<compile_context>
chip_gen: v7x
topology: tpu7x:2x2x1
jax: 0.10.0
libtpu: 0.0.40
codegen_flags: <defaults>
</compile_context>

<pallas_src>
import math
from functools import partial

import jax
import jax.numpy as jnp
from jax.experimental import pallas as pl


# ----------------------------- in-kernel helpers (traced inline) -----------------------------

def _layernorm(h, g, b):
    """LayerNorm over the last dim (matches nn.LayerNorm, eps=1e-5)."""
    mean = jnp.mean(h, axis=-1, keepdims=True)
    c = h - mean
    var = jnp.mean(c * c, axis=-1, keepdims=True)
    return c * jax.lax.rsqrt(var + 1e-5) * g + b


def _split_heads(x2, B, S, H, Dh):
    """(B*S, H*Dh) -> (H*B, S, Dh).

    Built from lane slices + a leading-dim stack + tile-boundary reshapes only
    (S is a multiple of 8 so the (H, B*S, Dh) -> (H*B, S, Dh) reshape is layout
    trivial); no minor-dim reshape and no sublane transpose is ever emitted.
    """
    stacked = jnp.stack([x2[:, h * Dh:(h + 1) * Dh] for h in range(H)], axis=0)  # (H, B*S, Dh)
    return stacked.reshape(H * B, S, Dh)


def _merge_heads(o3, B, S, H, Dh):
    """(H*B, S, Dh) -> (B*S, H*Dh) via leading-dim slices + one lane concat."""
    heads = [o3[h * B:(h + 1) * B] for h in range(H)]           # each (B, S, Dh)
    return jnp.concatenate(heads, axis=-1).reshape(B * S, H * Dh)


def _mha(q2, k2, v2, bias, wo, bo, *, B, Sq, Sk, H, Dh):
    """Multi-head attention + single output projection, fully VMEM/vreg resident.

    q2: (B*Sq, H*Dh), k2/v2: (B*Sk, H*Dh), bias: additive mask broadcastable to
    (H, B, Sq, Sk), wo: (H*Dh, D), bo: (1, D).  Returns (B*Sq, D).
    One batched score einsum, ONE softmax pass over all heads, ONE Wo matmul.
    """
    scale = 1.0 / math.sqrt(Dh)
    qh = _split_heads(q2, B, Sq, H, Dh)                         # (H*B, Sq, Dh)
    kh = _split_heads(k2, B, Sk, H, Dh)                         # (H*B, Sk, Dh)
    vh = _split_heads(v2, B, Sk, H, Dh)                         # (H*B, Sk, Dh)

    # contract on the last dims of both operands -> no k.T relayout
    s = jnp.einsum("bqd,bkd->bqk", qh, kh,
                   preferred_element_type=jnp.float32) * scale   # (H*B, Sq, Sk)

    # single softmax pass over every (head, batch) score tile; mask bias is hoisted
    s4 = s.reshape(H, B, Sq, Sk) + bias
    s4 = s4 - jnp.max(s4, axis=-1, keepdims=True)
    p4 = jnp.exp(s4)
    p4 = p4 * pl.reciprocal(jnp.sum(p4, axis=-1, keepdims=True), approx=True)
    p = p4.reshape(H * B, Sq, Sk)

    o = jnp.einsum("bqk,bkd->bqd", p, vh,
                   preferred_element_type=jnp.float32)           # (H*B, Sq, Dh)
    o2 = _merge_heads(o, B, Sq, H, Dh)                           # (B*Sq, D)
    # one full-width Wo matmul (K = D) instead of H K=Dh matmuls
    return jnp.dot(o2, wo, preferred_element_type=jnp.float32) + bo


def _encoder_layer(x, bias, wqkv, bqkv, wo, bo, g1, b1,
                   w1, bf1, w2, bf2, g2, b2, *, B, S, H, Dh):
    D = H * Dh
    # merged QKV matmul
    qkv = jnp.dot(x, wqkv, preferred_element_type=jnp.float32) + bqkv
    sa = _mha(qkv[:, 0:D], qkv[:, D:2 * D], qkv[:, 2 * D:3 * D], bias, wo, bo,
              B=B, Sq=S, Sk=S, H=H, Dh=Dh)
    h1 = _layernorm(x + sa, g1, b1)                              # dropout == identity (eval)
    f = jnp.maximum(jnp.dot(h1, w1, preferred_element_type=jnp.float32) + bf1, 0.0)
    f = jnp.dot(f, w2, preferred_element_type=jnp.float32) + bf2
    return _layernorm(h1 + f, g2, b2)


def _decoder_layer(x, enc_out, tgt_bias, cross_bias,
                   swqkv, sbqkv, swo, sbo, g1, b1,
                   cwq, cbq, cwkv, cbkv, cwo, cbo, g2, b2,
                   w1, bf1, w2, bf2, g3, b3, *, B, S, H, Dh):
    D = H * Dh
    # masked self-attention (merged QKV matmul)
    qkv = jnp.dot(x, swqkv, preferred_element_type=jnp.float32) + sbqkv
    sa = _mha(qkv[:, 0:D], qkv[:, D:2 * D], qkv[:, 2 * D:3 * D], tgt_bias, swo, sbo,
              B=B, Sq=S, Sk=S, H=H, Dh=Dh)
    h1 = _layernorm(x + sa, g1, b1)
    # cross-attention: Q from decoder stream, merged K/V from encoder output
    q = jnp.dot(h1, cwq, preferred_element_type=jnp.float32) + cbq
    kv = jnp.dot(enc_out, cwkv, preferred_element_type=jnp.float32) + cbkv
    ca = _mha(q, kv[:, 0:D], kv[:, D:2 * D], cross_bias, cwo, cbo,
              B=B, Sq=S, Sk=S, H=H, Dh=Dh)
    h2 = _layernorm(h1 + ca, g2, b2)
    # feed-forward
    f = jnp.maximum(jnp.dot(h2, w1, preferred_element_type=jnp.float32) + bf1, 0.0)
    f = jnp.dot(f, w2, preferred_element_type=jnp.float32) + bf2
    return _layernorm(h2 + f, g3, b3)


# ----------------------------- the single fused kernel -----------------------------

def _transformer_kernel(
        tok_ref, src_mask_ref, tgt_mask_ref, cross_mask_ref,
        enc_emb_ref, dec_emb_ref, pe_ref,
        # encoder params, stacked over layers (leading layer axis)
        e_wqkv_ref, e_bqkv_ref, e_wo_ref, e_bo_ref, e_g1_ref, e_b1_ref,
        e_w1_ref, e_bf1_ref, e_w2_ref, e_bf2_ref, e_g2_ref, e_b2_ref,
        # decoder params, stacked over layers
        d_swqkv_ref, d_sbqkv_ref, d_swo_ref, d_sbo_ref, d_g1_ref, d_b1_ref,
        d_cwq_ref, d_cbq_ref, d_cwkv_ref, d_cbkv_ref, d_cwo_ref, d_cbo_ref,
        d_g2_ref, d_b2_ref,
        d_w1_ref, d_bf1_ref, d_w2_ref, d_bf2_ref, d_g3_ref, d_b3_ref,
        fc_w_ref, fc_b_ref,
        o_ref,
        *, num_heads, num_layers, d_model, vocab_size, batch, seq):
    B, S, V, D = batch, seq, vocab_size, d_model
    H = num_heads
    Dh = D // H
    BS = B * S
    sqrt_d = math.sqrt(D)

    # ---- embedding gather as a one-hot MXU matmul (shared by encoder & decoder) ----
    tok = tok_ref[...]                                            # (B*S, 1) int32
    iota = jax.lax.broadcasted_iota(jnp.int32, (BS, V), 1)
    onehot = (tok == iota).astype(jnp.float32)                    # (B*S, V)

    pe = pe_ref[0:S, :]                                           # (S, D)

    # ---- masks -> additive biases, computed ONCE (hoisted out of every attention) ----
    # laid out as (., B, ., Sk) so they broadcast against the (H, B, Sq, Sk) scores
    src_bias = jnp.where(src_mask_ref[...] > 0.0, 0.0, -1e9).reshape(1, B, 1, S)
    cross_bias = jnp.where(cross_mask_ref[...] > 0.0, 0.0, -1e9).reshape(1, B, 1, S)
    tgt_bias = jnp.where(tgt_mask_ref[...] > 0.0, 0.0, -1e9)      # (1, 1, S, S)

    # ================= encoder =================
    x = jnp.dot(onehot, enc_emb_ref[...], preferred_element_type=jnp.float32) * sqrt_d
    x = (x.reshape(B, S, D) + pe[None, :, :]).reshape(BS, D)
    for l in range(num_layers):                                   # static unroll, weights stay in VMEM
        x = _encoder_layer(
            x, src_bias,
            e_wqkv_ref[l], e_bqkv_ref[l], e_wo_ref[l], e_bo_ref[l],
            e_g1_ref[l], e_b1_ref[l],
            e_w1_ref[l], e_bf1_ref[l], e_w2_ref[l], e_bf2_ref[l],
            e_g2_ref[l], e_b2_ref[l],
            B=B, S=S, H=H, Dh=Dh)
    enc_out = x                                                   # (B*S, D), never leaves VMEM

    # ================= decoder =================
    y = jnp.dot(onehot, dec_emb_ref[...], preferred_element_type=jnp.float32) * sqrt_d
    y = (y.reshape(B, S, D) + pe[None, :, :]).reshape(BS, D)
    for l in range(num_layers):
        y = _decoder_layer(
            y, enc_out, tgt_bias, cross_bias,
            d_swqkv_ref[l], d_sbqkv_ref[l], d_swo_ref[l], d_sbo_ref[l],
            d_g1_ref[l], d_b1_ref[l],
            d_cwq_ref[l], d_cbq_ref[l], d_cwkv_ref[l], d_cbkv_ref[l],
            d_cwo_ref[l], d_cbo_ref[l], d_g2_ref[l], d_b2_ref[l],
            d_w1_ref[l], d_bf1_ref[l], d_w2_ref[l], d_bf2_ref[l],
            d_g3_ref[l], d_b3_ref[l],
            B=B, S=S, H=H, Dh=Dh)

    # ---- final fc + log_softmax (logits never spill to HBM un-normalized) ----
    logits = jnp.dot(y, fc_w_ref[...], preferred_element_type=jnp.float32) + fc_b_ref[...]
    m = jnp.max(logits, axis=-1, keepdims=True)
    z = logits - m
    lse = jnp.log(jnp.sum(jnp.exp(z), axis=-1, keepdims=True))
    o_ref[...] = z - lse                                          # (B*S, V)


# ----------------------------- pallas_call wrapper -----------------------------

ENC_KEYS = ("wqkv", "bqkv", "wo", "bo", "g1", "b1",
            "w1", "bf1", "w2", "bf2", "g2", "b2")
DEC_KEYS = ("swqkv", "sbqkv", "swo", "sbo", "g1", "b1",
            "cwq", "cbq", "cwkv", "cbkv", "cwo", "cbo", "g2", "b2",
            "w1", "bf1", "w2", "bf2", "g3", "b3")


def transformer_forward(tokens, src_mask, tgt_mask, cross_mask, params,
                        *, num_heads, num_layers):
    """Full Transformer forward: ONE fused Pallas kernel (no grid; everything in VMEM)."""
    B, S = tokens.shape
    V, D = params["enc_emb"].shape
    assert D % num_heads == 0

    kernel = partial(_transformer_kernel, num_heads=num_heads, num_layers=num_layers,
                     d_model=D, vocab_size=V, batch=B, seq=S)

    out2d = pl.pallas_call(
        kernel,
        out_shape=jax.ShapeDtypeStruct((B * S, V), jnp.float32),
    )(tokens.reshape(B * S, 1).astype(jnp.int32),
      jnp.asarray(src_mask, jnp.float32),
      jnp.asarray(tgt_mask, jnp.float32),
      jnp.asarray(cross_mask, jnp.float32),
      params["enc_emb"], params["dec_emb"], params["pe"],
      *[params["enc"][k] for k in ENC_KEYS],
      *[params["dec"][k] for k in DEC_KEYS],
      params["fc_w"], params["fc_b"])
    return out2d.reshape(B, S, V)


# ----------------------------- parameter init -----------------------------

def sinusoidal_pe(max_len, d_model):
    pos = jnp.arange(max_len, dtype=jnp.float32)[:, None]
    div = jnp.exp(jnp.arange(0, d_model, 2, dtype=jnp.float32)
                  * (-math.log(10000.0) / d_model))
    pe = jnp.zeros((max_len, d_model), jnp.float32)
    pe = pe.at[:, 0::2].set(jnp.sin(pos * div))
    pe = pe.at[:, 1::2].set(jnp.cos(pos * div))
    return pe


def _dense(key, fan_in, fan_out):
    return 0.02 * jax.random.normal(key, (fan_in, fan_out), jnp.float32)


def _init_mha(key, d_model):
    ks = jax.random.split(key, 4)
    return tuple(_dense(k, d_model, d_model) for k in ks)          # wq, wk, wv, wo


def _init_enc_layer(key, d_model, d_ff):
    k_attn, k_ff1, k_ff2 = jax.random.split(key, 3)
    wq, wk, wv, wo = _init_mha(k_attn, d_model)
    zero_d = jnp.zeros((1, d_model), jnp.float32)
    ones_d = jnp.ones((1, d_model), jnp.float32)
    return {
        "wqkv": jnp.concatenate([wq, wk, wv], axis=1),             # merged (D, 3D) QKV
        "bqkv": jnp.zeros((1, 3 * d_model), jnp.float32),
        "wo": wo, "bo": zero_d,
        "g1": ones_d, "b1": zero_d,
        "w1": _dense(k_ff1, d_model, d_ff),
        "bf1": jnp.zeros((1, d_ff), jnp.float32),
        "w2": _dense(k_ff2, d_ff, d_model),
        "bf2": zero_d,
        "g2": ones_d, "b2": zero_d,
    }


def _init_dec_layer(key, d_model, d_ff):
    k_sa, k_ca, k_ff1, k_ff2 = jax.random.split(key, 4)
    swq, swk, swv, swo = _init_mha(k_sa, d_model)
    cwq, cwk, cwv, cwo = _init_mha(k_ca, d_model)
    zero_d = jnp.zeros((1, d_model), jnp.float32)
    ones_d = jnp.ones((1, d_model), jnp.float32)
    return {
        "swqkv": jnp.concatenate([swq, swk, swv], axis=1),
        "sbqkv": jnp.zeros((1, 3 * d_model), jnp.float32),
        "swo": swo, "sbo": zero_d,
        "g1": ones_d, "b1": zero_d,
        "cwq": cwq, "cbq": zero_d,
        "cwkv": jnp.concatenate([cwk, cwv], axis=1),               # merged (D, 2D) K/V
        "cbkv": jnp.zeros((1, 2 * d_model), jnp.float32),
        "cwo": cwo, "cbo": zero_d,
        "g2": ones_d, "b2": zero_d,
        "w1": _dense(k_ff1, d_model, d_ff),
        "bf1": jnp.zeros((1, d_ff), jnp.float32),
        "w2": _dense(k_ff2, d_ff, d_model),
        "bf2": zero_d,
        "g3": ones_d, "b3": zero_d,
    }


def _stack_layers(layer_dicts, keys):
    """Stack per-layer params along a leading layer axis (so the kernel indexes [l])."""
    return {k: jnp.stack([d[k] for d in layer_dicts], axis=0) for k in keys}


def init_params(key, vocab_size, d_model, num_layers, d_ff, max_seq_len):
    k_ee, k_de, k_enc, k_dec, k_fc = jax.random.split(key, 5)
    enc_layers = [_init_enc_layer(k, d_model, d_ff)
                  for k in jax.random.split(k_enc, num_layers)]
    dec_layers = [_init_dec_layer(k, d_model, d_ff)
                  for k in jax.random.split(k_dec, num_layers)]
    return {
        "enc_emb": 0.02 * jax.random.normal(k_ee, (vocab_size, d_model), jnp.float32),
        "dec_emb": 0.02 * jax.random.normal(k_de, (vocab_size, d_model), jnp.float32),
        "pe": sinusoidal_pe(max_seq_len, d_model),
        "enc": _stack_layers(enc_layers, ENC_KEYS),
        "dec": _stack_layers(dec_layers, DEC_KEYS),
        "fc_w": _dense(k_fc, d_model, vocab_size),
        "fc_b": jnp.zeros((1, vocab_size), jnp.float32),
    }


# ----------------------------- main -----------------------------

if __name__ == "__main__":
    VOCAB, D_MODEL, NUM_HEADS, NUM_LAYERS, D_FF, MAX_LEN = 16, 32, 4, 2, 64, 16
    B, S = 2, 8

    key = jax.random.PRNGKey(0)
    k_tok, k_par = jax.random.split(key)
    tokens = jax.random.randint(k_tok, (B, S), 0, VOCAB, dtype=jnp.int32)
    params = init_params(k_par, VOCAB, D_MODEL, NUM_LAYERS, D_FF, MAX_LEN)

    # masks: 1 = attend, 0 = masked (PyTorch masked_fill(mask == 0, -1e9) convention)
    src_mask = jnp.ones((B, 1, 1, S), jnp.float32)
    tgt_mask = jnp.tril(jnp.ones((S, S), jnp.float32))[None, None, :, :]
    cross_mask = jnp.ones((B, 1, 1, S), jnp.float32)

    fwd = jax.jit(partial(transformer_forward,
                          num_heads=NUM_HEADS, num_layers=NUM_LAYERS))
    out = fwd(tokens, src_mask, tgt_mask, cross_mask, params)
    out = jax.block_until_ready(out)

    assert out.shape == (B, S, VOCAB)
    assert bool(jnp.all(jnp.isfinite(out)))
    # log_softmax rows must exponentiate-and-sum to ~1
    assert jnp.allclose(jnp.sum(jnp.exp(out), axis=-1), 1.0, atol=1e-4)
    print("KERNEL_OK")
</pallas_src>

<mosaic_0001>
module attributes {stable_mosaic.version = 11 : i64} {
  func.func @_transformer_kernel(%arg0: memref<16x1xi32, #tpu.memory_space<vmem>>, %arg1: memref<2x1x1x8xf32, #tpu.memory_space<vmem>>, %arg2: memref<1x1x8x8xf32, #tpu.memory_space<vmem>>, %arg3: memref<2x1x1x8xf32, #tpu.memory_space<vmem>>, %arg4: memref<16x32xf32, #tpu.memory_space<vmem>>, %arg5: memref<16x32xf32, #tpu.memory_space<vmem>>, %arg6: memref<16x32xf32, #tpu.memory_space<vmem>>, %arg7: memref<2x32x96xf32, #tpu.memory_space<vmem>>, %arg8: memref<2x1x96xf32, #tpu.memory_space<vmem>>, %arg9: memref<2x32x32xf32, #tpu.memory_space<vmem>>, %arg10: memref<2x1x32xf32, #tpu.memory_space<vmem>>, %arg11: memref<2x1x32xf32, #tpu.memory_space<vmem>>, %arg12: memref<2x1x32xf32, #tpu.memory_space<vmem>>, %arg13: memref<2x32x64xf32, #tpu.memory_space<vmem>>, %arg14: memref<2x1x64xf32, #tpu.memory_space<vmem>>, %arg15: memref<2x64x32xf32, #tpu.memory_space<vmem>>, %arg16: memref<2x1x32xf32, #tpu.memory_space<vmem>>, %arg17: memref<2x1x32xf32, #tpu.memory_space<vmem>>, %arg18: memref<2x1x32xf32, #tpu.memory_space<vmem>>, %arg19: memref<2x32x96xf32, #tpu.memory_space<vmem>>, %arg20: memref<2x1x96xf32, #tpu.memory_space<vmem>>, %arg21: memref<2x32x32xf32, #tpu.memory_space<vmem>>, %arg22: memref<2x1x32xf32, #tpu.memory_space<vmem>>, %arg23: memref<2x1x32xf32, #tpu.memory_space<vmem>>, %arg24: memref<2x1x32xf32, #tpu.memory_space<vmem>>, %arg25: memref<2x32x32xf32, #tpu.memory_space<vmem>>, %arg26: memref<2x1x32xf32, #tpu.memory_space<vmem>>, %arg27: memref<2x32x64xf32, #tpu.memory_space<vmem>>, %arg28: memref<2x1x64xf32, #tpu.memory_space<vmem>>, %arg29: memref<2x32x32xf32, #tpu.memory_space<vmem>>, %arg30: memref<2x1x32xf32, #tpu.memory_space<vmem>>, %arg31: memref<2x1x32xf32, #tpu.memory_space<vmem>>, %arg32: memref<2x1x32xf32, #tpu.memory_space<vmem>>, %arg33: memref<2x32x64xf32, #tpu.memory_space<vmem>>, %arg34: memref<2x1x64xf32, #tpu.memory_space<vmem>>, %arg35: memref<2x64x32xf32, #tpu.memory_space<vmem>>, %arg36: memref<2x1x32xf32, #tpu.memory_space<vmem>>, %arg37: memref<2x1x32xf32, #tpu.memory_space<vmem>>, %arg38: memref<2x1x32xf32, #tpu.memory_space<vmem>>, %arg39: memref<32x16xf32, #tpu.memory_space<vmem>>, %arg40: memref<1x16xf32, #tpu.memory_space<vmem>>, %arg41: memref<16x16xf32, #tpu.memory_space<vmem>>) attributes {dimension_semantics = [], scalar_prefetch = 0 : i64, scratch_operands = 0 : i64, tpu.core_type = #tpu.core_type<tc>} {
    %c0 = arith.constant 0 : index
    %c0_0 = arith.constant 0 : index
    %0 = vector.load %arg0[%c0, %c0_0] : memref<16x1xi32, #tpu.memory_space<vmem>>, vector<16x1xi32>
    %1 = tpu.iota {dimensions = array<i32: 1>} : vector<16x16xi32>
    %2 = vector.broadcast %0 : vector<16x1xi32> to vector<16x16xi32>
    %3 = arith.cmpi eq, %2, %1 : vector<16x16xi32>
    %4 = arith.extui %3 : vector<16x16xi1> to vector<16x16xi32>
    %5 = arith.sitofp %4 : vector<16x16xi32> to vector<16x16xf32>
    %c0_1 = arith.constant 0 : index
    %c0_2 = arith.constant 0 : index
    %6 = vector.load %arg6[%c0_1, %c0_2] : memref<16x32xf32, #tpu.memory_space<vmem>>, vector<8x32xf32>
    %c0_3 = arith.constant 0 : index
    %c0_4 = arith.constant 0 : index
    %c0_5 = arith.constant 0 : index
    %c0_6 = arith.constant 0 : index
    %7 = vector.load %arg1[%c0_3, %c0_4, %c0_5, %c0_6] : memref<2x1x1x8xf32, #tpu.memory_space<vmem>>, vector<2x1x1x8xf32>
    %cst = arith.constant 0.000000e+00 : f32
    %8 = vector.broadcast %cst : f32 to vector<2x1x1x8xf32>
    %9 = arith.cmpf ogt, %7, %8 : vector<2x1x1x8xf32>
    %cst_7 = arith.constant 0.000000e+00 : f32
    %cst_8 = arith.constant -1.000000e+09 : f32
    %10 = vector.broadcast %cst_7 : f32 to vector<2x1x1x8xf32>
    %11 = vector.broadcast %cst_8 : f32 to vector<2x1x1x8xf32>
    %12 = arith.select %9, %10, %11 : vector<2x1x1x8xi1>, vector<2x1x1x8xf32>
    %13 = vector.shape_cast %12 : vector<2x1x1x8xf32> to vector<1x2x1x8xf32>
    %c0_9 = arith.constant 0 : index
    %c0_10 = arith.constant 0 : index
    %c0_11 = arith.constant 0 : index
    %c0_12 = arith.constant 0 : index
    %14 = vector.load %arg3[%c0_9, %c0_10, %c0_11, %c0_12] : memref<2x1x1x8xf32, #tpu.memory_space<vmem>>, vector<2x1x1x8xf32>
    %cst_13 = arith.constant 0.000000e+00 : f32
    %15 = vector.broadcast %cst_13 : f32 to vector<2x1x1x8xf32>
    %16 = arith.cmpf ogt, %14, %15 : vector<2x1x1x8xf32>
    %cst_14 = arith.constant 0.000000e+00 : f32
    %cst_15 = arith.constant -1.000000e+09 : f32
    %17 = vector.broadcast %cst_14 : f32 to vector<2x1x1x8xf32>
    %18 = vector.broadcast %cst_15 : f32 to vector<2x1x1x8xf32>
    %19 = arith.select %16, %17, %18 : vector<2x1x1x8xi1>, vector<2x1x1x8xf32>
    %20 = vector.shape_cast %19 : vector<2x1x1x8xf32> to vector<1x2x1x8xf32>
    %c0_16 = arith.constant 0 : index
    %c0_17 = arith.constant 0 : index
    %c0_18 = arith.constant 0 : index
    %c0_19 = arith.constant 0 : index
    %21 = vector.load %arg2[%c0_16, %c0_17, %c0_18, %c0_19] : memref<1x1x8x8xf32, #tpu.memory_space<vmem>>, vector<1x1x8x8xf32>
    %cst_20 = arith.constant 0.000000e+00 : f32
    %22 = vector.broadcast %cst_20 : f32 to vector<1x1x8x8xf32>
    %23 = arith.cmpf ogt, %21, %22 : vector<1x1x8x8xf32>
    %cst_21 = arith.constant 0.000000e+00 : f32
    %cst_22 = arith.constant -1.000000e+09 : f32
    %24 = vector.broadcast %cst_21 : f32 to vector<1x1x8x8xf32>
    %25 = vector.broadcast %cst_22 : f32 to vector<1x1x8x8xf32>
    %26 = arith.select %23, %24, %25 : vector<1x1x8x8xi1>, vector<1x1x8x8xf32>
    %c0_23 = arith.constant 0 : index
    %c0_24 = arith.constant 0 : index
    %27 = vector.load %arg4[%c0_23, %c0_24] : memref<16x32xf32, #tpu.memory_space<vmem>>, vector<16x32xf32>
    %cst_25 = arith.constant dense<0.000000e+00> : vector<16x32xf32>
    %28 = tpu.matmul %5, %27, %cst_25 {dimension_numbers = #tpu.dot_dimension_numbers<[1], [0], [0], [1], [0, 0, 1, 1], [], []>} : vector<16x16xf32>, vector<16x32xf32>, vector<16x32xf32> -> vector<16x32xf32>
    %cst_26 = arith.constant 5.65685415 : f32
    %29 = vector.broadcast %cst_26 : f32 to vector<16x32xf32>
    %30 = arith.mulf %28, %29 : vector<16x32xf32>
    %31 = vector.shape_cast %30 : vector<16x32xf32> to vector<2x8x32xf32>
    %32 = vector.shape_cast %6 : vector<8x32xf32> to vector<1x8x32xf32>
    %33 = vector.broadcast %32 : vector<1x8x32xf32> to vector<2x8x32xf32>
    %34 = arith.addf %31, %33 : vector<2x8x32xf32>
    %35 = vector.shape_cast %34 : vector<2x8x32xf32> to vector<16x32xf32>
    %c0_27 = arith.constant 0 : index
    %c0_28 = arith.constant 0 : index
    %c0_29 = arith.constant 0 : index
    %36 = vector.load %arg7[%c0_27, %c0_28, %c0_29] : memref<2x32x96xf32, #tpu.memory_space<vmem>>, vector<1x32x96xf32>
    %37 = vector.shape_cast %36 : vector<1x32x96xf32> to vector<32x96xf32>
    %c0_30 = arith.constant 0 : index
    %c0_31 = arith.constant 0 : index
    %c0_32 = arith.constant 0 : index
    %38 = vector.load %arg8[%c0_30, %c0_31, %c0_32] : memref<2x1x96xf32, #tpu.memory_space<vmem>>, vector<1x1x96xf32>
    %39 = vector.shape_cast %38 : vector<1x1x96xf32> to vector<1x96xf32>
    %c0_33 = arith.constant 0 : index
    %c0_34 = arith.constant 0 : index
    %c0_35 = arith.constant 0 : index
    %40 = vector.load %arg9[%c0_33, %c0_34, %c0_35] : memref<2x32x32xf32, #tpu.memory_space<vmem>>, vector<1x32x32xf32>
    %41 = vector.shape_cast %40 : vector<1x32x32xf32> to vector<32x32xf32>
    %c0_36 = arith.constant 0 : index
    %c0_37 = arith.constant 0 : index
    %c0_38 = arith.constant 0 : index
    %42 = vector.load %arg10[%c0_36, %c0_37, %c0_38] : memref<2x1x32xf32, #tpu.memory_space<vmem>>, vector<1x1x32xf32>
    %43 = vector.shape_cast %42 : vector<1x1x32xf32> to vector<1x32xf32>
    %c0_39 = arith.constant 0 : index
    %c0_40 = arith.constant 0 : index
    %c0_41 = arith.constant 0 : index
    %44 = vector.load %arg11[%c0_39, %c0_40, %c0_41] : memref<2x1x32xf32, #tpu.memory_space<vmem>>, vector<1x1x32xf32>
    %45 = vector.shape_cast %44 : vector<1x1x32xf32> to vector<1x32xf32>
    %c0_42 = arith.constant 0 : index
    %c0_43 = arith.constant 0 : index
    %c0_44 = arith.constant 0 : index
    %46 = vector.load %arg12[%c0_42, %c0_43, %c0_44] : memref<2x1x32xf32, #tpu.memory_space<vmem>>, vector<1x1x32xf32>
    %47 = vector.shape_cast %46 : vector<1x1x32xf32> to vector<1x32xf32>
    %c0_45 = arith.constant 0 : index
    %c0_46 = arith.constant 0 : index
    %c0_47 = arith.constant 0 : index
    %48 = vector.load %arg13[%c0_45, %c0_46, %c0_47] : memref<2x32x64xf32, #tpu.memory_space<vmem>>, vector<1x32x64xf32>
    %49 = vector.shape_cast %48 : vector<1x32x64xf32> to vector<32x64xf32>
    %c0_48 = arith.constant 0 : index
    %c0_49 = arith.constant 0 : index
    %c0_50 = arith.constant 0 : index
    %50 = vector.load %arg14[%c0_48, %c0_49, %c0_50] : memref<2x1x64xf32, #tpu.memory_space<vmem>>, vector<1x1x64xf32>
    %51 = vector.shape_cast %50 : vector<1x1x64xf32> to vector<1x64xf32>
    %c0_51 = arith.constant 0 : index
    %c0_52 = arith.constant 0 : index
    %c0_53 = arith.constant 0 : index
    %52 = vector.load %arg15[%c0_51, %c0_52, %c0_53] : memref<2x64x32xf32, #tpu.memory_space<vmem>>, vector<1x64x32xf32>
    %53 = vector.shape_cast %52 : vector<1x64x32xf32> to vector<64x32xf32>
    %c0_54 = arith.constant 0 : index
    %c0_55 = arith.constant 0 : index
    %c0_56 = arith.constant 0 : index
    %54 = vector.load %arg16[%c0_54, %c0_55, %c0_56] : memref<2x1x32xf32, #tpu.memory_space<vmem>>, vector<1x1x32xf32>
    %55 = vector.shape_cast %54 : vector<1x1x32xf32> to vector<1x32xf32>
    %c0_57 = arith.constant 0 : index
    %c0_58 = arith.constant 0 : index
    %c0_59 = arith.constant 0 : index
    %56 = vector.load %arg17[%c0_57, %c0_58, %c0_59] : memref<2x1x32xf32, #tpu.memory_space<vmem>>, vector<1x1x32xf32>
    %57 = vector.shape_cast %56 : vector<1x1x32xf32> to vector<1x32xf32>
    %c0_60 = arith.constant 0 : index
    %c0_61 = arith.constant 0 : index
    %c0_62 = arith.constant 0 : index
    %58 = vector.load %arg18[%c0_60, %c0_61, %c0_62] : memref<2x1x32xf32, #tpu.memory_space<vmem>>, vector<1x1x32xf32>
    %59 = vector.shape_cast %58 : vector<1x1x32xf32> to vector<1x32xf32>
    %cst_63 = arith.constant dense<0.000000e+00> : vector<16x96xf32>
    %60 = tpu.matmul %35, %37, %cst_63 {dimension_numbers = #tpu.dot_dimension_numbers<[1], [0], [0], [1], [0, 0, 1, 1], [], []>} : vector<16x32xf32>, vector<32x96xf32>, vector<16x96xf32> -> vector<16x96xf32>
    %61 = vector.broadcast %39 : vector<1x96xf32> to vector<16x96xf32>
    %62 = arith.addf %60, %61 : vector<16x96xf32>
    %63 = vector.extract_strided_slice %62 {offsets = [0, 0], sizes = [16, 32], strides = [1, 1]} : vector<16x96xf32> to vector<16x32xf32>
    %64 = vector.extract_strided_slice %62 {offsets = [0, 32], sizes = [16, 32], strides = [1, 1]} : vector<16x96xf32> to vector<16x32xf32>
    %65 = vector.extract_strided_slice %62 {offsets = [0, 64], sizes = [16, 32], strides = [1, 1]} : vector<16x96xf32> to vector<16x32xf32>
    %66 = vector.extract_strided_slice %63 {offsets = [0, 0], sizes = [16, 8], strides = [1, 1]} : vector<16x32xf32> to vector<16x8xf32>
    %67 = vector.extract_strided_slice %63 {offsets = [0, 8], sizes = [16, 8], strides = [1, 1]} : vector<16x32xf32> to vector<16x8xf32>
    %68 = vector.extract_strided_slice %63 {offsets = [0, 16], sizes = [16, 8], strides = [1, 1]} : vector<16x32xf32> to vector<16x8xf32>
    %69 = vector.extract_strided_slice %63 {offsets = [0, 24], sizes = [16, 8], strides = [1, 1]} : vector<16x32xf32> to vector<16x8xf32>
    %70 = vector.shape_cast %66 : vector<16x8xf32> to vector<1x16x8xf32>
    %71 = vector.shape_cast %67 : vector<16x8xf32> to vector<1x16x8xf32>
    %72 = vector.shape_cast %68 : vector<16x8xf32> to vector<1x16x8xf32>
    %73 = vector.shape_cast %69 : vector<16x8xf32> to vector<1x16x8xf32>
    %74 = tpu.concatenate %70, %71, %72, %73 in 0 : vector<1x16x8xf32>, vector<1x16x8xf32>, vector<1x16x8xf32>, vector<1x16x8xf32> -> vector<4x16x8xf32>
    %75 = vector.shape_cast %74 : vector<4x16x8xf32> to vector<8x8x8xf32>
    %76 = vector.extract_strided_slice %64 {offsets = [0, 0], sizes = [16, 8], strides = [1, 1]} : vector<16x32xf32> to vector<16x8xf32>
    %77 = vector.extract_strided_slice %64 {offsets = [0, 8], sizes = [16, 8], strides = [1, 1]} : vector<16x32xf32> to vector<16x8xf32>
    %78 = vector.extract_strided_slice %64 {offsets = [0, 16], sizes = [16, 8], strides = [1, 1]} : vector<16x32xf32> to vector<16x8xf32>
    %79 = vector.extract_strided_slice %64 {offsets = [0, 24], sizes = [16, 8], strides = [1, 1]} : vector<16x32xf32> to vector<16x8xf32>
    %80 = vector.shape_cast %76 : vector<16x8xf32> to vector<1x16x8xf32>
    %81 = vector.shape_cast %77 : vector<16x8xf32> to vector<1x16x8xf32>
    %82 = vector.shape_cast %78 : vector<16x8xf32> to vector<1x16x8xf32>
    %83 = vector.shape_cast %79 : vector<16x8xf32> to vector<1x16x8xf32>
    %84 = tpu.concatenate %80, %81, %82, %83 in 0 : vector<1x16x8xf32>, vector<1x16x8xf32>, vector<1x16x8xf32>, vector<1x16x8xf32> -> vector<4x16x8xf32>
    %85 = vector.shape_cast %84 : vector<4x16x8xf32> to vector<8x8x8xf32>
    %86 = vector.extract_strided_slice %65 {offsets = [0, 0], sizes = [16, 8], strides = [1, 1]} : vector<16x32xf32> to vector<16x8xf32>
    %87 = vector.extract_strided_slice %65 {offsets = [0, 8], sizes = [16, 8], strides = [1, 1]} : vector<16x32xf32> to vector<16x8xf32>
    %88 = vector.extract_strided_slice %65 {offsets = [0, 16], sizes = [16, 8], strides = [1, 1]} : vector<16x32xf32> to vector<16x8xf32>
    %89 = vector.extract_strided_slice %65 {offsets = [0, 24], sizes = [16, 8], strides = [1, 1]} : vector<16x32xf32> to vector<16x8xf32>
    %90 = vector.shape_cast %86 : vector<16x8xf32> to vector<1x16x8xf32>
    %91 = vector.shape_cast %87 : vector<16x8xf32> to vector<1x16x8xf32>
    %92 = vector.shape_cast %88 : vector<16x8xf32> to vector<1x16x8xf32>
    %93 = vector.shape_cast %89 : vector<16x8xf32> to vector<1x16x8xf32>
    %94 = tpu.concatenate %90, %91, %92, %93 in 0 : vector<1x16x8xf32>, vector<1x16x8xf32>, vector<1x16x8xf32>, vector<1x16x8xf32> -> vector<4x16x8xf32>
    %95 = vector.shape_cast %94 : vector<4x16x8xf32> to vector<8x8x8xf32>
    "tpu.trace_start"() <{level = 10 : i32, message = "bqd,bkd->bqk"}> : () -> ()
    %cst_64 = arith.constant dense<0.000000e+00> : vector<8x8x8xf32>
    %96 = tpu.matmul %75, %85, %cst_64 {dimension_numbers = #tpu.dot_dimension_numbers<[2], [2], [1], [1], [0, 0, 0, 1, 1, 1], [0], [0]>} : vector<8x8x8xf32>, vector<8x8x8xf32>, vector<8x8x8xf32> -> vector<8x8x8xf32>
    "tpu.trace_stop"() : () -> ()
    %cst_65 = arith.constant 0.353553385 : f32
    %97 = vector.broadcast %cst_65 : f32 to vector<8x8x8xf32>
    %98 = arith.mulf %96, %97 : vector<8x8x8xf32>
    %99 = vector.shape_cast %98 : vector<8x8x8xf32> to vector<4x2x8x8xf32>
    %100 = vector.broadcast %13 : vector<1x2x1x8xf32> to vector<4x2x8x8xf32>
    %101 = arith.addf %99, %100 : vector<4x2x8x8xf32>
    %cst_66 = arith.constant dense<0xFF800000> : vector<4x2x8xf32>
    %102 = vector.multi_reduction <maximumf>, %101, %cst_66 [3] : vector<4x2x8x8xf32> to vector<4x2x8xf32>
    %103 = vector.shape_cast %102 : vector<4x2x8xf32> to vector<4x2x8x1xf32>
    %104 = vector.broadcast %103 : vector<4x2x8x1xf32> to vector<4x2x8x8xf32>
    %105 = arith.subf %101, %104 : vector<4x2x8x8xf32>
    %106 = math.exp %105 : vector<4x2x8x8xf32>
    %cst_67 = arith.constant dense<0.000000e+00> : vector<4x2x8xf32>
    %107 = vector.multi_reduction <add>, %106, %cst_67 [3] : vector<4x2x8x8xf32> to vector<4x2x8xf32>
    %108 = vector.shape_cast %107 : vector<4x2x8xf32> to vector<4x2x8x1xf32>
    %109 = tpu.reciprocal %108 {approx = true} : vector<4x2x8x1xf32> -> vector<4x2x8x1xf32>
    %110 = vector.broadcast %109 : vector<4x2x8x1xf32> to vector<4x2x8x8xf32>
    %111 = arith.mulf %106, %110 : vector<4x2x8x8xf32>
    %112 = vector.shape_cast %111 : vector<4x2x8x8xf32> to vector<8x8x8xf32>
    "tpu.trace_start"() <{level = 10 : i32, message = "bqk,bkd->bqd"}> : () -> ()
    %cst_68 = arith.constant dense<0.000000e+00> : vector<8x8x8xf32>
    %113 = tpu.matmul %112, %95, %cst_68 {dimension_numbers = #tpu.dot_dimension_numbers<[2], [1], [1], [2], [0, 0, 0, 1, 1, 2], [0], [0]>} : vector<8x8x8xf32>, vector<8x8x8xf32>, vector<8x8x8xf32> -> vector<8x8x8xf32>
    "tpu.trace_stop"() : () -> ()
    %114 = vector.extract_strided_slice %113 {offsets = [0, 0, 0], sizes = [2, 8, 8], strides = [1, 1, 1]} : vector<8x8x8xf32> to vector<2x8x8xf32>
    %115 = vector.extract_strided_slice %113 {offsets = [2, 0, 0], sizes = [2, 8, 8], strides = [1, 1, 1]} : vector<8x8x8xf32> to vector<2x8x8xf32>
    %116 = vector.extract_strided_slice %113 {offsets = [4, 0, 0], sizes = [2, 8, 8], strides = [1, 1, 1]} : vector<8x8x8xf32> to vector<2x8x8xf32>
    %117 = vector.extract_strided_slice %113 {offsets = [6, 0, 0], sizes = [2, 8, 8], strides = [1, 1, 1]} : vector<8x8x8xf32> to vector<2x8x8xf32>
    %118 = tpu.concatenate %114, %115, %116, %117 in 2 : vector<2x8x8xf32>, vector<2x8x8xf32>, vector<2x8x8xf32>, vector<2x8x8xf32> -> vector<2x8x32xf32>
    %119 = vector.shape_cast %118 : vector<2x8x32xf32> to vector<16x32xf32>
    %cst_69 = arith.constant dense<0.000000e+00> : vector<16x32xf32>
    %120 = tpu.matmul %119, %41, %cst_69 {dimension_numbers = #tpu.dot_dimension_numbers<[1], [0], [0], [1], [0, 0, 1, 1], [], []>} : vector<16x32xf32>, vector<32x32xf32>, vector<16x32xf32> -> vector<16x32xf32>
    %121 = vector.broadcast %43 : vector<1x32xf32> to vector<16x32xf32>
    %122 = arith.addf %120, %121 : vector<16x32xf32>
    %123 = arith.addf %35, %122 : vector<16x32xf32>
    %cst_70 = arith.constant dense<0.000000e+00> : vector<16xf32>
    %124 = vector.multi_reduction <add>, %123, %cst_70 [1] : vector<16x32xf32> to vector<16xf32>
    %125 = vector.shape_cast %124 : vector<16xf32> to vector<16x1xf32>
    %cst_71 = arith.constant 3.200000e+01 : f32
    %126 = vector.broadcast %cst_71 : f32 to vector<16x1xf32>
    %127 = arith.divf %125, %126 : vector<16x1xf32>
    %128 = vector.broadcast %127 : vector<16x1xf32> to vector<16x32xf32>
    %129 = arith.subf %123, %128 : vector<16x32xf32>
    %130 = arith.mulf %129, %129 : vector<16x32xf32>
    %cst_72 = arith.constant dense<0.000000e+00> : vector<16xf32>
    %131 = vector.multi_reduction <add>, %130, %cst_72 [1] : vector<16x32xf32> to vector<16xf32>
    %132 = vector.shape_cast %131 : vector<16xf32> to vector<16x1xf32>
    %cst_73 = arith.constant 3.200000e+01 : f32
    %133 = vector.broadcast %cst_73 : f32 to vector<16x1xf32>
    %134 = arith.divf %132, %133 : vector<16x1xf32>
    %cst_74 = arith.constant 9.99999974E-6 : f32
    %135 = vector.broadcast %cst_74 : f32 to vector<16x1xf32>
    %136 = arith.addf %134, %135 : vector<16x1xf32>
    %137 = math.rsqrt %136 : vector<16x1xf32>
    %138 = vector.broadcast %137 : vector<16x1xf32> to vector<16x32xf32>
    %139 = arith.mulf %129, %138 : vector<16x32xf32>
    %140 = vector.broadcast %45 : vector<1x32xf32> to vector<16x32xf32>
    %141 = arith.mulf %139, %140 : vector<16x32xf32>
    %142 = vector.broadcast %47 : vector<1x32xf32> to vector<16x32xf32>
    %143 = arith.addf %141, %142 : vector<16x32xf32>
    %cst_75 = arith.constant dense<0.000000e+00> : vector<16x64xf32>
    %144 = tpu.matmul %143, %49, %cst_75 {dimension_numbers = #tpu.dot_dimension_numbers<[1], [0], [0], [1], [0, 0, 1, 1], [], []>} : vector<16x32xf32>, vector<32x64xf32>, vector<16x64xf32> -> vector<16x64xf32>
    %145 = vector.broadcast %51 : vector<1x64xf32> to vector<16x64xf32>
    %146 = arith.addf %144, %145 : vector<16x64xf32>
    %cst_76 = arith.constant 0.000000e+00 : f32
    %147 = vector.broadcast %cst_76 : f32 to vector<16x64xf32>
    %148 = arith.maximumf %146, %147 : vector<16x64xf32>
    %cst_77 = arith.constant dense<0.000000e+00> : vector<16x32xf32>
    %149 = tpu.matmul %148, %53, %cst_77 {dimension_numbers = #tpu.dot_dimension_numbers<[1], [0], [0], [1], [0, 0, 1, 1], [], []>} : vector<16x64xf32>, vector<64x32xf32>, vector<16x32xf32> -> vector<16x32xf32>
    %150 = vector.broadcast %55 : vector<1x32xf32> to vector<16x32xf32>
    %151 = arith.addf %149, %150 : vector<16x32xf32>
    %152 = arith.addf %143, %151 : vector<16x32xf32>
    %cst_78 = arith.constant dense<0.000000e+00> : vector<16xf32>
    %153 = vector.multi_reduction <add>, %152, %cst_78 [1] : vector<16x32xf32> to vector<16xf32>
    %154 = vector.shape_cast %153 : vector<16xf32> to vector<16x1xf32>
    %cst_79 = arith.constant 3.200000e+01 : f32
    %155 = vector.broadcast %cst_79 : f32 to vector<16x1xf32>
    %156 = arith.divf %154, %155 : vector<16x1xf32>
    %157 = vector.broadcast %156 : vector<16x1xf32> to vector<16x32xf32>
    %158 = arith.subf %152, %157 : vector<16x32xf32>
    %159 = arith.mulf %158, %158 : vector<16x32xf32>
    %cst_80 = arith.constant dense<0.000000e+00> : vector<16xf32>
    %160 = vector.multi_reduction <add>, %159, %cst_80 [1] : vector<16x32xf32> to vector<16xf32>
    %161 = vector.shape_cast %160 : vector<16xf32> to vector<16x1xf32>
    %cst_81 = arith.constant 3.200000e+01 : f32
    %162 = vector.broadcast %cst_81 : f32 to vector<16x1xf32>
    %163 = arith.divf %161, %162 : vector<16x1xf32>
    %cst_82 = arith.constant 9.99999974E-6 : f32
    %164 = vector.broadcast %cst_82 : f32 to vector<16x1xf32>
    %165 = arith.addf %163, %164 : vector<16x1xf32>
    %166 = math.rsqrt %165 : vector<16x1xf32>
    %167 = vector.broadcast %166 : vector<16x1xf32> to vector<16x32xf32>
    %168 = arith.mulf %158, %167 : vector<16x32xf32>
    %169 = vector.broadcast %57 : vector<1x32xf32> to vector<16x32xf32>
    %170 = arith.mulf %168, %169 : vector<16x32xf32>
    %171 = vector.broadcast %59 : vector<1x32xf32> to vector<16x32xf32>
    %172 = arith.addf %170, %171 : vector<16x32xf32>
    %c1 = arith.constant 1 : index
    %c0_83 = arith.constant 0 : index
    %c0_84 = arith.constant 0 : index
    %173 = vector.load %arg7[%c1, %c0_83, %c0_84] : memref<2x32x96xf32, #tpu.memory_space<vmem>>, vector<1x32x96xf32>
    %174 = vector.shape_cast %173 : vector<1x32x96xf32> to vector<32x96xf32>
    %c1_85 = arith.constant 1 : index
    %c0_86 = arith.constant 0 : index
    %c0_87 = arith.constant 0 : index
    %175 = vector.load %arg8[%c1_85, %c0_86, %c0_87] : memref<2x1x96xf32, #tpu.memory_space<vmem>>, vector<1x1x96xf32>
    %176 = vector.shape_cast %175 : vector<1x1x96xf32> to vector<1x96xf32>
    %c1_88 = arith.constant 1 : index
    %c0_89 = arith.constant 0 : index
    %c0_90 = arith.constant 0 : index
    %177 = vector.load %arg9[%c1_88, %c0_89, %c0_90] : memref<2x32x32xf32, #tpu.memory_space<vmem>>, vector<1x32x32xf32>
    %178 = vector.shape_cast %177 : vector<1x32x32xf32> to vector<32x32xf32>
    %c1_91 = arith.constant 1 : index
    %c0_92 = arith.constant 0 : index
    %c0_93 = arith.constant 0 : index
    %179 = vector.load %arg10[%c1_91, %c0_92, %c0_93] : memref<2x1x32xf32, #tpu.memory_space<vmem>>, vector<1x1x32xf32>
    %180 = vector.shape_cast %179 : vector<1x1x32xf32> to vector<1x32xf32>
    %c1_94 = arith.constant 1 : index
    %c0_95 = arith.constant 0 : index
    %c0_96 = arith.constant 0 : index
    %181 = vector.load %arg11[%c1_94, %c0_95, %c0_96] : memref<2x1x32xf32, #tpu.memory_space<vmem>>, vector<1x1x32xf32>
    %182 = vector.shape_cast %181 : vector<1x1x32xf32> to vector<1x32xf32>
    %c1_97 = arith.constant 1 : index
    %c0_98 = arith.constant 0 : index
    %c0_99 = arith.constant 0 : index
    %183 = vector.load %arg12[%c1_97, %c0_98, %c0_99] : memref<2x1x32xf32, #tpu.memory_space<vmem>>, vector<1x1x32xf32>
    %184 = vector.shape_cast %183 : vector<1x1x32xf32> to vector<1x32xf32>
    %c1_100 = arith.constant 1 : index
    %c0_101 = arith.constant 0 : index
    %c0_102 = arith.constant 0 : index
    %185 = vector.load %arg13[%c1_100, %c0_101, %c0_102] : memref<2x32x64xf32, #tpu.memory_space<vmem>>, vector<1x32x64xf32>
    %186 = vector.shape_cast %185 : vector<1x32x64xf32> to vector<32x64xf32>
    %c1_103 = arith.constant 1 : index
    %c0_104 = arith.constant 0 : index
    %c0_105 = arith.constant 0 : index
    %187 = vector.load %arg14[%c1_103, %c0_104, %c0_105] : memref<2x1x64xf32, #tpu.memory_space<vmem>>, vector<1x1x64xf32>
    %188 = vector.shape_cast %187 : vector<1x1x64xf32> to vector<1x64xf32>
    %c1_106 = arith.constant 1 : index
    %c0_107 = arith.constant 0 : index
    %c0_108 = arith.constant 0 : index
    %189 = vector.load %arg15[%c1_106, %c0_107, %c0_108] : memref<2x64x32xf32, #tpu.memory_space<vmem>>, vector<1x64x32xf32>
    %190 = vector.shape_cast %189 : vector<1x64x32xf32> to vector<64x32xf32>
    %c1_109 = arith.constant 1 : index
    %c0_110 = arith.constant 0 : index
    %c0_111 = arith.constant 0 : index
    %191 = vector.load %arg16[%c1_109, %c0_110, %c0_111] : memref<2x1x32xf32, #tpu.memory_space<vmem>>, vector<1x1x32xf32>
    %192 = vector.shape_cast %191 : vector<1x1x32xf32> to vector<1x32xf32>
    %c1_112 = arith.constant 1 : index
    %c0_113 = arith.constant 0 : index
    %c0_114 = arith.constant 0 : index
    %193 = vector.load %arg17[%c1_112, %c0_113, %c0_114] : memref<2x1x32xf32, #tpu.memory_space<vmem>>, vector<1x1x32xf32>
    %194 = vector.shape_cast %193 : vector<1x1x32xf32> to vector<1x32xf32>
    %c1_115 = arith.constant 1 : index
    %c0_116 = arith.constant 0 : index
    %c0_117 = arith.constant 0 : index
    %195 = vector.load %arg18[%c1_115, %c0_116, %c0_117] : memref<2x1x32xf32, #tpu.memory_space<vmem>>, vector<1x1x32xf32>
    %196 = vector.shape_cast %195 : vector<1x1x32xf32> to vector<1x32xf32>
    %cst_118 = arith.constant dense<0.000000e+00> : vector<16x96xf32>
    %197 = tpu.matmul %172, %174, %cst_118 {dimension_numbers = #tpu.dot_dimension_numbers<[1], [0], [0], [1], [0, 0, 1, 1], [], []>} : vector<16x32xf32>, vector<32x96xf32>, vector<16x96xf32> -> vector<16x96xf32>
    %198 = vector.broadcast %176 : vector<1x96xf32> to vector<16x96xf32>
    %199 = arith.addf %197, %198 : vector<16x96xf32>
    %200 = vector.extract_strided_slice %199 {offsets = [0, 0], sizes = [16, 32], strides = [1, 1]} : vector<16x96xf32> to vector<16x32xf32>
    %201 = vector.extract_strided_slice %199 {offsets = [0, 32], sizes = [16, 32], strides = [1, 1]} : vector<16x96xf32> to vector<16x32xf32>
    %202 = vector.extract_strided_slice %199 {offsets = [0, 64], sizes = [16, 32], strides = [1, 1]} : vector<16x96xf32> to vector<16x32xf32>
    %203 = vector.extract_strided_slice %200 {offsets = [0, 0], sizes = [16, 8], strides = [1, 1]} : vector<16x32xf32> to vector<16x8xf32>
    %204 = vector.extract_strided_slice %200 {offsets = [0, 8], sizes = [16, 8], strides = [1, 1]} : vector<16x32xf32> to vector<16x8xf32>
    %205 = vector.extract_strided_slice %200 {offsets = [0, 16], sizes = [16, 8], strides = [1, 1]} : vector<16x32xf32> to vector<16x8xf32>
    %206 = vector.extract_strided_slice %200 {offsets = [0, 24], sizes = [16, 8], strides = [1, 1]} : vector<16x32xf32> to vector<16x8xf32>
    %207 = vector.shape_cast %203 : vector<16x8xf32> to vector<1x16x8xf32>
    %208 = vector.shape_cast %204 : vector<16x8xf32> to vector<1x16x8xf32>
    %209 = vector.shape_cast %205 : vector<16x8xf32> to vector<1x16x8xf32>
    %210 = vector.shape_cast %206 : vector<16x8xf32> to vector<1x16x8xf32>
    %211 = tpu.concatenate %207, %208, %209, %210 in 0 : vector<1x16x8xf32>, vector<1x16x8xf32>, vector<1x16x8xf32>, vector<1x16x8xf32> -> vector<4x16x8xf32>
    %212 = vector.shape_cast %211 : vector<4x16x8xf32> to vector<8x8x8xf32>
    %213 = vector.extract_strided_slice %201 {offsets = [0, 0], sizes = [16, 8], strides = [1, 1]} : vector<16x32xf32> to vector<16x8xf32>
    %214 = vector.extract_strided_slice %201 {offsets = [0, 8], sizes = [16, 8], strides = [1, 1]} : vector<16x32xf32> to vector<16x8xf32>
    %215 = vector.extract_strided_slice %201 {offsets = [0, 16], sizes = [16, 8], strides = [1, 1]} : vector<16x32xf32> to vector<16x8xf32>
    %216 = vector.extract_strided_slice %201 {offsets = [0, 24], sizes = [16, 8], strides = [1, 1]} : vector<16x32xf32> to vector<16x8xf32>
    %217 = vector.shape_cast %213 : vector<16x8xf32> to vector<1x16x8xf32>
    %218 = vector.shape_cast %214 : vector<16x8xf32> to vector<1x16x8xf32>
    %219 = vector.shape_cast %215 : vector<16x8xf32> to vector<1x16x8xf32>
    %220 = vector.shape_cast %216 : vector<16x8xf32> to vector<1x16x8xf32>
    %221 = tpu.concatenate %217, %218, %219, %220 in 0 : vector<1x16x8xf32>, vector<1x16x8xf32>, vector<1x16x8xf32>, vector<1x16x8xf32> -> vector<4x16x8xf32>
    %222 = vector.shape_cast %221 : vector<4x16x8xf32> to vector<8x8x8xf32>
    %223 = vector.extract_strided_slice %202 {offsets = [0, 0], sizes = [16, 8], strides = [1, 1]} : vector<16x32xf32> to vector<16x8xf32>
    %224 = vector.extract_strided_slice %202 {offsets = [0, 8], sizes = [16, 8], strides = [1, 1]} : vector<16x32xf32> to vector<16x8xf32>
    %225 = vector.extract_strided_slice %202 {offsets = [0, 16], sizes = [16, 8], strides = [1, 1]} : vector<16x32xf32> to vector<16x8xf32>
    %226 = vector.extract_strided_slice %202 {offsets = [0, 24], sizes = [16, 8], strides = [1, 1]} : vector<16x32xf32> to vector<16x8xf32>
    %227 = vector.shape_cast %223 : vector<16x8xf32> to vector<1x16x8xf32>
    %228 = vector.shape_cast %224 : vector<16x8xf32> to vector<1x16x8xf32>
    %229 = vector.shape_cast %225 : vector<16x8xf32> to vector<1x16x8xf32>
    %230 = vector.shape_cast %226 : vector<16x8xf32> to vector<1x16x8xf32>
    %231 = tpu.concatenate %227, %228, %229, %230 in 0 : vector<1x16x8xf32>, vector<1x16x8xf32>, vector<1x16x8xf32>, vector<1x16x8xf32> -> vector<4x16x8xf32>
    %232 = vector.shape_cast %231 : vector<4x16x8xf32> to vector<8x8x8xf32>
    "tpu.trace_start"() <{level = 10 : i32, message = "bqd,bkd->bqk"}> : () -> ()
    %cst_119 = arith.constant dense<0.000000e+00> : vector<8x8x8xf32>
    %233 = tpu.matmul %212, %222, %cst_119 {dimension_numbers = #tpu.dot_dimension_numbers<[2], [2], [1], [1], [0, 0, 0, 1, 1, 1], [0], [0]>} : vector<8x8x8xf32>, vector<8x8x8xf32>, vector<8x8x8xf32> -> vector<8x8x8xf32>
    "tpu.trace_stop"() : () -> ()
    %cst_120 = arith.constant 0.353553385 : f32
    %234 = vector.broadcast %cst_120 : f32 to vector<8x8x8xf32>
    %235 = arith.mulf %233, %234 : vector<8x8x8xf32>
    %236 = vector.shape_cast %235 : vector<8x8x8xf32> to vector<4x2x8x8xf32>
    %237 = vector.broadcast %13 : vector<1x2x1x8xf32> to vector<4x2x8x8xf32>
    %238 = arith.addf %236, %237 : vector<4x2x8x8xf32>
    %cst_121 = arith.constant dense<0xFF800000> : vector<4x2x8xf32>
    %239 = vector.multi_reduction <maximumf>, %238, %cst_121 [3] : vector<4x2x8x8xf32> to vector<4x2x8xf32>
    %240 = vector.shape_cast %239 : vector<4x2x8xf32> to vector<4x2x8x1xf32>
    %241 = vector.broadcast %240 : vector<4x2x8x1xf32> to vector<4x2x8x8xf32>
    %242 = arith.subf %238, %241 : vector<4x2x8x8xf32>
    %243 = math.exp %242 : vector<4x2x8x8xf32>
    %cst_122 = arith.constant dense<0.000000e+00> : vector<4x2x8xf32>
    %244 = vector.multi_reduction <add>, %243, %cst_122 [3] : vector<4x2x8x8xf32> to vector<4x2x8xf32>
    %245 = vector.shape_cast %244 : vector<4x2x8xf32> to vector<4x2x8x1xf32>
    %246 = tpu.reciprocal %245 {approx = true} : vector<4x2x8x1xf32> -> vector<4x2x8x1xf32>
    %247 = vector.broadcast %246 : vector<4x2x8x1xf32> to vector<4x2x8x8xf32>
    %248 = arith.mulf %243, %247 : vector<4x2x8x8xf32>
    %249 = vector.shape_cast %248 : vector<4x2x8x8xf32> to vector<8x8x8xf32>
    "tpu.trace_start"() <{level = 10 : i32, message = "bqk,bkd->bqd"}> : () -> ()
    %cst_123 = arith.constant dense<0.000000e+00> : vector<8x8x8xf32>
    %250 = tpu.matmul %249, %232, %cst_123 {dimension_numbers = #tpu.dot_dimension_numbers<[2], [1], [1], [2], [0, 0, 0, 1, 1, 2], [0], [0]>} : vector<8x8x8xf32>, vector<8x8x8xf32>, vector<8x8x8xf32> -> vector<8x8x8xf32>
    "tpu.trace_stop"() : () -> ()
    %251 = vector.extract_strided_slice %250 {offsets = [0, 0, 0], sizes = [2, 8, 8], strides = [1, 1, 1]} : vector<8x8x8xf32> to vector<2x8x8xf32>
    %252 = vector.extract_strided_slice %250 {offsets = [2, 0, 0], sizes = [2, 8, 8], strides = [1, 1, 1]} : vector<8x8x8xf32> to vector<2x8x8xf32>
    %253 = vector.extract_strided_slice %250 {offsets = [4, 0, 0], sizes = [2, 8, 8], strides = [1, 1, 1]} : vector<8x8x8xf32> to vector<2x8x8xf32>
    %254 = vector.extract_strided_slice %250 {offsets = [6, 0, 0], sizes = [2, 8, 8], strides = [1, 1, 1]} : vector<8x8x8xf32> to vector<2x8x8xf32>
    %255 = tpu.concatenate %251, %252, %253, %254 in 2 : vector<2x8x8xf32>, vector<2x8x8xf32>, vector<2x8x8xf32>, vector<2x8x8xf32> -> vector<2x8x32xf32>
    %256 = vector.shape_cast %255 : vector<2x8x32xf32> to vector<16x32xf32>
    %cst_124 = arith.constant dense<0.000000e+00> : vector<16x32xf32>
    %257 = tpu.matmul %256, %178, %cst_124 {dimension_numbers = #tpu.dot_dimension_numbers<[1], [0], [0], [1], [0, 0, 1, 1], [], []>} : vector<16x32xf32>, vector<32x32xf32>, vector<16x32xf32> -> vector<16x32xf32>
    %258 = vector.broadcast %180 : vector<1x32xf32> to vector<16x32xf32>
    %259 = arith.addf %257, %258 : vector<16x32xf32>
    %260 = arith.addf %172, %259 : vector<16x32xf32>
    %cst_125 = arith.constant dense<0.000000e+00> : vector<16xf32>
    %261 = vector.multi_reduction <add>, %260, %cst_125 [1] : vector<16x32xf32> to vector<16xf32>
    %262 = vector.shape_cast %261 : vector<16xf32> to vector<16x1xf32>
    %cst_126 = arith.constant 3.200000e+01 : f32
    %263 = vector.broadcast %cst_126 : f32 to vector<16x1xf32>
    %264 = arith.divf %262, %263 : vector<16x1xf32>
    %265 = vector.broadcast %264 : vector<16x1xf32> to vector<16x32xf32>
    %266 = arith.subf %260, %265 : vector<16x32xf32>
    %267 = arith.mulf %266, %266 : vector<16x32xf32>
    %cst_127 = arith.constant dense<0.000000e+00> : vector<16xf32>
    %268 = vector.multi_reduction <add>, %267, %cst_127 [1] : vector<16x32xf32> to vector<16xf32>
    %269 = vector.shape_cast %268 : vector<16xf32> to vector<16x1xf32>
    %cst_128 = arith.constant 3.200000e+01 : f32
    %270 = vector.broadcast %cst_128 : f32 to vector<16x1xf32>
    %271 = arith.divf %269, %270 : vector<16x1xf32>
    %cst_129 = arith.constant 9.99999974E-6 : f32
    %272 = vector.broadcast %cst_129 : f32 to vector<16x1xf32>
    %273 = arith.addf %271, %272 : vector<16x1xf32>
    %274 = math.rsqrt %273 : vector<16x1xf32>
    %275 = vector.broadcast %274 : vector<16x1xf32> to vector<16x32xf32>
    %276 = arith.mulf %266, %275 : vector<16x32xf32>
    %277 = vector.broadcast %182 : vector<1x32xf32> to vector<16x32xf32>
    %278 = arith.mulf %276, %277 : vector<16x32xf32>
    %279 = vector.broadcast %184 : vector<1x32xf32> to vector<16x32xf32>
    %280 = arith.addf %278, %279 : vector<16x32xf32>
    %cst_130 = arith.constant dense<0.000000e+00> : vector<16x64xf32>
    %281 = tpu.matmul %280, %186, %cst_130 {dimension_numbers = #tpu.dot_dimension_numbers<[1], [0], [0], [1], [0, 0, 1, 1], [], []>} : vector<16x32xf32>, vector<32x64xf32>, vector<16x64xf32> -> vector<16x64xf32>
    %282 = vector.broadcast %188 : vector<1x64xf32> to vector<16x64xf32>
    %283 = arith.addf %281, %282 : vector<16x64xf32>
    %cst_131 = arith.constant 0.000000e+00 : f32
    %284 = vector.broadcast %cst_131 : f32 to vector<16x64xf32>
    %285 = arith.maximumf %283, %284 : vector<16x64xf32>
    %cst_132 = arith.constant dense<0.000000e+00> : vector<16x32xf32>
    %286 = tpu.matmul %285, %190, %cst_132 {dimension_numbers = #tpu.dot_dimension_numbers<[1], [0], [0], [1], [0, 0, 1, 1], [], []>} : vector<16x64xf32>, vector<64x32xf32>, vector<16x32xf32> -> vector<16x32xf32>
    %287 = vector.broadcast %192 : vector<1x32xf32> to vector<16x32xf32>
    %288 = arith.addf %286, %287 : vector<16x32xf32>
    %289 = arith.addf %280, %288 : vector<16x32xf32>
    %cst_133 = arith.constant dense<0.000000e+00> : vector<16xf32>
    %290 = vector.multi_reduction <add>, %289, %cst_133 [1] : vector<16x32xf32> to vector<16xf32>
    %291 = vector.shape_cast %290 : vector<16xf32> to vector<16x1xf32>
    %cst_134 = arith.constant 3.200000e+01 : f32
    %292 = vector.broadcast %cst_134 : f32 to vector<16x1xf32>
    %293 = arith.divf %291, %292 : vector<16x1xf32>
    %294 = vector.broadcast %293 : vector<16x1xf32> to vector<16x32xf32>
    %295 = arith.subf %289, %294 : vector<16x32xf32>
    %296 = arith.mulf %295, %295 : vector<16x32xf32>
    %cst_135 = arith.constant dense<0.000000e+00> : vector<16xf32>
    %297 = vector.multi_reduction <add>, %296, %cst_135 [1] : vector<16x32xf32> to vector<16xf32>
    %298 = vector.shape_cast %297 : vector<16xf32> to vector<16x1xf32>
    %cst_136 = arith.constant 3.200000e+01 : f32
    %299 = vector.broadcast %cst_136 : f32 to vector<16x1xf32>
    %300 = arith.divf %298, %299 : vector<16x1xf32>
    %cst_137 = arith.constant 9.99999974E-6 : f32
    %301 = vector.broadcast %cst_137 : f32 to vector<16x1xf32>
    %302 = arith.addf %300, %301 : vector<16x1xf32>
    %303 = math.rsqrt %302 : vector<16x1xf32>
    %304 = vector.broadcast %303 : vector<16x1xf32> to vector<16x32xf32>
    %305 = arith.mulf %295, %304 : vector<16x32xf32>
    %306 = vector.broadcast %194 : vector<1x32xf32> to vector<16x32xf32>
    %307 = arith.mulf %305, %306 : vector<16x32xf32>
    %308 = vector.broadcast %196 : vector<1x32xf32> to vector<16x32xf32>
    %309 = arith.addf %307, %308 : vector<16x32xf32>
    %c0_138 = arith.constant 0 : index
    %c0_139 = arith.constant 0 : index
    %310 = vector.load %arg5[%c0_138, %c0_139] : memref<16x32xf32, #tpu.memory_space<vmem>>, vector<16x32xf32>
    %cst_140 = arith.constant dense<0.000000e+00> : vector<16x32xf32>
    %311 = tpu.matmul %5, %310, %cst_140 {dimension_numbers = #tpu.dot_dimension_numbers<[1], [0], [0], [1], [0, 0, 1, 1], [], []>} : vector<16x16xf32>, vector<16x32xf32>, vector<16x32xf32> -> vector<16x32xf32>
    %cst_141 = arith.constant 5.65685415 : f32
    %312 = vector.broadcast %cst_141 : f32 to vector<16x32xf32>
    %313 = arith.mulf %311, %312 : vector<16x32xf32>
    %314 = vector.shape_cast %313 : vector<16x32xf32> to vector<2x8x32xf32>
    %315 = vector.shape_cast %6 : vector<8x32xf32> to vector<1x8x32xf32>
    %316 = vector.broadcast %315 : vector<1x8x32xf32> to vector<2x8x32xf32>
    %317 = arith.addf %314, %316 : vector<2x8x32xf32>
    %318 = vector.shape_cast %317 : vector<2x8x32xf32> to vector<16x32xf32>
    %c0_142 = arith.constant 0 : index
    %c0_143 = arith.constant 0 : index
    %c0_144 = arith.constant 0 : index
    %319 = vector.load %arg19[%c0_142, %c0_143, %c0_144] : memref<2x32x96xf32, #tpu.memory_space<vmem>>, vector<1x32x96xf32>
    %320 = vector.shape_cast %319 : vector<1x32x96xf32> to vector<32x96xf32>
    %c0_145 = arith.constant 0 : index
    %c0_146 = arith.constant 0 : index
    %c0_147 = arith.constant 0 : index
    %321 = vector.load %arg20[%c0_145, %c0_146, %c0_147] : memref<2x1x96xf32, #tpu.memory_space<vmem>>, vector<1x1x96xf32>
    %322 = vector.shape_cast %321 : vector<1x1x96xf32> to vector<1x96xf32>
    %c0_148 = arith.constant 0 : index
    %c0_149 = arith.constant 0 : index
    %c0_150 = arith.constant 0 : index
    %323 = vector.load %arg21[%c0_148, %c0_149, %c0_150] : memref<2x32x32xf32, #tpu.memory_space<vmem>>, vector<1x32x32xf32>
    %324 = vector.shape_cast %323 : vector<1x32x32xf32> to vector<32x32xf32>
    %c0_151 = arith.constant 0 : index
    %c0_152 = arith.constant 0 : index
    %c0_153 = arith.constant 0 : index
    %325 = vector.load %arg22[%c0_151, %c0_152, %c0_153] : memref<2x1x32xf32, #tpu.memory_space<vmem>>, vector<1x1x32xf32>
    %326 = vector.shape_cast %325 : vector<1x1x32xf32> to vector<1x32xf32>
    %c0_154 = arith.constant 0 : index
    %c0_155 = arith.constant 0 : index
    %c0_156 = arith.constant 0 : index
    %327 = vector.load %arg23[%c0_154, %c0_155, %c0_156] : memref<2x1x32xf32, #tpu.memory_space<vmem>>, vector<1x1x32xf32>
    %328 = vector.shape_cast %327 : vector<1x1x32xf32> to vector<1x32xf32>
    %c0_157 = arith.constant 0 : index
    %c0_158 = arith.constant 0 : index
    %c0_159 = arith.constant 0 : index
    %329 = vector.load %arg24[%c0_157, %c0_158, %c0_159] : memref<2x1x32xf32, #tpu.memory_space<vmem>>, vector<1x1x32xf32>
    %330 = vector.shape_cast %329 : vector<1x1x32xf32> to vector<1x32xf32>
    %c0_160 = arith.constant 0 : index
    %c0_161 = arith.constant 0 : index
    %c0_162 = arith.constant 0 : index
    %331 = vector.load %arg25[%c0_160, %c0_161, %c0_162] : memref<2x32x32xf32, #tpu.memory_space<vmem>>, vector<1x32x32xf32>
    %332 = vector.shape_cast %331 : vector<1x32x32xf32> to vector<32x32xf32>
    %c0_163 = arith.constant 0 : index
    %c0_164 = arith.constant 0 : index
    %c0_165 = arith.constant 0 : index
    %333 = vector.load %arg26[%c0_163, %c0_164, %c0_165] : memref<2x1x32xf32, #tpu.memory_space<vmem>>, vector<1x1x32xf32>
    %334 = vector.shape_cast %333 : vector<1x1x32xf32> to vector<1x32xf32>
    %c0_166 = arith.constant 0 : index
    %c0_167 = arith.constant 0 : index
    %c0_168 = arith.constant 0 : index
    %335 = vector.load %arg27[%c0_166, %c0_167, %c0_168] : memref<2x32x64xf32, #tpu.memory_space<vmem>>, vector<1x32x64xf32>
    %336 = vector.shape_cast %335 : vector<1x32x64xf32> to vector<32x64xf32>
    %c0_169 = arith.constant 0 : index
    %c0_170 = arith.constant 0 : index
    %c0_171 = arith.constant 0 : index
    %337 = vector.load %arg28[%c0_169, %c0_170, %c0_171] : memref<2x1x64xf32, #tpu.memory_space<vmem>>, vector<1x1x64xf32>
    %338 = vector.shape_cast %337 : vector<1x1x64xf32> to vector<1x64xf32>
    %c0_172 = arith.constant 0 : index
    %c0_173 = arith.constant 0 : index
    %c0_174 = arith.constant 0 : index
    %339 = vector.load %arg29[%c0_172, %c0_173, %c0_174] : memref<2x32x32xf32, #tpu.memory_space<vmem>>, vector<1x32x32xf32>
    %340 = vector.shape_cast %339 : vector<1x32x32xf32> to vector<32x32xf32>
    %c0_175 = arith.constant 0 : index
    %c0_176 = arith.constant 0 : index
    %c0_177 = arith.constant 0 : index
    %341 = vector.load %arg30[%c0_175, %c0_176, %c0_177] : memref<2x1x32xf32, #tpu.memory_space<vmem>>, vector<1x1x32xf32>
    %342 = vector.shape_cast %341 : vector<1x1x32xf32> to vector<1x32xf32>
    %c0_178 = arith.constant 0 : index
    %c0_179 = arith.constant 0 : index
    %c0_180 = arith.constant 0 : index
    %343 = vector.load %arg31[%c0_178, %c0_179, %c0_180] : memref<2x1x32xf32, #tpu.memory_space<vmem>>, vector<1x1x32xf32>
    %344 = vector.shape_cast %343 : vector<1x1x32xf32> to vector<1x32xf32>
    %c0_181 = arith.constant 0 : index
    %c0_182 = arith.constant 0 : index
    %c0_183 = arith.constant 0 : index
    %345 = vector.load %arg32[%c0_181, %c0_182, %c0_183] : memref<2x1x32xf32, #tpu.memory_space<vmem>>, vector<1x1x32xf32>
    %346 = vector.shape_cast %345 : vector<1x1x32xf32> to vector<1x32xf32>
    %c0_184 = arith.constant 0 : index
    %c0_185 = arith.constant 0 : index
    %c0_186 = arith.constant 0 : index
    %347 = vector.load %arg33[%c0_184, %c0_185, %c0_186] : memref<2x32x64xf32, #tpu.memory_space<vmem>>, vector<1x32x64xf32>
    %348 = vector.shape_cast %347 : vector<1x32x64xf32> to vector<32x64xf32>
    %c0_187 = arith.constant 0 : index
    %c0_188 = arith.constant 0 : index
    %c0_189 = arith.constant 0 : index
    %349 = vector.load %arg34[%c0_187, %c0_188, %c0_189] : memref<2x1x64xf32, #tpu.memory_space<vmem>>, vector<1x1x64xf32>
    %350 = vector.shape_cast %349 : vector<1x1x64xf32> to vector<1x64xf32>
    %c0_190 = arith.constant 0 : index
    %c0_191 = arith.constant 0 : index
    %c0_192 = arith.constant 0 : index
    %351 = vector.load %arg35[%c0_190, %c0_191, %c0_192] : memref<2x64x32xf32, #tpu.memory_space<vmem>>, vector<1x64x32xf32>
    %352 = vector.shape_cast %351 : vector<1x64x32xf32> to vector<64x32xf32>
    %c0_193 = arith.constant 0 : index
    %c0_194 = arith.constant 0 : index
    %c0_195 = arith.constant 0 : index
    %353 = vector.load %arg36[%c0_193, %c0_194, %c0_195] : memref<2x1x32xf32, #tpu.memory_space<vmem>>, vector<1x1x32xf32>
    %354 = vector.shape_cast %353 : vector<1x1x32xf32> to vector<1x32xf32>
    %c0_196 = arith.constant 0 : index
    %c0_197 = arith.constant 0 : index
    %c0_198 = arith.constant 0 : index
    %355 = vector.load %arg37[%c0_196, %c0_197, %c0_198] : memref<2x1x32xf32, #tpu.memory_space<vmem>>, vector<1x1x32xf32>
    %356 = vector.shape_cast %355 : vector<1x1x32xf32> to vector<1x32xf32>
    %c0_199 = arith.constant 0 : index
    %c0_200 = arith.constant 0 : index
    %c0_201 = arith.constant 0 : index
    %357 = vector.load %arg38[%c0_199, %c0_200, %c0_201] : memref<2x1x32xf32, #tpu.memory_space<vmem>>, vector<1x1x32xf32>
    %358 = vector.shape_cast %357 : vector<1x1x32xf32> to vector<1x32xf32>
    %cst_202 = arith.constant dense<0.000000e+00> : vector<16x96xf32>
    %359 = tpu.matmul %318, %320, %cst_202 {dimension_numbers = #tpu.dot_dimension_numbers<[1], [0], [0], [1], [0, 0, 1, 1], [], []>} : vector<16x32xf32>, vector<32x96xf32>, vector<16x96xf32> -> vector<16x96xf32>
    %360 = vector.broadcast %322 : vector<1x96xf32> to vector<16x96xf32>
    %361 = arith.addf %359, %360 : vector<16x96xf32>
    %362 = vector.extract_strided_slice %361 {offsets = [0, 0], sizes = [16, 32], strides = [1, 1]} : vector<16x96xf32> to vector<16x32xf32>
    %363 = vector.extract_strided_slice %361 {offsets = [0, 32], sizes = [16, 32], strides = [1, 1]} : vector<16x96xf32> to vector<16x32xf32>
    %364 = vector.extract_strided_slice %361 {offsets = [0, 64], sizes = [16, 32], strides = [1, 1]} : vector<16x96xf32> to vector<16x32xf32>
    %365 = vector.extract_strided_slice %362 {offsets = [0, 0], sizes = [16, 8], strides = [1, 1]} : vector<16x32xf32> to vector<16x8xf32>
    %366 = vector.extract_strided_slice %362 {offsets = [0, 8], sizes = [16, 8], strides = [1, 1]} : vector<16x32xf32> to vector<16x8xf32>
    %367 = vector.extract_strided_slice %362 {offsets = [0, 16], sizes = [16, 8], strides = [1, 1]} : vector<16x32xf32> to vector<16x8xf32>
    %368 = vector.extract_strided_slice %362 {offsets = [0, 24], sizes = [16, 8], strides = [1, 1]} : vector<16x32xf32> to vector<16x8xf32>
    %369 = vector.shape_cast %365 : vector<16x8xf32> to vector<1x16x8xf32>
    %370 = vector.shape_cast %366 : vector<16x8xf32> to vector<1x16x8xf32>
    %371 = vector.shape_cast %367 : vector<16x8xf32> to vector<1x16x8xf32>
    %372 = vector.shape_cast %368 : vector<16x8xf32> to vector<1x16x8xf32>
    %373 = tpu.concatenate %369, %370, %371, %372 in 0 : vector<1x16x8xf32>, vector<1x16x8xf32>, vector<1x16x8xf32>, vector<1x16x8xf32> -> vector<4x16x8xf32>
    %374 = vector.shape_cast %373 : vector<4x16x8xf32> to vector<8x8x8xf32>
    %375 = vector.extract_strided_slice %363 {offsets = [0, 0], sizes = [16, 8], strides = [1, 1]} : vector<16x32xf32> to vector<16x8xf32>
    %376 = vector.extract_strided_slice %363 {offsets = [0, 8], sizes = [16, 8], strides = [1, 1]} : vector<16x32xf32> to vector<16x8xf32>
    %377 = vector.extract_strided_slice %363 {offsets = [0, 16], sizes = [16, 8], strides = [1, 1]} : vector<16x32xf32> to vector<16x8xf32>
    %378 = vector.extract_strided_slice %363 {offsets = [0, 24], sizes = [16, 8], strides = [1, 1]} : vector<16x32xf32> to vector<16x8xf32>
    %379 = vector.shape_cast %375 : vector<16x8xf32> to vector<1x16x8xf32>
    %380 = vector.shape_cast %376 : vector<16x8xf32> to vector<1x16x8xf32>
    %381 = vector.shape_cast %377 : vector<16x8xf32> to vector<1x16x8xf32>
    %382 = vector.shape_cast %378 : vector<16x8xf32> to vector<1x16x8xf32>
    %383 = tpu.concatenate %379, %380, %381, %382 in 0 : vector<1x16x8xf32>, vector<1x16x8xf32>, vector<1x16x8xf32>, vector<1x16x8xf32> -> vector<4x16x8xf32>
    %384 = vector.shape_cast %383 : vector<4x16x8xf32> to vector<8x8x8xf32>
    %385 = vector.extract_strided_slice %364 {offsets = [0, 0], sizes = [16, 8], strides = [1, 1]} : vector<16x32xf32> to vector<16x8xf32>
    %386 = vector.extract_strided_slice %364 {offsets = [0, 8], sizes = [16, 8], strides = [1, 1]} : vector<16x32xf32> to vector<16x8xf32>
    %387 = vector.extract_strided_slice %364 {offsets = [0, 16], sizes = [16, 8], strides = [1, 1]} : vector<16x32xf32> to vector<16x8xf32>
    %388 = vector.extract_strided_slice %364 {offsets = [0, 24], sizes = [16, 8], strides = [1, 1]} : vector<16x32xf32> to vector<16x8xf32>
    %389 = vector.shape_cast %385 : vector<16x8xf32> to vector<1x16x8xf32>
    %390 = vector.shape_cast %386 : vector<16x8xf32> to vector<1x16x8xf32>
    %391 = vector.shape_cast %387 : vector<16x8xf32> to vector<1x16x8xf32>
    %392 = vector.shape_cast %388 : vector<16x8xf32> to vector<1x16x8xf32>
    %393 = tpu.concatenate %389, %390, %391, %392 in 0 : vector<1x16x8xf32>, vector<1x16x8xf32>, vector<1x16x8xf32>, vector<1x16x8xf32> -> vector<4x16x8xf32>
    %394 = vector.shape_cast %393 : vector<4x16x8xf32> to vector<8x8x8xf32>
    "tpu.trace_start"() <{level = 10 : i32, message = "bqd,bkd->bqk"}> : () -> ()
    %cst_203 = arith.constant dense<0.000000e+00> : vector<8x8x8xf32>
    %395 = tpu.matmul %374, %384, %cst_203 {dimension_numbers = #tpu.dot_dimension_numbers<[2], [2], [1], [1], [0, 0, 0, 1, 1, 1], [0], [0]>} : vector<8x8x8xf32>, vector<8x8x8xf32>, vector<8x8x8xf32> -> vector<8x8x8xf32>
    "tpu.trace_stop"() : () -> ()
    %cst_204 = arith.constant 0.353553385 : f32
    %396 = vector.broadcast %cst_204 : f32 to vector<8x8x8xf32>
    %397 = arith.mulf %395, %396 : vector<8x8x8xf32>
    %398 = vector.shape_cast %397 : vector<8x8x8xf32> to vector<4x2x8x8xf32>
    %399 = vector.broadcast %26 : vector<1x1x8x8xf32> to vector<4x2x8x8xf32>
    %400 = arith.addf %398, %399 : vector<4x2x8x8xf32>
    %cst_205 = arith.constant dense<0xFF800000> : vector<4x2x8xf32>
    %401 = vector.multi_reduction <maximumf>, %400, %cst_205 [3] : vector<4x2x8x8xf32> to vector<4x2x8xf32>
    %402 = vector.shape_cast %401 : vector<4x2x8xf32> to vector<4x2x8x1xf32>
    %403 = vector.broadcast %402 : vector<4x2x8x1xf32> to vector<4x2x8x8xf32>
    %404 = arith.subf %400, %403 : vector<4x2x8x8xf32>
    %405 = math.exp %404 : vector<4x2x8x8xf32>
    %cst_206 = arith.constant dense<0.000000e+00> : vector<4x2x8xf32>
    %406 = vector.multi_reduction <add>, %405, %cst_206 [3] : vector<4x2x8x8xf32> to vector<4x2x8xf32>
    %407 = vector.shape_cast %406 : vector<4x2x8xf32> to vector<4x2x8x1xf32>
    %408 = tpu.reciprocal %407 {approx = true} : vector<4x2x8x1xf32> -> vector<4x2x8x1xf32>
    %409 = vector.broadcast %408 : vector<4x2x8x1xf32> to vector<4x2x8x8xf32>
    %410 = arith.mulf %405, %409 : vector<4x2x8x8xf32>
    %411 = vector.shape_cast %410 : vector<4x2x8x8xf32> to vector<8x8x8xf32>
    "tpu.trace_start"() <{level = 10 : i32, message = "bqk,bkd->bqd"}> : () -> ()
    %cst_207 = arith.constant dense<0.000000e+00> : vector<8x8x8xf32>
    %412 = tpu.matmul %411, %394, %cst_207 {dimension_numbers = #tpu.dot_dimension_numbers<[2], [1], [1], [2], [0, 0, 0, 1, 1, 2], [0], [0]>} : vector<8x8x8xf32>, vector<8x8x8xf32>, vector<8x8x8xf32> -> vector<8x8x8xf32>
    "tpu.trace_stop"() : () -> ()
    %413 = vector.extract_strided_slice %412 {offsets = [0, 0, 0], sizes = [2, 8, 8], strides = [1, 1, 1]} : vector<8x8x8xf32> to vector<2x8x8xf32>
    %414 = vector.extract_strided_slice %412 {offsets = [2, 0, 0], sizes = [2, 8, 8], strides = [1, 1, 1]} : vector<8x8x8xf32> to vector<2x8x8xf32>
    %415 = vector.extract_strided_slice %412 {offsets = [4, 0, 0], sizes = [2, 8, 8], strides = [1, 1, 1]} : vector<8x8x8xf32> to vector<2x8x8xf32>
    %416 = vector.extract_strided_slice %412 {offsets = [6, 0, 0], sizes = [2, 8, 8], strides = [1, 1, 1]} : vector<8x8x8xf32> to vector<2x8x8xf32>
    %417 = tpu.concatenate %413, %414, %415, %416 in 2 : vector<2x8x8xf32>, vector<2x8x8xf32>, vector<2x8x8xf32>, vector<2x8x8xf32> -> vector<2x8x32xf32>
    %418 = vector.shape_cast %417 : vector<2x8x32xf32> to vector<16x32xf32>
    %cst_208 = arith.constant dense<0.000000e+00> : vector<16x32xf32>
    %419 = tpu.matmul %418, %324, %cst_208 {dimension_numbers = #tpu.dot_dimension_numbers<[1], [0], [0], [1], [0, 0, 1, 1], [], []>} : vector<16x32xf32>, vector<32x32xf32>, vector<16x32xf32> -> vector<16x32xf32>
    %420 = vector.broadcast %326 : vector<1x32xf32> to vector<16x32xf32>
    %421 = arith.addf %419, %420 : vector<16x32xf32>
    %422 = arith.addf %318, %421 : vector<16x32xf32>
    %cst_209 = arith.constant dense<0.000000e+00> : vector<16xf32>
    %423 = vector.multi_reduction <add>, %422, %cst_209 [1] : vector<16x32xf32> to vector<16xf32>
    %424 = vector.shape_cast %423 : vector<16xf32> to vector<16x1xf32>
    %cst_210 = arith.constant 3.200000e+01 : f32
    %425 = vector.broadcast %cst_210 : f32 to vector<16x1xf32>
    %426 = arith.divf %424, %425 : vector<16x1xf32>
    %427 = vector.broadcast %426 : vector<16x1xf32> to vector<16x32xf32>
    %428 = arith.subf %422, %427 : vector<16x32xf32>
    %429 = arith.mulf %428, %428 : vector<16x32xf32>
    %cst_211 = arith.constant dense<0.000000e+00> : vector<16xf32>
    %430 = vector.multi_reduction <add>, %429, %cst_211 [1] : vector<16x32xf32> to vector<16xf32>
    %431 = vector.shape_cast %430 : vector<16xf32> to vector<16x1xf32>
    %cst_212 = arith.constant 3.200000e+01 : f32
    %432 = vector.broadcast %cst_212 : f32 to vector<16x1xf32>
    %433 = arith.divf %431, %432 : vector<16x1xf32>
    %cst_213 = arith.constant 9.99999974E-6 : f32
    %434 = vector.broadcast %cst_213 : f32 to vector<16x1xf32>
    %435 = arith.addf %433, %434 : vector<16x1xf32>
    %436 = math.rsqrt %435 : vector<16x1xf32>
    %437 = vector.broadcast %436 : vector<16x1xf32> to vector<16x32xf32>
    %438 = arith.mulf %428, %437 : vector<16x32xf32>
    %439 = vector.broadcast %328 : vector<1x32xf32> to vector<16x32xf32>
    %440 = arith.mulf %438, %439 : vector<16x32xf32>
    %441 = vector.broadcast %330 : vector<1x32xf32> to vector<16x32xf32>
    %442 = arith.addf %440, %441 : vector<16x32xf32>
    %cst_214 = arith.constant dense<0.000000e+00> : vector<16x32xf32>
    %443 = tpu.matmul %442, %332, %cst_214 {dimension_numbers = #tpu.dot_dimension_numbers<[1], [0], [0], [1], [0, 0, 1, 1], [], []>} : vector<16x32xf32>, vector<32x32xf32>, vector<16x32xf32> -> vector<16x32xf32>
    %444 = vector.broadcast %334 : vector<1x32xf32> to vector<16x32xf32>
    %445 = arith.addf %443, %444 : vector<16x32xf32>
    %cst_215 = arith.constant dense<0.000000e+00> : vector<16x64xf32>
    %446 = tpu.matmul %309, %336, %cst_215 {dimension_numbers = #tpu.dot_dimension_numbers<[1], [0], [0], [1], [0, 0, 1, 1], [], []>} : vector<16x32xf32>, vector<32x64xf32>, vector<16x64xf32> -> vector<16x64xf32>
    %447 = vector.broadcast %338 : vector<1x64xf32> to vector<16x64xf32>
    %448 = arith.addf %446, %447 : vector<16x64xf32>
    %449 = vector.extract_strided_slice %448 {offsets = [0, 0], sizes = [16, 32], strides = [1, 1]} : vector<16x64xf32> to vector<16x32xf32>
    %450 = vector.extract_strided_slice %448 {offsets = [0, 32], sizes = [16, 32], strides = [1, 1]} : vector<16x64xf32> to vector<16x32xf32>
    %451 = vector.extract_strided_slice %445 {offsets = [0, 0], sizes = [16, 8], strides = [1, 1]} : vector<16x32xf32> to vector<16x8xf32>
    %452 = vector.extract_strided_slice %445 {offsets = [0, 8], sizes = [16, 8], strides = [1, 1]} : vector<16x32xf32> to vector<16x8xf32>
    %453 = vector.extract_strided_slice %445 {offsets = [0, 16], sizes = [16, 8], strides = [1, 1]} : vector<16x32xf32> to vector<16x8xf32>
    %454 = vector.extract_strided_slice %445 {offsets = [0, 24], sizes = [16, 8], strides = [1, 1]} : vector<16x32xf32> to vector<16x8xf32>
    %455 = vector.shape_cast %451 : vector<16x8xf32> to vector<1x16x8xf32>
    %456 = vector.shape_cast %452 : vector<16x8xf32> to vector<1x16x8xf32>
    %457 = vector.shape_cast %453 : vector<16x8xf32> to vector<1x16x8xf32>
    %458 = vector.shape_cast %454 : vector<16x8xf32> to vector<1x16x8xf32>
    %459 = tpu.concatenate %455, %456, %457, %458 in 0 : vector<1x16x8xf32>, vector<1x16x8xf32>, vector<1x16x8xf32>, vector<1x16x8xf32> -> vector<4x16x8xf32>
    %460 = vector.shape_cast %459 : vector<4x16x8xf32> to vector<8x8x8xf32>
    %461 = vector.extract_strided_slice %449 {offsets = [0, 0], sizes = [16, 8], strides = [1, 1]} : vector<16x32xf32> to vector<16x8xf32>
    %462 = vector.extract_strided_slice %449 {offsets = [0, 8], sizes = [16, 8], strides = [1, 1]} : vector<16x32xf32> to vector<16x8xf32>
    %463 = vector.extract_strided_slice %449 {offsets = [0, 16], sizes = [16, 8], strides = [1, 1]} : vector<16x32xf32> to vector<16x8xf32>
    %464 = vector.extract_strided_slice %449 {offsets = [0, 24], sizes = [16, 8], strides = [1, 1]} : vector<16x32xf32> to vector<16x8xf32>
    %465 = vector.shape_cast %461 : vector<16x8xf32> to vector<1x16x8xf32>
    %466 = vector.shape_cast %462 : vector<16x8xf32> to vector<1x16x8xf32>
    %467 = vector.shape_cast %463 : vector<16x8xf32> to vector<1x16x8xf32>
    %468 = vector.shape_cast %464 : vector<16x8xf32> to vector<1x16x8xf32>
    %469 = tpu.concatenate %465, %466, %467, %468 in 0 : vector<1x16x8xf32>, vector<1x16x8xf32>, vector<1x16x8xf32>, vector<1x16x8xf32> -> vector<4x16x8xf32>
    %470 = vector.shape_cast %469 : vector<4x16x8xf32> to vector<8x8x8xf32>
    %471 = vector.extract_strided_slice %450 {offsets = [0, 0], sizes = [16, 8], strides = [1, 1]} : vector<16x32xf32> to vector<16x8xf32>
    %472 = vector.extract_strided_slice %450 {offsets = [0, 8], sizes = [16, 8], strides = [1, 1]} : vector<16x32xf32> to vector<16x8xf32>
    %473 = vector.extract_strided_slice %450 {offsets = [0, 16], sizes = [16, 8], strides = [1, 1]} : vector<16x32xf32> to vector<16x8xf32>
    %474 = vector.extract_strided_slice %450 {offsets = [0, 24], sizes = [16, 8], strides = [1, 1]} : vector<16x32xf32> to vector<16x8xf32>
    %475 = vector.shape_cast %471 : vector<16x8xf32> to vector<1x16x8xf32>
    %476 = vector.shape_cast %472 : vector<16x8xf32> to vector<1x16x8xf32>
    %477 = vector.shape_cast %473 : vector<16x8xf32> to vector<1x16x8xf32>
    %478 = vector.shape_cast %474 : vector<16x8xf32> to vector<1x16x8xf32>
    %479 = tpu.concatenate %475, %476, %477, %478 in 0 : vector<1x16x8xf32>, vector<1x16x8xf32>, vector<1x16x8xf32>, vector<1x16x8xf32> -> vector<4x16x8xf32>
    %480 = vector.shape_cast %479 : vector<4x16x8xf32> to vector<8x8x8xf32>
    "tpu.trace_start"() <{level = 10 : i32, message = "bqd,bkd->bqk"}> : () -> ()
    %cst_216 = arith.constant dense<0.000000e+00> : vector<8x8x8xf32>
    %481 = tpu.matmul %460, %470, %cst_216 {dimension_numbers = #tpu.dot_dimension_numbers<[2], [2], [1], [1], [0, 0, 0, 1, 1, 1], [0], [0]>} : vector<8x8x8xf32>, vector<8x8x8xf32>, vector<8x8x8xf32> -> vector<8x8x8xf32>
    "tpu.trace_stop"() : () -> ()
    %cst_217 = arith.constant 0.353553385 : f32
    %482 = vector.broadcast %cst_217 : f32 to vector<8x8x8xf32>
    %483 = arith.mulf %481, %482 : vector<8x8x8xf32>
    %484 = vector.shape_cast %483 : vector<8x8x8xf32> to vector<4x2x8x8xf32>
    %485 = vector.broadcast %20 : vector<1x2x1x8xf32> to vector<4x2x8x8xf32>
    %486 = arith.addf %484, %485 : vector<4x2x8x8xf32>
    %cst_218 = arith.constant dense<0xFF800000> : vector<4x2x8xf32>
    %487 = vector.multi_reduction <maximumf>, %486, %cst_218 [3] : vector<4x2x8x8xf32> to vector<4x2x8xf32>
    %488 = vector.shape_cast %487 : vector<4x2x8xf32> to vector<4x2x8x1xf32>
    %489 = vector.broadcast %488 : vector<4x2x8x1xf32> to vector<4x2x8x8xf32>
    %490 = arith.subf %486, %489 : vector<4x2x8x8xf32>
    %491 = math.exp %490 : vector<4x2x8x8xf32>
    %cst_219 = arith.constant dense<0.000000e+00> : vector<4x2x8xf32>
    %492 = vector.multi_reduction <add>, %491, %cst_219 [3] : vector<4x2x8x8xf32> to vector<4x2x8xf32>
    %493 = vector.shape_cast %492 : vector<4x2x8xf32> to vector<4x2x8x1xf32>
    %494 = tpu.reciprocal %493 {approx = true} : vector<4x2x8x1xf32> -> vector<4x2x8x1xf32>
    %495 = vector.broadcast %494 : vector<4x2x8x1xf32> to vector<4x2x8x8xf32>
    %496 = arith.mulf %491, %495 : vector<4x2x8x8xf32>
    %497 = vector.shape_cast %496 : vector<4x2x8x8xf32> to vector<8x8x8xf32>
    "tpu.trace_start"() <{level = 10 : i32, message = "bqk,bkd->bqd"}> : () -> ()
    %cst_220 = arith.constant dense<0.000000e+00> : vector<8x8x8xf32>
    %498 = tpu.matmul %497, %480, %cst_220 {dimension_numbers = #tpu.dot_dimension_numbers<[2], [1], [1], [2], [0, 0, 0, 1, 1, 2], [0], [0]>} : vector<8x8x8xf32>, vector<8x8x8xf32>, vector<8x8x8xf32> -> vector<8x8x8xf32>
    "tpu.trace_stop"() : () -> ()
    %499 = vector.extract_strided_slice %498 {offsets = [0, 0, 0], sizes = [2, 8, 8], strides = [1, 1, 1]} : vector<8x8x8xf32> to vector<2x8x8xf32>
    %500 = vector.extract_strided_slice %498 {offsets = [2, 0, 0], sizes = [2, 8, 8], strides = [1, 1, 1]} : vector<8x8x8xf32> to vector<2x8x8xf32>
    %501 = vector.extract_strided_slice %498 {offsets = [4, 0, 0], sizes = [2, 8, 8], strides = [1, 1, 1]} : vector<8x8x8xf32> to vector<2x8x8xf32>
    %502 = vector.extract_strided_slice %498 {offsets = [6, 0, 0], sizes = [2, 8, 8], strides = [1, 1, 1]} : vector<8x8x8xf32> to vector<2x8x8xf32>
    %503 = tpu.concatenate %499, %500, %501, %502 in 2 : vector<2x8x8xf32>, vector<2x8x8xf32>, vector<2x8x8xf32>, vector<2x8x8xf32> -> vector<2x8x32xf32>
    %504 = vector.shape_cast %503 : vector<2x8x32xf32> to vector<16x32xf32>
    %cst_221 = arith.constant dense<0.000000e+00> : vector<16x32xf32>
    %505 = tpu.matmul %504, %340, %cst_221 {dimension_numbers = #tpu.dot_dimension_numbers<[1], [0], [0], [1], [0, 0, 1, 1], [], []>} : vector<16x32xf32>, vector<32x32xf32>, vector<16x32xf32> -> vector<16x32xf32>
    %506 = vector.broadcast %342 : vector<1x32xf32> to vector<16x32xf32>
    %507 = arith.addf %505, %506 : vector<16x32xf32>
    %508 = arith.addf %442, %507 : vector<16x32xf32>
    %cst_222 = arith.constant dense<0.000000e+00> : vector<16xf32>
    %509 = vector.multi_reduction <add>, %508, %cst_222 [1] : vector<16x32xf32> to vector<16xf32>
    %510 = vector.shape_cast %509 : vector<16xf32> to vector<16x1xf32>
    %cst_223 = arith.constant 3.200000e+01 : f32
    %511 = vector.broadcast %cst_223 : f32 to vector<16x1xf32>
    %512 = arith.divf %510, %511 : vector<16x1xf32>
    %513 = vector.broadcast %512 : vector<16x1xf32> to vector<16x32xf32>
    %514 = arith.subf %508, %513 : vector<16x32xf32>
    %515 = arith.mulf %514, %514 : vector<16x32xf32>
    %cst_224 = arith.constant dense<0.000000e+00> : vector<16xf32>
    %516 = vector.multi_reduction <add>, %515, %cst_224 [1] : vector<16x32xf32> to vector<16xf32>
    %517 = vector.shape_cast %516 : vector<16xf32> to vector<16x1xf32>
    %cst_225 = arith.constant 3.200000e+01 : f32
    %518 = vector.broadcast %cst_225 : f32 to vector<16x1xf32>
    %519 = arith.divf %517, %518 : vector<16x1xf32>
    %cst_226 = arith.constant 9.99999974E-6 : f32
    %520 = vector.broadcast %cst_226 : f32 to vector<16x1xf32>
    %521 = arith.addf %519, %520 : vector<16x1xf32>
    %522 = math.rsqrt %521 : vector<16x1xf32>
    %523 = vector.broadcast %522 : vector<16x1xf32> to vector<16x32xf32>
    %524 = arith.mulf %514, %523 : vector<16x32xf32>
    %525 = vector.broadcast %344 : vector<1x32xf32> to vector<16x32xf32>
    %526 = arith.mulf %524, %525 : vector<16x32xf32>
    %527 = vector.broadcast %346 : vector<1x32xf32> to vector<16x32xf32>
    %528 = arith.addf %526, %527 : vector<16x32xf32>
    %cst_227 = arith.constant dense<0.000000e+00> : vector<16x64xf32>
    %529 = tpu.matmul %528, %348, %cst_227 {dimension_numbers = #tpu.dot_dimension_numbers<[1], [0], [0], [1], [0, 0, 1, 1], [], []>} : vector<16x32xf32>, vector<32x64xf32>, vector<16x64xf32> -> vector<16x64xf32>
    %530 = vector.broadcast %350 : vector<1x64xf32> to vector<16x64xf32>
    %531 = arith.addf %529, %530 : vector<16x64xf32>
    %cst_228 = arith.constant 0.000000e+00 : f32
    %532 = vector.broadcast %cst_228 : f32 to vector<16x64xf32>
    %533 = arith.maximumf %531, %532 : vector<16x64xf32>
    %cst_229 = arith.constant dense<0.000000e+00> : vector<16x32xf32>
    %534 = tpu.matmul %533, %352, %cst_229 {dimension_numbers = #tpu.dot_dimension_numbers<[1], [0], [0], [1], [0, 0, 1, 1], [], []>} : vector<16x64xf32>, vector<64x32xf32>, vector<16x32xf32> -> vector<16x32xf32>
    %535 = vector.broadcast %354 : vector<1x32xf32> to vector<16x32xf32>
    %536 = arith.addf %534, %535 : vector<16x32xf32>
    %537 = arith.addf %528, %536 : vector<16x32xf32>
    %cst_230 = arith.constant dense<0.000000e+00> : vector<16xf32>
    %538 = vector.multi_reduction <add>, %537, %cst_230 [1] : vector<16x32xf32> to vector<16xf32>
    %539 = vector.shape_cast %538 : vector<16xf32> to vector<16x1xf32>
    %cst_231 = arith.constant 3.200000e+01 : f32
    %540 = vector.broadcast %cst_231 : f32 to vector<16x1xf32>
    %541 = arith.divf %539, %540 : vector<16x1xf32>
    %542 = vector.broadcast %541 : vector<16x1xf32> to vector<16x32xf32>
    %543 = arith.subf %537, %542 : vector<16x32xf32>
    %544 = arith.mulf %543, %543 : vector<16x32xf32>
    %cst_232 = arith.constant dense<0.000000e+00> : vector<16xf32>
    %545 = vector.multi_reduction <add>, %544, %cst_232 [1] : vector<16x32xf32> to vector<16xf32>
    %546 = vector.shape_cast %545 : vector<16xf32> to vector<16x1xf32>
    %cst_233 = arith.constant 3.200000e+01 : f32
    %547 = vector.broadcast %cst_233 : f32 to vector<16x1xf32>
    %548 = arith.divf %546, %547 : vector<16x1xf32>
    %cst_234 = arith.constant 9.99999974E-6 : f32
    %549 = vector.broadcast %cst_234 : f32 to vector<16x1xf32>
    %550 = arith.addf %548, %549 : vector<16x1xf32>
    %551 = math.rsqrt %550 : vector<16x1xf32>
    %552 = vector.broadcast %551 : vector<16x1xf32> to vector<16x32xf32>
    %553 = arith.mulf %543, %552 : vector<16x32xf32>
    %554 = vector.broadcast %356 : vector<1x32xf32> to vector<16x32xf32>
    %555 = arith.mulf %553, %554 : vector<16x32xf32>
    %556 = vector.broadcast %358 : vector<1x32xf32> to vector<16x32xf32>
    %557 = arith.addf %555, %556 : vector<16x32xf32>
    %c1_235 = arith.constant 1 : index
    %c0_236 = arith.constant 0 : index
    %c0_237 = arith.constant 0 : index
    %558 = vector.load %arg19[%c1_235, %c0_236, %c0_237] : memref<2x32x96xf32, #tpu.memory_space<vmem>>, vector<1x32x96xf32>
    %559 = vector.shape_cast %558 : vector<1x32x96xf32> to vector<32x96xf32>
    %c1_238 = arith.constant 1 : index
    %c0_239 = arith.constant 0 : index
    %c0_240 = arith.constant 0 : index
    %560 = vector.load %arg20[%c1_238, %c0_239, %c0_240] : memref<2x1x96xf32, #tpu.memory_space<vmem>>, vector<1x1x96xf32>
    %561 = vector.shape_cast %560 : vector<1x1x96xf32> to vector<1x96xf32>
    %c1_241 = arith.constant 1 : index
    %c0_242 = arith.constant 0 : index
    %c0_243 = arith.constant 0 : index
    %562 = vector.load %arg21[%c1_241, %c0_242, %c0_243] : memref<2x32x32xf32, #tpu.memory_space<vmem>>, vector<1x32x32xf32>
    %563 = vector.shape_cast %562 : vector<1x32x32xf32> to vector<32x32xf32>
    %c1_244 = arith.constant 1 : index
    %c0_245 = arith.constant 0 : index
    %c0_246 = arith.constant 0 : index
    %564 = vector.load %arg22[%c1_244, %c0_245, %c0_246] : memref<2x1x32xf32, #tpu.memory_space<vmem>>, vector<1x1x32xf32>
    %565 = vector.shape_cast %564 : vector<1x1x32xf32> to vector<1x32xf32>
    %c1_247 = arith.constant 1 : index
    %c0_248 = arith.constant 0 : index
    %c0_249 = arith.constant 0 : index
    %566 = vector.load %arg23[%c1_247, %c0_248, %c0_249] : memref<2x1x32xf32, #tpu.memory_space<vmem>>, vector<1x1x32xf32>
    %567 = vector.shape_cast %566 : vector<1x1x32xf32> to vector<1x32xf32>
    %c1_250 = arith.constant 1 : index
    %c0_251 = arith.constant 0 : index
    %c0_252 = arith.constant 0 : index
    %568 = vector.load %arg24[%c1_250, %c0_251, %c0_252] : memref<2x1x32xf32, #tpu.memory_space<vmem>>, vector<1x1x32xf32>
    %569 = vector.shape_cast %568 : vector<1x1x32xf32> to vector<1x32xf32>
    %c1_253 = arith.constant 1 : index
    %c0_254 = arith.constant 0 : index
    %c0_255 = arith.constant 0 : index
    %570 = vector.load %arg25[%c1_253, %c0_254, %c0_255] : memref<2x32x32xf32, #tpu.memory_space<vmem>>, vector<1x32x32xf32>
    %571 = vector.shape_cast %570 : vector<1x32x32xf32> to vector<32x32xf32>
    %c1_256 = arith.constant 1 : index
    %c0_257 = arith.constant 0 : index
    %c0_258 = arith.constant 0 : index
    %572 = vector.load %arg26[%c1_256, %c0_257, %c0_258] : memref<2x1x32xf32, #tpu.memory_space<vmem>>, vector<1x1x32xf32>
    %573 = vector.shape_cast %572 : vector<1x1x32xf32> to vector<1x32xf32>
    %c1_259 = arith.constant 1 : index
    %c0_260 = arith.constant 0 : index
    %c0_261 = arith.constant 0 : index
    %574 = vector.load %arg27[%c1_259, %c0_260, %c0_261] : memref<2x32x64xf32, #tpu.memory_space<vmem>>, vector<1x32x64xf32>
    %575 = vector.shape_cast %574 : vector<1x32x64xf32> to vector<32x64xf32>
    %c1_262 = arith.constant 1 : index
    %c0_263 = arith.constant 0 : index
    %c0_264 = arith.constant 0 : index
    %576 = vector.load %arg28[%c1_262, %c0_263, %c0_264] : memref<2x1x64xf32, #tpu.memory_space<vmem>>, vector<1x1x64xf32>
    %577 = vector.shape_cast %576 : vector<1x1x64xf32> to vector<1x64xf32>
    %c1_265 = arith.constant 1 : index
    %c0_266 = arith.constant 0 : index
    %c0_267 = arith.constant 0 : index
    %578 = vector.load %arg29[%c1_265, %c0_266, %c0_267] : memref<2x32x32xf32, #tpu.memory_space<vmem>>, vector<1x32x32xf32>
    %579 = vector.shape_cast %578 : vector<1x32x32xf32> to vector<32x32xf32>
    %c1_268 = arith.constant 1 : index
    %c0_269 = arith.constant 0 : index
    %c0_270 = arith.constant 0 : index
    %580 = vector.load %arg30[%c1_268, %c0_269, %c0_270] : memref<2x1x32xf32, #tpu.memory_space<vmem>>, vector<1x1x32xf32>
    %581 = vector.shape_cast %580 : vector<1x1x32xf32> to vector<1x32xf32>
    %c1_271 = arith.constant 1 : index
    %c0_272 = arith.constant 0 : index
    %c0_273 = arith.constant 0 : index
    %582 = vector.load %arg31[%c1_271, %c0_272, %c0_273] : memref<2x1x32xf32, #tpu.memory_space<vmem>>, vector<1x1x32xf32>
    %583 = vector.shape_cast %582 : vector<1x1x32xf32> to vector<1x32xf32>
    %c1_274 = arith.constant 1 : index
    %c0_275 = arith.constant 0 : index
    %c0_276 = arith.constant 0 : index
    %584 = vector.load %arg32[%c1_274, %c0_275, %c0_276] : memref<2x1x32xf32, #tpu.memory_space<vmem>>, vector<1x1x32xf32>
    %585 = vector.shape_cast %584 : vector<1x1x32xf32> to vector<1x32xf32>
    %c1_277 = arith.constant 1 : index
    %c0_278 = arith.constant 0 : index
    %c0_279 = arith.constant 0 : index
    %586 = vector.load %arg33[%c1_277, %c0_278, %c0_279] : memref<2x32x64xf32, #tpu.memory_space<vmem>>, vector<1x32x64xf32>
    %587 = vector.shape_cast %586 : vector<1x32x64xf32> to vector<32x64xf32>
    %c1_280 = arith.constant 1 : index
    %c0_281 = arith.constant 0 : index
    %c0_282 = arith.constant 0 : index
    %588 = vector.load %arg34[%c1_280, %c0_281, %c0_282] : memref<2x1x64xf32, #tpu.memory_space<vmem>>, vector<1x1x64xf32>
    %589 = vector.shape_cast %588 : vector<1x1x64xf32> to vector<1x64xf32>
    %c1_283 = arith.constant 1 : index
    %c0_284 = arith.constant 0 : index
    %c0_285 = arith.constant 0 : index
    %590 = vector.load %arg35[%c1_283, %c0_284, %c0_285] : memref<2x64x32xf32, #tpu.memory_space<vmem>>, vector<1x64x32xf32>
    %591 = vector.shape_cast %590 : vector<1x64x32xf32> to vector<64x32xf32>
    %c1_286 = arith.constant 1 : index
    %c0_287 = arith.constant 0 : index
    %c0_288 = arith.constant 0 : index
    %592 = vector.load %arg36[%c1_286, %c0_287, %c0_288] : memref<2x1x32xf32, #tpu.memory_space<vmem>>, vector<1x1x32xf32>
    %593 = vector.shape_cast %592 : vector<1x1x32xf32> to vector<1x32xf32>
    %c1_289 = arith.constant 1 : index
    %c0_290 = arith.constant 0 : index
    %c0_291 = arith.constant 0 : index
    %594 = vector.load %arg37[%c1_289, %c0_290, %c0_291] : memref<2x1x32xf32, #tpu.memory_space<vmem>>, vector<1x1x32xf32>
    %595 = vector.shape_cast %594 : vector<1x1x32xf32> to vector<1x32xf32>
    %c1_292 = arith.constant 1 : index
    %c0_293 = arith.constant 0 : index
    %c0_294 = arith.constant 0 : index
    %596 = vector.load %arg38[%c1_292, %c0_293, %c0_294] : memref<2x1x32xf32, #tpu.memory_space<vmem>>, vector<1x1x32xf32>
    %597 = vector.shape_cast %596 : vector<1x1x32xf32> to vector<1x32xf32>
    %cst_295 = arith.constant dense<0.000000e+00> : vector<16x96xf32>
    %598 = tpu.matmul %557, %559, %cst_295 {dimension_numbers = #tpu.dot_dimension_numbers<[1], [0], [0], [1], [0, 0, 1, 1], [], []>} : vector<16x32xf32>, vector<32x96xf32>, vector<16x96xf32> -> vector<16x96xf32>
    %599 = vector.broadcast %561 : vector<1x96xf32> to vector<16x96xf32>
    %600 = arith.addf %598, %599 : vector<16x96xf32>
    %601 = vector.extract_strided_slice %600 {offsets = [0, 0], sizes = [16, 32], strides = [1, 1]} : vector<16x96xf32> to vector<16x32xf32>
    %602 = vector.extract_strided_slice %600 {offsets = [0, 32], sizes = [16, 32], strides = [1, 1]} : vector<16x96xf32> to vector<16x32xf32>
    %603 = vector.extract_strided_slice %600 {offsets = [0, 64], sizes = [16, 32], strides = [1, 1]} : vector<16x96xf32> to vector<16x32xf32>
    %604 = vector.extract_strided_slice %601 {offsets = [0, 0], sizes = [16, 8], strides = [1, 1]} : vector<16x32xf32> to vector<16x8xf32>
    %605 = vector.extract_strided_slice %601 {offsets = [0, 8], sizes = [16, 8], strides = [1, 1]} : vector<16x32xf32> to vector<16x8xf32>
    %606 = vector.extract_strided_slice %601 {offsets = [0, 16], sizes = [16, 8], strides = [1, 1]} : vector<16x32xf32> to vector<16x8xf32>
    %607 = vector.extract_strided_slice %601 {offsets = [0, 24], sizes = [16, 8], strides = [1, 1]} : vector<16x32xf32> to vector<16x8xf32>
    %608 = vector.shape_cast %604 : vector<16x8xf32> to vector<1x16x8xf32>
    %609 = vector.shape_cast %605 : vector<16x8xf32> to vector<1x16x8xf32>
    %610 = vector.shape_cast %606 : vector<16x8xf32> to vector<1x16x8xf32>
    %611 = vector.shape_cast %607 : vector<16x8xf32> to vector<1x16x8xf32>
    %612 = tpu.concatenate %608, %609, %610, %611 in 0 : vector<1x16x8xf32>, vector<1x16x8xf32>, vector<1x16x8xf32>, vector<1x16x8xf32> -> vector<4x16x8xf32>
    %613 = vector.shape_cast %612 : vector<4x16x8xf32> to vector<8x8x8xf32>
    %614 = vector.extract_strided_slice %602 {offsets = [0, 0], sizes = [16, 8], strides = [1, 1]} : vector<16x32xf32> to vector<16x8xf32>
    %615 = vector.extract_strided_slice %602 {offsets = [0, 8], sizes = [16, 8], strides = [1, 1]} : vector<16x32xf32> to vector<16x8xf32>
    %616 = vector.extract_strided_slice %602 {offsets = [0, 16], sizes = [16, 8], strides = [1, 1]} : vector<16x32xf32> to vector<16x8xf32>
    %617 = vector.extract_strided_slice %602 {offsets = [0, 24], sizes = [16, 8], strides = [1, 1]} : vector<16x32xf32> to vector<16x8xf32>
    %618 = vector.shape_cast %614 : vector<16x8xf32> to vector<1x16x8xf32>
    %619 = vector.shape_cast %615 : vector<16x8xf32> to vector<1x16x8xf32>
    %620 = vector.shape_cast %616 : vector<16x8xf32> to vector<1x16x8xf32>
    %621 = vector.shape_cast %617 : vector<16x8xf32> to vector<1x16x8xf32>
    %622 = tpu.concatenate %618, %619, %620, %621 in 0 : vector<1x16x8xf32>, vector<1x16x8xf32>, vector<1x16x8xf32>, vector<1x16x8xf32> -> vector<4x16x8xf32>
    %623 = vector.shape_cast %622 : vector<4x16x8xf32> to vector<8x8x8xf32>
    %624 = vector.extract_strided_slice %603 {offsets = [0, 0], sizes = [16, 8], strides = [1, 1]} : vector<16x32xf32> to vector<16x8xf32>
    %625 = vector.extract_strided_slice %603 {offsets = [0, 8], sizes = [16, 8], strides = [1, 1]} : vector<16x32xf32> to vector<16x8xf32>
    %626 = vector.extract_strided_slice %603 {offsets = [0, 16], sizes = [16, 8], strides = [1, 1]} : vector<16x32xf32> to vector<16x8xf32>
    %627 = vector.extract_strided_slice %603 {offsets = [0, 24], sizes = [16, 8], strides = [1, 1]} : vector<16x32xf32> to vector<16x8xf32>
    %628 = vector.shape_cast %624 : vector<16x8xf32> to vector<1x16x8xf32>
    %629 = vector.shape_cast %625 : vector<16x8xf32> to vector<1x16x8xf32>
    %630 = vector.shape_cast %626 : vector<16x8xf32> to vector<1x16x8xf32>
    %631 = vector.shape_cast %627 : vector<16x8xf32> to vector<1x16x8xf32>
    %632 = tpu.concatenate %628, %629, %630, %631 in 0 : vector<1x16x8xf32>, vector<1x16x8xf32>, vector<1x16x8xf32>, vector<1x16x8xf32> -> vector<4x16x8xf32>
    %633 = vector.shape_cast %632 : vector<4x16x8xf32> to vector<8x8x8xf32>
    "tpu.trace_start"() <{level = 10 : i32, message = "bqd,bkd->bqk"}> : () -> ()
    %cst_296 = arith.constant dense<0.000000e+00> : vector<8x8x8xf32>
    %634 = tpu.matmul %613, %623, %cst_296 {dimension_numbers = #tpu.dot_dimension_numbers<[2], [2], [1], [1], [0, 0, 0, 1, 1, 1], [0], [0]>} : vector<8x8x8xf32>, vector<8x8x8xf32>, vector<8x8x8xf32> -> vector<8x8x8xf32>
    "tpu.trace_stop"() : () -> ()
    %cst_297 = arith.constant 0.353553385 : f32
    %635 = vector.broadcast %cst_297 : f32 to vector<8x8x8xf32>
    %636 = arith.mulf %634, %635 : vector<8x8x8xf32>
    %637 = vector.shape_cast %636 : vector<8x8x8xf32> to vector<4x2x8x8xf32>
    %638 = vector.broadcast %26 : vector<1x1x8x8xf32> to vector<4x2x8x8xf32>
    %639 = arith.addf %637, %638 : vector<4x2x8x8xf32>
    %cst_298 = arith.constant dense<0xFF800000> : vector<4x2x8xf32>
    %640 = vector.multi_reduction <maximumf>, %639, %cst_298 [3] : vector<4x2x8x8xf32> to vector<4x2x8xf32>
    %641 = vector.shape_cast %640 : vector<4x2x8xf32> to vector<4x2x8x1xf32>
    %642 = vector.broadcast %641 : vector<4x2x8x1xf32> to vector<4x2x8x8xf32>
    %643 = arith.subf %639, %642 : vector<4x2x8x8xf32>
    %644 = math.exp %643 : vector<4x2x8x8xf32>
    %cst_299 = arith.constant dense<0.000000e+00> : vector<4x2x8xf32>
    %645 = vector.multi_reduction <add>, %644, %cst_299 [3] : vector<4x2x8x8xf32> to vector<4x2x8xf32>
    %646 = vector.shape_cast %645 : vector<4x2x8xf32> to vector<4x2x8x1xf32>
    %647 = tpu.reciprocal %646 {approx = true} : vector<4x2x8x1xf32> -> vector<4x2x8x1xf32>
    %648 = vector.broadcast %647 : vector<4x2x8x1xf32> to vector<4x2x8x8xf32>
    %649 = arith.mulf %644, %648 : vector<4x2x8x8xf32>
    %650 = vector.shape_cast %649 : vector<4x2x8x8xf32> to vector<8x8x8xf32>
    "tpu.trace_start"() <{level = 10 : i32, message = "bqk,bkd->bqd"}> : () -> ()
    %cst_300 = arith.constant dense<0.000000e+00> : vector<8x8x8xf32>
    %651 = tpu.matmul %650, %633, %cst_300 {dimension_numbers = #tpu.dot_dimension_numbers<[2], [1], [1], [2], [0, 0, 0, 1, 1, 2], [0], [0]>} : vector<8x8x8xf32>, vector<8x8x8xf32>, vector<8x8x8xf32> -> vector<8x8x8xf32>
    "tpu.trace_stop"() : () -> ()
    %652 = vector.extract_strided_slice %651 {offsets = [0, 0, 0], sizes = [2, 8, 8], strides = [1, 1, 1]} : vector<8x8x8xf32> to vector<2x8x8xf32>
    %653 = vector.extract_strided_slice %651 {offsets = [2, 0, 0], sizes = [2, 8, 8], strides = [1, 1, 1]} : vector<8x8x8xf32> to vector<2x8x8xf32>
    %654 = vector.extract_strided_slice %651 {offsets = [4, 0, 0], sizes = [2, 8, 8], strides = [1, 1, 1]} : vector<8x8x8xf32> to vector<2x8x8xf32>
    %655 = vector.extract_strided_slice %651 {offsets = [6, 0, 0], sizes = [2, 8, 8], strides = [1, 1, 1]} : vector<8x8x8xf32> to vector<2x8x8xf32>
    %656 = tpu.concatenate %652, %653, %654, %655 in 2 : vector<2x8x8xf32>, vector<2x8x8xf32>, vector<2x8x8xf32>, vector<2x8x8xf32> -> vector<2x8x32xf32>
    %657 = vector.shape_cast %656 : vector<2x8x32xf32> to vector<16x32xf32>
    %cst_301 = arith.constant dense<0.000000e+00> : vector<16x32xf32>
    %658 = tpu.matmul %657, %563, %cst_301 {dimension_numbers = #tpu.dot_dimension_numbers<[1], [0], [0], [1], [0, 0, 1, 1], [], []>} : vector<16x32xf32>, vector<32x32xf32>, vector<16x32xf32> -> vector<16x32xf32>
    %659 = vector.broadcast %565 : vector<1x32xf32> to vector<16x32xf32>
    %660 = arith.addf %658, %659 : vector<16x32xf32>
    %661 = arith.addf %557, %660 : vector<16x32xf32>
    %cst_302 = arith.constant dense<0.000000e+00> : vector<16xf32>
    %662 = vector.multi_reduction <add>, %661, %cst_302 [1] : vector<16x32xf32> to vector<16xf32>
    %663 = vector.shape_cast %662 : vector<16xf32> to vector<16x1xf32>
    %cst_303 = arith.constant 3.200000e+01 : f32
    %664 = vector.broadcast %cst_303 : f32 to vector<16x1xf32>
    %665 = arith.divf %663, %664 : vector<16x1xf32>
    %666 = vector.broadcast %665 : vector<16x1xf32> to vector<16x32xf32>
    %667 = arith.subf %661, %666 : vector<16x32xf32>
    %668 = arith.mulf %667, %667 : vector<16x32xf32>
    %cst_304 = arith.constant dense<0.000000e+00> : vector<16xf32>
    %669 = vector.multi_reduction <add>, %668, %cst_304 [1] : vector<16x32xf32> to vector<16xf32>
    %670 = vector.shape_cast %669 : vector<16xf32> to vector<16x1xf32>
    %cst_305 = arith.constant 3.200000e+01 : f32
    %671 = vector.broadcast %cst_305 : f32 to vector<16x1xf32>
    %672 = arith.divf %670, %671 : vector<16x1xf32>
    %cst_306 = arith.constant 9.99999974E-6 : f32
    %673 = vector.broadcast %cst_306 : f32 to vector<16x1xf32>
    %674 = arith.addf %672, %673 : vector<16x1xf32>
    %675 = math.rsqrt %674 : vector<16x1xf32>
    %676 = vector.broadcast %675 : vector<16x1xf32> to vector<16x32xf32>
    %677 = arith.mulf %667, %676 : vector<16x32xf32>
    %678 = vector.broadcast %567 : vector<1x32xf32> to vector<16x32xf32>
    %679 = arith.mulf %677, %678 : vector<16x32xf32>
    %680 = vector.broadcast %569 : vector<1x32xf32> to vector<16x32xf32>
    %681 = arith.addf %679, %680 : vector<16x32xf32>
    %cst_307 = arith.constant dense<0.000000e+00> : vector<16x32xf32>
    %682 = tpu.matmul %681, %571, %cst_307 {dimension_numbers = #tpu.dot_dimension_numbers<[1], [0], [0], [1], [0, 0, 1, 1], [], []>} : vector<16x32xf32>, vector<32x32xf32>, vector<16x32xf32> -> vector<16x32xf32>
    %683 = vector.broadcast %573 : vector<1x32xf32> to vector<16x32xf32>
    %684 = arith.addf %682, %683 : vector<16x32xf32>
    %cst_308 = arith.constant dense<0.000000e+00> : vector<16x64xf32>
    %685 = tpu.matmul %309, %575, %cst_308 {dimension_numbers = #tpu.dot_dimension_numbers<[1], [0], [0], [1], [0, 0, 1, 1], [], []>} : vector<16x32xf32>, vector<32x64xf32>, vector<16x64xf32> -> vector<16x64xf32>
    %686 = vector.broadcast %577 : vector<1x64xf32> to vector<16x64xf32>
    %687 = arith.addf %685, %686 : vector<16x64xf32>
    %688 = vector.extract_strided_slice %687 {offsets = [0, 0], sizes = [16, 32], strides = [1, 1]} : vector<16x64xf32> to vector<16x32xf32>
    %689 = vector.extract_strided_slice %687 {offsets = [0, 32], sizes = [16, 32], strides = [1, 1]} : vector<16x64xf32> to vector<16x32xf32>
    %690 = vector.extract_strided_slice %684 {offsets = [0, 0], sizes = [16, 8], strides = [1, 1]} : vector<16x32xf32> to vector<16x8xf32>
    %691 = vector.extract_strided_slice %684 {offsets = [0, 8], sizes = [16, 8], strides = [1, 1]} : vector<16x32xf32> to vector<16x8xf32>
    %692 = vector.extract_strided_slice %684 {offsets = [0, 16], sizes = [16, 8], strides = [1, 1]} : vector<16x32xf32> to vector<16x8xf32>
    %693 = vector.extract_strided_slice %684 {offsets = [0, 24], sizes = [16, 8], strides = [1, 1]} : vector<16x32xf32> to vector<16x8xf32>
    %694 = vector.shape_cast %690 : vector<16x8xf32> to vector<1x16x8xf32>
    %695 = vector.shape_cast %691 : vector<16x8xf32> to vector<1x16x8xf32>
    %696 = vector.shape_cast %692 : vector<16x8xf32> to vector<1x16x8xf32>
    %697 = vector.shape_cast %693 : vector<16x8xf32> to vector<1x16x8xf32>
    %698 = tpu.concatenate %694, %695, %696, %697 in 0 : vector<1x16x8xf32>, vector<1x16x8xf32>, vector<1x16x8xf32>, vector<1x16x8xf32> -> vector<4x16x8xf32>
    %699 = vector.shape_cast %698 : vector<4x16x8xf32> to vector<8x8x8xf32>
    %700 = vector.extract_strided_slice %688 {offsets = [0, 0], sizes = [16, 8], strides = [1, 1]} : vector<16x32xf32> to vector<16x8xf32>
    %701 = vector.extract_strided_slice %688 {offsets = [0, 8], sizes = [16, 8], strides = [1, 1]} : vector<16x32xf32> to vector<16x8xf32>
    %702 = vector.extract_strided_slice %688 {offsets = [0, 16], sizes = [16, 8], strides = [1, 1]} : vector<16x32xf32> to vector<16x8xf32>
    %703 = vector.extract_strided_slice %688 {offsets = [0, 24], sizes = [16, 8], strides = [1, 1]} : vector<16x32xf32> to vector<16x8xf32>
    %704 = vector.shape_cast %700 : vector<16x8xf32> to vector<1x16x8xf32>
    %705 = vector.shape_cast %701 : vector<16x8xf32> to vector<1x16x8xf32>
    %706 = vector.shape_cast %702 : vector<16x8xf32> to vector<1x16x8xf32>
    %707 = vector.shape_cast %703 : vector<16x8xf32> to vector<1x16x8xf32>
    %708 = tpu.concatenate %704, %705, %706, %707 in 0 : vector<1x16x8xf32>, vector<1x16x8xf32>, vector<1x16x8xf32>, vector<1x16x8xf32> -> vector<4x16x8xf32>
    %709 = vector.shape_cast %708 : vector<4x16x8xf32> to vector<8x8x8xf32>
    %710 = vector.extract_strided_slice %689 {offsets = [0, 0], sizes = [16, 8], strides = [1, 1]} : vector<16x32xf32> to vector<16x8xf32>
    %711 = vector.extract_strided_slice %689 {offsets = [0, 8], sizes = [16, 8], strides = [1, 1]} : vector<16x32xf32> to vector<16x8xf32>
    %712 = vector.extract_strided_slice %689 {offsets = [0, 16], sizes = [16, 8], strides = [1, 1]} : vector<16x32xf32> to vector<16x8xf32>
    %713 = vector.extract_strided_slice %689 {offsets = [0, 24], sizes = [16, 8], strides = [1, 1]} : vector<16x32xf32> to vector<16x8xf32>
    %714 = vector.shape_cast %710 : vector<16x8xf32> to vector<1x16x8xf32>
    %715 = vector.shape_cast %711 : vector<16x8xf32> to vector<1x16x8xf32>
    %716 = vector.shape_cast %712 : vector<16x8xf32> to vector<1x16x8xf32>
    %717 = vector.shape_cast %713 : vector<16x8xf32> to vector<1x16x8xf32>
    %718 = tpu.concatenate %714, %715, %716, %717 in 0 : vector<1x16x8xf32>, vector<1x16x8xf32>, vector<1x16x8xf32>, vector<1x16x8xf32> -> vector<4x16x8xf32>
    %719 = vector.shape_cast %718 : vector<4x16x8xf32> to vector<8x8x8xf32>
    "tpu.trace_start"() <{level = 10 : i32, message = "bqd,bkd->bqk"}> : () -> ()
    %cst_309 = arith.constant dense<0.000000e+00> : vector<8x8x8xf32>
    %720 = tpu.matmul %699, %709, %cst_309 {dimension_numbers = #tpu.dot_dimension_numbers<[2], [2], [1], [1], [0, 0, 0, 1, 1, 1], [0], [0]>} : vector<8x8x8xf32>, vector<8x8x8xf32>, vector<8x8x8xf32> -> vector<8x8x8xf32>
    "tpu.trace_stop"() : () -> ()
    %cst_310 = arith.constant 0.353553385 : f32
    %721 = vector.broadcast %cst_310 : f32 to vector<8x8x8xf32>
    %722 = arith.mulf %720, %721 : vector<8x8x8xf32>
    %723 = vector.shape_cast %722 : vector<8x8x8xf32> to vector<4x2x8x8xf32>
    %724 = vector.broadcast %20 : vector<1x2x1x8xf32> to vector<4x2x8x8xf32>
    %725 = arith.addf %723, %724 : vector<4x2x8x8xf32>
    %cst_311 = arith.constant dense<0xFF800000> : vector<4x2x8xf32>
    %726 = vector.multi_reduction <maximumf>, %725, %cst_311 [3] : vector<4x2x8x8xf32> to vector<4x2x8xf32>
    %727 = vector.shape_cast %726 : vector<4x2x8xf32> to vector<4x2x8x1xf32>
    %728 = vector.broadcast %727 : vector<4x2x8x1xf32> to vector<4x2x8x8xf32>
    %729 = arith.subf %725, %728 : vector<4x2x8x8xf32>
    %730 = math.exp %729 : vector<4x2x8x8xf32>
    %cst_312 = arith.constant dense<0.000000e+00> : vector<4x2x8xf32>
    %731 = vector.multi_reduction <add>, %730, %cst_312 [3] : vector<4x2x8x8xf32> to vector<4x2x8xf32>
    %732 = vector.shape_cast %731 : vector<4x2x8xf32> to vector<4x2x8x1xf32>
    %733 = tpu.reciprocal %732 {approx = true} : vector<4x2x8x1xf32> -> vector<4x2x8x1xf32>
    %734 = vector.broadcast %733 : vector<4x2x8x1xf32> to vector<4x2x8x8xf32>
    %735 = arith.mulf %730, %734 : vector<4x2x8x8xf32>
    %736 = vector.shape_cast %735 : vector<4x2x8x8xf32> to vector<8x8x8xf32>
    "tpu.trace_start"() <{level = 10 : i32, message = "bqk,bkd->bqd"}> : () -> ()
    %cst_313 = arith.constant dense<0.000000e+00> : vector<8x8x8xf32>
    %737 = tpu.matmul %736, %719, %cst_313 {dimension_numbers = #tpu.dot_dimension_numbers<[2], [1], [1], [2], [0, 0, 0, 1, 1, 2], [0], [0]>} : vector<8x8x8xf32>, vector<8x8x8xf32>, vector<8x8x8xf32> -> vector<8x8x8xf32>
    "tpu.trace_stop"() : () -> ()
    %738 = vector.extract_strided_slice %737 {offsets = [0, 0, 0], sizes = [2, 8, 8], strides = [1, 1, 1]} : vector<8x8x8xf32> to vector<2x8x8xf32>
    %739 = vector.extract_strided_slice %737 {offsets = [2, 0, 0], sizes = [2, 8, 8], strides = [1, 1, 1]} : vector<8x8x8xf32> to vector<2x8x8xf32>
    %740 = vector.extract_strided_slice %737 {offsets = [4, 0, 0], sizes = [2, 8, 8], strides = [1, 1, 1]} : vector<8x8x8xf32> to vector<2x8x8xf32>
    %741 = vector.extract_strided_slice %737 {offsets = [6, 0, 0], sizes = [2, 8, 8], strides = [1, 1, 1]} : vector<8x8x8xf32> to vector<2x8x8xf32>
    %742 = tpu.concatenate %738, %739, %740, %741 in 2 : vector<2x8x8xf32>, vector<2x8x8xf32>, vector<2x8x8xf32>, vector<2x8x8xf32> -> vector<2x8x32xf32>
    %743 = vector.shape_cast %742 : vector<2x8x32xf32> to vector<16x32xf32>
    %cst_314 = arith.constant dense<0.000000e+00> : vector<16x32xf32>
    %744 = tpu.matmul %743, %579, %cst_314 {dimension_numbers = #tpu.dot_dimension_numbers<[1], [0], [0], [1], [0, 0, 1, 1], [], []>} : vector<16x32xf32>, vector<32x32xf32>, vector<16x32xf32> -> vector<16x32xf32>
    %745 = vector.broadcast %581 : vector<1x32xf32> to vector<16x32xf32>
    %746 = arith.addf %744, %745 : vector<16x32xf32>
    %747 = arith.addf %681, %746 : vector<16x32xf32>
    %cst_315 = arith.constant dense<0.000000e+00> : vector<16xf32>
    %748 = vector.multi_reduction <add>, %747, %cst_315 [1] : vector<16x32xf32> to vector<16xf32>
    %749 = vector.shape_cast %748 : vector<16xf32> to vector<16x1xf32>
    %cst_316 = arith.constant 3.200000e+01 : f32
    %750 = vector.broadcast %cst_316 : f32 to vector<16x1xf32>
    %751 = arith.divf %749, %750 : vector<16x1xf32>
    %752 = vector.broadcast %751 : vector<16x1xf32> to vector<16x32xf32>
    %753 = arith.subf %747, %752 : vector<16x32xf32>
    %754 = arith.mulf %753, %753 : vector<16x32xf32>
    %cst_317 = arith.constant dense<0.000000e+00> : vector<16xf32>
    %755 = vector.multi_reduction <add>, %754, %cst_317 [1] : vector<16x32xf32> to vector<16xf32>
    %756 = vector.shape_cast %755 : vector<16xf32> to vector<16x1xf32>
    %cst_318 = arith.constant 3.200000e+01 : f32
    %757 = vector.broadcast %cst_318 : f32 to vector<16x1xf32>
    %758 = arith.divf %756, %757 : vector<16x1xf32>
    %cst_319 = arith.constant 9.99999974E-6 : f32
    %759 = vector.broadcast %cst_319 : f32 to vector<16x1xf32>
    %760 = arith.addf %758, %759 : vector<16x1xf32>
    %761 = math.rsqrt %760 : vector<16x1xf32>
    %762 = vector.broadcast %761 : vector<16x1xf32> to vector<16x32xf32>
    %763 = arith.mulf %753, %762 : vector<16x32xf32>
    %764 = vector.broadcast %583 : vector<1x32xf32> to vector<16x32xf32>
    %765 = arith.mulf %763, %764 : vector<16x32xf32>
    %766 = vector.broadcast %585 : vector<1x32xf32> to vector<16x32xf32>
    %767 = arith.addf %765, %766 : vector<16x32xf32>
    %cst_320 = arith.constant dense<0.000000e+00> : vector<16x64xf32>
    %768 = tpu.matmul %767, %587, %cst_320 {dimension_numbers = #tpu.dot_dimension_numbers<[1], [0], [0], [1], [0, 0, 1, 1], [], []>} : vector<16x32xf32>, vector<32x64xf32>, vector<16x64xf32> -> vector<16x64xf32>
    %769 = vector.broadcast %589 : vector<1x64xf32> to vector<16x64xf32>
    %770 = arith.addf %768, %769 : vector<16x64xf32>
    %cst_321 = arith.constant 0.000000e+00 : f32
    %771 = vector.broadcast %cst_321 : f32 to vector<16x64xf32>
    %772 = arith.maximumf %770, %771 : vector<16x64xf32>
    %cst_322 = arith.constant dense<0.000000e+00> : vector<16x32xf32>
    %773 = tpu.matmul %772, %591, %cst_322 {dimension_numbers = #tpu.dot_dimension_numbers<[1], [0], [0], [1], [0, 0, 1, 1], [], []>} : vector<16x64xf32>, vector<64x32xf32>, vector<16x32xf32> -> vector<16x32xf32>
    %774 = vector.broadcast %593 : vector<1x32xf32> to vector<16x32xf32>
    %775 = arith.addf %773, %774 : vector<16x32xf32>
    %776 = arith.addf %767, %775 : vector<16x32xf32>
    %cst_323 = arith.constant dense<0.000000e+00> : vector<16xf32>
    %777 = vector.multi_reduction <add>, %776, %cst_323 [1] : vector<16x32xf32> to vector<16xf32>
    %778 = vector.shape_cast %777 : vector<16xf32> to vector<16x1xf32>
    %cst_324 = arith.constant 3.200000e+01 : f32
    %779 = vector.broadcast %cst_324 : f32 to vector<16x1xf32>
    %780 = arith.divf %778, %779 : vector<16x1xf32>
    %781 = vector.broadcast %780 : vector<16x1xf32> to vector<16x32xf32>
    %782 = arith.subf %776, %781 : vector<16x32xf32>
    %783 = arith.mulf %782, %782 : vector<16x32xf32>
    %cst_325 = arith.constant dense<0.000000e+00> : vector<16xf32>
    %784 = vector.multi_reduction <add>, %783, %cst_325 [1] : vector<16x32xf32> to vector<16xf32>
    %785 = vector.shape_cast %784 : vector<16xf32> to vector<16x1xf32>
    %cst_326 = arith.constant 3.200000e+01 : f32
    %786 = vector.broadcast %cst_326 : f32 to vector<16x1xf32>
    %787 = arith.divf %785, %786 : vector<16x1xf32>
    %cst_327 = arith.constant 9.99999974E-6 : f32
    %788 = vector.broadcast %cst_327 : f32 to vector<16x1xf32>
    %789 = arith.addf %787, %788 : vector<16x1xf32>
    %790 = math.rsqrt %789 : vector<16x1xf32>
    %791 = vector.broadcast %790 : vector<16x1xf32> to vector<16x32xf32>
    %792 = arith.mulf %782, %791 : vector<16x32xf32>
    %793 = vector.broadcast %595 : vector<1x32xf32> to vector<16x32xf32>
    %794 = arith.mulf %792, %793 : vector<16x32xf32>
    %795 = vector.broadcast %597 : vector<1x32xf32> to vector<16x32xf32>
    %796 = arith.addf %794, %795 : vector<16x32xf32>
    %c0_328 = arith.constant 0 : index
    %c0_329 = arith.constant 0 : index
    %797 = vector.load %arg39[%c0_328, %c0_329] : memref<32x16xf32, #tpu.memory_space<vmem>>, vector<32x16xf32>
    %cst_330 = arith.constant dense<0.000000e+00> : vector<16x16xf32>
    %798 = tpu.matmul %796, %797, %cst_330 {dimension_numbers = #tpu.dot_dimension_numbers<[1], [0], [0], [1], [0, 0, 1, 1], [], []>} : vector<16x32xf32>, vector<32x16xf32>, vector<16x16xf32> -> vector<16x16xf32>
    %c0_331 = arith.constant 0 : index
    %c0_332 = arith.constant 0 : index
    %799 = vector.load %arg40[%c0_331, %c0_332] : memref<1x16xf32, #tpu.memory_space<vmem>>, vector<1x16xf32>
    %800 = vector.broadcast %799 : vector<1x16xf32> to vector<16x16xf32>
    %801 = arith.addf %798, %800 : vector<16x16xf32>
    %cst_333 = arith.constant dense<0xFF800000> : vector<16xf32>
    %802 = vector.multi_reduction <maximumf>, %801, %cst_333 [1] : vector<16x16xf32> to vector<16xf32>
    %803 = vector.shape_cast %802 : vector<16xf32> to vector<16x1xf32>
    %804 = vector.broadcast %803 : vector<16x1xf32> to vector<16x16xf32>
    %805 = arith.subf %801, %804 : vector<16x16xf32>
    %806 = math.exp %805 : vector<16x16xf32>
    %cst_334 = arith.constant dense<0.000000e+00> : vector<16xf32>
    %807 = vector.multi_reduction <add>, %806, %cst_334 [1] : vector<16x16xf32> to vector<16xf32>
    %808 = vector.shape_cast %807 : vector<16xf32> to vector<16x1xf32>
    %809 = math.log %808 : vector<16x1xf32>
    %810 = vector.broadcast %809 : vector<16x1xf32> to vector<16x16xf32>
    %811 = arith.subf %805, %810 : vector<16x16xf32>
    %c0_335 = arith.constant 0 : index
    %c0_336 = arith.constant 0 : index
    %812 = vector.load %arg41[%c0_335, %c0_336] : memref<16x16xf32, #tpu.memory_space<vmem>>, vector<16x16xf32>
    tpu.vector_store %arg41[%c0_335, %c0_336], %811 {strides = array<i32>} : memref<16x16xf32, #tpu.memory_space<vmem>>, vector<16x16xf32>,
    return
  }
}

</mosaic_0001>

<bundles_post_ra>
// kernel: transformer_forward.1
= control target key start
LH: loop header
LB: loop body
LE: loop exit
PB: predicated region body
PF: predicated region fallthrough
CT: control target
= control target key end

     0   :  { %s14239_s6 = smov 1   ;;  %s14240_s10 = smov 2   ;;  %s16180_s0 = inlined_call_operand.smem [shape: u32[42], index: -1, kind: input, shape index: {}] }
   0x1   :  { %s14329_s5 = sld [smem:[%s16180_s0]]   ;;  %s14241_s14 = smov 3  }
   0x2   :  { %s14334_s9 = sld [smem:[%s16180_s0 + %s14239_s6]]   ;;  %s14242_s18 = smov 4  }
   0x3   :  { %s14339_s13 = sld [smem:[%s16180_s0 + %s14240_s10]]   ;;  %s14243_s22 = smov 5  }
   0x4   :  { %s14344_s17 = sld [smem:[%s16180_s0 + %s14241_s14]]   ;;  %s14244_s26 = smov 6  }
   0x5   :  { %s14349_s21 = sld [smem:[%s16180_s0 + %s14242_s18]]   ;;  %s14245_s30 = smov 7  }
   0x6   :  { %s14354_s25 = sld [smem:[%s16180_s0 + %s14243_s22]]   ;;  %s14246_s4 = smov 8  }
   0x7   :  { %16205 = sst [smem:[#allocation59_spill]] %s14329_s5  ;;  %s14247_s10 = smov 9  }
   0x8   :  { %16206 = sst [smem:[#allocation60_spill]] %s14334_s9  ;;  %s14248_s15 = smov 10  }
   0x9   :  { %s14359_s29 = sld [smem:[%s16180_s0 + %s14244_s26]]   ;;  %s14249_s20 = smov 11  }
   0xa   :  { %s14364_s3 = sld [smem:[%s16180_s0 + %s14245_s30]]   ;;  %s14250_s26 = smov 12  }
   0xb   :  { %16207 = sst [smem:[#allocation61_spill]] %s14349_s21  ;;  %s14251_s1 = smov 13  }
   0xc   :  { %s14369_s8 = sld [smem:[%s16180_s0 + %s14246_s4]]   ;;  %s14252_s7 = smov 14  }
   0xd   :  { %s14374_s14 = sld [smem:[%s16180_s0 + %s14247_s10]]   ;;  %s14254_s22 = smov 16  }
   0xe   :  { %s14379_s19 = sld [smem:[%s16180_s0 + %s14248_s15]]   ;;  %s14253_s15 = smov 15  }
   0xf   :  { %16208 = sst [smem:[#allocation62_spill]] %s14359_s29  ;;  %s14255_s28 = smov 17  }
  0x10   :  { %16209 = sst [smem:[#allocation63_spill]] %s14364_s3 }
  0x11   :  { %s14384_s24 = sld [smem:[%s16180_s0 + %s14249_s20]]  }
  0x12   :  { %s14389_s30 = sld [smem:[%s16180_s0 + %s14250_s26]]  }
  0x13   :  { %16210 = sst [smem:[#allocation64_spill]] %s14374_s14 }
  0x14   :  { %16211 = sst [smem:[#allocation65_spill]] %s14379_s19 }
  0x15   :  { %s14394_s6 = sld [smem:[%s16180_s0 + %s14251_s1]]  }
  0x16   :  { %s14399_s12 = sld [smem:[%s16180_s0 + %s14252_s7]]   ;;  %s14256_s7 = smov 18  }
  0x17   :  { %s14404_s20 = sld [smem:[%s16180_s0 + %s14253_s15]]   ;;  %s14257_s15 = smov 19  }
  0x18   :  { %16212 = sst [smem:[#allocation66_spill]] %s14389_s30 }
  0x19   :  { %s14409_s27 = sld [smem:[%s16180_s0 + %s14254_s22]]   ;;  %s14258_s22 = smov 20  }
  0x1a   :  { %s14414_s4 = sld [smem:[%s16180_s0 + %s14255_s28]]   ;;  %s14259_s28 = smov 21  }
  0x1b   :  { %16213 = sst [smem:[#allocation67_spill]] %s14394_s6 }
  0x1c   :  { %s14419_s6 = sld [smem:[%s16180_s0 + %s14256_s7]]   ;;  %s14260_s7 = smov 22  }
  0x1d   :  { %16214 = sst [smem:[#allocation68_spill]] %s14404_s20 }
  0x1e   :  { %s14424_s20 = sld [smem:[%s16180_s0 + %s14257_s15]]   ;;  %s14261_s15 = smov 23  }
  0x1f   :  { %16215 = sst [smem:[#allocation69_spill]] %s14409_s27 }
  0x20   :  { %16216 = sst [smem:[#allocation70_spill]] %s14414_s4 }
  0x21   :  { %s14429_s14 = sld [smem:[%s16180_s0 + %s14258_s22]]   ;;  %s14262_s22 = smov 24  }
  0x22   :  { %s14434_s4 = sld [smem:[%s16180_s0 + %s14259_s28]]   ;;  %s14263_s28 = smov 25  }
  0x23   :  { %s14439_s9 = sld [smem:[%s16180_s0 + %s14260_s7]]   ;;  %s14264_s7 = smov 26  }
  0x24   :  { %16217 = sst [smem:[#allocation71_spill]] %s14424_s20 }
  0x25   :  { %s14444_s20 = sld [smem:[%s16180_s0 + %s14261_s15]]   ;;  %s14265_s15 = smov 27  }
  0x26   :  { %s14449_s29 = sld [smem:[%s16180_s0 + %s14262_s22]]   ;;  %s14266_s22 = smov 28  }
  0x27   :  { %16218 = sst [smem:[#allocation72_spill]] %s14429_s14 }
  0x28   :  { %16219 = sst [smem:[#allocation73_spill]] %s14434_s4 }
  0x29   :  { %s14454_s4 = sld [smem:[%s16180_s0 + %s14263_s28]]   ;;  %s14267_s28 = smov 29  }
  0x2a   :  { %s14459_s3 = sld [smem:[%s16180_s0 + %s14264_s7]]   ;;  %s14268_s7 = smov 30  }
  0x2b   :  { %16220 = sst [smem:[#allocation74_spill]] %s14444_s20 }
  0x2c   :  { %s14464_s21 = sld [smem:[%s16180_s0 + %s14265_s15]]   ;;  %s14269_s15 = smov 31  }
  0x2d   :  { %s14469_s5 = sld [smem:[%s16180_s0 + %s14266_s22]]   ;;  %s14270_s22 = smov 32  }
  0x2e   :  { %s14479_s20 = sld [smem:[%s16180_s0 + %s14268_s7]]   ;;  %s14272_s7 = smov 34  }
  0x2f   :  { %16221 = sst [smem:[#allocation75_spill]] %s14454_s4 }
  0x30   :  { %s14474_s4 = sld [smem:[%s16180_s0 + %s14267_s28]]   ;;  %s14271_s28 = smov 33  }
  0x31   :  { %s14489_s14 = sld [smem:[%s16180_s0 + %s14270_s22]]   ;;  %s14274_s22 = smov 36  }
  0x32   :  { %16222 = sst [smem:[#allocation76_spill]] %s14464_s21 }
  0x33   :  { %s14484_s21 = sld [smem:[%s16180_s0 + %s14269_s15]]   ;;  %s14273_s15 = smov 35  }
  0x34   :  { %s14499_s27 = sld [smem:[%s16180_s0 + %s14272_s7]]   ;;  %s14276_s7 = smov 38  }
  0x35   :  { %s14509_s30 = sld [smem:[%s16180_s0 + %s14274_s22]]   ;;  %s14278_s22 = smov 40  }
  0x36   :  { %16223 = sst [smem:[#allocation77_spill]] %s14474_s4 }
  0x37   :  { %s14494_s4 = sld [smem:[%s16180_s0 + %s14271_s28]]   ;;  %s14275_s28 = smov 37  }
  0x38   :  { %s14529_s19 = sld [smem:[%s16180_s0 + %s14278_s22]]  }
  0x39   :  { %16224 = sst [smem:[#allocation78_spill]] %s14484_s21 }
  0x3a   :  { %16226 = sst [smem:[#allocation80_spill]] %s14499_s27 }
  0x3b   :  { %s14504_s21 = sld [smem:[%s16180_s0 + %s14273_s15]]   ;;  %s14277_s15 = smov 39  }
  0x3c   :  { %s14519_s27 = sld [smem:[%s16180_s0 + %s14276_s7]]  }
  0x3d   :  { %16225 = sst [smem:[#allocation79_spill]] %s14494_s4 }
  0x3e   :  { %s14514_s4 = sld [smem:[%s16180_s0 + %s14275_s28]]   ;;  %s14279_s28 = smov 41  }
  0x41   :  { %16227 = sst [smem:[#allocation81_spill]] %s14504_s21 }
  0x42   :  { %s14524_s21 = sld [smem:[%s16180_s0 + %s14277_s15]]  }
  0x44   :  { %16228 = sst [smem:[#allocation82_spill]] %s14514_s4 }
  0x45   :  { %s14534_s4 = sld [smem:[%s16180_s0 + %s14279_s28]]  }
  0x46   :  { %88 = vsyncpa [#allocation3], 0 }
  0x47   :  { %89 = vsyncpa [#allocation6], 0 }
  0x48   :  { %90 = vsyncpa [#allocation9], 0 }
  0x49   :  { %91 = vsyncpa [#allocation12], 0 }
  0x4a   :  { %92 = vsyncpa [#allocation15], 0 }
  0x4b   :  { %93 = vsyncpa [#allocation18], 0 }
  0x4c   :  { %94 = vsyncpa [#allocation21], 0 }
  0x4d   :  { %95 = vsyncpa [#allocation24], 0 }
  0x4e   :  { %96 = vsyncpa [#allocation27], 0 }
  0x4f   :  { %97 = vsyncpa [#allocation30], 0 }
  0x50   :  { %98 = vsyncpa [#allocation33], 0 }
  0x51   :  { %99 = vsyncpa [#allocation36], 0 }
  0x52   :  { %100 = vsyncpa [#allocation39], 0 }
  0x53   :  { %101 = vsyncpa [#allocation42], 0 }
  0x54   :  { %102 = vsyncpa [#allocation4], 0  ;;  %s14280_s0 = smov [#allocation5]   ;;  %s13615_s10 = scalar_lea.hbm %s14344_s17, 32 }
  0x55   :  { %s122_s7 = sshll.u32 %s14280_s0, 4  ;;  %p13616_p0 = scmp.ne.s32.totalorder %s14344_s17, %s13615_s10  ;;  %s123_s7 = int_to_ptr.vmem [resolvable:$true] %s122_s7 }
  0x56   :  { %p13619_p1 = scmp.lt.u32.totalorder %s13615_s10, %s14344_s17 }
  0x58   :  { %p13621_p2 = pnand %p13619_p1, %p13616_p0 }
  0x5a   :  { %13624 = shalt.err (!%p13621_p2)
}
  0x5b   :  { %s13625_s11 = scalar_lea.vmem %s123_s7, 32  ;;  %p13630_p4 = scmp.lt.s32.totalorder %s123_s7, %s123_s7 }
  0x5c   :  { %p13626_p3 = scmp.ne.s32.totalorder %s123_s7, %s13625_s11  ;;  %p13631_p5 = scmp.lt.s32.totalorder %s13625_s11, %s13625_s11 }
  0x5e   :  { %p13632_p6 = por %p13631_p5, %p13630_p4 }
  0x60   :  { %p13633_p7 = pnand %p13632_p6, %p13626_p3 }
  0x62   :  { %13636 = shalt.err (!%p13633_p7)
}
  0x63   :  { %s14281_s15 = smov 16   ;;  %s14282_s16 = smov 1  }
  0x64   :  { %128 = dma.hbm_to_vmem [thread:$0]  %s14344_s17, 32, %s123_s7, [#allocation6], %s14281_s15, %s14281_s15, %s14282_s16  }
  0x65   :  { %s14283_s18 = smov [#allocation8]   ;;  %s14284_s23 = smov [#allocation11]  }
  0x66   :  { %s152_s22 = sshll.u32 %s14283_s18, 4  ;;  %s178_s26 = sshll.u32 %s14284_s23, 4  ;;  %s153_s22 = int_to_ptr.vmem [resolvable:$true] %s152_s22  ;;  %s179_s26 = int_to_ptr.vmem [resolvable:$true] %s178_s26 }
  0x67   :  { %s13637_s28 = scalar_lea.hbm %s14369_s8, 32 }
  0x68   :  { %p13638_p8 = scmp.ne.s32.totalorder %s14369_s8, %s13637_s28  ;;  %p13641_p9 = scmp.lt.u32.totalorder %s13637_s28, %s14369_s8 }
  0x6a   :  { %p13643_p10 = pnand %p13641_p9, %p13638_p8 }
  0x6c   :  { %13646 = shalt.err (!%p13643_p10)
}
  0x6d   :  { %s13647_s1 = scalar_lea.vmem %s153_s22, 32  ;;  %p13652_p12 = scmp.lt.s32.totalorder %s153_s22, %s153_s22 }
  0x6e   :  { %p13648_p11 = scmp.ne.s32.totalorder %s153_s22, %s13647_s1  ;;  %p13653_p13 = scmp.lt.s32.totalorder %s13647_s1, %s13647_s1 }
  0x70   :  { %p13654_p0 = por %p13653_p13, %p13652_p12 }
  0x72   :  { %p13655_p1 = pnand %p13654_p0, %p13648_p11 }
  0x74   :  { %13658 = shalt.err (!%p13655_p1)
}
  0x75   :  { %158 = dma.hbm_to_vmem [thread:$0]  %s14369_s8, 32, %s153_s22, [#allocation9], %s14281_s15, %s14281_s15, %s14282_s16  }
  0x76   :  { %s13659_s17 = scalar_lea.hbm %s14384_s24, 32 }
  0x77   :  { %p13660_p2 = scmp.ne.s32.totalorder %s14384_s24, %s13659_s17  ;;  %p13663_p3 = scmp.lt.u32.totalorder %s13659_s17, %s14384_s24 }
  0x79   :  { %p13665_p4 = pnand %p13663_p3, %p13660_p2 }
  0x7b   :  { %13668 = shalt.err (!%p13665_p4)
}
  0x7c   :  { %s13669_s2 = scalar_lea.vmem %s179_s26, 32  ;;  %p13674_p6 = scmp.lt.s32.totalorder %s179_s26, %s179_s26 }
  0x7d   :  { %p13670_p5 = scmp.ne.s32.totalorder %s179_s26, %s13669_s2  ;;  %p13675_p7 = scmp.lt.s32.totalorder %s13669_s2, %s13669_s2 }
  0x7f   :  { %p13676_p8 = por %p13675_p7, %p13674_p6 }
  0x81   :  { %p13677_p9 = pnand %p13676_p8, %p13670_p5 }
  0x83   :  { %13680 = shalt.err (!%p13677_p9)
}
  0x84   :  { %184 = dma.hbm_to_vmem [thread:$0]  %s14384_s24, 32, %s179_s26, [#allocation12], %s14281_s15, %s14281_s15, %s14282_s16  }
  0x85   :  { %s14285_s8 = smov [#allocation14]   ;;  %s14286_s7 = smov [#allocation17]  }
  0x86   :  { %s204_s0 = sshll.u32 %s14285_s8, 4  ;;  %s232_s10 = sshll.u32 %s14286_s7, 4  ;;  %s205_s0 = int_to_ptr.vmem [resolvable:$true] %s204_s0  ;;  %s233_s10 = int_to_ptr.vmem [resolvable:$true] %s232_s10 }
  0x87   :  { %s13681_s11 = scalar_lea.hbm %s14399_s12, 32 }
  0x88   :  { %p13682_p10 = scmp.ne.s32.totalorder %s14399_s12, %s13681_s11  ;;  %p13685_p11 = scmp.lt.u32.totalorder %s13681_s11, %s14399_s12 }
  0x8a   :  { %p13687_p12 = pnand %p13685_p11, %p13682_p10 }
  0x8c   :  { %13690 = shalt.err (!%p13687_p12)
}
  0x8d   :  { %s13691_s18 = scalar_lea.vmem %s205_s0, 32  ;;  %p13696_p0 = scmp.lt.s32.totalorder %s205_s0, %s205_s0 }
  0x8e   :  { %p13692_p13 = scmp.ne.s32.totalorder %s205_s0, %s13691_s18  ;;  %p13697_p1 = scmp.lt.s32.totalorder %s13691_s18, %s13691_s18 }
  0x90   :  { %p13698_p2 = por %p13697_p1, %p13696_p0 }
  0x92   :  { %p13699_p3 = pnand %p13698_p2, %p13692_p13 }
  0x94   :  { %13702 = shalt.err (!%p13699_p3)
}
  0x95   :  { %210 = dma.hbm_to_vmem [thread:$0]  %s14399_s12, 32, %s205_s0, [#allocation15], %s14281_s15, %s14281_s15, %s14282_s16  }
  0x96   :  { %s13703_s24 = scalar_lea.hbm %s14419_s6, 32 }
  0x97   :  { %p13704_p4 = scmp.ne.s32.totalorder %s14419_s6, %s13703_s24  ;;  %p13707_p5 = scmp.lt.u32.totalorder %s13703_s24, %s14419_s6 }
  0x99   :  { %p13709_p6 = pnand %p13707_p5, %p13704_p4 }
  0x9b   :  { %13712 = shalt.err (!%p13709_p6)
}
  0x9c   :  { %s13713_s22 = scalar_lea.vmem %s233_s10, 32  ;;  %p13718_p8 = scmp.lt.s32.totalorder %s233_s10, %s233_s10 }
  0x9d   :  { %p13714_p7 = scmp.ne.s32.totalorder %s233_s10, %s13713_s22  ;;  %p13719_p9 = scmp.lt.s32.totalorder %s13713_s22, %s13713_s22 }
  0x9f   :  { %p13720_p10 = por %p13719_p9, %p13718_p8 }
  0xa1   :  { %p13721_p11 = pnand %p13720_p10, %p13714_p7 }
  0xa3   :  { %13724 = shalt.err (!%p13721_p11)
}
  0xa4   :  { %238 = dma.hbm_to_vmem [thread:$0]  %s14419_s6, 32, %s233_s10, [#allocation18], %s14281_s15, %s14281_s15, %s14282_s16  }
  0xa5   :  { %s14287_s12 = smov [#allocation20]   ;;  %s14288_s26 = smov [#allocation23]  }
  0xa6   :  { %s260_s23 = sshll.u32 %s14287_s12, 4  ;;  %s284_s28 = sshll.u32 %s14288_s26, 4  ;;  %s261_s23 = int_to_ptr.vmem [resolvable:$true] %s260_s23  ;;  %s285_s28 = int_to_ptr.vmem [resolvable:$true] %s284_s28 }
  0xa7   :  { %s13725_s1 = scalar_lea.hbm %s14439_s9, 32 }
  0xa8   :  { %p13726_p12 = scmp.ne.s32.totalorder %s14439_s9, %s13725_s1  ;;  %p13729_p13 = scmp.lt.u32.totalorder %s13725_s1, %s14439_s9 }
  0xaa   :  { %p13731_p0 = pnand %p13729_p13, %p13726_p12 }
  0xac   :  { %13734 = shalt.err (!%p13731_p0)
}
  0xad   :  { %s13735_s17 = scalar_lea.vmem %s261_s23, 32  ;;  %p13740_p2 = scmp.lt.s32.totalorder %s261_s23, %s261_s23 }
  0xae   :  { %p13736_p1 = scmp.ne.s32.totalorder %s261_s23, %s13735_s17  ;;  %p13741_p3 = scmp.lt.s32.totalorder %s13735_s17, %s13735_s17 }
  0xb0   :  { %p13742_p4 = por %p13741_p3, %p13740_p2 }
  0xb2   :  { %p13743_p5 = pnand %p13742_p4, %p13736_p1 }
  0xb4   :  { %13746 = shalt.err (!%p13743_p5)
}
  0xb5   :  { %266 = dma.hbm_to_vmem [thread:$0]  %s14439_s9, 32, %s261_s23, [#allocation21], %s14281_s15, %s14281_s15, %s14282_s16  }
  0xb6   :  { %s13747_s6 = scalar_lea.hbm %s14449_s29, 32 }
  0xb7   :  { %p13748_p6 = scmp.ne.s32.totalorder %s14449_s29, %s13747_s6  ;;  %p13751_p7 = scmp.lt.u32.totalorder %s13747_s6, %s14449_s29 }
  0xb9   :  { %p13753_p8 = pnand %p13751_p7, %p13748_p6 }
  0xbb   :  { %13756 = shalt.err (!%p13753_p8)
}
  0xbc   :  { %s13757_s2 = scalar_lea.vmem %s285_s28, 32  ;;  %p13762_p10 = scmp.lt.s32.totalorder %s285_s28, %s285_s28 }
  0xbd   :  { %p13758_p9 = scmp.ne.s32.totalorder %s285_s28, %s13757_s2  ;;  %p13763_p11 = scmp.lt.s32.totalorder %s13757_s2, %s13757_s2 }
  0xbf   :  { %p13764_p12 = por %p13763_p11, %p13762_p10 }
  0xc1   :  { %p13765_p13 = pnand %p13764_p12, %p13758_p9 }
  0xc3   :  { %13768 = shalt.err (!%p13765_p13)
}
  0xc4   :  { %290 = dma.hbm_to_vmem [thread:$0]  %s14449_s29, 32, %s285_s28, [#allocation24], %s14281_s15, %s14281_s15, %s14282_s16  }
  0xc5   :  { %s14289_s9 = smov [#allocation26]   ;;  %s14290_s0 = smov [#allocation29]  }
  0xc6   :  { %s308_s8 = sshll.u32 %s14289_s9, 4  ;;  %s332_s7 = sshll.u32 %s14290_s0, 4  ;;  %s309_s8 = int_to_ptr.vmem [resolvable:$true] %s308_s8  ;;  %s333_s7 = int_to_ptr.vmem [resolvable:$true] %s332_s7 }
  0xc7   :  { %s13769_s10 = scalar_lea.hbm %s14459_s3, 32 }
  0xc8   :  { %p13770_p0 = scmp.ne.s32.totalorder %s14459_s3, %s13769_s10  ;;  %p13773_p1 = scmp.lt.u32.totalorder %s13769_s10, %s14459_s3 }
  0xca   :  { %p13775_p2 = pnand %p13773_p1, %p13770_p0 }
  0xcc   :  { %13778 = shalt.err (!%p13775_p2)
}
  0xcd   :  { %s13779_s11 = scalar_lea.vmem %s309_s8, 32  ;;  %p13784_p4 = scmp.lt.s32.totalorder %s309_s8, %s309_s8 }
  0xce   :  { %p13780_p3 = scmp.ne.s32.totalorder %s309_s8, %s13779_s11  ;;  %p13785_p5 = scmp.lt.s32.totalorder %s13779_s11, %s13779_s11 }
  0xd0   :  { %p13786_p6 = por %p13785_p5, %p13784_p4 }
  0xd2   :  { %p13787_p7 = pnand %p13786_p6, %p13780_p3 }
  0xd4   :  { %13790 = shalt.err (!%p13787_p7)
}
  0xd5   :  { %314 = dma.hbm_to_vmem [thread:$0]  %s14459_s3, 32, %s309_s8, [#allocation27], %s14281_s15, %s14281_s15, %s14282_s16  }
  0xd6   :  { %s13791_s29 = scalar_lea.hbm %s14469_s5, 32 }
  0xd7   :  { %p13792_p8 = scmp.ne.s32.totalorder %s14469_s5, %s13791_s29  ;;  %p13795_p9 = scmp.lt.u32.totalorder %s13791_s29, %s14469_s5 }
  0xd9   :  { %p13797_p10 = pnand %p13795_p9, %p13792_p8 }
  0xdb   :  { %13800 = shalt.err (!%p13797_p10)
}
  0xdc   :  { %s13801_s18 = scalar_lea.vmem %s333_s7, 32  ;;  %p13806_p12 = scmp.lt.s32.totalorder %s333_s7, %s333_s7 }
  0xdd   :  { %p13802_p11 = scmp.ne.s32.totalorder %s333_s7, %s13801_s18  ;;  %p13807_p13 = scmp.lt.s32.totalorder %s13801_s18, %s13801_s18 }
  0xdf   :  { %p13808_p0 = por %p13807_p13, %p13806_p12 }
  0xe1   :  { %p13809_p1 = pnand %p13808_p0, %p13802_p11 }
  0xe3   :  { %13812 = shalt.err (!%p13809_p1)
}
  0xe4   :  { %338 = dma.hbm_to_vmem [thread:$0]  %s14469_s5, 32, %s333_s7, [#allocation30], %s14281_s15, %s14281_s15, %s14282_s16  }
  0xe5   :  { %s14291_s3 = smov [#allocation32]   ;;  %s14292_s22 = smov [#allocation35]  }
  0xe6   :  { %s356_s24 = sshll.u32 %s14291_s3, 4  ;;  %s380_s12 = sshll.u32 %s14292_s22, 4  ;;  %s357_s24 = int_to_ptr.vmem [resolvable:$true] %s356_s24  ;;  %s381_s12 = int_to_ptr.vmem [resolvable:$true] %s380_s12 }
  0xe7   :  { %s13813_s23 = scalar_lea.hbm %s14479_s20, 32 }
  0xe8   :  { %p13814_p2 = scmp.ne.s32.totalorder %s14479_s20, %s13813_s23  ;;  %p13817_p3 = scmp.lt.u32.totalorder %s13813_s23, %s14479_s20 }
  0xea   :  { %p13819_p4 = pnand %p13817_p3, %p13814_p2 }
  0xec   :  { %13822 = shalt.err (!%p13819_p4)
}
  0xed   :  { %s13823_s26 = scalar_lea.vmem %s357_s24, 32  ;;  %p13828_p6 = scmp.lt.s32.totalorder %s357_s24, %s357_s24 }
  0xee   :  { %p13824_p5 = scmp.ne.s32.totalorder %s357_s24, %s13823_s26  ;;  %p13829_p7 = scmp.lt.s32.totalorder %s13823_s26, %s13823_s26 }
  0xf0   :  { %p13830_p8 = por %p13829_p7, %p13828_p6 }
  0xf2   :  { %p13831_p9 = pnand %p13830_p8, %p13824_p5 }
  0xf4   :  { %13834 = shalt.err (!%p13831_p9)
}
  0xf5   :  { %362 = dma.hbm_to_vmem [thread:$0]  %s14479_s20, 32, %s357_s24, [#allocation33], %s14281_s15, %s14281_s15, %s14282_s16  }
  0xf6   :  { %s13835_s5 = scalar_lea.hbm %s14489_s14, 32 }
  0xf7   :  { %p13836_p10 = scmp.ne.s32.totalorder %s14489_s14, %s13835_s5  ;;  %p13839_p11 = scmp.lt.u32.totalorder %s13835_s5, %s14489_s14 }
  0xf9   :  { %p13841_p12 = pnand %p13839_p11, %p13836_p10 }
  0xfb   :  { %13844 = shalt.err (!%p13841_p12)
}
  0xfc   :  { %s13845_s28 = scalar_lea.vmem %s381_s12, 32  ;;  %p13850_p0 = scmp.lt.s32.totalorder %s381_s12, %s381_s12 }
  0xfd   :  { %p13846_p13 = scmp.ne.s32.totalorder %s381_s12, %s13845_s28  ;;  %p13851_p1 = scmp.lt.s32.totalorder %s13845_s28, %s13845_s28 }
  0xff   :  { %p13852_p2 = por %p13851_p1, %p13850_p0 }
 0x101   :  { %p13853_p3 = pnand %p13852_p2, %p13846_p13 }
 0x103   :  { %13856 = shalt.err (!%p13853_p3)
}
 0x104   :  { %386 = dma.hbm_to_vmem [thread:$0]  %s14489_s14, 32, %s381_s12, [#allocation36], %s14281_s15, %s14281_s15, %s14282_s16  }
 0x105   :  { %s14293_s20 = smov [#allocation38]   ;;  %s14294_s17 = smov [#allocation2]  }
 0x106   :  { %s408_s1 = sshll.u32 %s14293_s20, 4  ;;  %s113_s6 = sshll.u32 %s14294_s17, 4  ;;  %s409_s1 = int_to_ptr.vmem [resolvable:$true] %s408_s1  ;;  %s114_s6 = int_to_ptr.vmem [resolvable:$true] %s113_s6 }
 0x107   :  { %s13857_s2 = scalar_lea.hbm %s14509_s30, 32 }
 0x108   :  { %p13858_p4 = scmp.ne.s32.totalorder %s14509_s30, %s13857_s2  ;;  %p13861_p5 = scmp.lt.u32.totalorder %s13857_s2, %s14509_s30 }
 0x10a   :  { %p13863_p6 = pnand %p13861_p5, %p13858_p4 }
 0x10c   :  { %13866 = shalt.err (!%p13863_p6)
}
 0x10d   :  { %s13867_s9 = scalar_lea.vmem %s409_s1, 32  ;;  %p13872_p8 = scmp.lt.s32.totalorder %s409_s1, %s409_s1 }
 0x10e   :  { %p13868_p7 = scmp.ne.s32.totalorder %s409_s1, %s13867_s9  ;;  %p13873_p9 = scmp.lt.s32.totalorder %s13867_s9, %s13867_s9 }
 0x110   :  { %p13874_p10 = por %p13873_p9, %p13872_p8 }
 0x112   :  { %p13875_p11 = pnand %p13874_p10, %p13868_p7 }
 0x114   :  { %13878 = shalt.err (!%p13875_p11)
}
 0x115   :  { %414 = dma.hbm_to_vmem [thread:$0]  %s14509_s30, 32, %s409_s1, [#allocation39], %s14281_s15, %s14281_s15, %s14282_s16  }
 0x116   :  { %s13879_s14 = scalar_lea.hbm %s14339_s13, 128 }
 0x117   :  { %p13880_p12 = scmp.ne.s32.totalorder %s14339_s13, %s13879_s14  ;;  %p13883_p13 = scmp.lt.u32.totalorder %s13879_s14, %s14339_s13 }
 0x119   :  { %p13885_p0 = pnand %p13883_p13, %p13880_p12 }
 0x11b   :  { %13888 = shalt.err (!%p13885_p0)
}
 0x11c   :  { %s13889_s8 = scalar_lea.vmem %s114_s6, 128  ;;  %p13894_p2 = scmp.lt.s32.totalorder %s114_s6, %s114_s6 }
 0x11d   :  { %p13890_p1 = scmp.ne.s32.totalorder %s114_s6, %s13889_s8  ;;  %p13895_p3 = scmp.lt.s32.totalorder %s13889_s8, %s13889_s8 }
 0x11f   :  { %p13896_p4 = por %p13895_p3, %p13894_p2 }
 0x121   :  { %p13897_p5 = pnand %p13896_p4, %p13890_p1 }
 0x123   :  { %13900 = shalt.err (!%p13897_p5)
}
 0x124   :  { %116 = dma.hbm_to_vmem [thread:$0]  %s14339_s13, 128, %s114_s6, [#allocation3]  }
 0x125   :  { %s14295_s0 = smov [#allocation7]   ;;  %s13901_s7 = scalar_lea.hbm %s14354_s25, 256 }
 0x126   :  { %s136_s30 = sshll.u32 %s14295_s0, 4  ;;  %p13902_p6 = scmp.ne.s32.totalorder %s14354_s25, %s13901_s7  ;;  %s137_s30 = int_to_ptr.vmem [resolvable:$true] %s136_s30 }
 0x127   :  { %p13905_p7 = scmp.lt.u32.totalorder %s13901_s7, %s14354_s25 }
 0x129   :  { %p13907_p8 = pnand %p13905_p7, %p13902_p6 }
 0x12b   :  { %13910 = shalt.err (!%p13907_p8)
}
 0x12c   :  { %s13911_s10 = scalar_lea.vmem %s137_s30, 256  ;;  %p13916_p10 = scmp.lt.s32.totalorder %s137_s30, %s137_s30 }
 0x12d   :  { %p13912_p9 = scmp.ne.s32.totalorder %s137_s30, %s13911_s10  ;;  %p13917_p11 = scmp.lt.s32.totalorder %s13911_s10, %s13911_s10 }
 0x12f   :  { %p13918_p12 = por %p13917_p11, %p13916_p10 }
 0x131   :  { %p13919_p13 = pnand %p13918_p12, %p13912_p9 }
 0x133   :  { %13922 = shalt.err (!%p13919_p13)
}
 0x134   :  { %s14296_s11 = smov 128   ;;  %s16229_s29 = sld [smem:[#allocation65_spill]] }
 0x135   :  { %s14297_s13 = smov 8   ;;  %s14298_s18 = smov [#allocation10]  }
 0x136   :  { %142 = dma.hbm_to_vmem [thread:$0]  %s14354_s25, 256, %s137_s30, [#allocation6], %s14296_s11, %s14296_s11, %s14297_s13  }
 0x137   :  { %s166_s3 = sshll.u32 %s14298_s18, 4  ;;  %s14299_s24 = smov [#allocation13]   ;;  %s167_s3 = int_to_ptr.vmem [resolvable:$true] %s166_s3 }
 0x138   :  { %s190_s22 = sshll.u32 %s14299_s24, 4  ;;  %s14631_s22 = int_to_ptr.vmem [resolvable:$true] %s190_s22 }
 0x13a   :  { %s13923_s12 = scalar_lea.hbm %s16229_s29, 32 }
 0x13b   :  { %p13924_p0 = scmp.ne.s32.totalorder %s16229_s29, %s13923_s12  ;;  %p13927_p1 = scmp.lt.u32.totalorder %s13923_s12, %s16229_s29 }
 0x13d   :  { %p13929_p2 = pnand %p13927_p1, %p13924_p0 }
 0x13f   :  { %13932 = shalt.err (!%p13929_p2)
}
 0x140   :  { %s13933_s23 = scalar_lea.vmem %s167_s3, 32  ;;  %p13938_p4 = scmp.lt.s32.totalorder %s167_s3, %s167_s3 }
 0x141   :  { %p13934_p3 = scmp.ne.s32.totalorder %s167_s3, %s13933_s23  ;;  %p13939_p5 = scmp.lt.s32.totalorder %s13933_s23, %s13933_s23 }
 0x143   :  { %p13940_p6 = por %p13939_p5, %p13938_p4 }
 0x145   :  { %p13941_p7 = pnand %p13940_p6, %p13934_p3 }
 0x147   :  { %13944 = shalt.err (!%p13941_p7)
}
 0x148   :  { %s16230_s25 = sld [smem:[#allocation66_spill]] }
 0x149   :  { %172 = dma.hbm_to_vmem [thread:$0]  %s16229_s29, 32, %s167_s3, [#allocation9], %s14281_s15, %s14281_s15, %s14282_s16  }
 0x14e   :  { %s13945_s26 = scalar_lea.hbm %s16230_s25, 32 }
 0x14f   :  { %p13946_p8 = scmp.ne.s32.totalorder %s16230_s25, %s13945_s26  ;;  %p13949_p9 = scmp.lt.u32.totalorder %s13945_s26, %s16230_s25 }
 0x151   :  { %p13951_p10 = pnand %p13949_p9, %p13946_p8 }
 0x153   :  { %13954 = shalt.err (!%p13951_p10)
}
 0x154   :  { %s13955_s5 = scalar_lea.vmem %s14631_s22, 32  ;;  %p13960_p12 = scmp.lt.s32.totalorder %s14631_s22, %s14631_s22 }
 0x155   :  { %p13956_p11 = scmp.ne.s32.totalorder %s14631_s22, %s13955_s5  ;;  %p13961_p13 = scmp.lt.s32.totalorder %s13955_s5, %s13955_s5 }
 0x157   :  { %p13962_p0 = por %p13961_p13, %p13960_p12 }
 0x159   :  { %p13963_p1 = pnand %p13962_p0, %p13956_p11 }
 0x15b   :  { %13966 = shalt.err (!%p13963_p1)
}
 0x15c   :  { %s16231_s28 = sld [smem:[#allocation69_spill]]  ;;  %s14300_s20 = smov [#allocation16]  }
 0x15d   :  { %196 = dma.hbm_to_vmem [thread:$0]  %s16230_s25, 32, %s14631_s22, [#allocation12], %s14281_s15, %s14281_s15, %s14282_s16  }
 0x15e   :  { %s218_s1 = sshll.u32 %s14300_s20, 4  ;;  %s14301_s17 = smov [#allocation19]   ;;  %s219_s1 = int_to_ptr.vmem [resolvable:$true] %s218_s1 }
 0x15f   :  { %s246_s6 = sshll.u32 %s14301_s17, 4  ;;  %s14652_s6 = int_to_ptr.vmem [resolvable:$true] %s246_s6 }
 0x162   :  { %s13967_s2 = scalar_lea.hbm %s16231_s28, 32 }
 0x163   :  { %p13968_p2 = scmp.ne.s32.totalorder %s16231_s28, %s13967_s2  ;;  %p13971_p3 = scmp.lt.u32.totalorder %s13967_s2, %s16231_s28 }
 0x165   :  { %p13973_p4 = pnand %p13971_p3, %p13968_p2 }
 0x167   :  { %13976 = shalt.err (!%p13973_p4)
}
 0x168   :  { %s13977_s9 = scalar_lea.vmem %s219_s1, 32  ;;  %p13982_p6 = scmp.lt.s32.totalorder %s219_s1, %s219_s1 }
 0x169   :  { %p13978_p5 = scmp.ne.s32.totalorder %s219_s1, %s13977_s9  ;;  %p13983_p7 = scmp.lt.s32.totalorder %s13977_s9, %s13977_s9 }
 0x16b   :  { %p13984_p8 = por %p13983_p7, %p13982_p6 }
 0x16d   :  { %p13985_p9 = pnand %p13984_p8, %p13978_p5 }
 0x16f   :  { %13988 = shalt.err (!%p13985_p9)
}
 0x170   :  { %s16232_s14 = sld [smem:[#allocation72_spill]] }
 0x171   :  { %224 = dma.hbm_to_vmem [thread:$0]  %s16231_s28, 32, %s219_s1, [#allocation15], %s14281_s15, %s14281_s15, %s14282_s16  }
 0x176   :  { %s13989_s8 = scalar_lea.hbm %s16232_s14, 32 }
 0x177   :  { %p13990_p10 = scmp.ne.s32.totalorder %s16232_s14, %s13989_s8  ;;  %p13993_p11 = scmp.lt.u32.totalorder %s13989_s8, %s16232_s14 }
 0x179   :  { %p13995_p12 = pnand %p13993_p11, %p13990_p10 }
 0x17b   :  { %13998 = shalt.err (!%p13995_p12)
}
 0x17c   :  { %s13999_s0 = scalar_lea.vmem %s14652_s6, 32  ;;  %p14004_p0 = scmp.lt.s32.totalorder %s14652_s6, %s14652_s6 }
 0x17d   :  { %p14000_p13 = scmp.ne.s32.totalorder %s14652_s6, %s13999_s0  ;;  %p14005_p1 = scmp.lt.s32.totalorder %s13999_s0, %s13999_s0 }
 0x17f   :  { %p14006_p2 = por %p14005_p1, %p14004_p0 }
 0x181   :  { %p14007_p3 = pnand %p14006_p2, %p14000_p13 }
 0x183   :  { %14010 = shalt.err (!%p14007_p3)
}
 0x184   :  { %s16233_s30 = sld [smem:[#allocation74_spill]]  ;;  %s14302_s7 = smov [#allocation22]  }
 0x185   :  { %252 = dma.hbm_to_vmem [thread:$0]  %s16232_s14, 32, %s14652_s6, [#allocation18], %s14281_s15, %s14281_s15, %s14282_s16  }
 0x186   :  { %s272_s10 = sshll.u32 %s14302_s7, 4  ;;  %s14303_s29 = smov [#allocation25]   ;;  %s273_s10 = int_to_ptr.vmem [resolvable:$true] %s272_s10 }
 0x187   :  { %s296_s18 = sshll.u32 %s14303_s29, 4  ;;  %s14673_s18 = int_to_ptr.vmem [resolvable:$true] %s296_s18 }
 0x18a   :  { %s14011_s3 = scalar_lea.hbm %s16233_s30, 32 }
 0x18b   :  { %p14012_p4 = scmp.ne.s32.totalorder %s16233_s30, %s14011_s3  ;;  %p14015_p5 = scmp.lt.u32.totalorder %s14011_s3, %s16233_s30 }
 0x18d   :  { %p14017_p6 = pnand %p14015_p5, %p14012_p4 }
 0x18f   :  { %14020 = shalt.err (!%p14017_p6)
}
 0x190   :  { %s14021_s24 = scalar_lea.vmem %s273_s10, 32  ;;  %p14026_p8 = scmp.lt.s32.totalorder %s273_s10, %s273_s10 }
 0x191   :  { %p14022_p7 = scmp.ne.s32.totalorder %s273_s10, %s14021_s24  ;;  %p14027_p9 = scmp.lt.s32.totalorder %s14021_s24, %s14021_s24 }
 0x193   :  { %p14028_p10 = por %p14027_p9, %p14026_p8 }
 0x195   :  { %p14029_p11 = pnand %p14028_p10, %p14022_p7 }
 0x197   :  { %14032 = shalt.err (!%p14029_p11)
}
 0x198   :  { %s16234_s22 = sld [smem:[#allocation75_spill]] }
 0x199   :  { %278 = dma.hbm_to_vmem [thread:$0]  %s16233_s30, 32, %s273_s10, [#allocation21], %s14281_s15, %s14281_s15, %s14282_s16  }
 0x19e   :  { %s14033_s12 = scalar_lea.hbm %s16234_s22, 1024 }
 0x19f   :  { %p14034_p12 = scmp.ne.s32.totalorder %s16234_s22, %s14033_s12  ;;  %p14037_p13 = scmp.lt.u32.totalorder %s14033_s12, %s16234_s22 }
 0x1a1   :  { %p14039_p0 = pnand %p14037_p13, %p14034_p12 }
 0x1a3   :  { %14042 = shalt.err (!%p14039_p0)
}
 0x1a4   :  { %s14043_s23 = scalar_lea.vmem %s14673_s18, 1024  ;;  %p14048_p2 = scmp.lt.s32.totalorder %s14673_s18, %s14673_s18 }
 0x1a5   :  { %p14044_p1 = scmp.ne.s32.totalorder %s14673_s18, %s14043_s23  ;;  %p14049_p3 = scmp.lt.s32.totalorder %s14043_s23, %s14043_s23 }
 0x1a7   :  { %p14050_p4 = por %p14049_p3, %p14048_p2 }
 0x1a9   :  { %p14051_p5 = pnand %p14050_p4, %p14044_p1 }
 0x1ab   :  { %14054 = shalt.err (!%p14051_p5)
}
 0x1ac   :  { %s16235_s25 = sld [smem:[#allocation76_spill]]  ;;  %s14304_s26 = smov [#allocation28]  }
 0x1ad   :  { %302 = dma.hbm_to_vmem [thread:$0]  %s16234_s22, 1024, %s14673_s18, [#allocation24], %s14296_s11, %s14296_s11, %s14297_s13  }
 0x1ae   :  { %s320_s5 = sshll.u32 %s14304_s26, 4  ;;  %s14305_s28 = smov [#allocation31]   ;;  %s321_s5 = int_to_ptr.vmem [resolvable:$true] %s320_s5 }
 0x1af   :  { %s344_s20 = sshll.u32 %s14305_s28, 4  ;;  %s14694_s20 = int_to_ptr.vmem [resolvable:$true] %s344_s20 }
 0x1b2   :  { %s14055_s1 = scalar_lea.hbm %s16235_s25, 1024 }
 0x1b3   :  { %p14056_p6 = scmp.ne.s32.totalorder %s16235_s25, %s14055_s1  ;;  %p14059_p7 = scmp.lt.u32.totalorder %s14055_s1, %s16235_s25 }
 0x1b5   :  { %p14061_p8 = pnand %p14059_p7, %p14056_p6 }
 0x1b7   :  { %14064 = shalt.err (!%p14061_p8)
}
 0x1b8   :  { %s14065_s17 = scalar_lea.vmem %s321_s5, 1024  ;;  %p14070_p10 = scmp.lt.s32.totalorder %s321_s5, %s321_s5 }
 0x1b9   :  { %p14066_p9 = scmp.ne.s32.totalorder %s321_s5, %s14065_s17  ;;  %p14071_p11 = scmp.lt.s32.totalorder %s14065_s17, %s14065_s17 }
 0x1bb   :  { %p14072_p12 = por %p14071_p11, %p14070_p10 }
 0x1bd   :  { %p14073_p13 = pnand %p14072_p12, %p14066_p9 }
 0x1bf   :  { %14076 = shalt.err (!%p14073_p13)
}
 0x1c0   :  { %s16236_s6 = sld [smem:[#allocation77_spill]] }
 0x1c1   :  { %326 = dma.hbm_to_vmem [thread:$0]  %s16235_s25, 1024, %s321_s5, [#allocation27], %s14296_s11, %s14296_s11, %s14297_s13  }
 0x1c6   :  { %s14077_s2 = scalar_lea.hbm %s16236_s6, 1024 }
 0x1c7   :  { %p14078_p0 = scmp.ne.s32.totalorder %s16236_s6, %s14077_s2  ;;  %p14081_p1 = scmp.lt.u32.totalorder %s14077_s2, %s16236_s6 }
 0x1c9   :  { %p14083_p2 = pnand %p14081_p1, %p14078_p0 }
 0x1cb   :  { %14086 = shalt.err (!%p14083_p2)
}
 0x1cc   :  { %s14087_s9 = scalar_lea.vmem %s14694_s20, 1024  ;;  %p14092_p4 = scmp.lt.s32.totalorder %s14694_s20, %s14694_s20 }
 0x1cd   :  { %p14088_p3 = scmp.ne.s32.totalorder %s14694_s20, %s14087_s9  ;;  %p14093_p5 = scmp.lt.s32.totalorder %s14087_s9, %s14087_s9 }
 0x1cf   :  { %p14094_p6 = por %p14093_p5, %p14092_p4 }
 0x1d1   :  { %p14095_p7 = pnand %p14094_p6, %p14088_p3 }
 0x1d3   :  { %14098 = shalt.err (!%p14095_p7)
}
 0x1d4   :  { %s16237_s14 = sld [smem:[#allocation78_spill]]  ;;  %s14306_s8 = smov [#allocation34]  }
 0x1d5   :  { %350 = dma.hbm_to_vmem [thread:$0]  %s16236_s6, 1024, %s14694_s20, [#allocation30], %s14296_s11, %s14296_s11, %s14297_s13  }
 0x1d6   :  { %s368_s0 = sshll.u32 %s14306_s8, 4  ;;  %s14307_s30 = smov [#allocation37]   ;;  %s369_s0 = int_to_ptr.vmem [resolvable:$true] %s368_s0 }
 0x1d7   :  { %s394_s7 = sshll.u32 %s14307_s30, 4  ;;  %s14715_s7 = int_to_ptr.vmem [resolvable:$true] %s394_s7 }
 0x1da   :  { %s14099_s10 = scalar_lea.hbm %s16237_s14, 32 }
 0x1db   :  { %p14100_p8 = scmp.ne.s32.totalorder %s16237_s14, %s14099_s10  ;;  %p14103_p9 = scmp.lt.u32.totalorder %s14099_s10, %s16237_s14 }
 0x1dd   :  { %p14105_p10 = pnand %p14103_p9, %p14100_p8 }
 0x1df   :  { %14108 = shalt.err (!%p14105_p10)
}
 0x1e0   :  { %s14109_s29 = scalar_lea.vmem %s369_s0, 32  ;;  %p14114_p12 = scmp.lt.s32.totalorder %s369_s0, %s369_s0 }
 0x1e1   :  { %p14110_p11 = scmp.ne.s32.totalorder %s369_s0, %s14109_s29  ;;  %p14115_p13 = scmp.lt.s32.totalorder %s14109_s29, %s14109_s29 }
 0x1e3   :  { %p14116_p0 = por %p14115_p13, %p14114_p12 }
 0x1e5   :  { %p14117_p1 = pnand %p14116_p0, %p14110_p11 }
 0x1e7   :  { %14120 = shalt.err (!%p14117_p1)
}
 0x1e8   :  { %s16238_s18 = sld [smem:[#allocation80_spill]] }
 0x1e9   :  { %374 = dma.hbm_to_vmem [thread:$0]  %s16237_s14, 32, %s369_s0, [#allocation33], %s14281_s15, %s14281_s15, %s14282_s16  }
 0x1ee   :  { %s14121_s3 = scalar_lea.hbm %s16238_s18, 32 }
 0x1ef   :  { %p14122_p2 = scmp.ne.s32.totalorder %s16238_s18, %s14121_s3  ;;  %p14125_p3 = scmp.lt.u32.totalorder %s14121_s3, %s16238_s18 }
 0x1f1   :  { %p14127_p4 = pnand %p14125_p3, %p14122_p2 }
 0x1f3   :  { %14130 = shalt.err (!%p14127_p4)
}
 0x1f4   :  { %s14131_s24 = scalar_lea.vmem %s14715_s7, 32  ;;  %p14136_p6 = scmp.lt.s32.totalorder %s14715_s7, %s14715_s7 }
 0x1f5   :  { %p14132_p5 = scmp.ne.s32.totalorder %s14715_s7, %s14131_s24  ;;  %p14137_p7 = scmp.lt.s32.totalorder %s14131_s24, %s14131_s24 }
 0x1f7   :  { %p14138_p8 = por %p14137_p7, %p14136_p6 }
 0x1f9   :  { %p14139_p9 = pnand %p14138_p8, %p14132_p5 }
 0x1fb   :  { %14142 = shalt.err (!%p14139_p9)
}
 0x1fc   :  { %s16239_s22 = sld [smem:[#allocation82_spill]]  ;;  %s14308_s12 = smov [#allocation40]  }
 0x1fd   :  { %400 = dma.hbm_to_vmem [thread:$0]  %s16238_s18, 32, %s14715_s7, [#allocation36], %s14281_s15, %s14281_s15, %s14282_s16  }
 0x1fe   :  { %s420_s23 = sshll.u32 %s14308_s12, 4  ;;  %s14309_s25 = smov [#allocation41]   ;;  %s421_s23 = int_to_ptr.vmem [resolvable:$true] %s420_s23 }
 0x1ff   :  { %s432_s26 = sshll.u32 %s14309_s25, 4  ;;  %s14736_s26 = int_to_ptr.vmem [resolvable:$true] %s432_s26 }
 0x202   :  { %s14143_s5 = scalar_lea.hbm %s16239_s22, 32 }
 0x203   :  { %p14144_p10 = scmp.ne.s32.totalorder %s16239_s22, %s14143_s5  ;;  %p14147_p11 = scmp.lt.u32.totalorder %s14143_s5, %s16239_s22 }
 0x205   :  { %p14149_p12 = pnand %p14147_p11, %p14144_p10 }
 0x207   :  { %14152 = shalt.err (!%p14149_p12)
}
 0x208   :  { %s14153_s28 = scalar_lea.vmem %s421_s23, 32  ;;  %p14158_p0 = scmp.lt.s32.totalorder %s421_s23, %s421_s23 }
 0x209   :  { %p14154_p13 = scmp.ne.s32.totalorder %s421_s23, %s14153_s28  ;;  %p14159_p1 = scmp.lt.s32.totalorder %s14153_s28, %s14153_s28 }
 0x20b   :  { %p14160_p2 = por %p14159_p1, %p14158_p0 }
 0x20d   :  { %p14161_p3 = pnand %p14160_p2, %p14154_p13 }
 0x20f   :  { %14164 = shalt.err (!%p14161_p3)
}
 0x210   :  { %426 = dma.hbm_to_vmem [thread:$0]  %s16239_s22, 32, %s421_s23, [#allocation39], %s14281_s15, %s14281_s15, %s14282_s16  }
 0x211   :  { %s14165_s20 = scalar_lea.hbm %s14519_s27, 32 }
 0x212   :  { %p14166_p4 = scmp.ne.s32.totalorder %s14519_s27, %s14165_s20  ;;  %p14169_p5 = scmp.lt.u32.totalorder %s14165_s20, %s14519_s27 }
 0x214   :  { %p14171_p6 = pnand %p14169_p5, %p14166_p4 }
 0x216   :  { %14174 = shalt.err (!%p14171_p6)
}
 0x217   :  { %s14175_s1 = scalar_lea.vmem %s14736_s26, 32  ;;  %p14180_p8 = scmp.lt.s32.totalorder %s14736_s26, %s14736_s26 }
 0x218   :  { %p14176_p7 = scmp.ne.s32.totalorder %s14736_s26, %s14175_s1  ;;  %p14181_p9 = scmp.lt.s32.totalorder %s14175_s1, %s14175_s1 }
 0x21a   :  { %p14182_p10 = por %p14181_p9, %p14180_p8 }
 0x21c   :  { %p14183_p11 = pnand %p14182_p10, %p14176_p7 }
 0x21e   :  { %14186 = shalt.err (!%p14183_p11)
}
 0x21f   :  { %438 = dma.hbm_to_vmem [thread:$0]  %s14519_s27, 32, %s14736_s26, [#allocation42], %s14281_s15, %s14281_s15, %s14282_s16  }
 0x220   :  { %14209 = dma.done.wait [#allocation3], 128  }
 0x221   :  { %14210 = vsyncadd [#allocation3], 4294967168 }
 0x222   :  { %14211 = dma.done.wait [#allocation6], 288  }
 0x223   :  { %14212 = vsyncadd [#allocation6], 4294967008 }
 0x224   :  { %14213 = dma.done.wait [#allocation9], 64  }
 0x225   :  { %14214 = vsyncadd [#allocation9], 4294967232 }
 0x226   :  { %14215 = dma.done.wait [#allocation12], 64  }
 0x227   :  { %14216 = vsyncadd [#allocation12], 4294967232 }
 0x228   :  { %14217 = dma.done.wait [#allocation15], 64  }
 0x229   :  { %14218 = vsyncadd [#allocation15], 4294967232 }
 0x22a   :  { %14219 = dma.done.wait [#allocation18], 64  }
 0x22b   :  { %14220 = vsyncadd [#allocation18], 4294967232 }
 0x22c   :  { %14221 = dma.done.wait [#allocation21], 64  }
 0x22d   :  { %14222 = vsyncadd [#allocation21], 4294967232 }
 0x22e   :  { %14223 = dma.done.wait [#allocation24], 1056  }
 0x22f   :  { %14224 = vsyncadd [#allocation24], 4294966240 }
 0x230   :  { %14225 = dma.done.wait [#allocation27], 1056  }
 0x231   :  { %14226 = vsyncadd [#allocation27], 4294966240 }
 0x232   :  { %14227 = dma.done.wait [#allocation30], 1056  }
 0x233   :  { %14228 = vsyncadd [#allocation30], 4294966240 }
 0x234   :  { %14229 = dma.done.wait [#allocation33], 64  }
 0x235   :  { %14230 = vsyncadd [#allocation33], 4294967232 }
 0x236   :  { %14231 = dma.done.wait [#allocation36], 64  }
 0x237   :  { %14232 = vsyncadd [#allocation36], 4294967232 }
 0x238   :  { %14233 = dma.done.wait [#allocation39], 64  }
 0x239   :  { %14234 = vsyncadd [#allocation39], 4294967232 }
 0x23a   :  { %14235 = dma.done.wait [#allocation42], 32  }
 0x23b   :  { %14236 = vsyncadd [#allocation42], 4294967264  ;;  %s16240_s27 = sld [smem:[#allocation59_spill]]  ;;  %s16241_s16 = sld [smem:[#allocation61_spill]]  ;;  %v14310_v0 = vmov 0   ;;  %v14311_v6 = vmov 0.0   ;;  %v523_v9 = vlaneseq }
 0x23c   :  { %13373 = vset.pattern.permute.xlu0 %v14310_v0  ;;  %s16242_s17 = sld [smem:[#allocation63_spill]]  ;;  %12306 = vmatprep.subr.mxu0 %v14311_v6  ;;  %v544_v7 = vld [vmem:[#allocation5] sm:$0x1]  ;;  %v545_v8 = vld [vmem:[#allocation5 + $0x1] sm:$0x1]  ;;  %vm555_vm2 = vcmask 130048  }
 0x23d   :  { %vm546_vm0 = vcmp.gt.f32.partialorder %v544_v7, 0.0  ;;  %vm547_vm1 = vcmp.gt.f32.partialorder %v545_v8, 0.0  ;;  %v1391_v10 = vshrl.u32 %v523_v9, 7  ;;  %v14312_v11 = vmov -1e+09   ;;  %s16243_s6 = sld [smem:[#allocation62_spill]] }
 0x23e   :  { %v548_v12 = vsel %vm546_vm0, 0.0, %v14312_v11  ;;  %v549_v13 = vsel %vm547_vm1, 0.0, %v14312_v11  ;;  %v524_v20 = vand.u32 127, %v523_v9  ;;  %vm675_vm5 = vcmask 261120   ;;  %v11658_v35 = vld [vmem:[#allocation8] ss:$0 sm:$0xff] }
 0x23f   :  { %v14766_v16 = vsub.s32 0, %v1391_v10  ;;  %vm14313_vm6 = vmmov 0   ;;  %s14314_s2 = smov 112   ;;  %s14315_s9 = smov 120   ;;  %vm773_vm7 = vcmask 64512   ;;  %vm2132_vm10 = vcmask 195584  }
 0x240   :  { %12308 = vmatprep.mubr.msk.f32.mxu0 %vm14313_vm6, %v14311_v6  ;;  %s14316_s14 = smov 104   ;;  %s14317_s8 = smov 96   ;;  %vm2362_vm11 = vcmask 523264  }
 0x241   :  { %v521_v1 = vld [vmem:[%s16240_s27] sm:$0xff]  ;;  %v554_v3 = vld [vmem:[%s16241_s16 + $0x8] sm:$0xff]  ;;  %v14769_v18 = vrot.slane %v548_v12, %v14766_v16  ;;  %v14772_v19 = vrot.slane %v549_v13, %v14766_v16  ;;  %s16244_s0 = sld [smem:[#allocation60_spill]]  ;;  %s14318_s30 = smov 64  }
 0x242   :  { %v553_v2 = vld [vmem:[%s16241_s16] sm:$0xff]  ;;  %526 = vperm.xlu0 %13373, %v521_v1   ;;  %v522_v4 = vld [vmem:[%s16240_s27 + $0x8] sm:$0xff]  ;;  %v643_v25 = vld [vmem:[%s16242_s17 + $0x10] sm:$0xff]  ;;  %s16245_s7 = sld [smem:[#allocation64_spill]]  ;;  %s14319_s10 = smov 24  }
 0x243   :  { %v13067_v5 = vpack.c.bf16 %v554_v3, %v553_v2  ;;  %v641_v14 = vld [vmem:[%s16242_s17] sm:$0xff]  ;;  %v642_v15 = vld [vmem:[%s16242_s17 + $0x8] sm:$0xff]  ;;  %v644_v26 = vld [vmem:[%s16242_s17 + $0x18] sm:$0xff]  ;;  %s16246_s29 = sld [smem:[#allocation67_spill]]  ;;  %s16247_s18 = sld [smem:[#allocation68_spill]] }
 0x244   :  { %v13071_v17 = vpack.c.bf16 %v642_v15, %v641_v14  ;;  %v13075_v27 = vpack.c.bf16 %v644_v26, %v643_v25  ;;  %v537_v29 = vld [vmem:[%s16243_s6] sm:$0xff]  ;;  %s16248_s3 = sld [smem:[#allocation70_spill]]  ;;  %s16249_s24 = sld [smem:[#allocation71_spill]] }
 0x245   :  { %13068 = vmatprep.subr.bf16.mxu1 %v13067_v5  ;;  %s16250_s22 = sld [smem:[#allocation73_spill]]  ;;  %s16251_s12 = sld [smem:[#allocation79_spill]] }
 0x246   :  { %529 = vperm.xlu0 %13373, %v522_v4   ;;  %13070 = vmatpush3.bf16.msra.mxu1 %v13067_v5  ;;  %s16252_s23 = sld [smem:[#allocation81_spill]] }
 0x247   :  { %13072 = vmatprep.subr.bf16.mxu1 %v13071_v17  ;;  %v538_v54 = vld [vmem:[%s16244_s0] sm:$0x1]  ;;  %v539_v56 = vld [vmem:[%s16244_s0 + $0x1] sm:$0x1] }
 0x248   :  { %vm540_vm8 = vcmp.gt.f32.partialorder %v538_v54, 0.0  ;;  %vm541_vm9 = vcmp.gt.f32.partialorder %v539_v56, 0.0 }
 0x249   :  { %v542_v55 = vsel %vm540_vm8, 0.0, %v14312_v11  ;;  %v543_v62 = vsel %vm541_vm9, 0.0, %v14312_v11 }
 0x24a   :  { %v14896_v57 = vrot.slane %v542_v55, %v14766_v16  ;;  %v14902_v0 = vrot.slane %v543_v62, %v14766_v16 }
 0x2c1   :  { %v527_v21 = vpop.permute.xlu0 %526 }
 0x2c2   :  { %vm531_vm3 = vcmp.eq.s32.totalorder %v527_v21, %v524_v20 }
 0x2c3   :  { %v14775_v22 = vsel %vm531_vm3, 1.0, %v14311_v6 }
 0x2c4   :  { %12292 = vmatprep.mubr.msk.f32.mxu1 %vm555_vm2, %v14775_v22 }
 0x2c5   :  { %v530_v23 = vpop.permute.xlu0 %529 }
 0x2c6   :  { %vm532_vm4 = vcmp.eq.s32.totalorder %v530_v23, %v524_v20 }
 0x2c7   :  { %v14780_v24 = vsel %vm532_vm4, 1.0, %v14311_v6 }
 0x2c8   :  { %12293 = vmatmul.mubr.msk.f32.vlgmr.msra.gmra.mrb[0].mxu1 %vm555_vm2, %v14780_v24 }
 0x2c9   :  { %13074 = vmatpush3.bf16.msra.mxu1 %v13071_v17 }
 0x2ca   :  { %13076 = vmatprep.subr.bf16.mxu1 %v13075_v27 }
 0x2cd   :  { %13078 = vmatpush3.bf16.msra.mxu1 %v13075_v27 }
 0x2ce   :  { %12316 = vmatprep.subr.mxu1 %v14311_v6 }
 0x39b   :  { %v12294_v28 = vpop.f32.mrb[0].mxu1 }
 0x39c   :  { %v638_v30 = vmul.f32 5.656854, %v12294_v28  ;;  %v628_v31 = vpop.f32.mrb[1].mxu1 }
 0x39d   :  { %v637_v32 = vmul.f32 5.656854, %v628_v31 }
 0x39e   :  { %v14790_v34 = vadd.f32 %v638_v30, %v537_v29 }
 0x39f   :  { %v14788_v33 = vadd.f32 %v637_v32, %v537_v29 }
 0x3a1   :  { %12303 = vmatprep.mubr.msk.f32.mxu1 %vm675_vm5, %v14788_v33 }
 0x3a2   :  { %12304 = vmatmul.mubr.msk.f32.vlgmr.msra.gmra.mrb[2].mxu1 %vm675_vm5, %v14790_v34 }
 0x3a3   :  { %12318 = vmatprep.mubr.msk.f32.mxu1 %vm14313_vm6, %v14311_v6 }
 0x475   :  { %v12305_v36 = vpop.f32.mrb[2].mxu1 }
 0x476   :  { %v748_v37 = vpop.f32.mrb[3].mxu1  ;;  %v14806_v39 = vadd.f32 %v12305_v36, %v11658_v35 }
 0x477   :  { %v14800_v38 = vadd.f32 %v11658_v35, %v748_v37 }
 0x479   :  { %763 = vrot.lane.b32.xlu0 %v14800_v38, %s14314_s2  ;;  %759 = vrot.lane.b32.xlu1 %v14800_v38, %s14315_s9 }
 0x47d   :  { %767 = vrot.lane.b32.xlu0 %v14800_v38, %s14316_s14  ;;  %761 = vrot.lane.b32.xlu1 %v14806_v39, %s14315_s9 }
 0x481   :  { %771 = vrot.lane.b32.xlu0 %v14800_v38, %s14317_s8  ;;  %765 = vrot.lane.b32.xlu1 %v14806_v39, %s14314_s2 }
 0x485   :  { %769 = vrot.lane.b32.xlu1 %v14806_v39, %s14316_s14 }
 0x489   :  { %848 = vrot.lane.b32.xlu1 %v14806_v39, %s14317_s8 }
 0x4eb   :  { %v14820_v40 = vpop.permute.xlu0 %763  ;;  %v14822_v41 = vpop.permute.xlu1 %759 }
 0x4ec   :  { %924 = vrot.lane.b32.xlu0 %v14822_v41, %s14317_s8 }
 0x4ef   :  { %v14826_v42 = vpop.permute.xlu0 %767  ;;  %v14828_v43 = vpop.permute.xlu1 %761 }
 0x4f0   :  { %1076 = vrot.lane.b32.xlu0 %v14820_v40, %s14317_s8  ;;  %1000 = vrot.lane.b32.xlu1 %v14828_v43, %s14317_s8 }
 0x4f3   :  { %v772_v44 = vpop.permute.xlu0 %771  ;;  %v14834_v45 = vpop.permute.xlu1 %765 }
 0x4f4   :  { %12307 = vmatpush3.xpose.msk.msra.mxu0 %vm773_vm7, %v772_v44  ;;  %1228 = vrot.lane.b32.xlu0 %v14826_v42, %s14317_s8 }
 0x4f5   :  { %1152 = vrot.lane.b32.xlu1 %v14834_v45, %s14317_s8  ;;  %12311 = vmatprep.subr.mxu0 %v14311_v6 }
 0x4f7   :  { %12309 = vmatmul.mubr.msk.f32.vlgmr.msra.gmra.mrb[0].mxu0 %vm773_vm7, %v14800_v38  ;;  %v14844_v46 = vpop.permute.xlu1 %769 }
 0x4f8   :  { %12313 = vmatprep.mubr.msk.f32.mxu0 %vm14313_vm6, %v14311_v6 }
 0x4f9   :  { %1304 = vrot.lane.b32.xlu1 %v14844_v46, %s14317_s8 }
 0x4fb   :  { %v849_v47 = vpop.permute.xlu1 %848 }
 0x4fc   :  { %12312 = vmatpush3.xpose.msk.msra.mxu0 %vm773_vm7, %v849_v47 }
 0x4fd   :  { %12321 = vmatprep.subr.mxu0 %v14311_v6 }
 0x4ff   :  { %12314 = vmatmul.mubr.msk.f32.vlgmr.msra.gmra.mrb[2].mxu0 %vm773_vm7, %v14806_v39 }
 0x500   :  { %12323 = vmatprep.mubr.msk.f32.mxu0 %vm14313_vm6, %v14311_v6 }
 0x55e   :  { %v925_v48 = vpop.permute.xlu0 %924 }
 0x55f   :  { %12317 = vmatpush3.xpose.msk.msra.mxu1 %vm773_vm7, %v925_v48 }
 0x560   :  { %12326 = vmatprep.subr.mxu1 %v14311_v6 }
 0x562   :  { %12319 = vmatmul.mubr.msk.f32.vlgmr.msra.gmra.mrb[4].mxu1 %vm773_vm7, %v14822_v41  ;;  %v1077_v49 = vpop.permute.xlu0 %1076  ;;  %v1001_v50 = vpop.permute.xlu1 %1000 }
 0x563   :  { %12322 = vmatpush3.xpose.msk.msra.mxu0 %vm773_vm7, %v1001_v50  ;;  %12327 = vmatpush3.xpose.msk.msra.mxu1 %vm773_vm7, %v1077_v49 }
 0x564   :  { %12328 = vmatprep.mubr.msk.f32.mxu1 %vm14313_vm6, %v14311_v6  ;;  %12336 = vmatprep.subr.mxu1 %v14311_v6 }
 0x565   :  { %12331 = vmatprep.subr.mxu0 %v14311_v6 }
 0x566   :  { %12329 = vmatmul.mubr.msk.f32.vlgmr.msra.gmra.mrb[6].mxu1 %vm773_vm7, %v14820_v40  ;;  %v1229_v51 = vpop.permute.xlu0 %1228  ;;  %12324 = vmatmul.mubr.msk.f32.vlgmr.msra.gmra.mrb[4].mxu0 %vm773_vm7, %v14828_v43 }
 0x567   :  { %v1153_v52 = vpop.permute.xlu1 %1152  ;;  %12337 = vmatpush3.xpose.msk.msra.mxu1 %vm773_vm7, %v1229_v51  ;;  %12333 = vmatprep.mubr.msk.f32.mxu0 %vm14313_vm6, %v14311_v6 }
 0x568   :  { %12332 = vmatpush3.xpose.msk.msra.mxu0 %vm773_vm7, %v1153_v52  ;;  %12338 = vmatprep.mubr.msk.f32.mxu1 %vm14313_vm6, %v14311_v6 }
 0x569   :  { %12341 = vmatprep.subr.mxu0 %v14311_v6  ;;  %12346 = vmatprep.subr.mxu1 %v14311_v6 }
 0x56a   :  { %12339 = vmatmul.mubr.msk.f32.vlgmr.msra.gmra.mrb[8].mxu1 %vm773_vm7, %v14826_v42 }
 0x56b   :  { %12334 = vmatmul.mubr.msk.f32.vlgmr.msra.gmra.mrb[6].mxu0 %vm773_vm7, %v14834_v45  ;;  %v1305_v53 = vpop.permute.xlu1 %1304  ;;  %12348 = vmatprep.mubr.msk.f32.mxu1 %vm14313_vm6, %v14311_v6 }
 0x56c   :  { %12342 = vmatpush3.xpose.msk.msra.mxu0 %vm773_vm7, %v1305_v53  ;;  %12343 = vmatprep.mubr.msk.f32.mxu0 %vm14313_vm6, %v14311_v6 }
 0x56d   :  { %12351 = vmatprep.subr.mxu0 %v14311_v6 }
 0x56f   :  { %12344 = vmatmul.mubr.msk.f32.vlgmr.msra.gmra.mrb[8].mxu0 %vm773_vm7, %v14844_v46 }
 0x570   :  { %12353 = vmatprep.mubr.msk.f32.mxu0 %vm14313_vm6, %v14311_v6 }
 0x5ca   :  { %v844_v58 = vpop.f32.mrb[0].mxu0 }
 0x5cb   :  { %v1380_v59 = vmul.f32 0.35355338, %v844_v58  ;;  %v12310_v60 = vpop.f32.mrb[1].mxu0 }
 0x5cd   :  { %v1400_v61 = vadd.f32 %v14896_v57, %v1380_v59 }
 0x5cf   :  { %v1408_v63 = vsel %vm773_vm7, %v1400_v61, -inf }
 0x5d0   :  { %1409 = vmax.xlane.f32.xlu0 %v1408_v63 }
 0x5d2   :  { %v920_v1 = vpop.f32.mrb[2].mxu0 }
 0x5d3   :  { %v1381_v2 = vmul.f32 0.35355338, %v920_v1  ;;  %v12315_v3 = vpop.f32.mrb[3].mxu0 }
 0x5d5   :  { %v1401_v4 = vadd.f32 %v14902_v0, %v1381_v2 }
 0x5d7   :  { %v1411_v5 = vsel %vm773_vm7, %v1401_v4, -inf }
 0x5d8   :  { %1412 = vmax.xlane.f32.xlu1 %v1411_v5 }
 0x635   :  { %v996_v7 = vpop.f32.mrb[4].mxu1 }
 0x636   :  { %v1382_v8 = vmul.f32 0.35355338, %v996_v7  ;;  %v12320_v9 = vpop.f32.mrb[5].mxu1 }
 0x638   :  { %v1402_v10 = vadd.f32 %v14896_v57, %v1382_v8 }
 0x639   :  { %v1072_v12 = vpop.f32.mrb[4].mxu0  ;;  %v1148_v13 = vpop.f32.mrb[6].mxu1 }
 0x63a   :  { %v1383_v14 = vmul.f32 0.35355338, %v1072_v12  ;;  %v1384_v15 = vmul.f32 0.35355338, %v1148_v13  ;;  %v12325_v17 = vpop.f32.mrb[5].mxu0  ;;  %v12330_v16 = vpop.f32.mrb[7].mxu1 }
 0x63b   :  { %v1414_v20 = vsel %vm773_vm7, %v1402_v10, -inf }
 0x63c   :  { %1415 = vmax.xlane.f32.xlu0 %v1414_v20  ;;  %v1404_v21 = vadd.f32 %v14896_v57, %v1384_v15  ;;  %v1403_v23 = vadd.f32 %v14902_v0, %v1383_v14 }
 0x63d   :  { %v1300_v25 = vpop.f32.mrb[8].mxu1 }
 0x63e   :  { %v1224_v26 = vpop.f32.mrb[6].mxu0  ;;  %v1386_v27 = vmul.f32 0.35355338, %v1300_v25  ;;  %v12340_v28 = vpop.f32.mrb[9].mxu1  ;;  %v1420_v29 = vsel %vm773_vm7, %v1404_v21, -inf  ;;  %v1417_v30 = vsel %vm773_vm7, %v1403_v23, -inf }
 0x63f   :  { %v1385_v31 = vmul.f32 0.35355338, %v1224_v26  ;;  %v12335_v32 = vpop.f32.mrb[7].mxu0  ;;  %1421 = vmax.xlane.f32.xlu1 %v1420_v29 }
 0x640   :  { %1418 = vmax.xlane.f32.xlu0 %v1417_v30  ;;  %v1406_v35 = vadd.f32 %v14896_v57, %v1386_v27 }
 0x641   :  { %v1405_v36 = vadd.f32 %v14902_v0, %v1385_v31 }
 0x642   :  { %v1376_v37 = vpop.f32.mrb[8].mxu0  ;;  %v1426_v44 = vsel %vm773_vm7, %v1406_v35, -inf }
 0x643   :  { %v1387_v47 = vmul.f32 0.35355338, %v1376_v37  ;;  %v12345_v48 = vpop.f32.mrb[9].mxu0  ;;  %1427 = vmax.xlane.f32.xlu1 %v1426_v44  ;;  %v1423_v49 = vsel %vm773_vm7, %v1405_v36, -inf }
 0x644   :  { %1424 = vmax.xlane.f32.xlu0 %v1423_v49 }
 0x645   :  { %v1407_v50 = vadd.f32 %v14902_v0, %v1387_v47 }
 0x647   :  { %v1429_v51 = vsel %vm773_vm7, %v1407_v50, -inf }
 0x648   :  { %1430 = vmax.xlane.f32.xlu0 %v1429_v51 }
 0x654   :  { %1496 = vrot.lane.b32.xlu1 %v14800_v38, %s14318_s30 }
 0x658   :  { %1648 = vrot.lane.b32.xlu1 %v14822_v41, %s14318_s30 }
 0x65c   :  { %1724 = vrot.lane.b32.xlu1 %v14828_v43, %s14318_s30 }
 0x65d   :  { %v1410_v53 = vpop.xlane.xlu0 %1409 }
 0x65e   :  { %1572 = vrot.lane.b32.xlu0 %v14806_v39, %s14318_s30  ;;  %v1432_v55 = vsub.f32 %v1400_v61, %v1410_v53 }
 0x660   :  { %1876 = vrot.lane.b32.xlu1 %v14834_v45, %s14318_s30  ;;  %v1440_v56 = vmul.f32 1.442695, %v1432_v55 }
 0x662   :  { %1800 = vrot.lane.b32.xlu0 %v14820_v40, %s14318_s30 }
 0x665   :  { %v1413_v52 = vpop.xlane.xlu1 %1412 }
 0x666   :  { %v1433_v54 = vsub.f32 %v1401_v4, %v1413_v52 }
 0x668   :  { %v1442_v38 = vmul.f32 1.442695, %v1433_v54 }
 0x66a   :  { %13374 = vpow2.f32 %v1442_v38 }
 0x66b   :  { %13376 = vpow2.f32 %v1440_v56 }
 0x674   :  { %v14930_v41 = vpop.eup %13374 }
 0x675   :  { %v14932_v43 = vpop.eup %13376  ;;  %v1459_v39 = vsel %vm773_vm7, %v14930_v41, 0.0 }
 0x676   :  { %v1456_v45 = vsel %vm773_vm7, %v14932_v43, 0.0 }
 0x681   :  { %1460 = vadd.xlane.f32.xlu0 %v1459_v39 }
 0x684   :  { %1457 = vadd.xlane.f32.xlu1 %v1456_v45 }
 0x6c9   :  { %v1416_v40 = vpop.xlane.xlu0 %1415 }
 0x6ca   :  { %v1434_v58 = vsub.f32 %v1402_v10, %v1416_v40 }
 0x6cc   :  { %v1444_v59 = vmul.f32 1.442695, %v1434_v58  ;;  %v1422_v60 = vpop.xlane.xlu1 %1421 }
 0x6cd   :  { %v1419_v61 = vpop.xlane.xlu0 %1418  ;;  %v1436_v62 = vsub.f32 %v1404_v21, %v1422_v60 }
 0x6ce   :  { %13378 = vpow2.f32 %v1444_v59  ;;  %v1435_v63 = vsub.f32 %v1403_v23, %v1419_v61 }
 0x6cf   :  { %v1448_v1 = vmul.f32 1.442695, %v1436_v62 }
 0x6d0   :  { %v1446_v2 = vmul.f32 1.442695, %v1435_v63  ;;  %v1428_v3 = vpop.xlane.xlu1 %1427 }
 0x6d1   :  { %13380 = vpow2.f32 %v1448_v1  ;;  %v1425_v4 = vpop.xlane.xlu0 %1424  ;;  %v1438_v5 = vsub.f32 %v1406_v35, %v1428_v3 }
 0x6d2   :  { %13382 = vpow2.f32 %v1446_v2  ;;  %v1437_v7 = vsub.f32 %v1405_v36, %v1425_v4 }
 0x6d3   :  { %v1452_v8 = vmul.f32 1.442695, %v1438_v5 }
 0x6d4   :  { %v1450_v9 = vmul.f32 1.442695, %v1437_v7  ;;  %v1497_v12 = vpop.permute.xlu1 %1496  ;;  %v646_v7 = vld [vmem:[%s16245_s7] sm:$0xff] }
 0x6d5   :  { %13384 = vpow2.f32 %v1452_v8  ;;  %v1431_v13 = vpop.xlane.xlu0 %1430  ;;  %12347 = vmatpush3.msra.mxu1 %v1497_v12  ;;  %v647_v8 = vld [vmem:[%s16245_s7 + $0x8] sm:$0xff]  ;;  %v648_v12 = vld [vmem:[%s16245_s7 + $0x10] sm:$0xff] }
 0x6d6   :  { %13386 = vpow2.f32 %v1450_v9  ;;  %v1439_v10 = vsub.f32 %v1407_v50, %v1431_v13  ;;  %12356 = vmatprep.subr.mxu1 %v14311_v6  ;;  %v13079_v9 = vpack.c.bf16 %v647_v8, %v646_v7  ;;  %v649_v13 = vld [vmem:[%s16245_s7 + $0x18] sm:$0xff]  ;;  %v659_v7 = vld [vmem:[%s16247_s18 + $0x8] sm:$0xff]  ;;  %v660_v8 = vld [vmem:[%s16247_s18 + $0x10] sm:$0xff] }
 0x6d8   :  { %v13379_v14 = vpop.eup %13378  ;;  %v1454_v15 = vmul.f32 1.442695, %v1439_v10  ;;  %v1649_v32 = vpop.permute.xlu1 %1648  ;;  %v13083_v10 = vpack.c.bf16 %v649_v13, %v648_v12  ;;  %v661_v12 = vld [vmem:[%s16247_s18 + $0x18] sm:$0xff] }
 0x6d9   :  { %v1573_v17 = vpop.permute.xlu0 %1572  ;;  %v1462_v16 = vsel %vm773_vm7, %v13379_v14, 0.0  ;;  %v13099_v13 = vpack.c.bf16 %v661_v12, %v660_v8  ;;  %v11701_v8 = vld [vmem:[%s16242_s17 + $0x38] sm:$0xff] }
 0x6da   :  { %13388 = vpow2.f32 %v1454_v15  ;;  %1463 = vadd.xlane.f32.xlu1 %v1462_v16  ;;  %12352 = vmatpush3.msra.mxu0 %v1573_v17 }
 0x6db   :  { %v13381_v20 = vpop.eup %13380  ;;  %12361 = vmatprep.subr.mxu0 %v14311_v6 }
 0x6dc   :  { %v13383_v21 = vpop.eup %13382  ;;  %v1468_v23 = vsel %vm773_vm7, %v13381_v20, 0.0  ;;  %v1725_v35 = vpop.permute.xlu1 %1724 }
 0x6dd   :  { %v1465_v25 = vsel %vm773_vm7, %v13383_v21, 0.0  ;;  %v1801_v36 = vpop.permute.xlu0 %1800 }
 0x6de   :  { %1466 = vadd.xlane.f32.xlu0 %v1465_v25  ;;  %1469 = vadd.xlane.f32.xlu1 %v1468_v23 }
 0x6df   :  { %v14943_v26 = vpop.eup %13384 }
 0x6e0   :  { %v13387_v27 = vpop.eup %13386  ;;  %v1474_v28 = vsel %vm773_vm7, %v14943_v26, 0.0  ;;  %v1877_v37 = vpop.permute.xlu1 %1876 }
 0x6e1   :  { %v1471_v29 = vsel %vm773_vm7, %v13387_v27, 0.0 }
 0x6e2   :  { %1472 = vadd.xlane.f32.xlu0 %v1471_v29  ;;  %1475 = vadd.xlane.f32.xlu1 %v1474_v28 }
 0x6e4   :  { %v14948_v30 = vpop.eup %13388 }
 0x6e5   :  { %v1477_v31 = vsel %vm773_vm7, %v14948_v30, 0.0 }
 0x6e6   :  { %1478 = vadd.xlane.f32.xlu0 %v1477_v31 }
 0x6f3   :  { %2028 = vrot.lane.b32.xlu1 %v14844_v46, %s14318_s30 }
 0x6fc   :  { %1952 = vrot.lane.b32.xlu0 %v14826_v42, %s14318_s30 }
 0x70e   :  { %v1461_v44 = vpop.xlane.xlu0 %1460 }
 0x70f   :  { %13390 = vrcp.f32 %v1461_v44 }
 0x711   :  { %v1458_v47 = vpop.xlane.xlu1 %1457 }
 0x712   :  { %13392 = vrcp.f32 %v1458_v47 }
 0x719   :  { %v13391_v48 = vpop.eup %13390 }
 0x71a   :  { %v1489_v49 = vmul.f32 %v13391_v48, %v14930_v41 }
 0x71c   :  { %v13393_v50 = vpop.eup %13392  ;;  %12354 = vmatmul.mubr.msk.f32.vlgmr.msra.gmra.mrb[10].mxu0 %vm773_vm7, %v1489_v49 }
 0x71d   :  { %12362 = vmatpush3.msra.mxu0 %v1725_v35  ;;  %v1488_v46 = vmul.f32 %v13393_v50, %v14932_v43  ;;  %12363 = vmatprep.mubr.msk.f32.mxu0 %vm14313_vm6, %v14311_v6 }
 0x71e   :  { %12371 = vmatprep.subr.mxu0 %v14311_v6 }
 0x71f   :  { %12349 = vmatmul.mubr.msk.f32.vlgmr.msra.gmra.mrb[10].mxu1 %vm773_vm7, %v1488_v46 }
 0x720   :  { %12357 = vmatpush3.msra.mxu1 %v1649_v32  ;;  %12358 = vmatprep.mubr.msk.f32.mxu1 %vm14313_vm6, %v14311_v6 }
 0x721   :  { %12366 = vmatprep.subr.mxu1 %v14311_v6 }
 0x767   :  { %v1464_v42 = vpop.xlane.xlu1 %1463 }
 0x768   :  { %13394 = vrcp.f32 %v1464_v42  ;;  %v11685_v42 = vld [vmem:[#allocation10] ss:$0 sm:$0xff] }
 0x76b   :  { %v1467_v51 = vpop.xlane.xlu0 %1466  ;;  %v1470_v52 = vpop.xlane.xlu1 %1469 }
 0x76c   :  { %13396 = vrcp.f32 %v1467_v51 }
 0x76d   :  { %13398 = vrcp.f32 %v1470_v52 }
 0x76f   :  { %v1473_v53 = vpop.xlane.xlu0 %1472  ;;  %v1476_v54 = vpop.xlane.xlu1 %1475 }
 0x770   :  { %13400 = vrcp.f32 %v1473_v53 }
 0x771   :  { %13402 = vrcp.f32 %v1476_v54 }
 0x772   :  { %v13395_v55 = vpop.eup %13394 }
 0x773   :  { %v1479_v38 = vpop.xlane.xlu0 %1478  ;;  %v1490_v56 = vmul.f32 %v13395_v55, %v13379_v14  ;;  %v2029_v62 = vpop.permute.xlu1 %2028 }
 0x774   :  { %13404 = vrcp.f32 %v1479_v38 }
 0x775   :  { %12359 = vmatmul.mubr.msk.f32.vlgmr.msra.gmra.mrb[12].mxu1 %vm773_vm7, %v1490_v56 }
 0x776   :  { %v13397_v41 = vpop.eup %13396  ;;  %12367 = vmatpush3.msra.mxu1 %v1801_v36  ;;  %12368 = vmatprep.mubr.msk.f32.mxu1 %vm14313_vm6, %v14311_v6 }
 0x777   :  { %v13399_v43 = vpop.eup %13398  ;;  %12376 = vmatprep.subr.mxu1 %v14311_v6  ;;  %v1491_v39 = vmul.f32 %v13397_v41, %v13383_v21  ;;  %v1953_v45 = vpop.permute.xlu0 %1952 }
 0x778   :  { %v1492_v40 = vmul.f32 %v13399_v43, %v13381_v20 }
 0x779   :  { %12364 = vmatmul.mubr.msk.f32.vlgmr.msra.gmra.mrb[12].mxu0 %vm773_vm7, %v1491_v39 }
 0x77a   :  { %v13401_v58 = vpop.eup %13400  ;;  %12369 = vmatmul.mubr.msk.f32.vlgmr.msra.gmra.mrb[14].mxu1 %vm773_vm7, %v1492_v40  ;;  %12372 = vmatpush3.msra.mxu0 %v1877_v37 }
 0x77b   :  { %v13403_v59 = vpop.eup %13402  ;;  %12377 = vmatpush3.msra.mxu1 %v1953_v45  ;;  %12373 = vmatprep.mubr.msk.f32.mxu0 %vm14313_vm6, %v14311_v6  ;;  %v1493_v60 = vmul.f32 %v13401_v58, %v13387_v27 }
 0x77c   :  { %12378 = vmatprep.mubr.msk.f32.mxu1 %vm14313_vm6, %v14311_v6  ;;  %12381 = vmatprep.subr.mxu0 %v14311_v6  ;;  %v1494_v61 = vmul.f32 %v13403_v59, %v14943_v26 }
 0x77d   :  { %12374 = vmatmul.mubr.msk.f32.vlgmr.msra.gmra.mrb[14].mxu0 %vm773_vm7, %v1493_v60  ;;  %13080 = vmatprep.subr.bf16.mxu1 %v13079_v9 }
 0x77e   :  { %v13405_v63 = vpop.eup %13404  ;;  %12379 = vmatmul.mubr.msk.f32.vlgmr.msra.gmra.mrb[16].mxu1 %vm773_vm7, %v1494_v61  ;;  %12382 = vmatpush3.msra.mxu0 %v2029_v62  ;;  %v653_v62 = vld [vmem:[%s16246_s29] sm:$0xff] }
 0x77f   :  { %12383 = vmatprep.mubr.msk.f32.mxu0 %vm14313_vm6, %v14311_v6  ;;  %v1495_v1 = vmul.f32 %v13405_v63, %v14948_v30  ;;  %13082 = vmatpush3.bf16.msra.mxu1 %v13079_v9  ;;  %v654_v63 = vld [vmem:[%s16246_s29 + $0x8] sm:$0xff] }
 0x780   :  { %13084 = vmatprep.subr.bf16.mxu1 %v13083_v10 }
 0x781   :  { %12384 = vmatmul.mubr.msk.f32.vlgmr.msra.gmra.mrb[16].mxu0 %vm773_vm7, %v1495_v1  ;;  %v655_v1 = vld [vmem:[%s16246_s29 + $0x10] sm:$0xff] }
 0x783   :  { %13086 = vmatpush3.bf16.msra.mxu1 %v13083_v10  ;;  %v662_v10 = vld [vmem:[%s16247_s18 + $0x20] sm:$0xff] }
 0x7ef   :  { %v1644_v2 = vpop.f32.mrb[10].mxu0 }
 0x7f0   :  { %v12355_v3 = vpop.f32.mrb[11].mxu0 }
 0x7f1   :  { %v656_v3 = vld [vmem:[%s16246_s29 + $0x18] sm:$0xff] }
 0x7f2   :  { %v1568_v4 = vpop.f32.mrb[10].mxu1 }
 0x7f3   :  { %v12350_v5 = vpop.f32.mrb[11].mxu1 }
 0x7f4   :  { %v658_v5 = vld [vmem:[%s16247_s18] sm:$0xff] }
 0x7f5   :  { %v13095_v9 = vpack.c.bf16 %v659_v7, %v658_v5  ;;  %v11700_v5 = vld [vmem:[%s16242_s17 + $0x30] sm:$0xff] }
 0x7f7   :  { %13096 = vmatprep.subr.bf16.mxu1 %v13095_v9 }
 0x848   :  { %v1720_v14 = vpop.f32.mrb[12].mxu1 }
 0x849   :  { %2106 = vrot.lane.b32.xlu0 %v1720_v14, %s14297_s13  ;;  %v12360_v15 = vpop.f32.mrb[13].mxu1  ;;  %v663_v14 = vld [vmem:[%s16247_s18 + $0x28] sm:$0xff] }
 0x84a   :  { %v13103_v15 = vpack.c.bf16 %v663_v14, %v662_v10 }
 0x84c   :  { %v1796_v17 = vpop.f32.mrb[12].mxu0 }
 0x84d   :  { %v1872_v16 = vpop.f32.mrb[14].mxu1  ;;  %2108 = vrot.lane.b32.xlu1 %v1796_v17, %s14297_s13  ;;  %v12365_v20 = vpop.f32.mrb[13].mxu0 }
 0x84e   :  { %2114 = vrot.lane.b32.xlu0 %v1872_v16, %s14281_s15  ;;  %v12370_v21 = vpop.f32.mrb[15].mxu1 }
 0x850   :  { %v1948_v23 = vpop.f32.mrb[14].mxu0 }
 0x851   :  { %v2024_v25 = vpop.f32.mrb[16].mxu1  ;;  %2116 = vrot.lane.b32.xlu1 %v1948_v23, %s14281_s15  ;;  %v12375_v26 = vpop.f32.mrb[15].mxu0 }
 0x852   :  { %2122 = vrot.lane.b32.xlu0 %v2024_v25, %s14319_s10  ;;  %v12380_v27 = vpop.f32.mrb[17].mxu1 }
 0x853   :  { %v11688_v27 = vld [vmem:[#allocation11] ss:$0 sm:$0xff] }
 0x854   :  { %v2100_v28 = vpop.f32.mrb[16].mxu0 }
 0x855   :  { %2124 = vrot.lane.b32.xlu1 %v2100_v28, %s14319_s10  ;;  %v12385_v29 = vpop.f32.mrb[17].mxu0 }
 0x856   :  { %v11689_v29 = vld [vmem:[#allocation13] ss:$0 sm:$0xff] }
 0x8bb   :  { %v2107_v30 = vpop.permute.xlu0 %2106 }
 0x8bc   :  { %v2128_v35 = vsel %vm773_vm7, %v1568_v4, %v2107_v30  ;;  %v13091_v4 = vpack.c.bf16 %v656_v3, %v655_v1  ;;  %v11698_v3 = vld [vmem:[%s16242_s17 + $0x20] sm:$0xff] }
 0x8bf   :  { %v2109_v31 = vpop.permute.xlu1 %2108 }
 0x8c0   :  { %v2115_v32 = vpop.permute.xlu0 %2114  ;;  %v2129_v48 = vsel %vm773_vm7, %v1644_v2, %v2109_v31  ;;  %v13087_v2 = vpack.c.bf16 %v654_v63, %v653_v62 }
 0x8c1   :  { %v2130_v37 = vsel %vm555_vm2, %v2128_v35, %v2115_v32 }
 0x8c2   :  { %13088 = vmatprep.subr.bf16.mxu0 %v13087_v2 }
 0x8c3   :  { %v2117_v36 = vpop.permute.xlu1 %2116  ;;  %13090 = vmatpush3.bf16.msra.mxu0 %v13087_v2 }
 0x8c4   :  { %v2123_v44 = vpop.permute.xlu0 %2122  ;;  %v2131_v49 = vsel %vm555_vm2, %v2129_v48, %v2117_v36  ;;  %13092 = vmatprep.subr.bf16.mxu0 %v13091_v4 }
 0x8c5   :  { %v2133_v47 = vsel %vm2132_vm10, %v2130_v37, %v2123_v44  ;;  %v664_v44 = vld [vmem:[%s16247_s18 + $0x30] sm:$0xff] }
 0x8c6   :  { %12394 = vmatprep.mubr.msk.f32.mxu1 %vm675_vm5, %v2133_v47  ;;  %v665_v47 = vld [vmem:[%s16247_s18 + $0x38] sm:$0xff] }
 0x8c7   :  { %v2125_v50 = vpop.permute.xlu1 %2124  ;;  %13094 = vmatpush3.bf16.msra.mxu0 %v13091_v4  ;;  %v13107_v48 = vpack.c.bf16 %v665_v47, %v664_v44  ;;  %v11699_v4 = vld [vmem:[%s16242_s17 + $0x28] sm:$0xff] }
 0x8c8   :  { %v2134_v46 = vsel %vm2132_vm10, %v2131_v49, %v2125_v50  ;;  %v11690_v49 = vld [vmem:[#allocation14] ss:$0 sm:$0xff]  ;;  %v13111_v7 = vpack.c.bf16 %v11699_v4, %v11698_v3 }
 0x8c9   :  { %12395 = vmatmul.mubr.msk.f32.vlgmr.msra.gmra.mrb[18].mxu1 %vm675_vm5, %v2134_v46 }
 0x8ca   :  { %13098 = vmatpush3.bf16.msra.mxu1 %v13095_v9  ;;  %v13115_v9 = vpack.c.bf16 %v11701_v8, %v11700_v5  ;;  %13112 = vmatprep.subr.bf16.mxu0 %v13111_v7 }
 0x8cb   :  { %13100 = vmatprep.subr.bf16.mxu1 %v13099_v13 }
 0x8ce   :  { %13102 = vmatpush3.bf16.msra.mxu1 %v13099_v13 }
 0x8cf   :  { %13104 = vmatprep.subr.bf16.mxu1 %v13103_v15 }
 0x8d2   :  { %13106 = vmatpush3.bf16.msra.mxu1 %v13103_v15 }
 0x8d3   :  { %13108 = vmatprep.subr.bf16.mxu1 %v13107_v48 }
 0x8d6   :  { %13110 = vmatpush3.bf16.msra.mxu1 %v13107_v48 }
 0x8d7   :  { %12448 = vmatprep.subr.mxu1 %v14311_v6 }
 0x99c   :  { %v12396_v51 = vpop.f32.mrb[18].mxu1 }
 0x99d   :  { %v2219_v52 = vadd.f32 %v12396_v51, %v11685_v42  ;;  %v2213_v53 = vpop.f32.mrb[19].mxu1 }
 0x99e   :  { %v2214_v54 = vadd.f32 %v11685_v42, %v2213_v53 }
 0x99f   :  { %v2223_v55 = vadd.f32 %v2219_v52, %v14790_v34 }
 0x9a0   :  { %v2222_v38 = vadd.f32 %v2214_v54, %v14788_v33  ;;  %v11693_v54 = vld [vmem:[#allocation16] ss:$0 sm:$0xff] }
 0x9a1   :  { %v2227_v56 = vsel %vm675_vm5, %v2223_v55, 0.0 }
 0x9a2   :  { %2228 = vadd.xlane.f32.xlu1 %v2227_v56  ;;  %v2224_v41 = vsel %vm675_vm5, %v2222_v38, 0.0 }
 0x9a3   :  { %2225 = vadd.xlane.f32.xlu0 %v2224_v41 }
 0xa2f   :  { %v2229_v43 = vpop.xlane.xlu1 %2228 }
 0xa30   :  { %v2232_v39 = vmul.f32 0.03125, %v2229_v43  ;;  %v2226_v45 = vpop.xlane.xlu0 %2225 }
 0xa31   :  { %v2231_v40 = vmul.f32 0.03125, %v2226_v45 }
 0xa32   :  { %v2234_v58 = vsub.f32 %v2223_v55, %v2232_v39 }
 0xa33   :  { %v2233_v59 = vsub.f32 %v2222_v38, %v2231_v40 }
 0xa34   :  { %v2236_v34 = vmul.f32 %v2234_v58, %v2234_v58 }
 0xa35   :  { %v2235_v60 = vmul.f32 %v2233_v59, %v2233_v59 }
 0xa36   :  { %v2240_v61 = vsel %vm675_vm5, %v2236_v34, 0.0 }
 0xa37   :  { %v2237_v33 = vsel %vm675_vm5, %v2235_v60, 0.0 }
 0xa38   :  { %2238 = vadd.xlane.f32.xlu0 %v2237_v33 }
 0xa3c   :  { %2241 = vadd.xlane.f32.xlu0 %v2240_v61 }
 0xac5   :  { %v2239_v17 = vpop.xlane.xlu0 %2238 }
 0xac6   :  { %v2243_v16 = vmul.f32 0.03125, %v2239_v17 }
 0xac8   :  { %v2245_v20 = vadd.f32 1e-05, %v2243_v16 }
 0xac9   :  { %v2242_v21 = vpop.xlane.xlu0 %2241 }
 0xaca   :  { %13406 = vrsqrt.f32 %v2245_v20  ;;  %v2244_v23 = vmul.f32 0.03125, %v2242_v21  ;;  %v11696_v20 = vld [vmem:[%s16248_s3] ss:$0 sm:$0xff] }
 0xacc   :  { %v2246_v25 = vadd.f32 1e-05, %v2244_v23 }
 0xace   :  { %13408 = vrsqrt.f32 %v2246_v25 }
 0xad4   :  { %v13407_v26 = vpop.eup %13406 }
 0xad5   :  { %v2249_v28 = vmul.f32 %v13407_v26, %v2233_v59  ;;  %v11697_v26 = vld [vmem:[#allocation17] ss:$0 sm:$0xff] }
 0xad7   :  { %v2257_v30 = vmul.f32 %v11688_v27, %v2249_v28 }
 0xad8   :  { %v13409_v31 = vpop.eup %13408 }
 0xad9   :  { %v2250_v32 = vmul.f32 %v13409_v31, %v2234_v58  ;;  %v2265_v35 = vadd.f32 %v11689_v29, %v2257_v30  ;;  %v11719_v31 = vld [vmem:[#allocation8 + $0x1] ss:$0 sm:$0xff] }
 0xadb   :  { %v2258_v36 = vmul.f32 %v11688_v27, %v2250_v32  ;;  %12405 = vmatprep.mubr.msk.f32.mxu0 %vm675_vm5, %v2265_v35 }
 0xadd   :  { %v2266_v37 = vadd.f32 %v11689_v29, %v2258_v36 }
 0xadf   :  { %12406 = vmatmul.mubr.msk.f32.vlgmr.msra.gmra.mrb[18].mxu0 %vm675_vm5, %v2266_v37 }
 0xae0   :  { %13114 = vmatpush3.bf16.msra.mxu0 %v13111_v7 }
 0xae1   :  { %13116 = vmatprep.subr.bf16.mxu0 %v13115_v9 }
 0xae4   :  { %13118 = vmatpush3.bf16.msra.mxu0 %v13115_v9 }
 0xae5   :  { %12438 = vmatprep.subr.mxu0 %v14311_v6 }
 0xbb2   :  { %v12407_v50 = vpop.f32.mrb[18].mxu0 }
 0xbb3   :  { %v2351_v46 = vadd.f32 %v12407_v50, %v11690_v49  ;;  %v2345_v42 = vpop.f32.mrb[19].mxu0 }
 0xbb4   :  { %v2346_v51 = vadd.f32 %v11690_v49, %v2345_v42 }
 0xbb5   :  { %v2355_v53 = vmax.f32 %v2351_v46, 0.0 }
 0xbb6   :  { %v2354_v52 = vmax.f32 %v2346_v51, 0.0 }
 0xbb8   :  { %12424 = vmatprep.mubr.msk.f32.mxu1 %vm2362_vm11, %v2354_v52 }
 0xbb9   :  { %12425 = vmatmul.mubr.msk.f32.vlgmr.msra.gmra.mrb[20].mxu1 %vm2362_vm11, %v2355_v53 }
 0xbba   :  { %12450 = vmatprep.mubr.msk.f32.mxu1 %vm14313_vm6, %v14311_v6 }
 0xc8c   :  { %v12426_v55 = vpop.f32.mrb[20].mxu1 }
 0xc8d   :  { %v2441_v38 = vadd.f32 %v12426_v55, %v11693_v54  ;;  %v2435_v56 = vpop.f32.mrb[21].mxu1 }
 0xc8e   :  { %v2436_v41 = vadd.f32 %v11693_v54, %v2435_v56 }
 0xc8f   :  { %v2445_v43 = vadd.f32 %v2441_v38, %v2266_v37 }
 0xc90   :  { %v2444_v39 = vadd.f32 %v2436_v41, %v2265_v35 }
 0xc91   :  { %v2449_v45 = vsel %vm675_vm5, %v2445_v43, 0.0 }
 0xc92   :  { %2450 = vadd.xlane.f32.xlu0 %v2449_v45  ;;  %v2446_v40 = vsel %vm675_vm5, %v2444_v39, 0.0 }
 0xc93   :  { %2447 = vadd.xlane.f32.xlu1 %v2446_v40 }
 0xd1f   :  { %v2451_v58 = vpop.xlane.xlu0 %2450 }
 0xd20   :  { %v2453_v59 = vmul.f32 0.03125, %v2451_v58  ;;  %v2448_v60 = vpop.xlane.xlu1 %2447 }
 0xd21   :  { %v2452_v33 = vmul.f32 0.03125, %v2448_v60 }
 0xd22   :  { %v2455_v34 = vsub.f32 %v2445_v43, %v2453_v59 }
 0xd23   :  { %v2454_v61 = vsub.f32 %v2444_v39, %v2452_v33 }
 0xd24   :  { %v2457_v62 = vmul.f32 %v2455_v34, %v2455_v34 }
 0xd25   :  { %v2456_v63 = vmul.f32 %v2454_v61, %v2454_v61 }
 0xd26   :  { %v2461_v1 = vsel %vm675_vm5, %v2457_v62, 0.0 }
 0xd27   :  { %2462 = vadd.xlane.f32.xlu0 %v2461_v1  ;;  %v2458_v2 = vsel %vm675_vm5, %v2456_v63, 0.0 }
 0xd28   :  { %2459 = vadd.xlane.f32.xlu1 %v2458_v2 }
 0xdb4   :  { %v2463_v12 = vpop.xlane.xlu0 %2462 }
 0xdb5   :  { %v2465_v13 = vmul.f32 0.03125, %v2463_v12  ;;  %v2460_v10 = vpop.xlane.xlu1 %2459 }
 0xdb6   :  { %v2464_v14 = vmul.f32 0.03125, %v2460_v10 }
 0xdb7   :  { %v2467_v15 = vadd.f32 1e-05, %v2465_v13 }
 0xdb8   :  { %v2466_v17 = vadd.f32 1e-05, %v2464_v14 }
 0xdb9   :  { %13410 = vrsqrt.f32 %v2467_v15 }
 0xdba   :  { %13412 = vrsqrt.f32 %v2466_v17 }
 0xdc3   :  { %v13411_v16 = vpop.eup %13410 }
 0xdc4   :  { %v13413_v21 = vpop.eup %13412  ;;  %v2471_v23 = vmul.f32 %v13411_v16, %v2455_v34 }
 0xdc5   :  { %v2470_v25 = vmul.f32 %v13413_v21, %v2454_v61 }
 0xdc6   :  { %v2479_v27 = vmul.f32 %v11696_v20, %v2471_v23 }
 0xdc7   :  { %v2478_v28 = vmul.f32 %v11696_v20, %v2470_v25 }
 0xdc8   :  { %v15039_v30 = vadd.f32 %v11697_v26, %v2479_v27 }
 0xdc9   :  { %v15037_v29 = vadd.f32 %v11697_v26, %v2478_v28 }
 0xdcb   :  { %12435 = vmatprep.mubr.msk.f32.mxu0 %vm675_vm5, %v15037_v29 }
 0xdcc   :  { %12436 = vmatmul.mubr.msk.f32.vlgmr.msra.gmra.mrb[20].mxu0 %vm675_vm5, %v15039_v30 }
 0xdcd   :  { %12440 = vmatprep.mubr.msk.f32.mxu0 %vm14313_vm6, %v14311_v6 }
 0xe9f   :  { %v12437_v32 = vpop.f32.mrb[20].mxu0 }
 0xea0   :  { %v15047_v35 = vadd.f32 %v12437_v32, %v11719_v31  ;;  %v2606_v36 = vpop.f32.mrb[21].mxu0 }
 0xea1   :  { %v15049_v37 = vadd.f32 %v11719_v31, %v2606_v36 }
 0xea2   :  { %2619 = vrot.lane.b32.xlu0 %v15047_v35, %s14315_s9 }
 0xea3   :  { %2617 = vrot.lane.b32.xlu1 %v15049_v37, %s14315_s9 }
 0xea6   :  { %2625 = vrot.lane.b32.xlu0 %v15049_v37, %s14316_s14 }
 0xea7   :  { %2621 = vrot.lane.b32.xlu1 %v15049_v37, %s14314_s2 }
 0xeaa   :  { %2629 = vrot.lane.b32.xlu0 %v15049_v37, %s14317_s8 }
 0xeab   :  { %2623 = vrot.lane.b32.xlu1 %v15047_v35, %s14314_s2 }
 0xeaf   :  { %2627 = vrot.lane.b32.xlu1 %v15047_v35, %s14316_s14 }
 0xeb3   :  { %2705 = vrot.lane.b32.xlu1 %v15047_v35, %s14317_s8 }
 0xf14   :  { %v15067_v44 = vpop.permute.xlu0 %2619 }
 0xf15   :  { %2857 = vrot.lane.b32.xlu1 %v15067_v44, %s14317_s8  ;;  %v15071_v47 = vpop.permute.xlu1 %2617 }
 0xf16   :  { %2781 = vrot.lane.b32.xlu0 %v15071_v47, %s14317_s8 }
 0xf18   :  { %v15075_v48 = vpop.permute.xlu0 %2625 }
 0xf19   :  { %v15077_v49 = vpop.permute.xlu1 %2621 }
 0xf1a   :  { %2933 = vrot.lane.b32.xlu0 %v15077_v49, %s14317_s8 }
 0xf1c   :  { %v2630_v50 = vpop.permute.xlu0 %2629 }
 0xf1d   :  { %12439 = vmatpush3.xpose.msk.msra.mxu0 %vm773_vm7, %v2630_v50  ;;  %v15082_v46 = vpop.permute.xlu1 %2623 }
 0xf1e   :  { %3085 = vrot.lane.b32.xlu0 %v15075_v48, %s14317_s8  ;;  %3009 = vrot.lane.b32.xlu1 %v15082_v46, %s14317_s8 }
 0xf1f   :  { %12443 = vmatprep.subr.mxu0 %v14311_v6 }
 0xf20   :  { %12441 = vmatmul.mubr.msk.f32.vlgmr.msra.gmra.mrb[22].mxu0 %vm773_vm7, %v15049_v37 }
 0xf21   :  { %v15091_v42 = vpop.permute.xlu1 %2627  ;;  %12445 = vmatprep.mubr.msk.f32.mxu0 %vm14313_vm6, %v14311_v6 }
 0xf22   :  { %3161 = vrot.lane.b32.xlu1 %v15091_v42, %s14317_s8 }
 0xf25   :  { %v2706_v51 = vpop.permute.xlu1 %2705 }
 0xf26   :  { %12444 = vmatpush3.xpose.msk.msra.mxu0 %vm773_vm7, %v2706_v51 }
 0xf27   :  { %12453 = vmatprep.subr.mxu0 %v14311_v6 }
 0xf29   :  { %12446 = vmatmul.mubr.msk.f32.vlgmr.msra.gmra.mrb[24].mxu0 %vm773_vm7, %v15047_v35 }
 0xf2a   :  { %12455 = vmatprep.mubr.msk.f32.mxu0 %vm14313_vm6, %v14311_v6 }
 0xf87   :  { %v2858_v52 = vpop.permute.xlu1 %2857 }
 0xf88   :  { %v2782_v53 = vpop.permute.xlu0 %2781  ;;  %12454 = vmatpush3.xpose.msk.msra.mxu0 %vm773_vm7, %v2858_v52 }
 0xf89   :  { %12449 = vmatpush3.xpose.msk.msra.mxu1 %vm773_vm7, %v2782_v53  ;;  %12463 = vmatprep.subr.mxu0 %v14311_v6 }
 0xf8a   :  { %12458 = vmatprep.subr.mxu1 %v14311_v6 }
 0xf8b   :  { %12456 = vmatmul.mubr.msk.f32.vlgmr.msra.gmra.mrb[26].mxu0 %vm773_vm7, %v15067_v44 }
 0xf8c   :  { %12451 = vmatmul.mubr.msk.f32.vlgmr.msra.gmra.mrb[22].mxu1 %vm773_vm7, %v15071_v47  ;;  %v2934_v54 = vpop.permute.xlu0 %2933  ;;  %12465 = vmatprep.mubr.msk.f32.mxu0 %vm14313_vm6, %v14311_v6 }
 0xf8d   :  { %12459 = vmatpush3.xpose.msk.msra.mxu1 %vm773_vm7, %v2934_v54  ;;  %12460 = vmatprep.mubr.msk.f32.mxu1 %vm14313_vm6, %v14311_v6 }
 0xf8e   :  { %12468 = vmatprep.subr.mxu1 %v14311_v6 }
 0xf90   :  { %12461 = vmatmul.mubr.msk.f32.vlgmr.msra.gmra.mrb[24].mxu1 %vm773_vm7, %v15077_v49  ;;  %v3086_v55 = vpop.permute.xlu0 %3085  ;;  %v3010_v38 = vpop.permute.xlu1 %3009 }
 0xf91   :  { %12464 = vmatpush3.xpose.msk.msra.mxu0 %vm773_vm7, %v3010_v38  ;;  %12469 = vmatpush3.xpose.msk.msra.mxu1 %vm773_vm7, %v3086_v55 }
 0xf92   :  { %12470 = vmatprep.mubr.msk.f32.mxu1 %vm14313_vm6, %v14311_v6  ;;  %12473 = vmatprep.subr.mxu0 %v14311_v6 }
 0xf93   :  { %12478 = vmatprep.subr.mxu1 %v14311_v6 }
 0xf94   :  { %12466 = vmatmul.mubr.msk.f32.vlgmr.msra.gmra.mrb[28].mxu0 %vm773_vm7, %v15082_v46  ;;  %12471 = vmatmul.mubr.msk.f32.vlgmr.msra.gmra.mrb[26].mxu1 %vm773_vm7, %v15075_v48  ;;  %v3162_v56 = vpop.permute.xlu1 %3161 }
 0xf95   :  { %12474 = vmatpush3.xpose.msk.msra.mxu0 %vm773_vm7, %v3162_v56  ;;  %12475 = vmatprep.mubr.msk.f32.mxu0 %vm14313_vm6, %v14311_v6 }
 0xf96   :  { %12483 = vmatprep.subr.mxu0 %v14311_v6  ;;  %12480 = vmatprep.mubr.msk.f32.mxu1 %vm14313_vm6, %v14311_v6 }
 0xf98   :  { %12476 = vmatmul.mubr.msk.f32.vlgmr.msra.gmra.mrb[30].mxu0 %vm773_vm7, %v15091_v42 }
 0xf99   :  { %12485 = vmatprep.mubr.msk.f32.mxu0 %vm14313_vm6, %v14311_v6 }
 0xff3   :  { %v2701_v41 = vpop.f32.mrb[22].mxu0 }
 0xff4   :  { %v3237_v43 = vmul.f32 0.35355338, %v2701_v41  ;;  %v12442_v39 = vpop.f32.mrb[23].mxu0 }
 0xff6   :  { %v3245_v45 = vadd.f32 %v3237_v43, %v14896_v57 }
 0xff8   :  { %v3253_v40 = vsel %vm773_vm7, %v3245_v45, -inf }
 0xff9   :  { %3254 = vmax.xlane.f32.xlu0 %v3253_v40 }
 0xffc   :  { %v2777_v58 = vpop.f32.mrb[24].mxu0 }
 0xffd   :  { %v3238_v59 = vmul.f32 0.35355338, %v2777_v58  ;;  %v12447_v60 = vpop.f32.mrb[25].mxu0 }
 0xfff   :  { %v3246_v33 = vadd.f32 %v3238_v59, %v14902_v0 }
0x1001   :  { %v3256_v34 = vsel %vm773_vm7, %v3246_v33, -inf }
0x1002   :  { %3257 = vmax.xlane.f32.xlu1 %v3256_v34 }
0x105e   :  { %v2929_v61 = vpop.f32.mrb[26].mxu0 }
0x105f   :  { %v3240_v62 = vmul.f32 0.35355338, %v2929_v61  ;;  %v2853_v63 = vpop.f32.mrb[22].mxu1  ;;  %v12457_v1 = vpop.f32.mrb[27].mxu0 }
0x1060   :  { %v3239_v2 = vmul.f32 0.35355338, %v2853_v63  ;;  %v12452_v3 = vpop.f32.mrb[23].mxu1 }
0x1061   :  { %v3248_v7 = vadd.f32 %v3240_v62, %v14902_v0 }
0x1062   :  { %v3247_v4 = vadd.f32 %v3239_v2, %v14896_v57 }
0x1063   :  { %v3005_v5 = vpop.f32.mrb[24].mxu1  ;;  %v3262_v15 = vsel %vm773_vm7, %v3248_v7, -inf }
0x1064   :  { %v3241_v8 = vmul.f32 0.35355338, %v3005_v5  ;;  %v12462_v9 = vpop.f32.mrb[25].mxu1  ;;  %v3259_v12 = vsel %vm773_vm7, %v3247_v4, -inf }
0x1065   :  { %3260 = vmax.xlane.f32.xlu0 %v3259_v12 }
0x1066   :  { %v3249_v13 = vadd.f32 %v3241_v8, %v14896_v57 }
0x1067   :  { %v3081_v10 = vpop.f32.mrb[28].mxu0  ;;  %v3157_v14 = vpop.f32.mrb[26].mxu1 }
0x1068   :  { %v3242_v17 = vmul.f32 0.35355338, %v3081_v10  ;;  %v3243_v16 = vmul.f32 0.35355338, %v3157_v14  ;;  %v12467_v20 = vpop.f32.mrb[29].mxu0  ;;  %v12472_v21 = vpop.f32.mrb[27].mxu1 }
0x1069   :  { %v3265_v23 = vsel %vm773_vm7, %v3249_v13, -inf  ;;  %3263 = vmax.xlane.f32.xlu0 %v3262_v15 }
0x106a   :  { %3266 = vmax.xlane.f32.xlu1 %v3265_v23  ;;  %v3251_v25 = vadd.f32 %v3243_v16, %v14896_v57  ;;  %v3250_v26 = vadd.f32 %v3242_v17, %v14902_v0 }
0x106b   :  { %v3233_v27 = vpop.f32.mrb[30].mxu0 }
0x106c   :  { %v3244_v28 = vmul.f32 0.35355338, %v3233_v27  ;;  %v12477_v31 = vpop.f32.mrb[31].mxu0  ;;  %v3271_v32 = vsel %vm773_vm7, %v3251_v25, -inf  ;;  %v3268_v36 = vsel %vm773_vm7, %v3250_v26, -inf }
0x106d   :  { %3269 = vmax.xlane.f32.xlu0 %v3268_v36 }
0x106e   :  { %3272 = vmax.xlane.f32.xlu1 %v3271_v32  ;;  %v3252_v50 = vadd.f32 %v3244_v28, %v14902_v0 }
0x1070   :  { %v3274_v51 = vsel %vm773_vm7, %v3252_v50, -inf }
0x1071   :  { %3275 = vmax.xlane.f32.xlu0 %v3274_v51 }
0x107f   :  { %3341 = vrot.lane.b32.xlu1 %v15049_v37, %s14318_s30 }
0x1083   :  { %3493 = vrot.lane.b32.xlu1 %v15071_v47, %s14318_s30 }
0x1086   :  { %v3255_v52 = vpop.xlane.xlu0 %3254 }
0x1087   :  { %3569 = vrot.lane.b32.xlu1 %v15067_v44, %s14318_s30  ;;  %3417 = vrot.lane.b32.xlu0 %v15047_v35, %s14318_s30  ;;  %v3277_v37 = vsub.f32 %v3245_v45, %v3255_v52 }
0x1089   :  { %v3285_v54 = vmul.f32 1.442695, %v3277_v37 }
0x108b   :  { %3721 = vrot.lane.b32.xlu1 %v15082_v46, %s14318_s30  ;;  %3645 = vrot.lane.b32.xlu0 %v15077_v49, %s14318_s30 }
0x108f   :  { %v3258_v57 = vpop.xlane.xlu1 %3257 }
0x1090   :  { %v3278_v0 = vsub.f32 %v3246_v33, %v3258_v57 }
0x1092   :  { %v3287_v53 = vmul.f32 1.442695, %v3278_v0 }
0x1094   :  { %13414 = vpow2.f32 %v3287_v53 }
0x1095   :  { %13416 = vpow2.f32 %v3285_v54 }
0x109e   :  { %v15167_v47 = vpop.eup %13414 }
0x109f   :  { %v3304_v44 = vsel %vm773_vm7, %v15167_v47, 0.0  ;;  %v15171_v35 = vpop.eup %13416 }
0x10a0   :  { %v3301_v46 = vsel %vm773_vm7, %v15171_v35, 0.0 }
0x10aa   :  { %3305 = vadd.xlane.f32.xlu0 %v3304_v44 }
0x10af   :  { %3302 = vadd.xlane.f32.xlu1 %v3301_v46 }
0x10f2   :  { %v3261_v49 = vpop.xlane.xlu0 %3260 }
0x10f3   :  { %v3279_v55 = vsub.f32 %v3247_v4, %v3261_v49 }
0x10f5   :  { %v3289_v38 = vmul.f32 1.442695, %v3279_v55 }
0x10f6   :  { %v3264_v56 = vpop.xlane.xlu0 %3263 }
0x10f7   :  { %13418 = vpow2.f32 %v3289_v38  ;;  %v3280_v41 = vsub.f32 %v3248_v7, %v3264_v56  ;;  %v3267_v43 = vpop.xlane.xlu1 %3266 }
0x10f8   :  { %v3281_v39 = vsub.f32 %v3249_v13, %v3267_v43 }
0x10f9   :  { %v3291_v45 = vmul.f32 1.442695, %v3280_v41 }
0x10fa   :  { %v3293_v40 = vmul.f32 1.442695, %v3281_v39  ;;  %v3270_v58 = vpop.xlane.xlu0 %3269 }
0x10fb   :  { %13420 = vpow2.f32 %v3291_v45  ;;  %v3282_v59 = vsub.f32 %v3250_v26, %v3270_v58  ;;  %v3273_v60 = vpop.xlane.xlu1 %3272 }
0x10fc   :  { %13422 = vpow2.f32 %v3293_v40  ;;  %v3283_v33 = vsub.f32 %v3251_v25, %v3273_v60  ;;  %v11703_v60 = vld [vmem:[%s16245_s7 + $0x28] sm:$0xff] }
0x10fd   :  { %v3295_v34 = vmul.f32 1.442695, %v3282_v59  ;;  %v11702_v59 = vld [vmem:[%s16245_s7 + $0x20] sm:$0xff] }
0x10fe   :  { %v3297_v61 = vmul.f32 1.442695, %v3283_v33  ;;  %v3276_v62 = vpop.xlane.xlu0 %3275  ;;  %v13119_v33 = vpack.c.bf16 %v11703_v60, %v11702_v59  ;;  %v11710_v59 = vld [vmem:[%s16247_s18 + $0x40] sm:$0xff]  ;;  %v11711_v60 = vld [vmem:[%s16247_s18 + $0x48] sm:$0xff] }
0x10ff   :  { %13424 = vpow2.f32 %v3295_v34  ;;  %v3284_v63 = vsub.f32 %v3252_v50, %v3276_v62  ;;  %v3342_v1 = vpop.permute.xlu1 %3341  ;;  %v11704_v34 = vld [vmem:[%s16245_s7 + $0x30] sm:$0xff] }
0x1100   :  { %13426 = vpow2.f32 %v3297_v61  ;;  %12479 = vmatpush3.msra.mxu1 %v3342_v1  ;;  %v11705_v61 = vld [vmem:[%s16245_s7 + $0x38] sm:$0xff] }
0x1101   :  { %v13419_v2 = vpop.eup %13418  ;;  %v3299_v3 = vmul.f32 1.442695, %v3284_v63  ;;  %12488 = vmatprep.subr.mxu1 %v14311_v6  ;;  %v13123_v62 = vpack.c.bf16 %v11705_v61, %v11704_v34  ;;  %v13135_v34 = vpack.c.bf16 %v11711_v60, %v11710_v59  ;;  %v11713_v61 = vld [vmem:[%s16247_s18 + $0x58] sm:$0xff] }
0x1102   :  { %v3418_v4 = vpop.permute.xlu0 %3417  ;;  %v3307_v5 = vsel %vm773_vm7, %v13419_v2, 0.0 }
0x1103   :  { %13428 = vpow2.f32 %v3299_v3  ;;  %3308 = vadd.xlane.f32.xlu1 %v3307_v5  ;;  %12484 = vmatpush3.msra.mxu0 %v3418_v4  ;;  %v3494_v20 = vpop.permute.xlu1 %3493 }
0x1104   :  { %12493 = vmatprep.subr.mxu0 %v14311_v6 }
0x1105   :  { %v13421_v7 = vpop.eup %13420 }
0x1106   :  { %v13423_v8 = vpop.eup %13422  ;;  %v3310_v9 = vsel %vm773_vm7, %v13421_v7, 0.0  ;;  %v3646_v23 = vpop.permute.xlu0 %3645 }
0x1107   :  { %3311 = vadd.xlane.f32.xlu0 %v3310_v9  ;;  %v3313_v12 = vsel %vm773_vm7, %v13423_v8, 0.0  ;;  %v3570_v21 = vpop.permute.xlu1 %3569 }
0x1108   :  { %3314 = vadd.xlane.f32.xlu1 %v3313_v12 }
0x1109   :  { %v13425_v13 = vpop.eup %13424 }
0x110a   :  { %v15180_v10 = vpop.eup %13426  ;;  %v3316_v14 = vsel %vm773_vm7, %v13425_v13, 0.0 }
0x110b   :  { %3317 = vadd.xlane.f32.xlu0 %v3316_v14  ;;  %v3319_v15 = vsel %vm773_vm7, %v15180_v10, 0.0  ;;  %v3722_v26 = vpop.permute.xlu1 %3721 }
0x110c   :  { %3320 = vadd.xlane.f32.xlu1 %v3319_v15 }
0x110d   :  { %v15185_v17 = vpop.eup %13428 }
0x110e   :  { %v3322_v16 = vsel %vm773_vm7, %v15185_v17, 0.0 }
0x110f   :  { %3323 = vadd.xlane.f32.xlu0 %v3322_v16 }
0x111d   :  { %3873 = vrot.lane.b32.xlu1 %v15091_v42, %s14318_s30 }
0x1125   :  { %3797 = vrot.lane.b32.xlu0 %v15075_v48, %s14318_s30 }
0x1137   :  { %v3306_v25 = vpop.xlane.xlu0 %3305 }
0x1138   :  { %13430 = vrcp.f32 %v3306_v25 }
0x113c   :  { %v3303_v27 = vpop.xlane.xlu1 %3302 }
0x113d   :  { %13432 = vrcp.f32 %v3303_v27 }
0x1142   :  { %v13431_v28 = vpop.eup %13430 }
0x1143   :  { %v3334_v31 = vmul.f32 %v13431_v28, %v15167_v47 }
0x1145   :  { %12486 = vmatmul.mubr.msk.f32.vlgmr.msra.gmra.mrb[32].mxu0 %vm773_vm7, %v3334_v31 }
0x1146   :  { %12494 = vmatpush3.msra.mxu0 %v3570_v21  ;;  %12495 = vmatprep.mubr.msk.f32.mxu0 %vm14313_vm6, %v14311_v6 }
0x1147   :  { %v13433_v42 = vpop.eup %13432  ;;  %12503 = vmatprep.subr.mxu0 %v14311_v6 }
0x1148   :  { %v3333_v48 = vmul.f32 %v13433_v42, %v15171_v35  ;;  %v11746_v42 = vld [vmem:[#allocation10 + $0x1] ss:$0 sm:$0xff] }
0x114a   :  { %12481 = vmatmul.mubr.msk.f32.vlgmr.msra.gmra.mrb[28].mxu1 %vm773_vm7, %v3333_v48 }
0x114b   :  { %12489 = vmatpush3.msra.mxu1 %v3494_v20  ;;  %12490 = vmatprep.mubr.msk.f32.mxu1 %vm14313_vm6, %v14311_v6 }
0x114c   :  { %12498 = vmatprep.subr.mxu1 %v14311_v6 }
0x1190   :  { %v3309_v32 = vpop.xlane.xlu1 %3308 }
0x1191   :  { %13434 = vrcp.f32 %v3309_v32 }
0x1194   :  { %v3312_v36 = vpop.xlane.xlu0 %3311 }
0x1195   :  { %13436 = vrcp.f32 %v3312_v36  ;;  %v3315_v50 = vpop.xlane.xlu1 %3314 }
0x1196   :  { %13438 = vrcp.f32 %v3315_v50 }
0x1198   :  { %v3318_v51 = vpop.xlane.xlu0 %3317 }
0x1199   :  { %13440 = vrcp.f32 %v3318_v51  ;;  %v3321_v57 = vpop.xlane.xlu1 %3320 }
0x119a   :  { %13442 = vrcp.f32 %v3321_v57 }
0x119b   :  { %v13435_v0 = vpop.eup %13434 }
0x119c   :  { %v3324_v52 = vpop.xlane.xlu0 %3323  ;;  %v3335_v53 = vmul.f32 %v13435_v0, %v13419_v2 }
0x119d   :  { %13444 = vrcp.f32 %v3324_v52  ;;  %v3874_v56 = vpop.permute.xlu1 %3873 }
0x119e   :  { %12491 = vmatmul.mubr.msk.f32.vlgmr.msra.gmra.mrb[30].mxu1 %vm773_vm7, %v3335_v53 }
0x119f   :  { %v13437_v37 = vpop.eup %13436  ;;  %12499 = vmatpush3.msra.mxu1 %v3646_v23  ;;  %12500 = vmatprep.mubr.msk.f32.mxu1 %vm14313_vm6, %v14311_v6 }
0x11a0   :  { %v13439_v54 = vpop.eup %13438  ;;  %12508 = vmatprep.subr.mxu1 %v14311_v6  ;;  %v3336_v47 = vmul.f32 %v13437_v37, %v13421_v7  ;;  %v3798_v44 = vpop.permute.xlu0 %3797 }
0x11a1   :  { %v3337_v35 = vmul.f32 %v13439_v54, %v13423_v8 }
0x11a2   :  { %12496 = vmatmul.mubr.msk.f32.vlgmr.msra.gmra.mrb[34].mxu0 %vm773_vm7, %v3336_v47 }
0x11a3   :  { %v13441_v46 = vpop.eup %13440  ;;  %12501 = vmatmul.mubr.msk.f32.vlgmr.msra.gmra.mrb[32].mxu1 %vm773_vm7, %v3337_v35  ;;  %12504 = vmatpush3.msra.mxu0 %v3722_v26 }
0x11a4   :  { %v13443_v49 = vpop.eup %13442  ;;  %12509 = vmatpush3.msra.mxu1 %v3798_v44  ;;  %12505 = vmatprep.mubr.msk.f32.mxu0 %vm14313_vm6, %v14311_v6  ;;  %v3338_v55 = vmul.f32 %v13441_v46, %v13425_v13 }
0x11a5   :  { %12510 = vmatprep.mubr.msk.f32.mxu1 %vm14313_vm6, %v14311_v6  ;;  %12513 = vmatprep.subr.mxu0 %v14311_v6  ;;  %v3339_v38 = vmul.f32 %v13443_v49, %v15180_v10 }
0x11a6   :  { %12506 = vmatmul.mubr.msk.f32.vlgmr.msra.gmra.mrb[36].mxu0 %vm773_vm7, %v3338_v55  ;;  %13120 = vmatprep.subr.bf16.mxu1 %v13119_v33  ;;  %v11706_v55 = vld [vmem:[%s16246_s29 + $0x20] sm:$0xff] }
0x11a7   :  { %v13445_v41 = vpop.eup %13444  ;;  %12511 = vmatmul.mubr.msk.f32.vlgmr.msra.gmra.mrb[34].mxu1 %vm773_vm7, %v3339_v38  ;;  %12514 = vmatpush3.msra.mxu0 %v3874_v56  ;;  %v11707_v38 = vld [vmem:[%s16246_s29 + $0x28] sm:$0xff]  ;;  %v11708_v56 = vld [vmem:[%s16246_s29 + $0x30] sm:$0xff] }
0x11a8   :  { %12515 = vmatprep.mubr.msk.f32.mxu0 %vm14313_vm6, %v14311_v6  ;;  %v3340_v43 = vmul.f32 %v13445_v41, %v15185_v17  ;;  %13122 = vmatpush3.bf16.msra.mxu1 %v13119_v33  ;;  %v13127_v41 = vpack.c.bf16 %v11707_v38, %v11706_v55  ;;  %v11712_v33 = vld [vmem:[%s16247_s18 + $0x50] sm:$0xff] }
0x11a9   :  { %13124 = vmatprep.subr.bf16.mxu1 %v13123_v62 }
0x11aa   :  { %12516 = vmatmul.mubr.msk.f32.vlgmr.msra.gmra.mrb[38].mxu0 %vm773_vm7, %v3340_v43  ;;  %v11709_v43 = vld [vmem:[%s16246_s29 + $0x38] sm:$0xff]  ;;  %13128 = vmatprep.subr.bf16.mxu0 %v13127_v41 }
0x11ab   :  { %13130 = vmatpush3.bf16.msra.mxu0 %v13127_v41 }
0x11ac   :  { %13126 = vmatpush3.bf16.msra.mxu1 %v13123_v62  ;;  %v13139_v62 = vpack.c.bf16 %v11713_v61, %v11712_v33 }
0x11ad   :  { %13136 = vmatprep.subr.bf16.mxu1 %v13135_v34 }
0x1218   :  { %v3489_v39 = vpop.f32.mrb[32].mxu0 }
0x1219   :  { %v12487_v45 = vpop.f32.mrb[33].mxu0 }
0x121a   :  { %v4330_v45 = vld [vmem:[#allocation7] sm:$0xff] }
0x121d   :  { %v3413_v40 = vpop.f32.mrb[28].mxu1 }
0x121e   :  { %v12482_v58 = vpop.f32.mrb[29].mxu1 }
0x1271   :  { %v3565_v63 = vpop.f32.mrb[30].mxu1 }
0x1272   :  { %3951 = vrot.lane.b32.xlu0 %v3565_v63, %s14297_s13  ;;  %v12492_v1 = vpop.f32.mrb[31].mxu1  ;;  %v11714_v63 = vld [vmem:[%s16247_s18 + $0x60] sm:$0xff] }
0x1273   :  { %v11715_v1 = vld [vmem:[%s16247_s18 + $0x68] sm:$0xff] }
0x1275   :  { %v3641_v2 = vpop.f32.mrb[34].mxu0 }
0x1276   :  { %v3717_v3 = vpop.f32.mrb[32].mxu1  ;;  %3953 = vrot.lane.b32.xlu1 %v3641_v2, %s14297_s13  ;;  %v12497_v4 = vpop.f32.mrb[35].mxu0  ;;  %v13143_v2 = vpack.c.bf16 %v11715_v1, %v11714_v63 }
0x1277   :  { %3959 = vrot.lane.b32.xlu0 %v3717_v3, %s14281_s15  ;;  %v12502_v5 = vpop.f32.mrb[33].mxu1 }
0x1279   :  { %v3793_v7 = vpop.f32.mrb[36].mxu0 }
0x127a   :  { %v3869_v8 = vpop.f32.mrb[34].mxu1  ;;  %3961 = vrot.lane.b32.xlu1 %v3793_v7, %s14281_s15  ;;  %v12507_v9 = vpop.f32.mrb[37].mxu0 }
0x127b   :  { %3967 = vrot.lane.b32.xlu0 %v3869_v8, %s14319_s10  ;;  %v12512_v12 = vpop.f32.mrb[35].mxu1 }
0x127d   :  { %v3945_v13 = vpop.f32.mrb[38].mxu0 }
0x127e   :  { %3969 = vrot.lane.b32.xlu1 %v3945_v13, %s14319_s10  ;;  %v12517_v10 = vpop.f32.mrb[39].mxu0  ;;  %v11749_v13 = vld [vmem:[#allocation11 + $0x1] ss:$0 sm:$0xff] }
0x12e4   :  { %v3952_v14 = vpop.permute.xlu0 %3951 }
0x12e5   :  { %v3973_v16 = vsel %vm773_vm7, %v3413_v40, %v3952_v14  ;;  %v4331_v40 = vld [vmem:[#allocation7 + $0x8] sm:$0xff]  ;;  %v11750_v14 = vld [vmem:[#allocation13 + $0x1] ss:$0 sm:$0xff] }
0x12e6   :  { %v13151_v58 = vpack.c.bf16 %v4331_v40, %v4330_v45 }
0x12e8   :  { %v3954_v15 = vpop.permute.xlu1 %3953 }
0x12e9   :  { %v3960_v17 = vpop.permute.xlu0 %3959  ;;  %v3974_v26 = vsel %vm773_vm7, %v3489_v39, %v3954_v15  ;;  %v13131_v39 = vpack.c.bf16 %v11709_v43, %v11708_v56 }
0x12ea   :  { %v3975_v21 = vsel %vm555_vm2, %v3973_v16, %v3960_v17 }
0x12eb   :  { %13132 = vmatprep.subr.bf16.mxu0 %v13131_v39 }
0x12ec   :  { %v3962_v20 = vpop.permute.xlu1 %3961  ;;  %13134 = vmatpush3.bf16.msra.mxu0 %v13131_v39 }
0x12ed   :  { %v3968_v23 = vpop.permute.xlu0 %3967  ;;  %v3976_v27 = vsel %vm555_vm2, %v3974_v26, %v3962_v20  ;;  %13152 = vmatprep.subr.bf16.mxu0 %v13151_v58  ;;  %v11717_v26 = vld [vmem:[%s16247_s18 + $0x78] sm:$0xff] }
0x12ee   :  { %v3977_v25 = vsel %vm2132_vm10, %v3975_v21, %v3968_v23 }
0x12ef   :  { %12526 = vmatprep.mubr.msk.f32.mxu1 %vm675_vm5, %v3977_v25  ;;  %v11716_v25 = vld [vmem:[%s16247_s18 + $0x70] sm:$0xff] }
0x12f0   :  { %v3970_v28 = vpop.permute.xlu1 %3969 }
0x12f1   :  { %v3978_v31 = vsel %vm2132_vm10, %v3976_v27, %v3970_v28  ;;  %v4411_v27 = vld [vmem:[%s16249_s24] sm:$0xff]  ;;  %v13147_v28 = vpack.c.bf16 %v11717_v26, %v11716_v25 }
0x12f2   :  { %12527 = vmatmul.mubr.msk.f32.vlgmr.msra.gmra.mrb[36].mxu1 %vm675_vm5, %v3978_v31  ;;  %v4412_v31 = vld [vmem:[%s16249_s24 + $0x8] sm:$0xff] }
0x12f3   :  { %13138 = vmatpush3.bf16.msra.mxu1 %v13135_v34 }
0x12f4   :  { %13140 = vmatprep.subr.bf16.mxu1 %v13139_v62 }
0x12f7   :  { %13142 = vmatpush3.bf16.msra.mxu1 %v13139_v62 }
0x12f8   :  { %13144 = vmatprep.subr.bf16.mxu1 %v13143_v2 }
0x12fb   :  { %13146 = vmatpush3.bf16.msra.mxu1 %v13143_v2 }
0x12fc   :  { %13148 = vmatprep.subr.bf16.mxu1 %v13147_v28 }
0x12ff   :  { %13150 = vmatpush3.bf16.msra.mxu1 %v13147_v28 }
0x1300   :  { %12582 = vmatprep.subr.mxu1 %v14311_v6 }
0x13c5   :  { %v12528_v48 = vpop.f32.mrb[36].mxu1 }
0x13c6   :  { %v4063_v32 = vadd.f32 %v12528_v48, %v11746_v42  ;;  %v4057_v36 = vpop.f32.mrb[37].mxu1  ;;  %v4413_v48 = vld [vmem:[%s16249_s24 + $0x10] sm:$0xff] }
0x13c7   :  { %v4058_v50 = vadd.f32 %v11746_v42, %v4057_v36  ;;  %v13155_v42 = vpack.c.bf16 %v4412_v31, %v4411_v27 }
0x13c8   :  { %v4067_v51 = vadd.f32 %v4063_v32, %v15039_v30  ;;  %v4414_v32 = vld [vmem:[%s16249_s24 + $0x18] sm:$0xff] }
0x13c9   :  { %v4066_v57 = vadd.f32 %v4058_v50, %v15037_v29  ;;  %v13159_v36 = vpack.c.bf16 %v4414_v32, %v4413_v48 }
0x13ca   :  { %v4071_v0 = vsel %vm675_vm5, %v4067_v51, 0.0 }
0x13cb   :  { %4072 = vadd.xlane.f32.xlu1 %v4071_v0  ;;  %v4068_v52 = vsel %vm675_vm5, %v4066_v57, 0.0 }
0x13cc   :  { %4069 = vadd.xlane.f32.xlu0 %v4068_v52 }
0x1458   :  { %v4073_v53 = vpop.xlane.xlu1 %4072 }
0x1459   :  { %v4075_v37 = vmul.f32 0.03125, %v4073_v53  ;;  %v4070_v54 = vpop.xlane.xlu0 %4069 }
0x145a   :  { %v4074_v47 = vmul.f32 0.03125, %v4070_v54 }
0x145b   :  { %v4077_v44 = vsub.f32 %v4067_v51, %v4075_v37 }
0x145c   :  { %v4076_v35 = vsub.f32 %v4066_v57, %v4074_v47 }
0x145d   :  { %v4079_v29 = vmul.f32 %v4077_v44, %v4077_v44 }
0x145e   :  { %v4078_v46 = vmul.f32 %v4076_v35, %v4076_v35 }
0x145f   :  { %v4083_v49 = vsel %vm675_vm5, %v4079_v29, 0.0 }
0x1460   :  { %v4080_v30 = vsel %vm675_vm5, %v4078_v46, 0.0 }
0x1461   :  { %4081 = vadd.xlane.f32.xlu0 %v4080_v30 }
0x1465   :  { %4084 = vadd.xlane.f32.xlu0 %v4083_v49  ;;  %v11761_v49 = vld [vmem:[#allocation19] ss:$0 sm:$0xff] }
0x14ee   :  { %v4082_v3 = vpop.xlane.xlu0 %4081 }
0x14ef   :  { %v4086_v4 = vmul.f32 0.03125, %v4082_v3  ;;  %v550_v3 = vld [vmem:[#allocation2] sm:$0xff] }
0x14f0   :  { %vm551_vm12 = vcmp.gt.f32.partialorder %v550_v3, 0.0 }
0x14f1   :  { %v4088_v5 = vadd.f32 1e-05, %v4086_v4  ;;  %v15387_v4 = vsel %vm551_vm12, 0.0, %v14312_v11 }
0x14f2   :  { %v4085_v7 = vpop.xlane.xlu0 %4084 }
0x14f3   :  { %13446 = vrsqrt.f32 %v4088_v5  ;;  %v4087_v8 = vmul.f32 0.03125, %v4085_v7 }
0x14f5   :  { %v4089_v9 = vadd.f32 1e-05, %v4087_v8 }
0x14f7   :  { %13448 = vrsqrt.f32 %v4089_v9 }
0x14fd   :  { %v13447_v12 = vpop.eup %13446 }
0x14fe   :  { %v4092_v10 = vmul.f32 %v13447_v12, %v4076_v35 }
0x1500   :  { %v4100_v15 = vmul.f32 %v11749_v13, %v4092_v10 }
0x1501   :  { %v13449_v17 = vpop.eup %13448 }
0x1502   :  { %v4093_v16 = vmul.f32 %v13449_v17, %v4077_v44  ;;  %v15255_v20 = vadd.f32 %v11750_v14, %v4100_v15  ;;  %v13614_v44 = vld [vmem:[%s16243_s6] sm:$0xff] }
0x1504   :  { %v4101_v21 = vmul.f32 %v11749_v13, %v4093_v16  ;;  %12537 = vmatprep.mubr.msk.f32.mxu0 %vm675_vm5, %v15255_v20 }
0x1506   :  { %v15259_v23 = vadd.f32 %v11750_v14, %v4101_v21 }
0x1508   :  { %12538 = vmatmul.mubr.msk.f32.vlgmr.msra.gmra.mrb[40].mxu0 %vm675_vm5, %v15259_v23 }
0x1509   :  { %13154 = vmatpush3.bf16.msra.mxu0 %v13151_v58  ;;  %12563 = vmatprep.mubr.msk.f32.mxu0 %vm555_vm2, %v14775_v22  ;;  %v11751_v22 = vld [vmem:[#allocation14 + $0x1] ss:$0 sm:$0xff] }
0x150a   :  { %13156 = vmatprep.subr.bf16.mxu0 %v13155_v42 }
0x150c   :  { %12564 = vmatmul.mubr.msk.f32.vlgmr.msra.gmra.mrb[42].mxu0 %vm555_vm2, %v14780_v24 }
0x150d   :  { %13158 = vmatpush3.bf16.msra.mxu0 %v13155_v42 }
0x150e   :  { %13160 = vmatprep.subr.bf16.mxu0 %v13159_v36 }
0x1511   :  { %13162 = vmatpush3.bf16.msra.mxu0 %v13159_v36 }
0x1512   :  { %12577 = vmatprep.subr.mxu0 %v14311_v6 }
0x15db   :  { %v12539_v24 = vpop.f32.mrb[40].mxu0 }
0x15dc   :  { %v4194_v50 = vadd.f32 %v12539_v24, %v11751_v22  ;;  %v4188_v51 = vpop.f32.mrb[41].mxu0 }
0x15dd   :  { %v4189_v57 = vadd.f32 %v11751_v22, %v4188_v51 }
0x15de   :  { %v4198_v53 = vmax.f32 %v4194_v50, 0.0 }
0x15df   :  { %v4197_v0 = vmax.f32 %v4189_v57, 0.0  ;;  %v12565_v52 = vpop.f32.mrb[42].mxu0 }
0x15e0   :  { %v4408_v37 = vmul.f32 5.656854, %v12565_v52  ;;  %v4398_v54 = vpop.f32.mrb[43].mxu0 }
0x15e1   :  { %v4407_v47 = vmul.f32 5.656854, %v4398_v54  ;;  %12556 = vmatprep.mubr.msk.f32.mxu1 %vm2362_vm11, %v4197_v0 }
0x15e2   :  { %12557 = vmatmul.mubr.msk.f32.vlgmr.msra.gmra.mrb[38].mxu1 %vm2362_vm11, %v4198_v53  ;;  %v15282_v46 = vadd.f32 %v13614_v44, %v4408_v37 }
0x15e3   :  { %v15278_v35 = vadd.f32 %v13614_v44, %v4407_v47  ;;  %12584 = vmatprep.mubr.msk.f32.mxu1 %vm14313_vm6, %v14311_v6 }
0x15e5   :  { %12574 = vmatprep.mubr.msk.f32.mxu0 %vm675_vm5, %v15278_v35 }
0x15e6   :  { %12575 = vmatmul.mubr.msk.f32.vlgmr.msra.gmra.mrb[44].mxu0 %vm675_vm5, %v15282_v46 }
0x15e7   :  { %12579 = vmatprep.mubr.msk.f32.mxu0 %vm14313_vm6, %v14311_v6 }
0x16b5   :  { %v15290_v30 = vpop.f32.mrb[38].mxu1 }
0x16b6   :  { %v15292_v29 = vpop.f32.mrb[39].mxu1 }
0x16b9   :  { %v12576_v55 = vpop.f32.mrb[44].mxu0 }
0x16ba   :  { %v15294_v38 = vadd.f32 %v12576_v55, %v11761_v49  ;;  %v4534_v56 = vpop.f32.mrb[45].mxu0 }
0x16bb   :  { %v15296_v41 = vadd.f32 %v11761_v49, %v4534_v56 }
0x16bc   :  { %4547 = vrot.lane.b32.xlu0 %v15294_v38, %s14315_s9 }
0x16bd   :  { %4545 = vrot.lane.b32.xlu1 %v15296_v41, %s14315_s9 }
0x16c0   :  { %4553 = vrot.lane.b32.xlu0 %v15296_v41, %s14316_s14 }
0x16c1   :  { %4549 = vrot.lane.b32.xlu1 %v15296_v41, %s14314_s2 }
0x16c4   :  { %4557 = vrot.lane.b32.xlu0 %v15296_v41, %s14317_s8 }
0x16c5   :  { %4551 = vrot.lane.b32.xlu1 %v15294_v38, %s14314_s2 }
0x16c9   :  { %4555 = vrot.lane.b32.xlu1 %v15294_v38, %s14316_s14 }
0x16cd   :  { %4633 = vrot.lane.b32.xlu1 %v15294_v38, %s14317_s8 }
0x172e   :  { %v15314_v43 = vpop.permute.xlu0 %4547 }
0x172f   :  { %4785 = vrot.lane.b32.xlu1 %v15314_v43, %s14317_s8  ;;  %v15318_v39 = vpop.permute.xlu1 %4545 }
0x1730   :  { %4709 = vrot.lane.b32.xlu0 %v15318_v39, %s14317_s8 }
0x1732   :  { %v15322_v45 = vpop.permute.xlu0 %4553 }
0x1733   :  { %v15324_v40 = vpop.permute.xlu1 %4549 }
0x1734   :  { %4861 = vrot.lane.b32.xlu0 %v15324_v40, %s14317_s8 }
0x1736   :  { %v4558_v58 = vpop.permute.xlu0 %4557 }
0x1737   :  { %12578 = vmatpush3.xpose.msk.msra.mxu0 %vm773_vm7, %v4558_v58  ;;  %v15329_v59 = vpop.permute.xlu1 %4551 }
0x1738   :  { %5013 = vrot.lane.b32.xlu0 %v15322_v45, %s14317_s8  ;;  %4937 = vrot.lane.b32.xlu1 %v15329_v59, %s14317_s8 }
0x1739   :  { %12587 = vmatprep.subr.mxu0 %v14311_v6 }
0x173a   :  { %12580 = vmatmul.mubr.msk.f32.vlgmr.msra.gmra.mrb[46].mxu0 %vm773_vm7, %v15296_v41 }
0x173b   :  { %v15338_v60 = vpop.permute.xlu1 %4555  ;;  %12589 = vmatprep.mubr.msk.f32.mxu0 %vm14313_vm6, %v14311_v6 }
0x173c   :  { %5089 = vrot.lane.b32.xlu1 %v15338_v60, %s14317_s8 }
0x173f   :  { %v4634_v33 = vpop.permute.xlu1 %4633 }
0x1740   :  { %12583 = vmatpush3.xpose.msk.msra.mxu1 %vm773_vm7, %v4634_v33 }
0x1741   :  { %12592 = vmatprep.subr.mxu1 %v14311_v6 }
0x1743   :  { %12585 = vmatmul.mubr.msk.f32.vlgmr.msra.gmra.mrb[40].mxu1 %vm773_vm7, %v15294_v38 }
0x1744   :  { %12594 = vmatprep.mubr.msk.f32.mxu1 %vm14313_vm6, %v14311_v6 }
0x17a1   :  { %v4786_v34 = vpop.permute.xlu1 %4785 }
0x17a2   :  { %v4710_v61 = vpop.permute.xlu0 %4709  ;;  %12593 = vmatpush3.xpose.msk.msra.mxu1 %vm773_vm7, %v4786_v34 }
0x17a3   :  { %12588 = vmatpush3.xpose.msk.msra.mxu0 %vm773_vm7, %v4710_v61  ;;  %12602 = vmatprep.subr.mxu1 %v14311_v6 }
0x17a4   :  { %12597 = vmatprep.subr.mxu0 %v14311_v6 }
0x17a5   :  { %12595 = vmatmul.mubr.msk.f32.vlgmr.msra.gmra.mrb[42].mxu1 %vm773_vm7, %v15314_v43 }
0x17a6   :  { %12590 = vmatmul.mubr.msk.f32.vlgmr.msra.gmra.mrb[48].mxu0 %vm773_vm7, %v15318_v39  ;;  %v4862_v62 = vpop.permute.xlu0 %4861  ;;  %12604 = vmatprep.mubr.msk.f32.mxu1 %vm14313_vm6, %v14311_v6 }
0x17a7   :  { %12598 = vmatpush3.xpose.msk.msra.mxu0 %vm773_vm7, %v4862_v62  ;;  %12599 = vmatprep.mubr.msk.f32.mxu0 %vm14313_vm6, %v14311_v6 }
0x17a8   :  { %12607 = vmatprep.subr.mxu0 %v14311_v6 }
0x17aa   :  { %12600 = vmatmul.mubr.msk.f32.vlgmr.msra.gmra.mrb[50].mxu0 %vm773_vm7, %v15324_v40  ;;  %v5014_v63 = vpop.permute.xlu0 %5013  ;;  %v4938_v1 = vpop.permute.xlu1 %4937 }
0x17ab   :  { %12603 = vmatpush3.xpose.msk.msra.mxu1 %vm773_vm7, %v4938_v1  ;;  %12608 = vmatpush3.xpose.msk.msra.mxu0 %vm773_vm7, %v5014_v63 }
0x17ac   :  { %12609 = vmatprep.mubr.msk.f32.mxu0 %vm14313_vm6, %v14311_v6  ;;  %12612 = vmatprep.subr.mxu1 %v14311_v6 }
0x17ad   :  { %12617 = vmatprep.subr.mxu0 %v14311_v6 }
0x17ae   :  { %12610 = vmatmul.mubr.msk.f32.vlgmr.msra.gmra.mrb[52].mxu0 %vm773_vm7, %v15322_v45  ;;  %v5090_v2 = vpop.permute.xlu1 %5089  ;;  %12605 = vmatmul.mubr.msk.f32.vlgmr.msra.gmra.mrb[44].mxu1 %vm773_vm7, %v15329_v59 }
0x17af   :  { %12613 = vmatpush3.xpose.msk.msra.mxu1 %vm773_vm7, %v5090_v2  ;;  %12614 = vmatprep.mubr.msk.f32.mxu1 %vm14313_vm6, %v14311_v6 }
0x17b0   :  { %12622 = vmatprep.subr.mxu1 %v14311_v6  ;;  %12619 = vmatprep.mubr.msk.f32.mxu0 %vm14313_vm6, %v14311_v6 }
0x17b2   :  { %12615 = vmatmul.mubr.msk.f32.vlgmr.msra.gmra.mrb[46].mxu1 %vm773_vm7, %v15338_v60 }
0x17b3   :  { %12624 = vmatprep.mubr.msk.f32.mxu1 %vm14313_vm6, %v14311_v6 }
0x180d   :  { %v4629_v5 = vpop.f32.mrb[46].mxu0 }
0x180e   :  { %v5165_v7 = vmul.f32 0.35355338, %v4629_v5  ;;  %v12581_v8 = vpop.f32.mrb[47].mxu0 }
0x1810   :  { %v5173_v9 = vadd.f32 %v5165_v7, %v15387_v4 }
0x1812   :  { %v5181_v12 = vsel %vm773_vm7, %v5173_v9, -inf }
0x1813   :  { %5182 = vmax.xlane.f32.xlu0 %v5181_v12 }
0x1816   :  { %v4705_v13 = vpop.f32.mrb[40].mxu1 }
0x1817   :  { %v5166_v10 = vmul.f32 0.35355338, %v4705_v13  ;;  %v12586_v14 = vpop.f32.mrb[41].mxu1 }
0x1819   :  { %v5174_v15 = vadd.f32 %v5166_v10, %v15387_v4 }
0x181b   :  { %v5184_v17 = vsel %vm773_vm7, %v5174_v15, -inf }
0x181c   :  { %5185 = vmax.xlane.f32.xlu1 %v5184_v17 }
0x1878   :  { %v4857_v16 = vpop.f32.mrb[42].mxu1 }
0x1879   :  { %v5168_v21 = vmul.f32 0.35355338, %v4857_v16  ;;  %v4781_v11 = vpop.f32.mrb[48].mxu0  ;;  %v12596_v25 = vpop.f32.mrb[43].mxu1 }
0x187a   :  { %v5167_v26 = vmul.f32 0.35355338, %v4781_v11  ;;  %v12591_v27 = vpop.f32.mrb[49].mxu0 }
0x187b   :  { %v5176_v31 = vadd.f32 %v5168_v21, %v15387_v4 }
0x187c   :  { %v5175_v28 = vadd.f32 %v5167_v26, %v15387_v4 }
0x187d   :  { %v4933_v42 = vpop.f32.mrb[50].mxu0  ;;  %v5190_v51 = vsel %vm773_vm7, %v5176_v31, -inf }
0x187e   :  { %v5169_v48 = vmul.f32 0.35355338, %v4933_v42  ;;  %v12601_v32 = vpop.f32.mrb[51].mxu0  ;;  %v5187_v36 = vsel %vm773_vm7, %v5175_v28, -inf }
0x187f   :  { %5188 = vmax.xlane.f32.xlu0 %v5187_v36 }
0x1880   :  { %v5177_v22 = vadd.f32 %v5169_v48, %v15387_v4 }
0x1881   :  { %v5009_v24 = vpop.f32.mrb[44].mxu1  ;;  %v5085_v50 = vpop.f32.mrb[52].mxu0 }
0x1882   :  { %v5170_v57 = vmul.f32 0.35355338, %v5009_v24  ;;  %v5171_v0 = vmul.f32 0.35355338, %v5085_v50  ;;  %v12606_v52 = vpop.f32.mrb[45].mxu1  ;;  %v12611_v53 = vpop.f32.mrb[53].mxu0 }
0x1883   :  { %v5193_v37 = vsel %vm773_vm7, %v5177_v22, -inf  ;;  %5191 = vmax.xlane.f32.xlu0 %v5190_v51 }
0x1884   :  { %v5178_v54 = vadd.f32 %v5170_v57, %v15387_v4  ;;  %v5179_v47 = vadd.f32 %v5171_v0, %v15387_v4  ;;  %5194 = vmax.xlane.f32.xlu1 %v5193_v37 }
0x1885   :  { %v5161_v44 = vpop.f32.mrb[46].mxu1 }
0x1886   :  { %v5172_v49 = vmul.f32 0.35355338, %v5161_v44  ;;  %v12616_v55 = vpop.f32.mrb[47].mxu1  ;;  %v5199_v56 = vsel %vm773_vm7, %v5179_v47, -inf  ;;  %v5196_v58 = vsel %vm773_vm7, %v5178_v54, -inf }
0x1887   :  { %5197 = vmax.xlane.f32.xlu0 %v5196_v58 }
0x1888   :  { %v5180_v33 = vadd.f32 %v5172_v49, %v15387_v4  ;;  %5200 = vmax.xlane.f32.xlu1 %v5199_v56 }
0x188a   :  { %v5202_v34 = vsel %vm773_vm7, %v5180_v33, -inf }
0x188b   :  { %5203 = vmax.xlane.f32.xlu0 %v5202_v34 }
0x1899   :  { %5269 = vrot.lane.b32.xlu1 %v15296_v41, %s14318_s30 }
0x189d   :  { %5421 = vrot.lane.b32.xlu1 %v15318_v39, %s14318_s30 }
0x18a0   :  { %v5183_v63 = vpop.xlane.xlu0 %5182 }
0x18a1   :  { %5497 = vrot.lane.b32.xlu1 %v15314_v43, %s14318_s30  ;;  %5345 = vrot.lane.b32.xlu0 %v15294_v38, %s14318_s30  ;;  %v5205_v41 = vsub.f32 %v5173_v9, %v5183_v63 }
0x18a3   :  { %v5213_v2 = vmul.f32 1.442695, %v5205_v41 }
0x18a5   :  { %5649 = vrot.lane.b32.xlu1 %v15329_v59, %s14318_s30  ;;  %5573 = vrot.lane.b32.xlu0 %v15324_v40, %s14318_s30 }
0x18a9   :  { %v5186_v61 = vpop.xlane.xlu1 %5185 }
0x18aa   :  { %v5206_v62 = vsub.f32 %v5174_v15, %v5186_v61 }
0x18ac   :  { %v5215_v1 = vmul.f32 1.442695, %v5206_v62 }
0x18ae   :  { %13450 = vpow2.f32 %v5215_v1 }
0x18af   :  { %13452 = vpow2.f32 %v5213_v2 }
0x18b8   :  { %v15417_v39 = vpop.eup %13450 }
0x18b9   :  { %v5232_v43 = vsel %vm773_vm7, %v15417_v39, 0.0  ;;  %v15421_v38 = vpop.eup %13452 }
0x18ba   :  { %v5229_v59 = vsel %vm773_vm7, %v15421_v38, 0.0 }
0x18c4   :  { %5233 = vadd.xlane.f32.xlu0 %v5232_v43 }
0x18c9   :  { %5230 = vadd.xlane.f32.xlu1 %v5229_v59 }
0x190c   :  { %v5189_v40 = vpop.xlane.xlu0 %5188 }
0x190d   :  { %v5207_v3 = vsub.f32 %v5175_v28, %v5189_v40 }
0x190f   :  { %v5217_v5 = vmul.f32 1.442695, %v5207_v3 }
0x1910   :  { %v5192_v7 = vpop.xlane.xlu0 %5191 }
0x1911   :  { %13454 = vpow2.f32 %v5217_v5  ;;  %v5195_v8 = vpop.xlane.xlu1 %5194  ;;  %v5208_v9 = vsub.f32 %v5176_v31, %v5192_v7 }
0x1912   :  { %v5209_v12 = vsub.f32 %v5177_v22, %v5195_v8 }
0x1913   :  { %v5219_v13 = vmul.f32 1.442695, %v5208_v9 }
0x1914   :  { %v5221_v10 = vmul.f32 1.442695, %v5209_v12  ;;  %v5198_v14 = vpop.xlane.xlu0 %5197 }
0x1915   :  { %13456 = vpow2.f32 %v5219_v13  ;;  %v5201_v15 = vpop.xlane.xlu1 %5200  ;;  %v5210_v17 = vsub.f32 %v5178_v54, %v5198_v14 }
0x1916   :  { %13458 = vpow2.f32 %v5221_v10  ;;  %v5211_v16 = vsub.f32 %v5179_v47, %v5201_v15 }
0x1917   :  { %v5223_v21 = vmul.f32 1.442695, %v5210_v17 }
0x1918   :  { %v5225_v11 = vmul.f32 1.442695, %v5211_v16  ;;  %v5204_v25 = vpop.xlane.xlu0 %5203  ;;  %v4416_v16 = vld [vmem:[%s16250_s22] sm:$0xff] }
0x1919   :  { %13460 = vpow2.f32 %v5223_v21  ;;  %v5270_v26 = vpop.permute.xlu1 %5269  ;;  %v5212_v27 = vsub.f32 %v5180_v33, %v5204_v25  ;;  %v4417_v21 = vld [vmem:[%s16250_s22 + $0x8] sm:$0xff]  ;;  %v4418_v25 = vld [vmem:[%s16250_s22 + $0x10] sm:$0xff] }
0x191a   :  { %13462 = vpow2.f32 %v5225_v11  ;;  %12618 = vmatpush3.msra.mxu0 %v5270_v26  ;;  %v13163_v11 = vpack.c.bf16 %v4417_v21, %v4416_v16  ;;  %v4419_v26 = vld [vmem:[%s16250_s22 + $0x18] sm:$0xff] }
0x191b   :  { %v13455_v28 = vpop.eup %13454  ;;  %v5227_v42 = vmul.f32 1.442695, %v5212_v27  ;;  %12627 = vmatprep.subr.mxu0 %v14311_v6  ;;  %v13167_v27 = vpack.c.bf16 %v4419_v26, %v4418_v25  ;;  %v11758_v21 = vld [vmem:[#allocation17 + $0x1] ss:$0 sm:$0xff] }
0x191c   :  { %v5346_v31 = vpop.permute.xlu0 %5345  ;;  %v5235_v48 = vsel %vm773_vm7, %v13455_v28, 0.0 }
0x191d   :  { %13464 = vpow2.f32 %v5227_v42  ;;  %5236 = vadd.xlane.f32.xlu1 %v5235_v48  ;;  %12623 = vmatpush3.msra.mxu1 %v5346_v31  ;;  %v5422_v37 = vpop.permute.xlu1 %5421 }
0x191e   :  { %12632 = vmatprep.subr.mxu1 %v14311_v6 }
0x191f   :  { %v13457_v32 = vpop.eup %13456 }
0x1920   :  { %v13459_v36 = vpop.eup %13458  ;;  %v5238_v22 = vsel %vm773_vm7, %v13457_v32, 0.0  ;;  %v5574_v47 = vpop.permute.xlu0 %5573 }
0x1921   :  { %v5241_v24 = vsel %vm773_vm7, %v13459_v36, 0.0  ;;  %5239 = vadd.xlane.f32.xlu0 %v5238_v22  ;;  %v5498_v54 = vpop.permute.xlu1 %5497 }
0x1922   :  { %5242 = vadd.xlane.f32.xlu1 %v5241_v24 }
0x1923   :  { %v13461_v50 = vpop.eup %13460 }
0x1924   :  { %v15430_v51 = vpop.eup %13462  ;;  %v5244_v57 = vsel %vm773_vm7, %v13461_v50, 0.0 }
0x1925   :  { %v5247_v0 = vsel %vm773_vm7, %v15430_v51, 0.0  ;;  %5245 = vadd.xlane.f32.xlu0 %v5244_v57  ;;  %v5650_v49 = vpop.permute.xlu1 %5649 }
0x1926   :  { %5248 = vadd.xlane.f32.xlu1 %v5247_v0 }
0x1927   :  { %v15435_v52 = vpop.eup %13464 }
0x1928   :  { %v5250_v53 = vsel %vm773_vm7, %v15435_v52, 0.0 }
0x1929   :  { %5251 = vadd.xlane.f32.xlu0 %v5250_v53 }
0x1937   :  { %5801 = vrot.lane.b32.xlu1 %v15338_v60, %s14318_s30 }
0x193f   :  { %5725 = vrot.lane.b32.xlu0 %v15322_v45, %s14318_s30 }
0x1951   :  { %v5234_v44 = vpop.xlane.xlu0 %5233 }
0x1952   :  { %13466 = vrcp.f32 %v5234_v44 }
0x1956   :  { %v5231_v55 = vpop.xlane.xlu1 %5230 }
0x1957   :  { %13468 = vrcp.f32 %v5231_v55 }
0x195c   :  { %v13467_v56 = vpop.eup %13466 }
0x195d   :  { %v5262_v58 = vmul.f32 %v13467_v56, %v15417_v39 }
0x195f   :  { %12625 = vmatmul.mubr.msk.f32.vlgmr.msra.gmra.mrb[48].mxu1 %vm773_vm7, %v5262_v58 }
0x1960   :  { %12633 = vmatpush3.msra.mxu1 %v5498_v54  ;;  %12634 = vmatprep.mubr.msk.f32.mxu1 %vm14313_vm6, %v14311_v6 }
0x1961   :  { %v13469_v60 = vpop.eup %13468  ;;  %12642 = vmatprep.subr.mxu1 %v14311_v6 }
0x1962   :  { %v5261_v45 = vmul.f32 %v13469_v60, %v15421_v38 }
0x1964   :  { %12620 = vmatmul.mubr.msk.f32.vlgmr.msra.gmra.mrb[54].mxu0 %vm773_vm7, %v5261_v45 }
0x1965   :  { %12628 = vmatpush3.msra.mxu0 %v5422_v37  ;;  %12629 = vmatprep.mubr.msk.f32.mxu0 %vm14313_vm6, %v14311_v6 }
0x1966   :  { %12637 = vmatprep.subr.mxu0 %v14311_v6 }
0x19aa   :  { %v5237_v33 = vpop.xlane.xlu1 %5236 }
0x19ab   :  { %13470 = vrcp.f32 %v5237_v33 }
0x19ae   :  { %v5240_v34 = vpop.xlane.xlu0 %5239 }
0x19af   :  { %v5243_v61 = vpop.xlane.xlu1 %5242  ;;  %13472 = vrcp.f32 %v5240_v34 }
0x19b0   :  { %13474 = vrcp.f32 %v5243_v61 }
0x19b2   :  { %v5246_v62 = vpop.xlane.xlu0 %5245 }
0x19b3   :  { %v5249_v63 = vpop.xlane.xlu1 %5248  ;;  %13476 = vrcp.f32 %v5246_v62 }
0x19b4   :  { %13478 = vrcp.f32 %v5249_v63 }
0x19b5   :  { %v13471_v1 = vpop.eup %13470 }
0x19b6   :  { %v5252_v41 = vpop.xlane.xlu0 %5251  ;;  %v5263_v2 = vmul.f32 %v13471_v1, %v13455_v28 }
0x19b7   :  { %13480 = vrcp.f32 %v5252_v41  ;;  %v5802_v9 = vpop.permute.xlu1 %5801 }
0x19b8   :  { %12630 = vmatmul.mubr.msk.f32.vlgmr.msra.gmra.mrb[56].mxu0 %vm773_vm7, %v5263_v2 }
0x19b9   :  { %v13473_v39 = vpop.eup %13472  ;;  %12638 = vmatpush3.msra.mxu0 %v5574_v47  ;;  %12639 = vmatprep.mubr.msk.f32.mxu0 %vm14313_vm6, %v14311_v6 }
0x19ba   :  { %v13475_v43 = vpop.eup %13474  ;;  %12647 = vmatprep.subr.mxu0 %v14311_v6  ;;  %v5264_v38 = vmul.f32 %v13473_v39, %v13457_v32  ;;  %v5726_v59 = vpop.permute.xlu0 %5725 }
0x19bb   :  { %v5265_v40 = vmul.f32 %v13475_v43, %v13459_v36 }
0x19bc   :  { %12635 = vmatmul.mubr.msk.f32.vlgmr.msra.gmra.mrb[50].mxu1 %vm773_vm7, %v5264_v38 }
0x19bd   :  { %v13477_v3 = vpop.eup %13476  ;;  %12640 = vmatmul.mubr.msk.f32.vlgmr.msra.gmra.mrb[58].mxu0 %vm773_vm7, %v5265_v40  ;;  %12643 = vmatpush3.msra.mxu1 %v5650_v49  ;;  %v11788_v40 = vld [vmem:[#allocation20] ss:$0 sm:$0xff] }
0x19be   :  { %v13479_v5 = vpop.eup %13478  ;;  %12648 = vmatpush3.msra.mxu0 %v5726_v59  ;;  %12644 = vmatprep.mubr.msk.f32.mxu1 %vm14313_vm6, %v14311_v6  ;;  %v5266_v7 = vmul.f32 %v13477_v3, %v13461_v50 }
0x19bf   :  { %12649 = vmatprep.mubr.msk.f32.mxu0 %vm14313_vm6, %v14311_v6  ;;  %12652 = vmatprep.subr.mxu1 %v14311_v6  ;;  %v5267_v8 = vmul.f32 %v13479_v5, %v15430_v51 }
0x19c0   :  { %12645 = vmatmul.mubr.msk.f32.vlgmr.msra.gmra.mrb[52].mxu1 %vm773_vm7, %v5266_v7  ;;  %13164 = vmatprep.subr.bf16.mxu0 %v13163_v11 }
0x19c1   :  { %v13481_v12 = vpop.eup %13480  ;;  %12650 = vmatmul.mubr.msk.f32.vlgmr.msra.gmra.mrb[60].mxu0 %vm773_vm7, %v5267_v8  ;;  %12653 = vmatpush3.msra.mxu1 %v5802_v9 }
0x19c2   :  { %12654 = vmatprep.mubr.msk.f32.mxu1 %vm14313_vm6, %v14311_v6  ;;  %v5268_v13 = vmul.f32 %v13481_v12, %v15435_v52  ;;  %13166 = vmatpush3.bf16.msra.mxu0 %v13163_v11  ;;  %v11754_v52 = vld [vmem:[#allocation16 + $0x1] ss:$0 sm:$0xff] }
0x19c3   :  { %13168 = vmatprep.subr.bf16.mxu0 %v13167_v27  ;;  %v4278_v53 = vadd.f32 %v11754_v52, %v15292_v29  ;;  %v4283_v54 = vadd.f32 %v15290_v30, %v11754_v52 }
0x19c4   :  { %12655 = vmatmul.mubr.msk.f32.vlgmr.msra.gmra.mrb[54].mxu1 %vm773_vm7, %v5268_v13 }
0x19c5   :  { %v4286_v37 = vadd.f32 %v4278_v53, %v15255_v20  ;;  %v4287_v44 = vadd.f32 %v4283_v54, %v15259_v23 }
0x19c6   :  { %13170 = vmatpush3.bf16.msra.mxu0 %v13167_v27 }
0x19c7   :  { %v4288_v47 = vsel %vm675_vm5, %v4286_v37, 0.0  ;;  %v4291_v49 = vsel %vm675_vm5, %v4287_v44, 0.0 }
0x1a32   :  { %v5417_v10 = vpop.f32.mrb[48].mxu1 }
0x1a33   :  { %v12626_v14 = vpop.f32.mrb[49].mxu1 }
0x1a37   :  { %v5341_v15 = vpop.f32.mrb[54].mxu0 }
0x1a38   :  { %v12621_v17 = vpop.f32.mrb[55].mxu0 }
0x1a39   :  { %v11757_v17 = vld [vmem:[%s16248_s3 + $0x1] ss:$0 sm:$0xff] }
0x1a8b   :  { %v5493_v28 = vpop.f32.mrb[56].mxu0 }
0x1a8c   :  { %v12631_v42 = vpop.f32.mrb[57].mxu0  ;;  %5879 = vrot.lane.b32.xlu0 %v5493_v28, %s14297_s13  ;;  %v4429_v28 = vld [vmem:[#allocation28 + $0x8] sm:$0xff] }
0x1a8f   :  { %v5569_v31 = vpop.f32.mrb[50].mxu1 }
0x1a90   :  { %v5645_v48 = vpop.f32.mrb[58].mxu0  ;;  %5881 = vrot.lane.b32.xlu1 %v5569_v31, %s14297_s13  ;;  %v12636_v32 = vpop.f32.mrb[51].mxu1  ;;  %v4430_v31 = vld [vmem:[#allocation28 + $0x10] sm:$0xff] }
0x1a91   :  { %5887 = vrot.lane.b32.xlu0 %v5645_v48, %s14281_s15  ;;  %v12641_v36 = vpop.f32.mrb[59].mxu0  ;;  %v4431_v48 = vld [vmem:[#allocation28 + $0x18] sm:$0xff] }
0x1a92   :  { %v13183_v32 = vpack.c.bf16 %v4431_v48, %v4430_v31 }
0x1a93   :  { %v5721_v22 = vpop.f32.mrb[52].mxu1 }
0x1a94   :  { %v5797_v24 = vpop.f32.mrb[60].mxu0  ;;  %5889 = vrot.lane.b32.xlu1 %v5721_v22, %s14281_s15  ;;  %v12646_v50 = vpop.f32.mrb[53].mxu1 }
0x1a95   :  { %5895 = vrot.lane.b32.xlu0 %v5797_v24, %s14319_s10  ;;  %v12651_v51 = vpop.f32.mrb[61].mxu0 }
0x1a97   :  { %v5873_v57 = vpop.f32.mrb[54].mxu1 }
0x1a98   :  { %5897 = vrot.lane.b32.xlu1 %v5873_v57, %s14319_s10  ;;  %v12656_v0 = vpop.f32.mrb[55].mxu1 }
0x1ab4   :  { %4289 = vadd.xlane.f32.xlu0 %v4288_v47 }
0x1abc   :  { %4292 = vadd.xlane.f32.xlu1 %v4291_v49 }
0x1afe   :  { %v5880_v55 = vpop.permute.xlu0 %5879 }
0x1aff   :  { %v5901_v60 = vsel %vm773_vm7, %v5341_v15, %v5880_v55 }
0x1b02   :  { %v5882_v56 = vpop.permute.xlu1 %5881 }
0x1b03   :  { %v5888_v58 = vpop.permute.xlu0 %5887  ;;  %v5902_v30 = vsel %vm773_vm7, %v5417_v10, %v5882_v56 }
0x1b04   :  { %v5903_v29 = vsel %vm555_vm2, %v5901_v60, %v5888_v58  ;;  %v4423_v60 = vld [vmem:[#allocation25] sm:$0xff] }
0x1b06   :  { %v5890_v45 = vpop.permute.xlu1 %5889 }
0x1b07   :  { %v5896_v33 = vpop.permute.xlu0 %5895  ;;  %v5904_v23 = vsel %vm555_vm2, %v5902_v30, %v5890_v45  ;;  %v4424_v45 = vld [vmem:[#allocation25 + $0x8] sm:$0xff] }
0x1b08   :  { %v5905_v20 = vsel %vm2132_vm10, %v5903_v29, %v5896_v33  ;;  %v4425_v29 = vld [vmem:[#allocation25 + $0x10] sm:$0xff]  ;;  %v13171_v33 = vpack.c.bf16 %v4424_v45, %v4423_v60 }
0x1b09   :  { %12665 = vmatprep.mubr.msk.f32.mxu0 %vm675_vm5, %v5905_v20  ;;  %v4426_v20 = vld [vmem:[#allocation25 + $0x18] sm:$0xff] }
0x1b0a   :  { %v5898_v34 = vpop.permute.xlu1 %5897  ;;  %v13175_v30 = vpack.c.bf16 %v4426_v20, %v4425_v29  ;;  %13172 = vmatprep.subr.bf16.mxu1 %v13171_v33 }
0x1b0b   :  { %v5906_v61 = vsel %vm2132_vm10, %v5904_v23, %v5898_v34  ;;  %13174 = vmatpush3.bf16.msra.mxu1 %v13171_v33 }
0x1b0c   :  { %12666 = vmatmul.mubr.msk.f32.vlgmr.msra.gmra.mrb[62].mxu0 %vm675_vm5, %v5906_v61  ;;  %13176 = vmatprep.subr.bf16.mxu1 %v13175_v30 }
0x1b0f   :  { %13178 = vmatpush3.bf16.msra.mxu1 %v13175_v30 }
0x1b10   :  { %12690 = vmatprep.subr.mxu1 %v14311_v6 }
0x1b41   :  { %v4290_v62 = vpop.xlane.xlu0 %4289 }
0x1b42   :  { %v4294_v63 = vmul.f32 0.03125, %v4290_v62 }
0x1b44   :  { %v4296_v1 = vsub.f32 %v4286_v37, %v4294_v63 }
0x1b46   :  { %v4298_v41 = vmul.f32 %v4296_v1, %v4296_v1 }
0x1b48   :  { %v4300_v2 = vsel %vm675_vm5, %v4298_v41, 0.0 }
0x1b49   :  { %4301 = vadd.xlane.f32.xlu1 %v4300_v2  ;;  %v4293_v39 = vpop.xlane.xlu1 %4292  ;;  %v11791_v2 = vld [vmem:[#allocation22] ss:$0 sm:$0xff] }
0x1b4a   :  { %v4295_v7 = vmul.f32 0.03125, %v4293_v39 }
0x1b4c   :  { %v4297_v10 = vsub.f32 %v4287_v44, %v4295_v7 }
0x1b4e   :  { %v4299_v26 = vmul.f32 %v4297_v10, %v4297_v10 }
0x1bd6   :  { %v4302_v43 = vpop.xlane.xlu1 %4301 }
0x1bd7   :  { %v4306_v38 = vmul.f32 0.03125, %v4302_v43  ;;  %v11792_v43 = vld [vmem:[#allocation23] ss:$0 sm:$0xff] }
0x1bd9   :  { %v4308_v59 = vadd.f32 1e-05, %v4306_v38 }
0x1bdb   :  { %13482 = vrsqrt.f32 %v4308_v59 }
0x1bdf   :  { %v12667_v3 = vpop.f32.mrb[62].mxu0 }
0x1be0   :  { %v5985_v5 = vpop.f32.mrb[63].mxu0  ;;  %v5991_v8 = vadd.f32 %v12667_v3, %v11788_v40 }
0x1be1   :  { %v5986_v9 = vadd.f32 %v11788_v40, %v5985_v5 }
0x1be2   :  { %v5995_v14 = vadd.f32 %v5991_v8, %v15282_v46  ;;  %v4428_v46 = vld [vmem:[#allocation28] sm:$0xff] }
0x1be3   :  { %v5994_v12 = vadd.f32 %v5986_v9, %v15278_v35  ;;  %v4303_v35 = vsel %vm675_vm5, %v4299_v26, 0.0  ;;  %v13179_v42 = vpack.c.bf16 %v4429_v28, %v4428_v46  ;;  %v11796_v8 = vld [vmem:[#allocation29] ss:$0 sm:$0xff] }
0x1be4   :  { %v5999_v25 = vsel %vm675_vm5, %v5995_v14, 0.0 }
0x1be5   :  { %v13483_v13 = vpop.eup %13482  ;;  %v5996_v15 = vsel %vm675_vm5, %v5994_v12, 0.0  ;;  %13180 = vmatprep.subr.bf16.mxu0 %v13179_v42 }
0x1be6   :  { %5997 = vadd.xlane.f32.xlu0 %v5996_v15  ;;  %v4312_v16 = vmul.f32 %v13483_v13, %v4296_v1  ;;  %13182 = vmatpush3.bf16.msra.mxu0 %v13179_v42  ;;  %v11793_v15 = vld [vmem:[#allocation26] ss:$0 sm:$0xff] }
0x1be7   :  { %13184 = vmatprep.subr.bf16.mxu0 %v13183_v32 }
0x1be8   :  { %v4320_v11 = vmul.f32 %v11757_v17, %v4312_v16 }
0x1bea   :  { %6000 = vadd.xlane.f32.xlu0 %v5999_v25  ;;  %v15501_v27 = vadd.f32 %v11758_v21, %v4320_v11  ;;  %13186 = vmatpush3.bf16.msra.mxu0 %v13183_v32 }
0x1beb   :  { %12700 = vmatprep.subr.mxu0 %v14311_v6 }
0x1bec   :  { %12687 = vmatprep.mubr.msk.f32.mxu0 %vm675_vm5, %v15501_v27 }
0x1bee   :  { %4304 = vadd.xlane.f32.xlu0 %v4303_v35 }
0x1c73   :  { %v5998_v36 = vpop.xlane.xlu0 %5997 }
0x1c74   :  { %v6002_v22 = vmul.f32 0.03125, %v5998_v36 }
0x1c76   :  { %v6004_v24 = vsub.f32 %v5994_v12, %v6002_v22 }
0x1c77   :  { %v6001_v50 = vpop.xlane.xlu0 %6000 }
0x1c78   :  { %v6003_v51 = vmul.f32 0.03125, %v6001_v50  ;;  %v6006_v57 = vmul.f32 %v6004_v24, %v6004_v24 }
0x1c7a   :  { %v6005_v0 = vsub.f32 %v5995_v14, %v6003_v51  ;;  %v6008_v52 = vsel %vm675_vm5, %v6006_v57, 0.0 }
0x1c7b   :  { %6009 = vadd.xlane.f32.xlu1 %v6008_v52  ;;  %v4305_v53 = vpop.xlane.xlu0 %4304 }
0x1c7c   :  { %v4307_v37 = vmul.f32 0.03125, %v4305_v53  ;;  %v6007_v54 = vmul.f32 %v6005_v0, %v6005_v0 }
0x1c7e   :  { %v4309_v47 = vadd.f32 1e-05, %v4307_v37  ;;  %v6011_v44 = vsel %vm675_vm5, %v6007_v54, 0.0 }
0x1c7f   :  { %6012 = vadd.xlane.f32.xlu0 %v6011_v44 }
0x1c80   :  { %13484 = vrsqrt.f32 %v4309_v47 }
0x1c8a   :  { %v13485_v49 = vpop.eup %13484 }
0x1c8b   :  { %v4313_v55 = vmul.f32 %v13485_v49, %v4297_v10 }
0x1c8d   :  { %v4321_v56 = vmul.f32 %v11757_v17, %v4313_v55 }
0x1c8f   :  { %v15509_v58 = vadd.f32 %v11758_v21, %v4321_v56 }
0x1c91   :  { %12688 = vmatmul.mubr.msk.f32.vlgmr.msra.gmra.mrb[64].mxu0 %vm675_vm5, %v15509_v58 }
0x1c92   :  { %12702 = vmatprep.mubr.msk.f32.mxu0 %vm14313_vm6, %v14311_v6 }
0x1d08   :  { %v6010_v23 = vpop.xlane.xlu1 %6009 }
0x1d09   :  { %v6014_v34 = vmul.f32 0.03125, %v6010_v23 }
0x1d0b   :  { %v6016_v61 = vadd.f32 1e-05, %v6014_v34 }
0x1d0c   :  { %v6013_v62 = vpop.xlane.xlu0 %6012 }
0x1d0d   :  { %13486 = vrsqrt.f32 %v6016_v61  ;;  %v6015_v63 = vmul.f32 0.03125, %v6013_v62 }
0x1d0f   :  { %v6017_v1 = vadd.f32 1e-05, %v6015_v63 }
0x1d11   :  { %13488 = vrsqrt.f32 %v6017_v1 }
0x1d17   :  { %v13487_v41 = vpop.eup %13486 }
0x1d18   :  { %v6020_v39 = vmul.f32 %v13487_v41, %v6004_v24 }
0x1d1a   :  { %v6028_v38 = vmul.f32 %v11791_v2, %v6020_v39 }
0x1d1b   :  { %v13489_v59 = vpop.eup %13488 }
0x1d1c   :  { %v6021_v40 = vmul.f32 %v13489_v59, %v6005_v0  ;;  %v15516_v3 = vadd.f32 %v11792_v43, %v6028_v38 }
0x1d1e   :  { %v6029_v5 = vmul.f32 %v11791_v2, %v6021_v40  ;;  %12676 = vmatprep.mubr.msk.f32.mxu1 %vm675_vm5, %v15516_v3 }
0x1d20   :  { %v15520_v7 = vadd.f32 %v11792_v43, %v6029_v5 }
0x1d22   :  { %12677 = vmatmul.mubr.msk.f32.vlgmr.msra.gmra.mrb[56].mxu1 %vm675_vm5, %v15520_v7 }
0x1d23   :  { %12692 = vmatprep.mubr.msk.f32.mxu1 %vm14313_vm6, %v14311_v6 }
0x1d64   :  { %v12689_v9 = vpop.f32.mrb[64].mxu0 }
0x1d65   :  { %v15526_v12 = vadd.f32 %v12689_v9, %v11796_v8  ;;  %v6203_v13 = vpop.f32.mrb[65].mxu0 }
0x1d66   :  { %v15528_v10 = vadd.f32 %v11796_v8, %v6203_v13 }
0x1d67   :  { %6230 = vrot.lane.b32.xlu0 %v15526_v12, %s14315_s9 }
0x1d68   :  { %6228 = vrot.lane.b32.xlu1 %v15528_v10, %s14315_s9  ;;  %12691 = vmatpush3.xpose.msk.msra.mxu1 %vm773_vm7, %v15528_v10 }
0x1d69   :  { %12695 = vmatprep.subr.mxu1 %v14311_v6 }
0x1d6b   :  { %6232 = vrot.lane.b32.xlu0 %v15528_v10, %s14314_s2 }
0x1d6c   :  { %6234 = vrot.lane.b32.xlu1 %v15526_v12, %s14314_s2 }
0x1d6f   :  { %6236 = vrot.lane.b32.xlu0 %v15528_v10, %s14316_s14 }
0x1dd9   :  { %v15557_v25 = vpop.permute.xlu0 %6230 }
0x1dda   :  { %v15543_v14 = vpop.permute.xlu1 %6228 }
0x1ddb   :  { %12701 = vmatpush3.xpose.msk.msra.mxu0 %vm773_vm7, %v15543_v14 }
0x1ddc   :  { %12710 = vmatprep.subr.mxu0 %v14311_v6 }
0x1ddd   :  { %v15570_v26 = vpop.permute.xlu0 %6232 }
0x1dde   :  { %v15572_v35 = vpop.permute.xlu1 %6234 }
0x1de1   :  { %v15575_v28 = vpop.permute.xlu0 %6236 }
0x1df5   :  { %v12678_v17 = vpop.f32.mrb[56].mxu1 }
0x1df6   :  { %v6122_v16 = vadd.f32 %v12678_v17, %v11793_v15  ;;  %v6116_v21 = vpop.f32.mrb[57].mxu1 }
0x1df7   :  { %v6117_v11 = vadd.f32 %v11793_v15, %v6116_v21 }
0x1df8   :  { %6216 = vrot.lane.b32.xlu1 %v6122_v16, %s14315_s9 }
0x1df9   :  { %6218 = vrot.lane.b32.xlu0 %v6117_v11, %s14314_s2  ;;  %12693 = vmatmul.mubr.msk.f32.vlgmr.msra.gmra.mrb[58].mxu1 %vm773_vm7, %v6117_v11 }
0x1dfa   :  { %12696 = vmatpush3.xpose.msk.msra.mxu1 %vm773_vm7, %v15526_v12  ;;  %12697 = vmatprep.mubr.msk.f32.mxu1 %vm14313_vm6, %v14311_v6 }
0x1dfb   :  { %12705 = vmatprep.subr.mxu1 %v14311_v6 }
0x1dfc   :  { %6214 = vrot.lane.b32.xlu1 %v6117_v11, %s14315_s9 }
0x1dfd   :  { %6222 = vrot.lane.b32.xlu0 %v6117_v11, %s14316_s14  ;;  %12698 = vmatmul.mubr.msk.f32.vlgmr.msra.gmra.mrb[60].mxu1 %vm773_vm7, %v6122_v16 }
0x1dfe   :  { %12706 = vmatpush3.xpose.msk.msra.mxu1 %vm773_vm7, %v15557_v25  ;;  %12707 = vmatprep.mubr.msk.f32.mxu1 %vm14313_vm6, %v14311_v6 }
0x1dff   :  { %12715 = vmatprep.subr.mxu1 %v14311_v6 }
0x1e00   :  { %6220 = vrot.lane.b32.xlu1 %v6122_v16, %s14314_s2 }
0x1e04   :  { %6238 = vrot.lane.b32.xlu1 %v15526_v12, %s14316_s14 }
0x1e08   :  { %6224 = vrot.lane.b32.xlu1 %v6122_v16, %s14316_s14 }
0x1e6a   :  { %v6217_v46 = vpop.permute.xlu1 %6216 }
0x1e6b   :  { %12708 = vmatmul.mubr.msk.f32.vlgmr.msra.gmra.mrb[62].mxu1 %vm773_vm7, %v6217_v46  ;;  %v6219_v31 = vpop.permute.xlu0 %6218 }
0x1e6c   :  { %12716 = vmatpush3.xpose.msk.msra.mxu1 %vm773_vm7, %v15572_v35  ;;  %12717 = vmatprep.mubr.msk.f32.mxu1 %vm14313_vm6, %v14311_v6 }
0x1e6d   :  { %12725 = vmatprep.subr.mxu1 %v14311_v6 }
0x1e6e   :  { %v6215_v42 = vpop.permute.xlu1 %6214 }
0x1e6f   :  { %12703 = vmatmul.mubr.msk.f32.vlgmr.msra.gmra.mrb[66].mxu0 %vm773_vm7, %v6215_v42  ;;  %v6223_v32 = vpop.permute.xlu0 %6222 }
0x1e70   :  { %12711 = vmatpush3.xpose.msk.msra.mxu0 %vm773_vm7, %v15570_v26  ;;  %12712 = vmatprep.mubr.msk.f32.mxu0 %vm14313_vm6, %v14311_v6 }
0x1e71   :  { %12720 = vmatprep.subr.mxu0 %v14311_v6 }
0x1e72   :  { %v6221_v48 = vpop.permute.xlu1 %6220 }
0x1e73   :  { %12713 = vmatmul.mubr.msk.f32.vlgmr.msra.gmra.mrb[68].mxu0 %vm773_vm7, %v6219_v31  ;;  %12718 = vmatmul.mubr.msk.f32.vlgmr.msra.gmra.mrb[64].mxu1 %vm773_vm7, %v6221_v48 }
0x1e74   :  { %12721 = vmatpush3.xpose.msk.msra.mxu0 %vm773_vm7, %v15575_v28  ;;  %12722 = vmatprep.mubr.msk.f32.mxu0 %vm14313_vm6, %v14311_v6 }
0x1e75   :  { %12727 = vmatprep.mubr.msk.f32.mxu1 %vm14313_vm6, %v14311_v6  ;;  %12730 = vmatprep.subr.mxu0 %v14311_v6 }
0x1e76   :  { %v15597_v36 = vpop.permute.xlu1 %6238 }
0x1e77   :  { %12723 = vmatmul.mubr.msk.f32.vlgmr.msra.gmra.mrb[70].mxu0 %vm773_vm7, %v6223_v32  ;;  %12726 = vmatpush3.xpose.msk.msra.mxu1 %vm773_vm7, %v15597_v36 }
0x1e78   :  { %12735 = vmatprep.subr.mxu1 %v14311_v6  ;;  %12732 = vmatprep.mubr.msk.f32.mxu0 %vm14313_vm6, %v14311_v6 }
0x1e7a   :  { %v6225_v22 = vpop.permute.xlu1 %6224 }
0x1e7b   :  { %12728 = vmatmul.mubr.msk.f32.vlgmr.msra.gmra.mrb[66].mxu1 %vm773_vm7, %v6225_v22 }
0x1e7c   :  { %12737 = vmatprep.mubr.msk.f32.mxu1 %vm14313_vm6, %v14311_v6 }
0x1ecc   :  { %v6310_v24 = vpop.f32.mrb[58].mxu1 }
0x1ecd   :  { %v6832_v50 = vmul.f32 0.35355338, %v6310_v24  ;;  %v12694_v51 = vpop.f32.mrb[59].mxu1 }
0x1ecf   :  { %v6852_v57 = vadd.f32 %v14769_v18, %v6832_v50 }
0x1ed0   :  { %v6384_v0 = vpop.f32.mrb[60].mxu1 }
0x1ed1   :  { %v6833_v52 = vmul.f32 0.35355338, %v6384_v0  ;;  %v12699_v53 = vpop.f32.mrb[61].mxu1  ;;  %v6860_v37 = vsel %vm773_vm7, %v6852_v57, -inf }
0x1ed2   :  { %6861 = vmax.xlane.f32.xlu0 %v6860_v37 }
0x1ed3   :  { %v6853_v54 = vadd.f32 %v14772_v19, %v6833_v52 }
0x1ed5   :  { %v6863_v47 = vsel %vm773_vm7, %v6853_v54, -inf }
0x1ed6   :  { %6864 = vmax.xlane.f32.xlu1 %v6863_v47 }
0x1f3e   :  { %v6532_v44 = vpop.f32.mrb[62].mxu1 }
0x1f3f   :  { %v12709_v49 = vpop.f32.mrb[63].mxu1  ;;  %v6835_v45 = vmul.f32 0.35355338, %v6532_v44 }
0x1f41   :  { %v6855_v61 = vadd.f32 %v14772_v19, %v6835_v45 }
0x1f42   :  { %v6458_v55 = vpop.f32.mrb[66].mxu0 }
0x1f43   :  { %v6834_v56 = vmul.f32 0.35355338, %v6458_v55  ;;  %v12704_v60 = vpop.f32.mrb[67].mxu0  ;;  %v6869_v59 = vsel %vm773_vm7, %v6855_v61, -inf }
0x1f45   :  { %v6854_v29 = vadd.f32 %v14769_v18, %v6834_v56 }
0x1f46   :  { %v6606_v33 = vpop.f32.mrb[68].mxu0  ;;  %v6680_v20 = vpop.f32.mrb[64].mxu1 }
0x1f47   :  { %v6836_v30 = vmul.f32 0.35355338, %v6606_v33  ;;  %v12714_v23 = vpop.f32.mrb[69].mxu0  ;;  %v12719_v34 = vpop.f32.mrb[65].mxu1  ;;  %v6837_v62 = vmul.f32 0.35355338, %v6680_v20 }
0x1f48   :  { %v6866_v63 = vsel %vm773_vm7, %v6854_v29, -inf }
0x1f49   :  { %v6856_v1 = vadd.f32 %v14769_v18, %v6836_v30  ;;  %6867 = vmax.xlane.f32.xlu0 %v6866_v63  ;;  %v6857_v38 = vadd.f32 %v14772_v19, %v6837_v62 }
0x1f4a   :  { %v6754_v41 = vpop.f32.mrb[70].mxu0 }
0x1f4b   :  { %v6838_v2 = vmul.f32 0.35355338, %v6754_v41  ;;  %v12724_v39 = vpop.f32.mrb[71].mxu0  ;;  %v6872_v43 = vsel %vm773_vm7, %v6856_v1, -inf  ;;  %v6875_v15 = vsel %vm773_vm7, %v6857_v38, -inf }
0x1f4c   :  { %6873 = vmax.xlane.f32.xlu1 %v6872_v43 }
0x1f4d   :  { %v6858_v40 = vadd.f32 %v14769_v18, %v6838_v2  ;;  %6870 = vmax.xlane.f32.xlu0 %v6869_v59 }
0x1f4e   :  { %v6828_v5 = vpop.f32.mrb[66].mxu1 }
0x1f4f   :  { %v6839_v8 = vmul.f32 0.35355338, %v6828_v5  ;;  %v12729_v9 = vpop.f32.mrb[67].mxu1  ;;  %v6878_v13 = vsel %vm773_vm7, %v6858_v40, -inf }
0x1f50   :  { %6879 = vmax.xlane.f32.xlu1 %v6878_v13 }
0x1f51   :  { %v6859_v17 = vadd.f32 %v14772_v19, %v6839_v8  ;;  %6876 = vmax.xlane.f32.xlu0 %v6875_v15 }
0x1f53   :  { %v6881_v16 = vsel %vm773_vm7, %v6859_v17, -inf }
0x1f55   :  { %6882 = vmax.xlane.f32.xlu0 %v6881_v16 }
0x1f5f   :  { %v6862_v11 = vpop.xlane.xlu0 %6861 }
0x1f60   :  { %v6884_v42 = vsub.f32 %v6852_v57, %v6862_v11 }
0x1f61   :  { %6948 = vrot.lane.b32.xlu1 %v15528_v10, %s14317_s8 }
0x1f62   :  { %v6892_v31 = vmul.f32 1.442695, %v6884_v42 }
0x1f63   :  { %v6865_v21 = vpop.xlane.xlu1 %6864 }
0x1f64   :  { %v6885_v46 = vsub.f32 %v6853_v54, %v6865_v21 }
0x1f65   :  { %7100 = vrot.lane.b32.xlu1 %v15543_v14, %s14317_s8 }
0x1f66   :  { %v6894_v10 = vmul.f32 1.442695, %v6885_v46 }
0x1f68   :  { %13490 = vpow2.f32 %v6894_v10 }
0x1f69   :  { %7176 = vrot.lane.b32.xlu1 %v15557_v25, %s14317_s8  ;;  %13492 = vpow2.f32 %v6892_v31 }
0x1f6b   :  { %7024 = vrot.lane.b32.xlu0 %v15526_v12, %s14317_s8 }
0x1f6d   :  { %7328 = vrot.lane.b32.xlu1 %v15572_v35, %s14317_s8 }
0x1f6f   :  { %7252 = vrot.lane.b32.xlu0 %v15570_v26, %s14317_s8 }
0x1f72   :  { %v15636_v14 = vpop.eup %13490 }
0x1f73   :  { %v15638_v25 = vpop.eup %13492  ;;  %v6911_v12 = vsel %vm773_vm7, %v15636_v14, 0.0 }
0x1f74   :  { %v6908_v35 = vsel %vm773_vm7, %v15638_v25, 0.0 }
0x1f8e   :  { %6912 = vadd.xlane.f32.xlu0 %v6911_v12 }
0x1f91   :  { %6909 = vadd.xlane.f32.xlu1 %v6908_v35 }
0x1fd6   :  { %v6868_v26 = vpop.xlane.xlu0 %6867 }
0x1fd7   :  { %v6886_v48 = vsub.f32 %v6854_v29, %v6868_v26 }
0x1fd9   :  { %v6896_v32 = vmul.f32 1.442695, %v6886_v48  ;;  %v6874_v22 = vpop.xlane.xlu1 %6873 }
0x1fda   :  { %v6888_v24 = vsub.f32 %v6856_v1, %v6874_v22  ;;  %v6871_v50 = vpop.xlane.xlu0 %6870 }
0x1fdb   :  { %13494 = vpow2.f32 %v6896_v32  ;;  %v6887_v51 = vsub.f32 %v6855_v61, %v6871_v50 }
0x1fdc   :  { %v6900_v57 = vmul.f32 1.442695, %v6888_v24 }
0x1fdd   :  { %v6898_v0 = vmul.f32 1.442695, %v6887_v51  ;;  %v6880_v52 = vpop.xlane.xlu1 %6879 }
0x1fde   :  { %13496 = vpow2.f32 %v6900_v57  ;;  %v6890_v53 = vsub.f32 %v6858_v40, %v6880_v52  ;;  %v6877_v37 = vpop.xlane.xlu0 %6876 }
0x1fdf   :  { %13498 = vpow2.f32 %v6898_v0  ;;  %v6889_v54 = vsub.f32 %v6857_v38, %v6877_v37  ;;  %v4434_v37 = vld [vmem:[#allocation31 + $0x8] sm:$0xff] }
0x1fe0   :  { %v6904_v47 = vmul.f32 1.442695, %v6890_v53  ;;  %v4433_v53 = vld [vmem:[#allocation31] sm:$0xff] }
0x1fe1   :  { %v6902_v44 = vmul.f32 1.442695, %v6889_v54  ;;  %v6949_v49 = vpop.permute.xlu1 %6948  ;;  %v13187_v54 = vpack.c.bf16 %v4434_v37, %v4433_v53  ;;  %v4448_v37 = vld [vmem:[%s16252_s23 + $0x18] sm:$0xff] }
0x1fe2   :  { %13500 = vpow2.f32 %v6904_v47  ;;  %v6883_v55 = vpop.xlane.xlu0 %6882  ;;  %12731 = vmatpush3.msra.mxu0 %v6949_v49  ;;  %v4435_v47 = vld [vmem:[#allocation31 + $0x10] sm:$0xff] }
0x1fe3   :  { %13502 = vpow2.f32 %v6902_v44  ;;  %v6891_v56 = vsub.f32 %v6859_v17, %v6883_v55  ;;  %12740 = vmatprep.subr.mxu0 %v14311_v6  ;;  %v4436_v44 = vld [vmem:[#allocation31 + $0x18] sm:$0xff] }
0x1fe4   :  { %v13191_v49 = vpack.c.bf16 %v4436_v44, %v4435_v47  ;;  %v4449_v47 = vld [vmem:[%s16252_s23 + $0x20] sm:$0xff]  ;;  %v4450_v44 = vld [vmem:[%s16252_s23 + $0x28] sm:$0xff] }
0x1fe5   :  { %v13495_v60 = vpop.eup %13494  ;;  %v6906_v45 = vmul.f32 1.442695, %v6891_v56  ;;  %v7101_v39 = vpop.permute.xlu1 %7100 }
0x1fe6   :  { %v7025_v29 = vpop.permute.xlu0 %7024  ;;  %v6914_v33 = vsel %vm773_vm7, %v13495_v60, 0.0 }
0x1fe7   :  { %13504 = vpow2.f32 %v6906_v45  ;;  %6915 = vadd.xlane.f32.xlu1 %v6914_v33  ;;  %12736 = vmatpush3.msra.mxu1 %v7025_v29 }
0x1fe8   :  { %v13497_v20 = vpop.eup %13496  ;;  %12745 = vmatprep.subr.mxu1 %v14311_v6 }
0x1fe9   :  { %v13499_v30 = vpop.eup %13498  ;;  %v6920_v23 = vsel %vm773_vm7, %v13497_v20, 0.0  ;;  %v7177_v43 = vpop.permute.xlu1 %7176 }
0x1fea   :  { %v6917_v34 = vsel %vm773_vm7, %v13499_v30, 0.0  ;;  %v7253_v38 = vpop.permute.xlu0 %7252 }
0x1feb   :  { %6921 = vadd.xlane.f32.xlu1 %v6920_v23  ;;  %6918 = vadd.xlane.f32.xlu0 %v6917_v34 }
0x1fec   :  { %v13501_v61 = vpop.eup %13500 }
0x1fed   :  { %v15649_v62 = vpop.eup %13502  ;;  %v6926_v63 = vsel %vm773_vm7, %v13501_v61, 0.0  ;;  %v7329_v59 = vpop.permute.xlu1 %7328 }
0x1fee   :  { %v6923_v1 = vsel %vm773_vm7, %v15649_v62, 0.0 }
0x1fef   :  { %6927 = vadd.xlane.f32.xlu1 %v6926_v63  ;;  %6924 = vadd.xlane.f32.xlu0 %v6923_v1 }
0x1ff1   :  { %v15654_v41 = vpop.eup %13504 }
0x1ff2   :  { %v6929_v2 = vsel %vm773_vm7, %v15654_v41, 0.0 }
0x1ff3   :  { %6930 = vadd.xlane.f32.xlu0 %v6929_v2 }
0x2000   :  { %7480 = vrot.lane.b32.xlu1 %v15597_v36, %s14317_s8 }
0x2009   :  { %7404 = vrot.lane.b32.xlu0 %v15575_v28, %s14317_s8 }
0x201b   :  { %v6913_v40 = vpop.xlane.xlu0 %6912 }
0x201c   :  { %13506 = vrcp.f32 %v6913_v40 }
0x201e   :  { %v6910_v5 = vpop.xlane.xlu1 %6909 }
0x201f   :  { %13508 = vrcp.f32 %v6910_v5 }
0x2026   :  { %v13507_v8 = vpop.eup %13506 }
0x2027   :  { %v6941_v9 = vmul.f32 %v13507_v8, %v15636_v14 }
0x2029   :  { %v13509_v13 = vpop.eup %13508  ;;  %12738 = vmatmul.mubr.msk.f32.vlgmr.msra.gmra.mrb[68].mxu1 %vm773_vm7, %v6941_v9 }
0x202a   :  { %12746 = vmatpush3.msra.mxu1 %v7177_v43  ;;  %v6940_v36 = vmul.f32 %v13509_v13, %v15638_v25  ;;  %12747 = vmatprep.mubr.msk.f32.mxu1 %vm14313_vm6, %v14311_v6  ;;  %v11823_v13 = vld [vmem:[#allocation32] ss:$0 sm:$0xff] }
0x202b   :  { %12755 = vmatprep.subr.mxu1 %v14311_v6 }
0x202c   :  { %12733 = vmatmul.mubr.msk.f32.vlgmr.msra.gmra.mrb[72].mxu0 %vm773_vm7, %v6940_v36 }
0x202d   :  { %12741 = vmatpush3.msra.mxu0 %v7101_v39  ;;  %12742 = vmatprep.mubr.msk.f32.mxu0 %vm14313_vm6, %v14311_v6 }
0x202e   :  { %12750 = vmatprep.subr.mxu0 %v14311_v6 }
0x2074   :  { %v6916_v28 = vpop.xlane.xlu1 %6915 }
0x2075   :  { %13510 = vrcp.f32 %v6916_v28 }
0x2078   :  { %v6922_v15 = vpop.xlane.xlu1 %6921  ;;  %v6919_v17 = vpop.xlane.xlu0 %6918 }
0x2079   :  { %13512 = vrcp.f32 %v6922_v15 }
0x207a   :  { %13514 = vrcp.f32 %v6919_v17 }
0x207c   :  { %v6928_v16 = vpop.xlane.xlu1 %6927  ;;  %v6925_v21 = vpop.xlane.xlu0 %6924 }
0x207d   :  { %13516 = vrcp.f32 %v6928_v16 }
0x207e   :  { %13518 = vrcp.f32 %v6925_v21 }
0x207f   :  { %v13511_v11 = vpop.eup %13510 }
0x2080   :  { %v6931_v46 = vpop.xlane.xlu0 %6930  ;;  %v6942_v42 = vmul.f32 %v13511_v11, %v13495_v60  ;;  %v7481_v24 = vpop.permute.xlu1 %7480 }
0x2081   :  { %13520 = vrcp.f32 %v6931_v46 }
0x2082   :  { %12743 = vmatmul.mubr.msk.f32.vlgmr.msra.gmra.mrb[74].mxu0 %vm773_vm7, %v6942_v42 }
0x2083   :  { %v13513_v10 = vpop.eup %13512  ;;  %12751 = vmatpush3.msra.mxu0 %v7253_v38  ;;  %12752 = vmatprep.mubr.msk.f32.mxu0 %vm14313_vm6, %v14311_v6 }
0x2084   :  { %v13515_v31 = vpop.eup %13514  ;;  %v7405_v14 = vpop.permute.xlu0 %7404  ;;  %12760 = vmatprep.subr.mxu0 %v14311_v6  ;;  %v6944_v25 = vmul.f32 %v13513_v10, %v13497_v20 }
0x2085   :  { %v6943_v12 = vmul.f32 %v13515_v31, %v13499_v30 }
0x2086   :  { %12753 = vmatmul.mubr.msk.f32.vlgmr.msra.gmra.mrb[76].mxu0 %vm773_vm7, %v6944_v25 }
0x2087   :  { %v13517_v35 = vpop.eup %13516  ;;  %12748 = vmatmul.mubr.msk.f32.vlgmr.msra.gmra.mrb[70].mxu1 %vm773_vm7, %v6943_v12  ;;  %12761 = vmatpush3.msra.mxu0 %v7405_v14 }
0x2088   :  { %v13519_v26 = vpop.eup %13518  ;;  %12756 = vmatpush3.msra.mxu1 %v7329_v59  ;;  %12757 = vmatprep.mubr.msk.f32.mxu1 %vm14313_vm6, %v14311_v6  ;;  %v6946_v48 = vmul.f32 %v13517_v35, %v13501_v61 }
0x2089   :  { %12762 = vmatprep.mubr.msk.f32.mxu0 %vm14313_vm6, %v14311_v6  ;;  %12765 = vmatprep.subr.mxu1 %v14311_v6  ;;  %v6945_v32 = vmul.f32 %v13519_v26, %v15649_v62 }
0x208a   :  { %12763 = vmatmul.mubr.msk.f32.vlgmr.msra.gmra.mrb[78].mxu0 %vm773_vm7, %v6946_v48  ;;  %13188 = vmatprep.subr.bf16.mxu0 %v13187_v54  ;;  %v4440_v48 = vld [vmem:[%s16251_s12] sm:$0xff] }
0x208b   :  { %v13521_v22 = vpop.eup %13520  ;;  %12758 = vmatmul.mubr.msk.f32.vlgmr.msra.gmra.mrb[72].mxu1 %vm773_vm7, %v6945_v32  ;;  %13190 = vmatpush3.bf16.msra.mxu0 %v13187_v54  ;;  %v4441_v32 = vld [vmem:[%s16251_s12 + $0x8] sm:$0xff] }
0x208c   :  { %12766 = vmatpush3.msra.mxu1 %v7481_v24  ;;  %12767 = vmatprep.mubr.msk.f32.mxu1 %vm14313_vm6, %v14311_v6  ;;  %v6947_v50 = vmul.f32 %v13521_v22, %v15654_v41  ;;  %v4442_v22 = vld [vmem:[%s16251_s12 + $0x10] sm:$0xff]  ;;  %v13195_v24 = vpack.c.bf16 %v4441_v32, %v4440_v48 }
0x208d   :  { %13192 = vmatprep.subr.bf16.mxu0 %v13191_v49 }
0x208e   :  { %13196 = vmatprep.subr.bf16.mxu1 %v13195_v24 }
0x208f   :  { %12768 = vmatmul.mubr.msk.f32.vlgmr.msra.gmra.mrb[74].mxu1 %vm773_vm7, %v6947_v50  ;;  %13194 = vmatpush3.bf16.msra.mxu0 %v13191_v49  ;;  %v4443_v50 = vld [vmem:[%s16251_s12 + $0x18] sm:$0xff]  ;;  %v13211_v49 = vpack.c.bf16 %v4450_v44, %v4449_v47 }
0x2090   :  { %13198 = vmatpush3.bf16.msra.mxu1 %v13195_v24  ;;  %v11837_v24 = vld [vmem:[%s16249_s24 + $0x28] sm:$0xff] }
0x20fc   :  { %v7096_v51 = vpop.f32.mrb[68].mxu1 }
0x20fd   :  { %v12739_v57 = vpop.f32.mrb[69].mxu1 }
0x20fe   :  { %v4445_v57 = vld [vmem:[%s16252_s23] sm:$0xff] }
0x20ff   :  { %v7020_v0 = vpop.f32.mrb[72].mxu0 }
0x2100   :  { %v12734_v52 = vpop.f32.mrb[73].mxu0 }
0x2101   :  { %v4447_v52 = vld [vmem:[%s16252_s23 + $0x10] sm:$0xff] }
0x2102   :  { %v13207_v54 = vpack.c.bf16 %v4448_v37, %v4447_v52 }
0x2155   :  { %v7172_v55 = vpop.f32.mrb[74].mxu0 }
0x2156   :  { %v12744_v56 = vpop.f32.mrb[75].mxu0  ;;  %7558 = vrot.lane.b32.xlu0 %v7172_v55, %s14297_s13 }
0x2159   :  { %v7324_v60 = vpop.f32.mrb[76].mxu0 }
0x215a   :  { %v7248_v45 = vpop.f32.mrb[70].mxu1  ;;  %7566 = vrot.lane.b32.xlu0 %v7324_v60, %s14281_s15  ;;  %v12754_v29 = vpop.f32.mrb[77].mxu0 }
0x215b   :  { %7560 = vrot.lane.b32.xlu1 %v7248_v45, %s14297_s13  ;;  %v12749_v33 = vpop.f32.mrb[71].mxu1 }
0x215d   :  { %v7476_v20 = vpop.f32.mrb[78].mxu0 }
0x215e   :  { %v7400_v30 = vpop.f32.mrb[72].mxu1  ;;  %7574 = vrot.lane.b32.xlu0 %v7476_v20, %s14319_s10  ;;  %v12764_v23 = vpop.f32.mrb[79].mxu0 }
0x215f   :  { %7568 = vrot.lane.b32.xlu1 %v7400_v30, %s14281_s15  ;;  %v12759_v34 = vpop.f32.mrb[73].mxu1  ;;  %v11826_v30 = vld [vmem:[#allocation34] ss:$0 sm:$0xff] }
0x2160   :  { %v11827_v34 = vld [vmem:[#allocation35] ss:$0 sm:$0xff] }
0x2162   :  { %v7552_v61 = vpop.f32.mrb[74].mxu1 }
0x2163   :  { %7576 = vrot.lane.b32.xlu1 %v7552_v61, %s14319_s10  ;;  %v12769_v62 = vpop.f32.mrb[75].mxu1 }
0x21c8   :  { %v7559_v63 = vpop.permute.xlu0 %7558 }
0x21c9   :  { %v7580_v2 = vsel %vm773_vm7, %v7020_v0, %v7559_v63  ;;  %v4446_v0 = vld [vmem:[%s16252_s23 + $0x8] sm:$0xff] }
0x21ca   :  { %v13203_v53 = vpack.c.bf16 %v4446_v0, %v4445_v57  ;;  %v11839_v57 = vld [vmem:[%s16249_s24 + $0x38] sm:$0xff] }
0x21cc   :  { %v7567_v1 = vpop.permute.xlu0 %7566  ;;  %13204 = vmatprep.subr.bf16.mxu0 %v13203_v53 }
0x21cd   :  { %v7561_v41 = vpop.permute.xlu1 %7560  ;;  %v7582_v39 = vsel %vm555_vm2, %v7580_v2, %v7567_v1 }
0x21ce   :  { %v7581_v40 = vsel %vm773_vm7, %v7096_v51, %v7561_v41  ;;  %v13199_v51 = vpack.c.bf16 %v4443_v50, %v4442_v22  ;;  %v11836_v22 = vld [vmem:[%s16249_s24 + $0x20] sm:$0xff]  ;;  %v11838_v50 = vld [vmem:[%s16249_s24 + $0x30] sm:$0xff] }
0x21cf   :  { %v13223_v0 = vpack.c.bf16 %v11839_v57, %v11838_v50 }
0x21d0   :  { %v7575_v43 = vpop.permute.xlu0 %7574  ;;  %13200 = vmatprep.subr.bf16.mxu1 %v13199_v51 }
0x21d1   :  { %v7569_v38 = vpop.permute.xlu1 %7568  ;;  %v7584_v59 = vsel %vm2132_vm10, %v7582_v39, %v7575_v43  ;;  %13202 = vmatpush3.bf16.msra.mxu1 %v13199_v51  ;;  %v4451_v39 = vld [vmem:[%s16252_s23 + $0x30] sm:$0xff]  ;;  %v4452_v43 = vld [vmem:[%s16252_s23 + $0x38] sm:$0xff]  ;;  %v13219_v51 = vpack.c.bf16 %v11837_v24, %v11836_v22 }
0x21d2   :  { %12778 = vmatprep.mubr.msk.f32.mxu0 %vm675_vm5, %v7584_v59  ;;  %v7583_v5 = vsel %vm555_vm2, %v7581_v40, %v7569_v38  ;;  %v13215_v38 = vpack.c.bf16 %v4452_v43, %v4451_v39  ;;  %v11828_v59 = vld [vmem:[#allocation37] ss:$0 sm:$0xff] }
0x21d3   :  { %13220 = vmatprep.subr.bf16.mxu1 %v13219_v51 }
0x21d5   :  { %v7577_v8 = vpop.permute.xlu1 %7576 }
0x21d6   :  { %v7585_v9 = vsel %vm2132_vm10, %v7583_v5, %v7577_v8 }
0x21d7   :  { %12779 = vmatmul.mubr.msk.f32.vlgmr.msra.gmra.mrb[80].mxu0 %vm675_vm5, %v7585_v9 }
0x21d8   :  { %13206 = vmatpush3.bf16.msra.mxu0 %v13203_v53 }
0x21d9   :  { %13208 = vmatprep.subr.bf16.mxu0 %v13207_v54 }
0x21dc   :  { %13210 = vmatpush3.bf16.msra.mxu0 %v13207_v54 }
0x21dd   :  { %13212 = vmatprep.subr.bf16.mxu0 %v13211_v49 }
0x21e0   :  { %13214 = vmatpush3.bf16.msra.mxu0 %v13211_v49 }
0x21e1   :  { %13216 = vmatprep.subr.bf16.mxu0 %v13215_v38 }
0x21e4   :  { %13218 = vmatpush3.bf16.msra.mxu0 %v13215_v38 }
0x21e5   :  { %12832 = vmatprep.subr.mxu0 %v14311_v6 }
0x22aa   :  { %v12780_v36 = vpop.f32.mrb[80].mxu0 }
0x22ab   :  { %v7670_v28 = vadd.f32 %v12780_v36, %v11823_v13  ;;  %v7664_v15 = vpop.f32.mrb[81].mxu0 }
0x22ac   :  { %v7665_v17 = vadd.f32 %v11823_v13, %v7664_v15 }
0x22ad   :  { %v7674_v16 = vadd.f32 %v7670_v28, %v15520_v7  ;;  %v11831_v28 = vld [vmem:[#allocation38] ss:$0 sm:$0xff] }
0x22ae   :  { %v7673_v21 = vadd.f32 %v7665_v17, %v15516_v3 }
0x22af   :  { %v7678_v11 = vsel %vm675_vm5, %v7674_v16, 0.0 }
0x22b0   :  { %7679 = vadd.xlane.f32.xlu1 %v7678_v11  ;;  %v7675_v46 = vsel %vm675_vm5, %v7673_v21, 0.0 }
0x22b1   :  { %7676 = vadd.xlane.f32.xlu0 %v7675_v46 }
0x233d   :  { %v7680_v42 = vpop.xlane.xlu1 %7679 }
0x233e   :  { %v7682_v10 = vmul.f32 0.03125, %v7680_v42  ;;  %v7677_v31 = vpop.xlane.xlu0 %7676 }
0x233f   :  { %v7681_v14 = vmul.f32 0.03125, %v7677_v31 }
0x2340   :  { %v7684_v25 = vsub.f32 %v7674_v16, %v7682_v10 }
0x2341   :  { %v7683_v12 = vsub.f32 %v7673_v21, %v7681_v14 }
0x2342   :  { %v7686_v7 = vmul.f32 %v7684_v25, %v7684_v25 }
0x2343   :  { %v7685_v35 = vmul.f32 %v7683_v12, %v7683_v12 }
0x2344   :  { %v7690_v26 = vsel %vm675_vm5, %v7686_v7, 0.0 }
0x2345   :  { %v7687_v3 = vsel %vm675_vm5, %v7685_v35, 0.0 }
0x2346   :  { %7688 = vadd.xlane.f32.xlu0 %v7687_v3 }
0x234a   :  { %7691 = vadd.xlane.f32.xlu0 %v7690_v26 }
0x23d3   :  { %v7689_v55 = vpop.xlane.xlu0 %7688 }
0x23d4   :  { %v7693_v56 = vmul.f32 0.03125, %v7689_v55  ;;  %v11834_v55 = vld [vmem:[#allocation40] ss:$0 sm:$0xff] }
0x23d6   :  { %v7695_v60 = vadd.f32 1e-05, %v7693_v56 }
0x23d7   :  { %v7692_v45 = vpop.xlane.xlu0 %7691 }
0x23d8   :  { %13522 = vrsqrt.f32 %v7695_v60  ;;  %v7694_v29 = vmul.f32 0.03125, %v7692_v45 }
0x23da   :  { %v7696_v33 = vadd.f32 1e-05, %v7694_v29  ;;  %v11835_v29 = vld [vmem:[#allocation41] ss:$0 sm:$0xff] }
0x23dc   :  { %13524 = vrsqrt.f32 %v7696_v33 }
0x23e2   :  { %v13523_v20 = vpop.eup %13522 }
0x23e3   :  { %v7699_v23 = vmul.f32 %v13523_v20, %v7683_v12 }
0x23e5   :  { %v7707_v61 = vmul.f32 %v11826_v30, %v7699_v23 }
0x23e6   :  { %v13525_v62 = vpop.eup %13524 }
0x23e7   :  { %v7700_v63 = vmul.f32 %v13525_v62, %v7684_v25  ;;  %v7715_v1 = vadd.f32 %v11827_v34, %v7707_v61 }
0x23e9   :  { %v7708_v41 = vmul.f32 %v11826_v30, %v7700_v63  ;;  %12789 = vmatprep.mubr.msk.f32.mxu1 %vm675_vm5, %v7715_v1 }
0x23eb   :  { %v7716_v2 = vadd.f32 %v11827_v34, %v7708_v41  ;;  %v11856_v34 = vld [vmem:[#allocation19 + $0x1] ss:$0 sm:$0xff] }
0x23ed   :  { %12790 = vmatmul.mubr.msk.f32.vlgmr.msra.gmra.mrb[76].mxu1 %vm675_vm5, %v7716_v2 }
0x23ee   :  { %13222 = vmatpush3.bf16.msra.mxu1 %v13219_v51 }
0x23ef   :  { %13224 = vmatprep.subr.bf16.mxu1 %v13223_v0 }
0x23f2   :  { %13226 = vmatpush3.bf16.msra.mxu1 %v13223_v0 }
0x23f3   :  { %12822 = vmatprep.subr.mxu1 %v14311_v6 }
0x24c0   :  { %v12791_v40 = vpop.f32.mrb[76].mxu1 }
0x24c1   :  { %v7801_v5 = vadd.f32 %v12791_v40, %v11828_v59  ;;  %v7795_v8 = vpop.f32.mrb[77].mxu1 }
0x24c2   :  { %v7796_v9 = vadd.f32 %v11828_v59, %v7795_v8 }
0x24c3   :  { %v7805_v36 = vmax.f32 %v7801_v5, 0.0 }
0x24c4   :  { %v7804_v13 = vmax.f32 %v7796_v9, 0.0 }
0x24c6   :  { %12808 = vmatprep.mubr.msk.f32.mxu0 %vm2362_vm11, %v7804_v13 }
0x24c7   :  { %12809 = vmatmul.mubr.msk.f32.vlgmr.msra.gmra.mrb[82].mxu0 %vm2362_vm11, %v7805_v36 }
0x24c8   :  { %12834 = vmatprep.mubr.msk.f32.mxu0 %vm14313_vm6, %v14311_v6 }
0x259a   :  { %v12810_v15 = vpop.f32.mrb[82].mxu0 }
0x259b   :  { %v7890_v17 = vadd.f32 %v12810_v15, %v11831_v28  ;;  %v7884_v16 = vpop.f32.mrb[83].mxu0 }
0x259c   :  { %v7885_v21 = vadd.f32 %v11831_v28, %v7884_v16 }
0x259d   :  { %v7894_v11 = vadd.f32 %v7890_v17, %v7716_v2 }
0x259e   :  { %v7893_v46 = vadd.f32 %v7885_v21, %v7715_v1 }
0x259f   :  { %v7898_v42 = vsel %vm675_vm5, %v7894_v11, 0.0 }
0x25a0   :  { %7899 = vadd.xlane.f32.xlu0 %v7898_v42  ;;  %v7895_v10 = vsel %vm675_vm5, %v7893_v46, 0.0 }
0x25a1   :  { %7896 = vadd.xlane.f32.xlu1 %v7895_v10 }
0x262d   :  { %v7900_v31 = vpop.xlane.xlu0 %7899 }
0x262e   :  { %v7902_v14 = vmul.f32 0.03125, %v7900_v31  ;;  %v7897_v25 = vpop.xlane.xlu1 %7896 }
0x262f   :  { %v7901_v12 = vmul.f32 0.03125, %v7897_v25 }
0x2630   :  { %v7904_v35 = vsub.f32 %v7894_v11, %v7902_v14 }
0x2631   :  { %v7903_v3 = vsub.f32 %v7893_v46, %v7901_v12 }
0x2632   :  { %v7906_v7 = vmul.f32 %v7904_v35, %v7904_v35 }
0x2633   :  { %v7905_v26 = vmul.f32 %v7903_v3, %v7903_v3 }
0x2634   :  { %v7910_v48 = vsel %vm675_vm5, %v7906_v7, 0.0 }
0x2635   :  { %7911 = vadd.xlane.f32.xlu0 %v7910_v48  ;;  %v7907_v32 = vsel %vm675_vm5, %v7905_v26, 0.0 }
0x2636   :  { %7908 = vadd.xlane.f32.xlu1 %v7907_v32 }
0x26c2   :  { %v7912_v52 = vpop.xlane.xlu0 %7911 }
0x26c3   :  { %v7914_v53 = vmul.f32 0.03125, %v7912_v52  ;;  %v7909_v37 = vpop.xlane.xlu1 %7908 }
0x26c4   :  { %v7913_v54 = vmul.f32 0.03125, %v7909_v37 }
0x26c5   :  { %v7916_v47 = vadd.f32 1e-05, %v7914_v53 }
0x26c6   :  { %v7915_v44 = vadd.f32 1e-05, %v7913_v54 }
0x26c7   :  { %13526 = vrsqrt.f32 %v7916_v47 }
0x26c8   :  { %13528 = vrsqrt.f32 %v7915_v44 }
0x26d1   :  { %v13527_v49 = vpop.eup %13526 }
0x26d2   :  { %v13529_v56 = vpop.eup %13528  ;;  %v7920_v60 = vmul.f32 %v13527_v49, %v7904_v35 }
0x26d3   :  { %v7919_v45 = vmul.f32 %v13529_v56, %v7903_v3 }
0x26d4   :  { %v7928_v33 = vmul.f32 %v11834_v55, %v7920_v60 }
0x26d5   :  { %v7927_v20 = vmul.f32 %v11834_v55, %v7919_v45 }
0x26d6   :  { %v15740_v23 = vadd.f32 %v11835_v29, %v7928_v33 }
0x26d7   :  { %v15738_v30 = vadd.f32 %v11835_v29, %v7927_v20 }
0x26d9   :  { %12819 = vmatprep.mubr.msk.f32.mxu1 %vm675_vm5, %v15738_v30 }
0x26da   :  { %12820 = vmatmul.mubr.msk.f32.vlgmr.msra.gmra.mrb[78].mxu1 %vm675_vm5, %v15740_v23 }
0x26db   :  { %12824 = vmatprep.mubr.msk.f32.mxu1 %vm14313_vm6, %v14311_v6 }
0x27ad   :  { %v12821_v61 = vpop.f32.mrb[78].mxu1 }
0x27ae   :  { %v15748_v62 = vadd.f32 %v12821_v61, %v11856_v34  ;;  %v8080_v63 = vpop.f32.mrb[79].mxu1 }
0x27af   :  { %v15750_v1 = vadd.f32 %v11856_v34, %v8080_v63 }
0x27b0   :  { %8093 = vrot.lane.b32.xlu0 %v15748_v62, %s14315_s9 }
0x27b1   :  { %8091 = vrot.lane.b32.xlu1 %v15750_v1, %s14315_s9 }
0x27b4   :  { %8099 = vrot.lane.b32.xlu0 %v15750_v1, %s14316_s14 }
0x27b5   :  { %8095 = vrot.lane.b32.xlu1 %v15750_v1, %s14314_s2 }
0x27b8   :  { %8103 = vrot.lane.b32.xlu0 %v15750_v1, %s14317_s8 }
0x27b9   :  { %8097 = vrot.lane.b32.xlu1 %v15748_v62, %s14314_s2 }
0x27bd   :  { %8101 = vrot.lane.b32.xlu1 %v15748_v62, %s14316_s14 }
0x27c1   :  { %8179 = vrot.lane.b32.xlu1 %v15748_v62, %s14317_s8 }
0x2822   :  { %v15768_v41 = vpop.permute.xlu0 %8093 }
0x2823   :  { %8331 = vrot.lane.b32.xlu1 %v15768_v41, %s14317_s8  ;;  %v15772_v2 = vpop.permute.xlu1 %8091 }
0x2824   :  { %8255 = vrot.lane.b32.xlu0 %v15772_v2, %s14317_s8 }
0x2826   :  { %v15776_v39 = vpop.permute.xlu0 %8099 }
0x2827   :  { %v15778_v43 = vpop.permute.xlu1 %8095 }
0x2828   :  { %8407 = vrot.lane.b32.xlu0 %v15778_v43, %s14317_s8 }
0x282a   :  { %v8104_v38 = vpop.permute.xlu0 %8103 }
0x282b   :  { %12823 = vmatpush3.xpose.msk.msra.mxu1 %vm773_vm7, %v8104_v38  ;;  %v15783_v59 = vpop.permute.xlu1 %8097 }
0x282c   :  { %8559 = vrot.lane.b32.xlu0 %v15776_v39, %s14317_s8  ;;  %8483 = vrot.lane.b32.xlu1 %v15783_v59, %s14317_s8 }
0x282d   :  { %12827 = vmatprep.subr.mxu1 %v14311_v6 }
0x282e   :  { %12825 = vmatmul.mubr.msk.f32.vlgmr.msra.gmra.mrb[80].mxu1 %vm773_vm7, %v15750_v1 }
0x282f   :  { %v15792_v40 = vpop.permute.xlu1 %8101  ;;  %12829 = vmatprep.mubr.msk.f32.mxu1 %vm14313_vm6, %v14311_v6 }
0x2830   :  { %8635 = vrot.lane.b32.xlu1 %v15792_v40, %s14317_s8 }
0x2833   :  { %v8180_v5 = vpop.permute.xlu1 %8179 }
0x2834   :  { %12828 = vmatpush3.xpose.msk.msra.mxu1 %vm773_vm7, %v8180_v5 }
0x2835   :  { %12837 = vmatprep.subr.mxu1 %v14311_v6 }
0x2837   :  { %12830 = vmatmul.mubr.msk.f32.vlgmr.msra.gmra.mrb[82].mxu1 %vm773_vm7, %v15748_v62 }
0x2838   :  { %12839 = vmatprep.mubr.msk.f32.mxu1 %vm14313_vm6, %v14311_v6 }
0x2895   :  { %v8332_v8 = vpop.permute.xlu1 %8331 }
0x2896   :  { %v8256_v9 = vpop.permute.xlu0 %8255  ;;  %12838 = vmatpush3.xpose.msk.msra.mxu1 %vm773_vm7, %v8332_v8 }
0x2897   :  { %12833 = vmatpush3.xpose.msk.msra.mxu0 %vm773_vm7, %v8256_v9  ;;  %12847 = vmatprep.subr.mxu1 %v14311_v6 }
0x2898   :  { %12842 = vmatprep.subr.mxu0 %v14311_v6 }
0x2899   :  { %12840 = vmatmul.mubr.msk.f32.vlgmr.msra.gmra.mrb[84].mxu1 %vm773_vm7, %v15768_v41 }
0x289a   :  { %12835 = vmatmul.mubr.msk.f32.vlgmr.msra.gmra.mrb[84].mxu0 %vm773_vm7, %v15772_v2  ;;  %v8408_v13 = vpop.permute.xlu0 %8407  ;;  %12849 = vmatprep.mubr.msk.f32.mxu1 %vm14313_vm6, %v14311_v6 }
0x289b   :  { %12843 = vmatpush3.xpose.msk.msra.mxu0 %vm773_vm7, %v8408_v13  ;;  %12844 = vmatprep.mubr.msk.f32.mxu0 %vm14313_vm6, %v14311_v6 }
0x289c   :  { %12852 = vmatprep.subr.mxu0 %v14311_v6 }
0x289e   :  { %12845 = vmatmul.mubr.msk.f32.vlgmr.msra.gmra.mrb[86].mxu0 %vm773_vm7, %v15778_v43  ;;  %v8560_v36 = vpop.permute.xlu0 %8559  ;;  %v8484_v28 = vpop.permute.xlu1 %8483 }
0x289f   :  { %12848 = vmatpush3.xpose.msk.msra.mxu1 %vm773_vm7, %v8484_v28  ;;  %12853 = vmatpush3.xpose.msk.msra.mxu0 %vm773_vm7, %v8560_v36 }
0x28a0   :  { %12854 = vmatprep.mubr.msk.f32.mxu0 %vm14313_vm6, %v14311_v6  ;;  %12857 = vmatprep.subr.mxu1 %v14311_v6 }
0x28a1   :  { %12862 = vmatprep.subr.mxu0 %v14311_v6 }
0x28a2   :  { %12850 = vmatmul.mubr.msk.f32.vlgmr.msra.gmra.mrb[86].mxu1 %vm773_vm7, %v15783_v59  ;;  %12855 = vmatmul.mubr.msk.f32.vlgmr.msra.gmra.mrb[88].mxu0 %vm773_vm7, %v15776_v39  ;;  %v8636_v15 = vpop.permute.xlu1 %8635 }
0x28a3   :  { %12858 = vmatpush3.xpose.msk.msra.mxu1 %vm773_vm7, %v8636_v15  ;;  %12859 = vmatprep.mubr.msk.f32.mxu1 %vm14313_vm6, %v14311_v6 }
0x28a4   :  { %12867 = vmatprep.subr.mxu1 %v14311_v6  ;;  %12864 = vmatprep.mubr.msk.f32.mxu0 %vm14313_vm6, %v14311_v6 }
0x28a6   :  { %12860 = vmatmul.mubr.msk.f32.vlgmr.msra.gmra.mrb[88].mxu1 %vm773_vm7, %v15792_v40 }
0x28a7   :  { %12869 = vmatprep.mubr.msk.f32.mxu1 %vm14313_vm6, %v14311_v6 }
0x2901   :  { %v8175_v17 = vpop.f32.mrb[80].mxu1 }
0x2902   :  { %v8711_v16 = vmul.f32 0.35355338, %v8175_v17  ;;  %v12826_v21 = vpop.f32.mrb[81].mxu1 }
0x2904   :  { %v8719_v11 = vadd.f32 %v8711_v16, %v15387_v4 }
0x2906   :  { %v8727_v46 = vsel %vm773_vm7, %v8719_v11, -inf }
0x2907   :  { %8728 = vmax.xlane.f32.xlu0 %v8727_v46 }
0x290a   :  { %v8251_v42 = vpop.f32.mrb[82].mxu1 }
0x290b   :  { %v8712_v10 = vmul.f32 0.35355338, %v8251_v42  ;;  %v12831_v31 = vpop.f32.mrb[83].mxu1 }
0x290d   :  { %v8720_v14 = vadd.f32 %v8712_v10, %v15387_v4 }
0x290f   :  { %v8730_v25 = vsel %vm773_vm7, %v8720_v14, -inf }
0x2910   :  { %8731 = vmax.xlane.f32.xlu1 %v8730_v25 }
0x296c   :  { %v8403_v12 = vpop.f32.mrb[84].mxu1 }
0x296d   :  { %v8714_v35 = vmul.f32 0.35355338, %v8403_v12  ;;  %v8327_v3 = vpop.f32.mrb[84].mxu0  ;;  %v12841_v7 = vpop.f32.mrb[85].mxu1 }
0x296e   :  { %v8713_v26 = vmul.f32 0.35355338, %v8327_v3  ;;  %v12836_v48 = vpop.f32.mrb[85].mxu0 }
0x296f   :  { %v8722_v22 = vadd.f32 %v8714_v35, %v15387_v4 }
0x2970   :  { %v8721_v32 = vadd.f32 %v8713_v26, %v15387_v4 }
0x2971   :  { %v8479_v24 = vpop.f32.mrb[86].mxu0  ;;  %v8736_v37 = vsel %vm773_vm7, %v8722_v22, -inf }
0x2972   :  { %v8715_v50 = vmul.f32 0.35355338, %v8479_v24  ;;  %v12846_v51 = vpop.f32.mrb[87].mxu0  ;;  %v8733_v57 = vsel %vm773_vm7, %v8721_v32, -inf }
0x2973   :  { %8734 = vmax.xlane.f32.xlu0 %v8733_v57 }
0x2974   :  { %v8723_v0 = vadd.f32 %v8715_v50, %v15387_v4 }
0x2975   :  { %v8555_v52 = vpop.f32.mrb[86].mxu1  ;;  %v8631_v53 = vpop.f32.mrb[88].mxu0 }
0x2976   :  { %v8716_v54 = vmul.f32 0.35355338, %v8555_v52  ;;  %v8717_v47 = vmul.f32 0.35355338, %v8631_v53  ;;  %v12851_v44 = vpop.f32.mrb[87].mxu1  ;;  %v12856_v49 = vpop.f32.mrb[89].mxu0 }
0x2977   :  { %v8739_v55 = vsel %vm773_vm7, %v8723_v0, -inf  ;;  %8737 = vmax.xlane.f32.xlu0 %v8736_v37 }
0x2978   :  { %v8724_v56 = vadd.f32 %v8716_v54, %v15387_v4  ;;  %v8725_v60 = vadd.f32 %v8717_v47, %v15387_v4  ;;  %8740 = vmax.xlane.f32.xlu1 %v8739_v55 }
0x2979   :  { %v8707_v45 = vpop.f32.mrb[88].mxu1 }
0x297a   :  { %v8718_v29 = vmul.f32 0.35355338, %v8707_v45  ;;  %v12861_v33 = vpop.f32.mrb[89].mxu1  ;;  %v8745_v20 = vsel %vm773_vm7, %v8725_v60, -inf  ;;  %v8742_v34 = vsel %vm773_vm7, %v8724_v56, -inf }
0x297b   :  { %8743 = vmax.xlane.f32.xlu0 %v8742_v34 }
0x297c   :  { %v8726_v61 = vadd.f32 %v8718_v29, %v15387_v4  ;;  %8746 = vmax.xlane.f32.xlu1 %v8745_v20 }
0x297e   :  { %v8748_v63 = vsel %vm773_vm7, %v8726_v61, -inf }
0x297f   :  { %8749 = vmax.xlane.f32.xlu0 %v8748_v63 }
0x298d   :  { %8815 = vrot.lane.b32.xlu1 %v15750_v1, %s14318_s30 }
0x2991   :  { %8967 = vrot.lane.b32.xlu1 %v15772_v2, %s14318_s30 }
0x2994   :  { %v8729_v5 = vpop.xlane.xlu0 %8728 }
0x2995   :  { %9043 = vrot.lane.b32.xlu1 %v15768_v41, %s14318_s30  ;;  %8891 = vrot.lane.b32.xlu0 %v15748_v62, %s14318_s30  ;;  %v8751_v1 = vsub.f32 %v8719_v11, %v8729_v5 }
0x2997   :  { %v8759_v9 = vmul.f32 1.442695, %v8751_v1 }
0x2999   :  { %9195 = vrot.lane.b32.xlu1 %v15783_v59, %s14318_s30  ;;  %9119 = vrot.lane.b32.xlu0 %v15778_v43, %s14318_s30 }
0x299d   :  { %v8732_v4 = vpop.xlane.xlu1 %8731 }
0x299e   :  { %v8752_v38 = vsub.f32 %v8720_v14, %v8732_v4 }
0x29a0   :  { %v8761_v8 = vmul.f32 1.442695, %v8752_v38 }
0x29a2   :  { %13530 = vpow2.f32 %v8761_v8 }
0x29a3   :  { %13532 = vpow2.f32 %v8759_v9 }
0x29ac   :  { %v15868_v2 = vpop.eup %13530 }
0x29ad   :  { %v8778_v41 = vsel %vm773_vm7, %v15868_v2, 0.0  ;;  %v15872_v62 = vpop.eup %13532 }
0x29ae   :  { %v8775_v59 = vsel %vm773_vm7, %v15872_v62, 0.0 }
0x29b8   :  { %8779 = vadd.xlane.f32.xlu0 %v8778_v41 }
0x29bd   :  { %8776 = vadd.xlane.f32.xlu1 %v8775_v59 }
0x2a00   :  { %v8735_v43 = vpop.xlane.xlu0 %8734 }
0x2a01   :  { %v8753_v13 = vsub.f32 %v8721_v32, %v8735_v43 }
0x2a03   :  { %v8763_v36 = vmul.f32 1.442695, %v8753_v13 }
0x2a04   :  { %v8738_v28 = vpop.xlane.xlu0 %8737 }
0x2a05   :  { %13534 = vpow2.f32 %v8763_v36  ;;  %v8754_v15 = vsub.f32 %v8722_v22, %v8738_v28  ;;  %v8741_v17 = vpop.xlane.xlu1 %8740 }
0x2a06   :  { %v8755_v16 = vsub.f32 %v8723_v0, %v8741_v17 }
0x2a07   :  { %v8765_v21 = vmul.f32 1.442695, %v8754_v15 }
0x2a08   :  { %v8767_v11 = vmul.f32 1.442695, %v8755_v16  ;;  %v8744_v46 = vpop.xlane.xlu0 %8743 }
0x2a09   :  { %13536 = vpow2.f32 %v8765_v21  ;;  %v8756_v42 = vsub.f32 %v8724_v56, %v8744_v46  ;;  %v8747_v10 = vpop.xlane.xlu1 %8746  ;;  %v11840_v46 = vld [vmem:[%s16250_s22 + $0x20] sm:$0xff] }
0x2a0a   :  { %13538 = vpow2.f32 %v8767_v11  ;;  %v8757_v31 = vsub.f32 %v8725_v60, %v8747_v10 }
0x2a0b   :  { %v8769_v14 = vmul.f32 1.442695, %v8756_v42  ;;  %v11841_v42 = vld [vmem:[%s16250_s22 + $0x28] sm:$0xff] }
0x2a0c   :  { %v8771_v25 = vmul.f32 1.442695, %v8757_v31  ;;  %v8750_v12 = vpop.xlane.xlu0 %8749  ;;  %v13227_v10 = vpack.c.bf16 %v11841_v42, %v11840_v46  ;;  %v11842_v31 = vld [vmem:[%s16250_s22 + $0x30] sm:$0xff]  ;;  %v7956_v46 = vld [vmem:[#allocation25 + $0x20] sm:$0xff] }
0x2a0d   :  { %13540 = vpow2.f32 %v8769_v14  ;;  %v8758_v35 = vsub.f32 %v8726_v61, %v8750_v12  ;;  %v8816_v3 = vpop.permute.xlu1 %8815  ;;  %v11843_v14 = vld [vmem:[%s16250_s22 + $0x38] sm:$0xff]  ;;  %v7963_v12 = vld [vmem:[#allocation28 + $0x20] sm:$0xff] }
0x2a0e   :  { %13542 = vpow2.f32 %v8771_v25  ;;  %12863 = vmatpush3.msra.mxu0 %v8816_v3  ;;  %v13231_v25 = vpack.c.bf16 %v11843_v14, %v11842_v31  ;;  %v7957_v42 = vld [vmem:[#allocation25 + $0x28] sm:$0xff]  ;;  %v7958_v31 = vld [vmem:[#allocation25 + $0x30] sm:$0xff]  ;;  %v7959_v14 = vld [vmem:[#allocation25 + $0x38] sm:$0xff] }
0x2a0f   :  { %v13535_v7 = vpop.eup %13534  ;;  %v8773_v26 = vmul.f32 1.442695, %v8758_v35  ;;  %12872 = vmatprep.subr.mxu0 %v14311_v6  ;;  %v7964_v35 = vld [vmem:[#allocation28 + $0x28] sm:$0xff] }
0x2a10   :  { %v8892_v48 = vpop.permute.xlu0 %8891  ;;  %v8781_v32 = vsel %vm773_vm7, %v13535_v7, 0.0 }
0x2a11   :  { %13544 = vpow2.f32 %v8773_v26  ;;  %8782 = vadd.xlane.f32.xlu1 %v8781_v32  ;;  %12868 = vmatpush3.msra.mxu1 %v8892_v48  ;;  %v8968_v47 = vpop.permute.xlu1 %8967 }
0x2a12   :  { %12877 = vmatprep.subr.mxu1 %v14311_v6 }
0x2a13   :  { %v13537_v22 = vpop.eup %13536 }
0x2a14   :  { %v13539_v24 = vpop.eup %13538  ;;  %v8784_v50 = vsel %vm773_vm7, %v13537_v22, 0.0  ;;  %v9120_v49 = vpop.permute.xlu0 %9119 }
0x2a15   :  { %8785 = vadd.xlane.f32.xlu0 %v8784_v50  ;;  %v8787_v51 = vsel %vm773_vm7, %v13539_v24, 0.0  ;;  %v9044_v44 = vpop.permute.xlu1 %9043 }
0x2a16   :  { %8788 = vadd.xlane.f32.xlu1 %v8787_v51 }
0x2a17   :  { %v13541_v57 = vpop.eup %13540 }
0x2a18   :  { %v13543_v0 = vpop.eup %13542  ;;  %v8790_v52 = vsel %vm773_vm7, %v13541_v57, 0.0 }
0x2a19   :  { %8791 = vadd.xlane.f32.xlu0 %v8790_v52  ;;  %v8793_v53 = vsel %vm773_vm7, %v13543_v0, 0.0  ;;  %v9196_v56 = vpop.permute.xlu1 %9195 }
0x2a1a   :  { %8794 = vadd.xlane.f32.xlu1 %v8793_v53 }
0x2a1b   :  { %v15883_v37 = vpop.eup %13544 }
0x2a1c   :  { %v8796_v54 = vsel %vm773_vm7, %v15883_v37, 0.0 }
0x2a1d   :  { %8797 = vadd.xlane.f32.xlu0 %v8796_v54 }
0x2a2b   :  { %9347 = vrot.lane.b32.xlu1 %v15792_v40, %s14318_s30 }
0x2a33   :  { %9271 = vrot.lane.b32.xlu0 %v15776_v39, %s14318_s30 }
0x2a45   :  { %v8780_v55 = vpop.xlane.xlu0 %8779 }
0x2a46   :  { %13546 = vrcp.f32 %v8780_v55 }
0x2a4a   :  { %v8777_v60 = vpop.xlane.xlu1 %8776 }
0x2a4b   :  { %13548 = vrcp.f32 %v8777_v60  ;;  %v7965_v60 = vld [vmem:[#allocation28 + $0x30] sm:$0xff] }
0x2a50   :  { %v13547_v45 = vpop.eup %13546 }
0x2a51   :  { %v8808_v29 = vmul.f32 %v13547_v45, %v15868_v2  ;;  %v7966_v45 = vld [vmem:[#allocation28 + $0x38] sm:$0xff] }
0x2a53   :  { %12870 = vmatmul.mubr.msk.f32.vlgmr.msra.gmra.mrb[90].mxu1 %vm773_vm7, %v8808_v29 }
0x2a54   :  { %12878 = vmatpush3.msra.mxu1 %v9044_v44  ;;  %12879 = vmatprep.mubr.msk.f32.mxu1 %vm14313_vm6, %v14311_v6 }
0x2a55   :  { %v13549_v40 = vpop.eup %13548  ;;  %12887 = vmatprep.subr.mxu1 %v14311_v6 }
0x2a56   :  { %v8807_v39 = vmul.f32 %v13549_v40, %v15872_v62 }
0x2a58   :  { %12865 = vmatmul.mubr.msk.f32.vlgmr.msra.gmra.mrb[90].mxu0 %vm773_vm7, %v8807_v39 }
0x2a59   :  { %12873 = vmatpush3.msra.mxu0 %v8968_v47  ;;  %12874 = vmatprep.mubr.msk.f32.mxu0 %vm14313_vm6, %v14311_v6 }
0x2a5a   :  { %12882 = vmatprep.subr.mxu0 %v14311_v6 }
0x2a9e   :  { %v8783_v33 = vpop.xlane.xlu1 %8782 }
0x2a9f   :  { %13550 = vrcp.f32 %v8783_v33 }
0x2aa2   :  { %v8786_v20 = vpop.xlane.xlu0 %8785 }
0x2aa3   :  { %13552 = vrcp.f32 %v8786_v20  ;;  %v8789_v34 = vpop.xlane.xlu1 %8788  ;;  %v13247_v20 = vpack.c.bf16 %v7966_v45, %v7965_v60 }
0x2aa4   :  { %13554 = vrcp.f32 %v8789_v34 }
0x2aa6   :  { %v8792_v61 = vpop.xlane.xlu0 %8791 }
0x2aa7   :  { %13556 = vrcp.f32 %v8792_v61  ;;  %v8795_v63 = vpop.xlane.xlu1 %8794  ;;  %v11883_v61 = vld [vmem:[#allocation20 + $0x1] ss:$0 sm:$0xff] }
0x2aa8   :  { %13558 = vrcp.f32 %v8795_v63 }
0x2aa9   :  { %v13551_v4 = vpop.eup %13550 }
0x2aaa   :  { %v8809_v38 = vmul.f32 %v13551_v4, %v13535_v7  ;;  %v8798_v5 = vpop.xlane.xlu0 %8797  ;;  %v13243_v7 = vpack.c.bf16 %v7964_v35, %v7963_v12 }
0x2aab   :  { %13560 = vrcp.f32 %v8798_v5  ;;  %v9348_v36 = vpop.permute.xlu1 %9347 }
0x2aac   :  { %12875 = vmatmul.mubr.msk.f32.vlgmr.msra.gmra.mrb[92].mxu0 %vm773_vm7, %v8809_v38 }
0x2aad   :  { %v13553_v8 = vpop.eup %13552  ;;  %12883 = vmatpush3.msra.mxu0 %v9120_v49  ;;  %12884 = vmatprep.mubr.msk.f32.mxu0 %vm14313_vm6, %v14311_v6 }
0x2aae   :  { %v13555_v1 = vpop.eup %13554  ;;  %v8810_v9 = vmul.f32 %v13553_v8, %v13537_v22  ;;  %12892 = vmatprep.subr.mxu0 %v14311_v6  ;;  %v9272_v41 = vpop.permute.xlu0 %9271 }
0x2aaf   :  { %v8811_v2 = vmul.f32 %v13555_v1, %v13539_v24 }
0x2ab0   :  { %12880 = vmatmul.mubr.msk.f32.vlgmr.msra.gmra.mrb[92].mxu1 %vm773_vm7, %v8810_v9 }
0x2ab1   :  { %v13557_v62 = vpop.eup %13556  ;;  %12885 = vmatmul.mubr.msk.f32.vlgmr.msra.gmra.mrb[94].mxu0 %vm773_vm7, %v8811_v2  ;;  %12888 = vmatpush3.msra.mxu1 %v9196_v56 }
0x2ab2   :  { %v13559_v59 = vpop.eup %13558  ;;  %v8812_v43 = vmul.f32 %v13557_v62, %v13541_v57  ;;  %12893 = vmatpush3.msra.mxu0 %v9272_v41  ;;  %12889 = vmatprep.mubr.msk.f32.mxu1 %vm14313_vm6, %v14311_v6  ;;  %v11891_v41 = vld [vmem:[#allocation29 + $0x1] ss:$0 sm:$0xff] }
0x2ab3   :  { %v8813_v13 = vmul.f32 %v13559_v59, %v13543_v0  ;;  %12894 = vmatprep.mubr.msk.f32.mxu0 %vm14313_vm6, %v14311_v6  ;;  %12897 = vmatprep.subr.mxu1 %v14311_v6 }
0x2ab4   :  { %12890 = vmatmul.mubr.msk.f32.vlgmr.msra.gmra.mrb[94].mxu1 %vm773_vm7, %v8812_v43  ;;  %13228 = vmatprep.subr.bf16.mxu0 %v13227_v10 }
0x2ab5   :  { %v13561_v28 = vpop.eup %13560  ;;  %12895 = vmatmul.mubr.msk.f32.vlgmr.msra.gmra.mrb[96].mxu0 %vm773_vm7, %v8813_v13  ;;  %12898 = vmatpush3.msra.mxu1 %v9348_v36 }
0x2ab6   :  { %v8814_v15 = vmul.f32 %v13561_v28, %v15883_v37  ;;  %12899 = vmatprep.mubr.msk.f32.mxu1 %vm14313_vm6, %v14311_v6  ;;  %13230 = vmatpush3.bf16.msra.mxu0 %v13227_v10  ;;  %v13235_v10 = vpack.c.bf16 %v7957_v42, %v7956_v46 }
0x2ab7   :  { %13232 = vmatprep.subr.bf16.mxu0 %v13231_v25 }
0x2ab8   :  { %12900 = vmatmul.mubr.msk.f32.vlgmr.msra.gmra.mrb[96].mxu1 %vm773_vm7, %v8814_v15  ;;  %13236 = vmatprep.subr.bf16.mxu1 %v13235_v10 }
0x2ab9   :  { %13238 = vmatpush3.bf16.msra.mxu1 %v13235_v10 }
0x2aba   :  { %13234 = vmatpush3.bf16.msra.mxu0 %v13231_v25  ;;  %v13239_v25 = vpack.c.bf16 %v7959_v14, %v7958_v31 }
0x2abb   :  { %13244 = vmatprep.subr.bf16.mxu0 %v13243_v7 }
0x2abc   :  { %13240 = vmatprep.subr.bf16.mxu1 %v13239_v25 }
0x2abd   :  { %13242 = vmatpush3.bf16.msra.mxu1 %v13239_v25 }
0x2abe   :  { %12935 = vmatprep.subr.mxu1 %v14311_v6 }
0x2b26   :  { %v8963_v17 = vpop.f32.mrb[90].mxu1 }
0x2b27   :  { %v12871_v16 = vpop.f32.mrb[91].mxu1 }
0x2b2b   :  { %v8887_v21 = vpop.f32.mrb[90].mxu0 }
0x2b2c   :  { %v12866_v11 = vpop.f32.mrb[91].mxu0 }
0x2b7f   :  { %v9039_v3 = vpop.f32.mrb[92].mxu0 }
0x2b80   :  { %9425 = vrot.lane.b32.xlu0 %v9039_v3, %s14297_s13  ;;  %v12876_v26 = vpop.f32.mrb[93].mxu0 }
0x2b83   :  { %v9115_v48 = vpop.f32.mrb[92].mxu1 }
0x2b84   :  { %v9191_v32 = vpop.f32.mrb[94].mxu0  ;;  %9427 = vrot.lane.b32.xlu1 %v9115_v48, %s14297_s13  ;;  %v12881_v22 = vpop.f32.mrb[93].mxu1 }
0x2b85   :  { %9433 = vrot.lane.b32.xlu0 %v9191_v32, %s14281_s15  ;;  %v12886_v24 = vpop.f32.mrb[95].mxu0  ;;  %v11886_v22 = vld [vmem:[#allocation22 + $0x1] ss:$0 sm:$0xff] }
0x2b87   :  { %v9267_v50 = vpop.f32.mrb[94].mxu1 }
0x2b88   :  { %v9343_v51 = vpop.f32.mrb[96].mxu0  ;;  %9435 = vrot.lane.b32.xlu1 %v9267_v50, %s14281_s15  ;;  %v12891_v57 = vpop.f32.mrb[95].mxu1  ;;  %v11887_v50 = vld [vmem:[#allocation23 + $0x1] ss:$0 sm:$0xff] }
0x2b89   :  { %9441 = vrot.lane.b32.xlu0 %v9343_v51, %s14319_s10  ;;  %v12896_v0 = vpop.f32.mrb[97].mxu0 }
0x2b8b   :  { %v9419_v52 = vpop.f32.mrb[96].mxu1 }
0x2b8c   :  { %9443 = vrot.lane.b32.xlu1 %v9419_v52, %s14319_s10  ;;  %v12901_v53 = vpop.f32.mrb[97].mxu1 }
0x2bf2   :  { %v9426_v37 = vpop.permute.xlu0 %9425 }
0x2bf3   :  { %v9447_v44 = vsel %vm773_vm7, %v8887_v21, %v9426_v37 }
0x2bf6   :  { %v9428_v54 = vpop.permute.xlu1 %9427 }
0x2bf7   :  { %v9434_v47 = vpop.permute.xlu0 %9433  ;;  %v9448_v40 = vsel %vm773_vm7, %v8963_v17, %v9428_v54  ;;  %v11888_v54 = vld [vmem:[#allocation26 + $0x1] ss:$0 sm:$0xff] }
0x2bf8   :  { %v9449_v55 = vsel %vm555_vm2, %v9447_v44, %v9434_v47 }
0x2bfa   :  { %v9436_v49 = vpop.permute.xlu1 %9435 }
0x2bfb   :  { %v9442_v56 = vpop.permute.xlu0 %9441  ;;  %v9450_v39 = vsel %vm555_vm2, %v9448_v40, %v9436_v49 }
0x2bfc   :  { %v9451_v29 = vsel %vm2132_vm10, %v9449_v55, %v9442_v56 }
0x2bfd   :  { %12910 = vmatprep.mubr.msk.f32.mxu0 %vm675_vm5, %v9451_v29 }
0x2bfe   :  { %v9444_v33 = vpop.permute.xlu1 %9443 }
0x2bff   :  { %v9452_v34 = vsel %vm2132_vm10, %v9450_v39, %v9444_v33 }
0x2c00   :  { %12911 = vmatmul.mubr.msk.f32.vlgmr.msra.gmra.mrb[98].mxu0 %vm675_vm5, %v9452_v34 }
0x2c01   :  { %13246 = vmatpush3.bf16.msra.mxu0 %v13243_v7  ;;  %12932 = vmatprep.mubr.msk.f32.mxu0 %vm675_vm5, %v15501_v27 }
0x2c02   :  { %13248 = vmatprep.subr.bf16.mxu0 %v13247_v20 }
0x2c05   :  { %13250 = vmatpush3.bf16.msra.mxu0 %v13247_v20 }
0x2c06   :  { %12945 = vmatprep.subr.mxu0 %v14311_v6 }
0x2c08   :  { %12933 = vmatmul.mubr.msk.f32.vlgmr.msra.gmra.mrb[100].mxu0 %vm675_vm5, %v15509_v58 }
0x2c09   :  { %12947 = vmatprep.mubr.msk.f32.mxu0 %vm14313_vm6, %v14311_v6 }
0x2cd3   :  { %v12912_v63 = vpop.f32.mrb[98].mxu0 }
0x2cd4   :  { %v9537_v4 = vadd.f32 %v12912_v63, %v11883_v61  ;;  %v9531_v38 = vpop.f32.mrb[99].mxu0 }
0x2cd5   :  { %v9532_v5 = vadd.f32 %v11883_v61, %v9531_v38 }
0x2cd6   :  { %v9541_v8 = vadd.f32 %v9537_v4, %v15740_v23 }
0x2cd7   :  { %v9540_v1 = vadd.f32 %v9532_v5, %v15738_v30 }
0x2cd8   :  { %v9545_v27 = vsel %vm675_vm5, %v9541_v8, 0.0 }
0x2cd9   :  { %9546 = vadd.xlane.f32.xlu1 %v9545_v27  ;;  %v9542_v9 = vsel %vm675_vm5, %v9540_v1, 0.0 }
0x2cda   :  { %9543 = vadd.xlane.f32.xlu0 %v9542_v9 }
0x2cdb   :  { %v12934_v2 = vpop.f32.mrb[100].mxu0 }
0x2cdc   :  { %v9743_v58 = vpop.f32.mrb[101].mxu0  ;;  %v15951_v59 = vadd.f32 %v12934_v2, %v11891_v41 }
0x2cdd   :  { %v15947_v62 = vadd.f32 %v11891_v41, %v9743_v58 }
0x2cea   :  { %9768 = vrot.lane.b32.xlu1 %v15947_v62, %s14315_s9 }
0x2cee   :  { %9774 = vrot.lane.b32.xlu1 %v15951_v59, %s14314_s2 }
0x2d66   :  { %v9547_v30 = vpop.xlane.xlu1 %9546 }
0x2d67   :  { %v9549_v23 = vmul.f32 0.03125, %v9547_v30  ;;  %v9544_v43 = vpop.xlane.xlu0 %9543 }
0x2d68   :  { %v9548_v13 = vmul.f32 0.03125, %v9544_v43 }
0x2d69   :  { %v9551_v36 = vsub.f32 %v9541_v8, %v9549_v23 }
0x2d6a   :  { %v9550_v28 = vsub.f32 %v9540_v1, %v9548_v13  ;;  %v15955_v15 = vpop.permute.xlu1 %9768 }
0x2d6b   :  { %12946 = vmatpush3.xpose.msk.msra.mxu0 %vm773_vm7, %v15955_v15  ;;  %v9553_v21 = vmul.f32 %v9551_v36, %v9551_v36 }
0x2d6c   :  { %v9552_v17 = vmul.f32 %v9550_v28, %v9550_v28  ;;  %12955 = vmatprep.subr.mxu0 %v14311_v6 }
0x2d6d   :  { %v9557_v11 = vsel %vm675_vm5, %v9553_v21, 0.0 }
0x2d6e   :  { %v9554_v16 = vsel %vm675_vm5, %v9552_v17, 0.0  ;;  %v16004_v60 = vpop.permute.xlu1 %9774 }
0x2d6f   :  { %9555 = vadd.xlane.f32.xlu0 %v9554_v16 }
0x2d73   :  { %9558 = vadd.xlane.f32.xlu0 %v9557_v11 }
0x2d89   :  { %9770 = vrot.lane.b32.xlu0 %v15951_v59, %s14315_s9 }
0x2d8d   :  { %9772 = vrot.lane.b32.xlu0 %v15947_v62, %s14314_s2 }
0x2d91   :  { %9776 = vrot.lane.b32.xlu0 %v15947_v62, %s14316_s14 }
0x2dfc   :  { %v9556_v12 = vpop.xlane.xlu0 %9555 }
0x2dfd   :  { %v9560_v35 = vmul.f32 0.03125, %v9556_v12 }
0x2dff   :  { %v9562_v3 = vadd.f32 1e-05, %v9560_v35 }
0x2e00   :  { %v9559_v7 = vpop.xlane.xlu0 %9558 }
0x2e01   :  { %13562 = vrsqrt.f32 %v9562_v3  ;;  %v9561_v26 = vmul.f32 0.03125, %v9559_v7 }
0x2e03   :  { %v9563_v48 = vadd.f32 1e-05, %v9561_v26 }
0x2e04   :  { %v15991_v56 = vpop.permute.xlu0 %9770 }
0x2e05   :  { %13564 = vrsqrt.f32 %v9563_v48 }
0x2e08   :  { %v16006_v45 = vpop.permute.xlu0 %9772 }
0x2e0b   :  { %v13563_v32 = vpop.eup %13562 }
0x2e0c   :  { %v9566_v24 = vmul.f32 %v13563_v32, %v9550_v28  ;;  %v16009_v40 = vpop.permute.xlu0 %9776 }
0x2e0e   :  { %v9574_v51 = vmul.f32 %v11886_v22, %v9566_v24 }
0x2e0f   :  { %v13565_v57 = vpop.eup %13564 }
0x2e10   :  { %v9567_v0 = vmul.f32 %v13565_v57, %v9551_v36  ;;  %v15969_v52 = vadd.f32 %v11887_v50, %v9574_v51 }
0x2e12   :  { %v9575_v53 = vmul.f32 %v11886_v22, %v9567_v0  ;;  %12921 = vmatprep.mubr.msk.f32.mxu1 %vm675_vm5, %v15969_v52 }
0x2e14   :  { %v15973_v37 = vadd.f32 %v11887_v50, %v9575_v53 }
0x2e16   :  { %12922 = vmatmul.mubr.msk.f32.vlgmr.msra.gmra.mrb[98].mxu1 %vm675_vm5, %v15973_v37 }
0x2e17   :  { %12936 = vmatpush3.xpose.msk.msra.mxu1 %vm773_vm7, %v15947_v62  ;;  %12937 = vmatprep.mubr.msk.f32.mxu1 %vm14313_vm6, %v14311_v6 }
0x2e18   :  { %12940 = vmatprep.subr.mxu1 %v14311_v6 }
0x2ee9   :  { %v12923_v47 = vpop.f32.mrb[98].mxu1 }
0x2eea   :  { %v9668_v44 = vadd.f32 %v12923_v47, %v11888_v54  ;;  %v9662_v49 = vpop.f32.mrb[99].mxu1 }
0x2eeb   :  { %v9663_v55 = vadd.f32 %v11888_v54, %v9662_v49 }
0x2eec   :  { %9756 = vrot.lane.b32.xlu1 %v9668_v44, %s14315_s9 }
0x2eed   :  { %9758 = vrot.lane.b32.xlu0 %v9663_v55, %s14314_s2  ;;  %12938 = vmatmul.mubr.msk.f32.vlgmr.msra.gmra.mrb[100].mxu1 %vm773_vm7, %v9663_v55 }
0x2eee   :  { %12941 = vmatpush3.xpose.msk.msra.mxu1 %vm773_vm7, %v15951_v59  ;;  %12942 = vmatprep.mubr.msk.f32.mxu1 %vm14313_vm6, %v14311_v6 }
0x2eef   :  { %12950 = vmatprep.subr.mxu1 %v14311_v6 }
0x2ef0   :  { %9754 = vrot.lane.b32.xlu1 %v9663_v55, %s14315_s9 }
0x2ef1   :  { %9762 = vrot.lane.b32.xlu0 %v9663_v55, %s14316_s14  ;;  %12943 = vmatmul.mubr.msk.f32.vlgmr.msra.gmra.mrb[102].mxu1 %vm773_vm7, %v9668_v44 }
0x2ef2   :  { %12951 = vmatpush3.xpose.msk.msra.mxu1 %vm773_vm7, %v15991_v56  ;;  %12952 = vmatprep.mubr.msk.f32.mxu1 %vm14313_vm6, %v14311_v6 }
0x2ef3   :  { %12960 = vmatprep.subr.mxu1 %v14311_v6 }
0x2ef4   :  { %9760 = vrot.lane.b32.xlu1 %v9668_v44, %s14314_s2 }
0x2ef8   :  { %9778 = vrot.lane.b32.xlu1 %v15951_v59, %s14316_s14 }
0x2efc   :  { %9764 = vrot.lane.b32.xlu1 %v9668_v44, %s14316_s14 }
0x2f5e   :  { %v9757_v29 = vpop.permute.xlu1 %9756 }
0x2f5f   :  { %12953 = vmatmul.mubr.msk.f32.vlgmr.msra.gmra.mrb[104].mxu1 %vm773_vm7, %v9757_v29  ;;  %v9759_v33 = vpop.permute.xlu0 %9758 }
0x2f60   :  { %12961 = vmatpush3.xpose.msk.msra.mxu1 %vm773_vm7, %v16004_v60  ;;  %12962 = vmatprep.mubr.msk.f32.mxu1 %vm14313_vm6, %v14311_v6 }
0x2f61   :  { %12970 = vmatprep.subr.mxu1 %v14311_v6 }
0x2f62   :  { %v9755_v39 = vpop.permute.xlu1 %9754 }
0x2f63   :  { %12948 = vmatmul.mubr.msk.f32.vlgmr.msra.gmra.mrb[102].mxu0 %vm773_vm7, %v9755_v39  ;;  %v9763_v34 = vpop.permute.xlu0 %9762 }
0x2f64   :  { %12956 = vmatpush3.xpose.msk.msra.mxu0 %vm773_vm7, %v16006_v45  ;;  %12957 = vmatprep.mubr.msk.f32.mxu0 %vm14313_vm6, %v14311_v6 }
0x2f65   :  { %12965 = vmatprep.subr.mxu0 %v14311_v6 }
0x2f66   :  { %v9761_v20 = vpop.permute.xlu1 %9760 }
0x2f67   :  { %12958 = vmatmul.mubr.msk.f32.vlgmr.msra.gmra.mrb[104].mxu0 %vm773_vm7, %v9759_v33  ;;  %12963 = vmatmul.mubr.msk.f32.vlgmr.msra.gmra.mrb[106].mxu1 %vm773_vm7, %v9761_v20 }
0x2f68   :  { %12966 = vmatpush3.xpose.msk.msra.mxu0 %vm773_vm7, %v16009_v40  ;;  %12967 = vmatprep.mubr.msk.f32.mxu0 %vm14313_vm6, %v14311_v6 }
0x2f69   :  { %12972 = vmatprep.mubr.msk.f32.mxu1 %vm14313_vm6, %v14311_v6  ;;  %12975 = vmatprep.subr.mxu0 %v14311_v6 }
0x2f6a   :  { %v16031_v61 = vpop.permute.xlu1 %9778 }
0x2f6b   :  { %12968 = vmatmul.mubr.msk.f32.vlgmr.msra.gmra.mrb[106].mxu0 %vm773_vm7, %v9763_v34  ;;  %12971 = vmatpush3.xpose.msk.msra.mxu1 %vm773_vm7, %v16031_v61 }
0x2f6c   :  { %12980 = vmatprep.subr.mxu1 %v14311_v6  ;;  %12977 = vmatprep.mubr.msk.f32.mxu0 %vm14313_vm6, %v14311_v6 }
0x2f6e   :  { %v9765_v63 = vpop.permute.xlu1 %9764 }
0x2f6f   :  { %12973 = vmatmul.mubr.msk.f32.vlgmr.msra.gmra.mrb[108].mxu1 %vm773_vm7, %v9765_v63 }
0x2f70   :  { %12982 = vmatprep.mubr.msk.f32.mxu1 %vm14313_vm6, %v14311_v6 }
0x2fc0   :  { %v9850_v4 = vpop.f32.mrb[100].mxu1 }
0x2fc1   :  { %v10372_v38 = vmul.f32 0.35355338, %v9850_v4  ;;  %v12939_v5 = vpop.f32.mrb[101].mxu1 }
0x2fc3   :  { %v10380_v8 = vadd.f32 %v10372_v38, %v14769_v18 }
0x2fc4   :  { %v9924_v1 = vpop.f32.mrb[102].mxu1 }
0x2fc5   :  { %v10373_v27 = vmul.f32 0.35355338, %v9924_v1  ;;  %v12944_v9 = vpop.f32.mrb[103].mxu1  ;;  %v10388_v2 = vsel %vm773_vm7, %v10380_v8, -inf }
0x2fc6   :  { %10389 = vmax.xlane.f32.xlu0 %v10388_v2 }
0x2fc7   :  { %v10381_v58 = vadd.f32 %v10373_v27, %v14772_v19 }
0x2fc9   :  { %v10391_v41 = vsel %vm773_vm7, %v10381_v58, -inf }
0x2fca   :  { %10392 = vmax.xlane.f32.xlu1 %v10391_v41 }
0x3032   :  { %v10072_v30 = vpop.f32.mrb[104].mxu1 }
0x3033   :  { %v12954_v23 = vpop.f32.mrb[105].mxu1  ;;  %v10375_v28 = vmul.f32 0.35355338, %v10072_v30 }
0x3035   :  { %v10383_v10 = vadd.f32 %v10375_v28, %v14772_v19 }
0x3036   :  { %v9998_v43 = vpop.f32.mrb[102].mxu0 }
0x3037   :  { %v10374_v13 = vmul.f32 0.35355338, %v9998_v43  ;;  %v12949_v36 = vpop.f32.mrb[103].mxu0  ;;  %v10397_v48 = vsel %vm773_vm7, %v10383_v10, -inf }
0x3039   :  { %v10382_v17 = vadd.f32 %v10374_v13, %v14769_v18 }
0x303a   :  { %v10146_v16 = vpop.f32.mrb[104].mxu0  ;;  %v10220_v21 = vpop.f32.mrb[106].mxu1 }
0x303b   :  { %v10376_v11 = vmul.f32 0.35355338, %v10146_v16  ;;  %v12959_v46 = vpop.f32.mrb[105].mxu0  ;;  %v12964_v42 = vpop.f32.mrb[107].mxu1  ;;  %v10377_v31 = vmul.f32 0.35355338, %v10220_v21 }
0x303c   :  { %v10394_v14 = vsel %vm773_vm7, %v10382_v17, -inf }
0x303d   :  { %v10384_v25 = vadd.f32 %v10376_v11, %v14769_v18  ;;  %10395 = vmax.xlane.f32.xlu0 %v10394_v14  ;;  %v10385_v26 = vadd.f32 %v10377_v31, %v14772_v19 }
0x303e   :  { %v10294_v12 = vpop.f32.mrb[106].mxu0 }
0x303f   :  { %v10378_v35 = vmul.f32 0.35355338, %v10294_v12  ;;  %v12969_v3 = vpop.f32.mrb[107].mxu0  ;;  %v10400_v7 = vsel %vm773_vm7, %v10384_v25, -inf  ;;  %v10403_v57 = vsel %vm773_vm7, %v10385_v26, -inf }
0x3040   :  { %10401 = vmax.xlane.f32.xlu1 %v10400_v7 }
0x3041   :  { %v10386_v32 = vadd.f32 %v10378_v35, %v14769_v18  ;;  %10398 = vmax.xlane.f32.xlu0 %v10397_v48 }
0x3042   :  { %v10368_v22 = vpop.f32.mrb[108].mxu1 }
0x3043   :  { %v10379_v24 = vmul.f32 0.35355338, %v10368_v22  ;;  %v12974_v50 = vpop.f32.mrb[109].mxu1  ;;  %v10406_v51 = vsel %vm773_vm7, %v10386_v32, -inf }
0x3044   :  { %10407 = vmax.xlane.f32.xlu1 %v10406_v51 }
0x3045   :  { %v10387_v0 = vadd.f32 %v10379_v24, %v14772_v19  ;;  %10404 = vmax.xlane.f32.xlu0 %v10403_v57 }
0x3047   :  { %v10409_v53 = vsel %vm773_vm7, %v10387_v0, -inf }
0x3049   :  { %10410 = vmax.xlane.f32.xlu0 %v10409_v53 }
0x3053   :  { %v10390_v19 = vpop.xlane.xlu0 %10389 }
0x3054   :  { %v10412_v47 = vsub.f32 %v10380_v8, %v10390_v19 }
0x3055   :  { %10476 = vrot.lane.b32.xlu1 %v15947_v62, %s14317_s8 }
0x3056   :  { %v10420_v44 = vmul.f32 1.442695, %v10412_v47 }
0x3057   :  { %v10393_v18 = vpop.xlane.xlu1 %10392 }
0x3058   :  { %v10413_v54 = vsub.f32 %v10381_v58, %v10393_v18 }
0x3059   :  { %10628 = vrot.lane.b32.xlu1 %v15955_v15, %s14317_s8 }
0x305a   :  { %v10422_v62 = vmul.f32 1.442695, %v10413_v54 }
0x305c   :  { %13566 = vpow2.f32 %v10422_v62 }
0x305d   :  { %10704 = vrot.lane.b32.xlu1 %v15991_v56, %s14317_s8  ;;  %13568 = vpow2.f32 %v10420_v44 }
0x305f   :  { %10552 = vrot.lane.b32.xlu0 %v15951_v59, %s14317_s8 }
0x3061   :  { %10856 = vrot.lane.b32.xlu1 %v16004_v60, %s14317_s8 }
0x3063   :  { %10780 = vrot.lane.b32.xlu0 %v16006_v45, %s14317_s8 }
0x3066   :  { %v16070_v15 = vpop.eup %13566 }
0x3067   :  { %v16072_v49 = vpop.eup %13568  ;;  %v10439_v59 = vsel %vm773_vm7, %v16070_v15, 0.0 }
0x3068   :  { %v10436_v55 = vsel %vm773_vm7, %v16072_v49, 0.0 }
0x3082   :  { %10440 = vadd.xlane.f32.xlu0 %v10439_v59 }
0x3085   :  { %10437 = vadd.xlane.f32.xlu1 %v10436_v55 }
0x30ca   :  { %v10396_v56 = vpop.xlane.xlu0 %10395 }
0x30cb   :  { %v10414_v60 = vsub.f32 %v10382_v17, %v10396_v56 }
0x30cd   :  { %v10424_v45 = vmul.f32 1.442695, %v10414_v60  ;;  %v10402_v29 = vpop.xlane.xlu1 %10401 }
0x30ce   :  { %v10416_v39 = vsub.f32 %v10384_v25, %v10402_v29  ;;  %v10399_v33 = vpop.xlane.xlu0 %10398 }
0x30cf   :  { %13570 = vpow2.f32 %v10424_v45  ;;  %v10415_v20 = vsub.f32 %v10383_v10, %v10399_v33  ;;  %v7970_v33 = vld [vmem:[#allocation31 + $0x20] sm:$0xff] }
0x30d0   :  { %v10428_v34 = vmul.f32 1.442695, %v10416_v39 }
0x30d1   :  { %v10426_v63 = vmul.f32 1.442695, %v10415_v20  ;;  %v10408_v4 = vpop.xlane.xlu1 %10407  ;;  %v7971_v20 = vld [vmem:[#allocation31 + $0x28] sm:$0xff] }
0x30d2   :  { %13572 = vpow2.f32 %v10428_v34  ;;  %v10418_v38 = vsub.f32 %v10386_v32, %v10408_v4  ;;  %v10405_v5 = vpop.xlane.xlu0 %10404  ;;  %v13251_v34 = vpack.c.bf16 %v7971_v20, %v7970_v33  ;;  %v7973_v4 = vld [vmem:[#allocation31 + $0x38] sm:$0xff] }
0x30d3   :  { %13574 = vpow2.f32 %v10426_v63  ;;  %v10417_v8 = vsub.f32 %v10385_v26, %v10405_v5  ;;  %v7972_v63 = vld [vmem:[#allocation31 + $0x30] sm:$0xff] }
0x30d4   :  { %v10432_v1 = vmul.f32 1.442695, %v10418_v38  ;;  %v13255_v38 = vpack.c.bf16 %v7973_v4, %v7972_v63 }
0x30d5   :  { %v10430_v27 = vmul.f32 1.442695, %v10417_v8  ;;  %v10477_v9 = vpop.permute.xlu1 %10476 }
0x30d6   :  { %13576 = vpow2.f32 %v10432_v1  ;;  %v10411_v2 = vpop.xlane.xlu0 %10410  ;;  %12976 = vmatpush3.msra.mxu0 %v10477_v9 }
0x30d7   :  { %13578 = vpow2.f32 %v10430_v27  ;;  %v10419_v58 = vsub.f32 %v10387_v0, %v10411_v2  ;;  %12985 = vmatprep.subr.mxu0 %v14311_v6 }
0x30d9   :  { %v13571_v41 = vpop.eup %13570  ;;  %v10434_v30 = vmul.f32 1.442695, %v10419_v58  ;;  %v10629_v31 = vpop.permute.xlu1 %10628 }
0x30da   :  { %v10553_v23 = vpop.permute.xlu0 %10552  ;;  %v10442_v43 = vsel %vm773_vm7, %v13571_v41, 0.0 }
0x30db   :  { %13580 = vpow2.f32 %v10434_v30  ;;  %10443 = vadd.xlane.f32.xlu1 %v10442_v43  ;;  %12981 = vmatpush3.msra.mxu1 %v10553_v23 }
0x30dc   :  { %v13573_v13 = vpop.eup %13572  ;;  %12990 = vmatprep.subr.mxu1 %v14311_v6 }
0x30dd   :  { %v13575_v36 = vpop.eup %13574  ;;  %v10448_v28 = vsel %vm773_vm7, %v13573_v13, 0.0  ;;  %v10705_v14 = vpop.permute.xlu1 %10704 }
0x30de   :  { %v10445_v17 = vsel %vm773_vm7, %v13575_v36, 0.0  ;;  %v10781_v25 = vpop.permute.xlu0 %10780 }
0x30df   :  { %10449 = vadd.xlane.f32.xlu1 %v10448_v28  ;;  %10446 = vadd.xlane.f32.xlu0 %v10445_v17 }
0x30e0   :  { %v13577_v16 = vpop.eup %13576 }
0x30e1   :  { %v13579_v21 = vpop.eup %13578  ;;  %v10454_v11 = vsel %vm773_vm7, %v13577_v16, 0.0  ;;  %v10857_v12 = vpop.permute.xlu1 %10856 }
0x30e2   :  { %v10451_v46 = vsel %vm773_vm7, %v13579_v21, 0.0 }
0x30e3   :  { %10455 = vadd.xlane.f32.xlu1 %v10454_v11  ;;  %10452 = vadd.xlane.f32.xlu0 %v10451_v46 }
0x30e5   :  { %v16085_v42 = vpop.eup %13580 }
0x30e6   :  { %v10457_v10 = vsel %vm773_vm7, %v16085_v42, 0.0 }
0x30e7   :  { %10458 = vadd.xlane.f32.xlu0 %v10457_v10 }
0x30f4   :  { %11008 = vrot.lane.b32.xlu1 %v16031_v61, %s14317_s8 }
0x30fd   :  { %10932 = vrot.lane.b32.xlu0 %v16009_v40, %s14317_s8 }
0x310f   :  { %v10441_v35 = vpop.xlane.xlu0 %10440 }
0x3110   :  { %13582 = vrcp.f32 %v10441_v35 }
0x3112   :  { %v10438_v3 = vpop.xlane.xlu1 %10437 }
0x3113   :  { %13584 = vrcp.f32 %v10438_v3 }
0x311a   :  { %v13583_v7 = vpop.eup %13582 }
0x311b   :  { %v10469_v26 = vmul.f32 %v13583_v7, %v16070_v15 }
0x311d   :  { %v13585_v48 = vpop.eup %13584  ;;  %12983 = vmatmul.mubr.msk.f32.vlgmr.msra.gmra.mrb[110].mxu1 %vm773_vm7, %v10469_v26 }
0x311e   :  { %v10468_v32 = vmul.f32 %v13585_v48, %v16072_v49  ;;  %12991 = vmatpush3.msra.mxu1 %v10705_v14  ;;  %12992 = vmatprep.mubr.msk.f32.mxu1 %vm14313_vm6, %v14311_v6 }
0x311f   :  { %13000 = vmatprep.subr.mxu1 %v14311_v6 }
0x3120   :  { %12978 = vmatmul.mubr.msk.f32.vlgmr.msra.gmra.mrb[108].mxu0 %vm773_vm7, %v10468_v32 }
0x3121   :  { %12986 = vmatpush3.msra.mxu0 %v10629_v31  ;;  %12987 = vmatprep.mubr.msk.f32.mxu0 %vm14313_vm6, %v14311_v6 }
0x3122   :  { %12995 = vmatprep.subr.mxu0 %v14311_v6 }
0x3168   :  { %v10444_v40 = vpop.xlane.xlu1 %10443 }
0x3169   :  { %13586 = vrcp.f32 %v10444_v40 }
0x316c   :  { %v10450_v61 = vpop.xlane.xlu1 %10449  ;;  %v10447_v22 = vpop.xlane.xlu0 %10446 }
0x316d   :  { %13588 = vrcp.f32 %v10450_v61 }
0x316e   :  { %13590 = vrcp.f32 %v10447_v22 }
0x3170   :  { %v10456_v24 = vpop.xlane.xlu1 %10455  ;;  %v10453_v50 = vpop.xlane.xlu0 %10452 }
0x3171   :  { %13592 = vrcp.f32 %v10456_v24 }
0x3172   :  { %13594 = vrcp.f32 %v10453_v50 }
0x3173   :  { %v13587_v51 = vpop.eup %13586 }
0x3174   :  { %v10470_v57 = vmul.f32 %v13587_v51, %v13571_v41  ;;  %v10459_v0 = vpop.xlane.xlu0 %10458  ;;  %v11009_v55 = vpop.permute.xlu1 %11008 }
0x3175   :  { %13596 = vrcp.f32 %v10459_v0 }
0x3176   :  { %12988 = vmatmul.mubr.msk.f32.vlgmr.msra.gmra.mrb[110].mxu0 %vm773_vm7, %v10470_v57 }
0x3177   :  { %v13589_v53 = vpop.eup %13588  ;;  %12996 = vmatpush3.msra.mxu0 %v10781_v25  ;;  %12997 = vmatprep.mubr.msk.f32.mxu0 %vm14313_vm6, %v14311_v6  ;;  %v11918_v25 = vld [vmem:[#allocation32 + $0x1] ss:$0 sm:$0xff] }
0x3178   :  { %v13591_v18 = vpop.eup %13590  ;;  %v10472_v19 = vmul.f32 %v13589_v53, %v13573_v13  ;;  %v10933_v54 = vpop.permute.xlu0 %10932  ;;  %13005 = vmatprep.subr.mxu0 %v14311_v6 }
0x3179   :  { %v10471_v47 = vmul.f32 %v13591_v18, %v13575_v36  ;;  %v11844_v18 = vld [vmem:[%s16251_s12 + $0x20] sm:$0xff] }
0x317a   :  { %12998 = vmatmul.mubr.msk.f32.vlgmr.msra.gmra.mrb[112].mxu0 %vm773_vm7, %v10472_v19  ;;  %v11845_v19 = vld [vmem:[%s16251_s12 + $0x28] sm:$0xff] }
0x317b   :  { %v13593_v62 = vpop.eup %13592  ;;  %12993 = vmatmul.mubr.msk.f32.vlgmr.msra.gmra.mrb[112].mxu1 %vm773_vm7, %v10471_v47  ;;  %13006 = vmatpush3.msra.mxu0 %v10933_v54  ;;  %v13259_v54 = vpack.c.bf16 %v11845_v19, %v11844_v18  ;;  %v11846_v47 = vld [vmem:[%s16251_s12 + $0x30] sm:$0xff]  ;;  %v11468_v18 = vld [vmem:[%s14524_s21 + $0x18] sm:$0xff] }
0x317c   :  { %v13595_v44 = vpop.eup %13594  ;;  %v10474_v15 = vmul.f32 %v13593_v62, %v13577_v16  ;;  %13001 = vmatpush3.msra.mxu1 %v10857_v12  ;;  %13002 = vmatprep.mubr.msk.f32.mxu1 %vm14313_vm6, %v14311_v6  ;;  %v11847_v62 = vld [vmem:[%s16251_s12 + $0x38] sm:$0xff] }
0x317d   :  { %v10473_v49 = vmul.f32 %v13595_v44, %v13579_v21  ;;  %13007 = vmatprep.mubr.msk.f32.mxu0 %vm14313_vm6, %v14311_v6  ;;  %13010 = vmatprep.subr.mxu1 %v14311_v6  ;;  %v13263_v44 = vpack.c.bf16 %v11847_v62, %v11846_v47 }
0x317e   :  { %13008 = vmatmul.mubr.msk.f32.vlgmr.msra.gmra.mrb[114].mxu0 %vm773_vm7, %v10474_v15  ;;  %13252 = vmatprep.subr.bf16.mxu0 %v13251_v34  ;;  %v11848_v15 = vld [vmem:[%s16252_s23 + $0x40] sm:$0xff] }
0x317f   :  { %v13597_v59 = vpop.eup %13596  ;;  %13003 = vmatmul.mubr.msk.f32.vlgmr.msra.gmra.mrb[114].mxu1 %vm773_vm7, %v10473_v49  ;;  %13254 = vmatpush3.bf16.msra.mxu0 %v13251_v34  ;;  %v11849_v49 = vld [vmem:[%s16252_s23 + $0x48] sm:$0xff] }
0x3180   :  { %v10475_v56 = vmul.f32 %v13597_v59, %v16085_v42  ;;  %13011 = vmatpush3.msra.mxu1 %v11009_v55  ;;  %13012 = vmatprep.mubr.msk.f32.mxu1 %vm14313_vm6, %v14311_v6  ;;  %v11850_v59 = vld [vmem:[%s16252_s23 + $0x50] sm:$0xff]  ;;  %v13267_v55 = vpack.c.bf16 %v11849_v49, %v11848_v15 }
0x3181   :  { %13256 = vmatprep.subr.bf16.mxu0 %v13255_v38  ;;  %13260 = vmatprep.subr.bf16.mxu1 %v13259_v54 }
0x3183   :  { %13013 = vmatmul.mubr.msk.f32.vlgmr.msra.gmra.mrb[116].mxu1 %vm773_vm7, %v10475_v56  ;;  %13258 = vmatpush3.bf16.msra.mxu0 %v13255_v38  ;;  %v11851_v56 = vld [vmem:[%s16252_s23 + $0x58] sm:$0xff] }
0x3184   :  { %13262 = vmatpush3.bf16.msra.mxu1 %v13259_v54  ;;  %13268 = vmatprep.subr.bf16.mxu0 %v13267_v55 }
0x3185   :  { %13264 = vmatprep.subr.bf16.mxu1 %v13263_v44 }
0x3188   :  { %13266 = vmatpush3.bf16.msra.mxu1 %v13263_v44 }
0x31f0   :  { %v10624_v60 = vpop.f32.mrb[110].mxu1 }
0x31f1   :  { %v12984_v45 = vpop.f32.mrb[111].mxu1 }
0x31f2   :  { %v11852_v45 = vld [vmem:[%s16252_s23 + $0x60] sm:$0xff] }
0x31f3   :  { %v10548_v29 = vpop.f32.mrb[108].mxu0 }
0x31f4   :  { %v12979_v39 = vpop.f32.mrb[109].mxu0 }
0x3249   :  { %v10700_v5 = vpop.f32.mrb[110].mxu0 }
0x324a   :  { %v12989_v8 = vpop.f32.mrb[111].mxu0  ;;  %11086 = vrot.lane.b32.xlu0 %v10700_v5, %s14297_s13 }
0x324b   :  { %v11921_v8 = vld [vmem:[#allocation34 + $0x1] ss:$0 sm:$0xff] }
0x324d   :  { %v10852_v6 = vpop.f32.mrb[112].mxu0 }
0x324e   :  { %v10776_v1 = vpop.f32.mrb[112].mxu1  ;;  %11094 = vrot.lane.b32.xlu0 %v10852_v6, %s14281_s15  ;;  %v12999_v27 = vpop.f32.mrb[113].mxu0 }
0x324f   :  { %11088 = vrot.lane.b32.xlu1 %v10776_v1, %s14297_s13  ;;  %v12994_v9 = vpop.f32.mrb[113].mxu1  ;;  %v11922_v1 = vld [vmem:[#allocation35 + $0x1] ss:$0 sm:$0xff] }
0x3251   :  { %v11004_v2 = vpop.f32.mrb[114].mxu0 }
0x3252   :  { %v10928_v58 = vpop.f32.mrb[114].mxu1  ;;  %11102 = vrot.lane.b32.xlu0 %v11004_v2, %s14319_s10  ;;  %v13009_v41 = vpop.f32.mrb[115].mxu0 }
0x3253   :  { %11096 = vrot.lane.b32.xlu1 %v10928_v58, %s14281_s15  ;;  %v13004_v30 = vpop.f32.mrb[115].mxu1 }
0x3256   :  { %v11080_v23 = vpop.f32.mrb[116].mxu1 }
0x3257   :  { %11104 = vrot.lane.b32.xlu1 %v11080_v23, %s14319_s10  ;;  %v13014_v43 = vpop.f32.mrb[117].mxu1  ;;  %v11854_v23 = vld [vmem:[%s16252_s23 + $0x70] sm:$0xff] }
0x3258   :  { %v11855_v43 = vld [vmem:[%s16252_s23 + $0x78] sm:$0xff] }
0x32bc   :  { %v11087_v13 = vpop.permute.xlu0 %11086 }
0x32bd   :  { %v11108_v17 = vsel %vm773_vm7, %v10548_v29, %v11087_v13  ;;  %v11853_v29 = vld [vmem:[%s16252_s23 + $0x68] sm:$0xff]  ;;  %v13279_v13 = vpack.c.bf16 %v11855_v43, %v11854_v23 }
0x32be   :  { %v13275_v39 = vpack.c.bf16 %v11853_v29, %v11852_v45  ;;  %v11930_v29 = vld [vmem:[#allocation41 + $0x1] ss:$0 sm:$0xff] }
0x32c0   :  { %v11095_v36 = vpop.permute.xlu0 %11094 }
0x32c1   :  { %v11089_v28 = vpop.permute.xlu1 %11088  ;;  %v11110_v16 = vsel %vm555_vm2, %v11108_v17, %v11095_v36  ;;  %v11923_v36 = vld [vmem:[#allocation37 + $0x1] ss:$0 sm:$0xff] }
0x32c2   :  { %v11109_v42 = vsel %vm773_vm7, %v10624_v60, %v11089_v28  ;;  %v13271_v60 = vpack.c.bf16 %v11851_v56, %v11850_v59 }
0x32c4   :  { %v11103_v21 = vpop.permute.xlu0 %11102 }
0x32c5   :  { %v11097_v11 = vpop.permute.xlu1 %11096  ;;  %v11112_v46 = vsel %vm2132_vm10, %v11110_v16, %v11103_v21 }
0x32c6   :  { %13023 = vmatprep.mubr.msk.f32.mxu0 %vm675_vm5, %v11112_v46  ;;  %v11111_v10 = vsel %vm555_vm2, %v11109_v42, %v11097_v11  ;;  %v11926_v42 = vld [vmem:[#allocation38 + $0x1] ss:$0 sm:$0xff] }
0x32c9   :  { %v11105_v31 = vpop.permute.xlu1 %11104 }
0x32ca   :  { %v11113_v14 = vsel %vm2132_vm10, %v11111_v10, %v11105_v31 }
0x32cb   :  { %13024 = vmatmul.mubr.msk.f32.vlgmr.msra.gmra.mrb[116].mxu0 %vm675_vm5, %v11113_v14 }
0x32cc   :  { %13270 = vmatpush3.bf16.msra.mxu0 %v13267_v55  ;;  %v11929_v55 = vld [vmem:[#allocation40 + $0x1] ss:$0 sm:$0xff] }
0x32cd   :  { %13272 = vmatprep.subr.bf16.mxu0 %v13271_v60 }
0x32d0   :  { %13274 = vmatpush3.bf16.msra.mxu0 %v13271_v60 }
0x32d1   :  { %13276 = vmatprep.subr.bf16.mxu0 %v13275_v39 }
0x32d4   :  { %13278 = vmatpush3.bf16.msra.mxu0 %v13275_v39 }
0x32d5   :  { %13280 = vmatprep.subr.bf16.mxu0 %v13279_v13 }
0x32d8   :  { %13282 = vmatpush3.bf16.msra.mxu0 %v13279_v13 }
0x339e   :  { %v13025_v12 = vpop.f32.mrb[116].mxu0 }
0x339f   :  { %v11198_v35 = vadd.f32 %v13025_v12, %v11918_v25  ;;  %v11192_v3 = vpop.f32.mrb[117].mxu0 }
0x33a0   :  { %v11193_v7 = vadd.f32 %v11918_v25, %v11192_v3 }
0x33a1   :  { %v11202_v26 = vadd.f32 %v11198_v35, %v15973_v37 }
0x33a2   :  { %v11201_v48 = vadd.f32 %v11193_v7, %v15969_v52 }
0x33a3   :  { %v11206_v32 = vsel %vm675_vm5, %v11202_v26, 0.0 }
0x33a4   :  { %11207 = vadd.xlane.f32.xlu1 %v11206_v32  ;;  %v11203_v40 = vsel %vm675_vm5, %v11201_v48, 0.0 }
0x33a5   :  { %11204 = vadd.xlane.f32.xlu0 %v11203_v40 }
0x3431   :  { %v11208_v61 = vpop.xlane.xlu1 %11207 }
0x3432   :  { %v11210_v22 = vmul.f32 0.03125, %v11208_v61  ;;  %v11205_v24 = vpop.xlane.xlu0 %11204 }
0x3433   :  { %v11209_v50 = vmul.f32 0.03125, %v11205_v24 }
0x3434   :  { %v11212_v51 = vsub.f32 %v11202_v26, %v11210_v22 }
0x3435   :  { %v11211_v57 = vsub.f32 %v11201_v48, %v11209_v50 }
0x3436   :  { %v11214_v37 = vmul.f32 %v11212_v51, %v11212_v51 }
0x3437   :  { %v11213_v0 = vmul.f32 %v11211_v57, %v11211_v57 }
0x3438   :  { %v11218_v53 = vsel %vm675_vm5, %v11214_v37, 0.0 }
0x3439   :  { %v11215_v52 = vsel %vm675_vm5, %v11213_v0, 0.0  ;;  %v11465_v0 = vld [vmem:[%s14524_s21] sm:$0xff] }
0x343a   :  { %11216 = vadd.xlane.f32.xlu0 %v11215_v52  ;;  %v11466_v52 = vld [vmem:[%s14524_s21 + $0x8] sm:$0xff] }
0x343b   :  { %v13283_v37 = vpack.c.bf16 %v11466_v52, %v11465_v0 }
0x343d   :  { %13284 = vmatprep.subr.bf16.mxu1 %v13283_v37 }
0x343e   :  { %11219 = vadd.xlane.f32.xlu0 %v11218_v53  ;;  %v11467_v53 = vld [vmem:[%s14524_s21 + $0x10] sm:$0xff]  ;;  %s14320_s21 = smov [#allocation43]  }
0x343f   :  { %v13287_v19 = vpack.c.bf16 %v11468_v18, %v11467_v53 }
0x34c7   :  { %v11217_v33 = vpop.xlane.xlu0 %11216 }
0x34c8   :  { %v11221_v20 = vmul.f32 0.03125, %v11217_v33 }
0x34ca   :  { %v11223_v34 = vadd.f32 1e-05, %v11221_v20 }
0x34cb   :  { %v11220_v63 = vpop.xlane.xlu0 %11219 }
0x34cc   :  { %13598 = vrsqrt.f32 %v11223_v34  ;;  %v11222_v4 = vmul.f32 0.03125, %v11220_v63  ;;  %v11931_v63 = vld [vmem:[%s14529_s19] ss:$0 sm:$0xff]  ;;  %s11588_s19 = sshll.u32 %s14320_s21, 4  ;;  %s11589_s19 = int_to_ptr.vmem [resolvable:$true] %s11588_s19 }
0x34cd   :  { %s14187_s15 = scalar_lea.vmem %s11589_s19, 256  ;;  %p14192_p13 = scmp.lt.s32.totalorder %s11589_s19, %s11589_s19 }
0x34ce   :  { %v11224_v38 = vadd.f32 1e-05, %v11222_v4  ;;  %p14188_p12 = scmp.ne.s32.totalorder %s11589_s19, %s14187_s15  ;;  %p14193_p0 = scmp.lt.s32.totalorder %s14187_s15, %s14187_s15 }
0x34d0   :  { %13600 = vrsqrt.f32 %v11224_v38  ;;  %p14194_p1 = por %p14193_p0, %p14192_p13 }
0x34d2   :  { %p14195_p2 = pnand %p14194_p1, %p14188_p12 }
0x34d6   :  { %v13599_v5 = vpop.eup %13598 }
0x34d7   :  { %v11227_v6 = vmul.f32 %v13599_v5, %v11211_v57 }
0x34d9   :  { %v11235_v27 = vmul.f32 %v11921_v8, %v11227_v6 }
0x34da   :  { %v13601_v9 = vpop.eup %13600 }
0x34db   :  { %v11228_v2 = vmul.f32 %v13601_v9, %v11212_v51  ;;  %v11243_v58 = vadd.f32 %v11922_v1, %v11235_v27 }
0x34dd   :  { %v11236_v41 = vmul.f32 %v11921_v8, %v11228_v2  ;;  %13034 = vmatprep.mubr.msk.f32.mxu1 %vm675_vm5, %v11243_v58 }
0x34df   :  { %v11244_v30 = vadd.f32 %v11922_v1, %v11236_v41 }
0x34e1   :  { %13035 = vmatmul.mubr.msk.f32.vlgmr.msra.gmra.mrb[118].mxu1 %vm675_vm5, %v11244_v30 }
0x34e2   :  { %13286 = vmatpush3.bf16.msra.mxu1 %v13283_v37 }
0x34e3   :  { %13288 = vmatprep.subr.bf16.mxu1 %v13287_v19 }
0x34e6   :  { %13290 = vmatpush3.bf16.msra.mxu1 %v13287_v19 }
0x35b4   :  { %v13036_v28 = vpop.f32.mrb[118].mxu1 }
0x35b5   :  { %v11329_v17 = vadd.f32 %v13036_v28, %v11923_v36  ;;  %v11323_v16 = vpop.f32.mrb[119].mxu1 }
0x35b6   :  { %v11324_v21 = vadd.f32 %v11923_v36, %v11323_v16 }
0x35b7   :  { %v11333_v46 = vmax.f32 %v11329_v17, 0.0 }
0x35b8   :  { %v11332_v11 = vmax.f32 %v11324_v21, 0.0 }
0x35ba   :  { %13053 = vmatprep.mubr.msk.f32.mxu0 %vm2362_vm11, %v11332_v11 }
0x35bb   :  { %13054 = vmatmul.mubr.msk.f32.vlgmr.msra.gmra.mrb[118].mxu0 %vm2362_vm11, %v11333_v46 }
0x368e   :  { %v13055_v10 = vpop.f32.mrb[118].mxu0 }
0x368f   :  { %v11418_v31 = vadd.f32 %v13055_v10, %v11926_v42  ;;  %v11412_v14 = vpop.f32.mrb[119].mxu0 }
0x3690   :  { %v11413_v25 = vadd.f32 %v11926_v42, %v11412_v14 }
0x3691   :  { %v11422_v12 = vadd.f32 %v11418_v31, %v11244_v30 }
0x3692   :  { %v11421_v35 = vadd.f32 %v11413_v25, %v11243_v58 }
0x3693   :  { %v11426_v3 = vsel %vm675_vm5, %v11422_v12, 0.0 }
0x3694   :  { %11427 = vadd.xlane.f32.xlu0 %v11426_v3  ;;  %v11423_v7 = vsel %vm675_vm5, %v11421_v35, 0.0 }
0x3695   :  { %11424 = vadd.xlane.f32.xlu1 %v11423_v7 }
0x3721   :  { %v11428_v26 = vpop.xlane.xlu0 %11427 }
0x3722   :  { %v11430_v48 = vmul.f32 0.03125, %v11428_v26  ;;  %v11425_v32 = vpop.xlane.xlu1 %11424 }
0x3723   :  { %v11429_v40 = vmul.f32 0.03125, %v11425_v32 }
0x3724   :  { %v11432_v61 = vsub.f32 %v11422_v12, %v11430_v48 }
0x3725   :  { %v11431_v22 = vsub.f32 %v11421_v35, %v11429_v40 }
0x3726   :  { %v11434_v24 = vmul.f32 %v11432_v61, %v11432_v61 }
0x3727   :  { %v11433_v50 = vmul.f32 %v11431_v22, %v11431_v22 }
0x3728   :  { %v11438_v51 = vsel %vm675_vm5, %v11434_v24, 0.0 }
0x3729   :  { %11439 = vadd.xlane.f32.xlu0 %v11438_v51  ;;  %v11435_v57 = vsel %vm675_vm5, %v11433_v50, 0.0 }
0x372a   :  { %11436 = vadd.xlane.f32.xlu1 %v11435_v57 }
0x37b6   :  { %v11440_v54 = vpop.xlane.xlu0 %11439 }
0x37b7   :  { %v11442_v47 = vmul.f32 0.03125, %v11440_v54  ;;  %v11437_v62 = vpop.xlane.xlu1 %11436 }
0x37b8   :  { %v11441_v44 = vmul.f32 0.03125, %v11437_v62 }
0x37b9   :  { %v11444_v15 = vadd.f32 1e-05, %v11442_v47 }
0x37ba   :  { %v11443_v49 = vadd.f32 1e-05, %v11441_v44 }
0x37bb   :  { %13602 = vrsqrt.f32 %v11444_v15 }
0x37bc   :  { %13604 = vrsqrt.f32 %v11443_v49 }
0x37c5   :  { %v13603_v59 = vpop.eup %13602 }
0x37c6   :  { %v13605_v56 = vpop.eup %13604  ;;  %v11448_v60 = vmul.f32 %v13603_v59, %v11432_v61 }
0x37c7   :  { %v11447_v45 = vmul.f32 %v13605_v56, %v11431_v22 }
0x37c8   :  { %v11456_v39 = vmul.f32 %v11929_v55, %v11448_v60 }
0x37c9   :  { %v11455_v33 = vmul.f32 %v11929_v55, %v11447_v45 }
0x37ca   :  { %v11464_v34 = vadd.f32 %v11930_v29, %v11456_v39 }
0x37cb   :  { %v11463_v20 = vadd.f32 %v11930_v29, %v11455_v33 }
0x37cd   :  { %13064 = vmatprep.mubr.msk.f32.mxu1 %vm675_vm5, %v11463_v20 }
0x37ce   :  { %13065 = vmatmul.mubr.msk.f32.vlgmr.msra.gmra.mrb[120].mxu1 %vm675_vm5, %v11464_v34 }
0x38a1   :  { %v13066_v4 = vpop.f32.mrb[120].mxu1 }
0x38a2   :  { %v11554_v38 = vadd.f32 %v13066_v4, %v11931_v63  ;;  %v11548_v5 = vpop.f32.mrb[121].mxu1 }
0x38a3   :  { %v11549_v8 = vadd.f32 %v11931_v63, %v11548_v5 }
0x38a4   :  { %v11560_v6 = vsel %vm555_vm2, %v11554_v38, -inf }
0x38a5   :  { %11561 = vmax.xlane.f32.xlu0 %v11560_v6  ;;  %v11557_v1 = vsel %vm555_vm2, %v11549_v8, -inf }
0x38a6   :  { %11558 = vmax.xlane.f32.xlu1 %v11557_v1 }
0x3932   :  { %v11562_v27 = vpop.xlane.xlu0 %11561 }
0x3933   :  { %v11564_v9 = vsub.f32 %v11554_v38, %v11562_v27  ;;  %v11559_v2 = vpop.xlane.xlu1 %11558 }
0x3934   :  { %v11563_v58 = vsub.f32 %v11549_v8, %v11559_v2 }
0x3935   :  { %v11567_v41 = vmul.f32 1.442695, %v11564_v9 }
0x3936   :  { %v11565_v30 = vmul.f32 1.442695, %v11563_v58 }
0x3937   :  { %13606 = vpow2.f32 %v11567_v41 }
0x3938   :  { %13608 = vpow2.f32 %v11565_v30 }
0x3941   :  { %v13607_v23 = vpop.eup %13606 }
0x3942   :  { %v13609_v43 = vpop.eup %13608  ;;  %v11572_v13 = vsel %vm555_vm2, %v13607_v23, 0.0 }
0x3943   :  { %11573 = vadd.xlane.f32.xlu0 %v11572_v13  ;;  %v11569_v36 = vsel %vm555_vm2, %v13609_v43, 0.0 }
0x3944   :  { %11570 = vadd.xlane.f32.xlu1 %v11569_v36 }
0x39d0   :  { %v11574_v28 = vpop.xlane.xlu0 %11573 }
0x39d1   :  { %13610 = vlog2.f32 %v11574_v28  ;;  %v11571_v17 = vpop.xlane.xlu1 %11570 }
0x39d2   :  { %13612 = vlog2.f32 %v11571_v17 }
0x39db   :  { %v13611_v16 = vpop.eup %13610 }
0x39dc   :  { %v13613_v21 = vpop.eup %13612  ;;  %v11578_v11 = vmul.f32 0.6931472, %v13611_v16 }
0x39dd   :  { %v11576_v46 = vmul.f32 0.6931472, %v13613_v21 }
0x39de   :  { %v11580_v42 = vsub.f32 %v11564_v9, %v11578_v11 }
0x39df   :  { %v11579_v10 = vsub.f32 %v11563_v58, %v11576_v46 }
0x39e0   :  { %11582 = vst.msk [vmem:[#allocation43 + $0x8] sm:$0xff] %vm555_vm2, %v11580_v42 }
0x39e1   :  { %11581 = vst.msk [vmem:[#allocation43] sm:$0xff] %vm555_vm2, %v11579_v10 }
0x39e2   :  { %14198 = shalt.err (!%p14195_p2)
}
0x39e3   :  { %s14199_s25 = scalar_lea.hbm %s14534_s4, 256 }
0x39e4   :  { %p14200_p3 = scmp.ne.s32.totalorder %s14534_s4, %s14199_s25  ;;  %p14203_p4 = scmp.lt.u32.totalorder %s14199_s25, %s14534_s4 }
0x39e6   :  { %p14205_p5 = pnand %p14203_p4, %p14200_p3 }
0x39e8   :  { %14208 = shalt.err (!%p14205_p5)
}
0x39e9   :  { %11594 = dma.vmem_to_hbm [thread:$0]  %s11589_s19, 256, %s14534_s4, [#allocation4], %s14296_s11, %s14296_s11, %s14297_s13  }
0x39ea   :  { %14237 = dma.done.wait [#allocation4], 256  }
0x39eb   :  { %14238 = vsyncadd [#allocation4], 4294967040 }
0x39ec   :  { %11598 = vsyncpa [#allocation3], 1 }
0x39ed   :  { %11599 = vsyncpa [#allocation6], 1 }
0x39ee   :  { %11600 = vsyncpa [#allocation9], 1 }
0x39ef   :  { %11601 = vsyncpa [#allocation12], 1 }
0x39f0   :  { %11602 = vsyncpa [#allocation15], 1 }
0x39f1   :  { %11603 = vsyncpa [#allocation18], 1 }
0x39f2   :  { %11604 = vsyncpa [#allocation21], 1 }
0x39f3   :  { %11605 = vsyncpa [#allocation24], 1 }
0x39f4   :  { %11606 = vsyncpa [#allocation27], 1 }
0x39f5   :  { %11607 = vsyncpa [#allocation30], 1 }
0x39f6   :  { %11608 = vsyncpa [#allocation33], 1 }
0x39f7   :  { %11609 = vsyncpa [#allocation36], 1 }
0x39f8   :  { %11610 = vsyncpa [#allocation39], 1 }
0x39f9   :  { %11611 = vsyncpa [#allocation42], 1 }
0x39fa   :  { %11612 = vsyncpa [#allocation4], 1 }

</bundles_post_ra>
